<compile_context>
chip_gen: v6e
topology: v6e:2x2x1
jax: 0.10.0
libtpu: 0.0.40
codegen_flags: <defaults>
</compile_context>

<pallas_src>
import functools
from itertools import combinations

import numpy as np
import jax
import jax.numpy as jnp
from jax.experimental import pallas as pl
from jax.experimental.pallas import tpu as pltpu


# ---------------------------------------------------------------------------
# Geometric-algebra tables for G(3,0,1) (projective GA): e0^2 = 0, e1..e3^2 = +1
# ---------------------------------------------------------------------------
def _build_ga_tables():
    gens = (0, 1, 2, 3)
    blades = []
    for g in range(5):
        blades.extend(combinations(gens, g))
    bits = [sum(1 << g for g in b) for b in blades]
    b2i = {bb: i for i, bb in enumerate(bits)}
    grades = [len(b) for b in blades]

    def reorder_sign(a, b):
        a >>= 1
        s = 0
        while a:
            s += bin(a & b).count("1")
            a >>= 1
        return -1.0 if (s & 1) else 1.0

    G = np.zeros((16, 16, 16), np.float32)     # geometric product: e_i e_j = sum_k G[i,j,k] e_k
    Wdg = np.zeros((16, 16, 16), np.float32)   # wedge product
    for i, bi in enumerate(bits):
        for j, bj in enumerate(bits):
            sgn = reorder_sign(bi, bj)
            k = b2i[bi ^ bj]
            common = bi & bj
            if common == 0:
                Wdg[i, j, k] = sgn
                G[i, j, k] = sgn
            elif not (common & 1):             # shared e1/e2/e3 square to +1; shared e0 -> 0
                G[i, j, k] = sgn

    # right complement ("dual"): e_i ^ dual(e_i) = e0123
    dual_idx = np.zeros(16, np.int32)
    dual_sgn = np.zeros(16, np.float32)
    for i, bi in enumerate(bits):
        ci = 0b1111 ^ bi
        dual_idx[i] = b2i[ci]
        dual_sgn[i] = reorder_sign(bi, ci)

    # join(x, y) = undual(dual(x) ^ dual(y))
    J = np.zeros((16, 16, 16), np.float32)
    for i in range(16):
        for j in range(16):
            di, si = int(dual_idx[i]), dual_sgn[i]
            dj, sj = int(dual_idx[j]), dual_sgn[j]
            for m in range(16):
                w = Wdg[di, dj, m]
                if w != 0.0:
                    k = int(dual_idx[m])
                    J[i, j, k] += si * sj * w * dual_sgn[k]

    # 9 Pin(3,0,1)-equivariant linear maps: 5 grade projections + (e0 * grade_g), g=0..3
    basis = np.zeros((9, 16, 16), np.float32)
    for i, g in enumerate(grades):
        basis[g, i, i] = 1.0
    e0 = b2i[1]
    for g in range(4):
        for j, gj in enumerate(grades):
            if gj != g:
                continue
            for k in range(16):
                if G[e0, j, k] != 0.0:
                    basis[5 + g, k, j] = G[e0, j, k]

    no_e0_mask = np.array([0.0 if (bb & 1) else 1.0 for bb in bits], np.float32)
    return G, J, basis, no_e0_mask


def _gelu_tanh(x):
    # TODO(synk): original scaler_gated_gelu uses exact (erf) GELU; tanh approximation used here.
    c = 0.7978845608028654  # sqrt(2/pi)
    return 0.5 * x * (1.0 + jnp.tanh(c * (x + 0.044715 * x * x * x)))


# ---------------------------------------------------------------------------
# Pallas kernel: full GeneratorMLP forward for one tile of rows (rows = flattened B*N)
# ---------------------------------------------------------------------------
def _generator_mlp_kernel(x_ref, rp_ref,
                          m1_ref, b1_ref, pcat_ref, gcat_ref, jcat_ref,
                          m2_ref, b2_ref, sels_ref, exps_ref,
                          m3_ref, b3_ref, mask_ref, wn_ref,
                          o_ref, *, n_channels, d_half, n_blade_chunk, eps):
    bf16 = jnp.bfloat16
    f32 = jnp.float32

    x = x_ref[...]                                   # (T, C*16)  f32
    rp = rp_ref[...]                                 # (T, 1)     f32  (hoisted equi-join scale)
    T = x.shape[0]

    # EquiRMSNorm: per-channel GA squared norm (e0-free blades), mean over channels (f32).
    # TODO(synk): EquiRMSNorm convention reconstructed (non-degenerate inner product, unit gain).
    sq = jnp.sum(x * x * mask_ref[...], axis=-1, keepdims=True) * (1.0 / n_channels)
    xn = x * jax.lax.rsqrt(sq + eps) * wn_ref[...]

    # GeneratorBilinear.proj_bili (equi_linear folded into one flat bf16 matmul, f32 accum)
    y = jnp.dot(xn.astype(bf16), m1_ref[...], preferred_element_type=f32) + b1_ref[...]
    lg = y[:, 0 * d_half:1 * d_half].astype(bf16)
    rg = y[:, 1 * d_half:2 * d_half].astype(bf16)
    lj = y[:, 2 * d_half:3 * d_half].astype(bf16)
    rj = y[:, 3 * d_half:4 * d_half].astype(bf16)

    # Merge the two blade-broadcast matmuls: [lg ; lj] row-stacked -> one LHS per chunk.
    lglj = jnp.concatenate([lg, lj], axis=0)         # (2T, d_half)  bf16

    # Geometric product & equivariant join, blade-chunked:
    #   pb[:, i*d_half + c*16 + m] = lg/lj[:, c*16 + i]                (per-blade broadcast)
    #   gb[:, i*d_half + c*16 + k] = sum_j G[i,j,k] * rg[:, c*16 + j]  (structure constants)
    # chunk intermediates are exact signed copies of bf16 inputs -> truncate to bf16, widen
    # to f32 only in the lane-aligned slice-multiply-accumulate (VPU).
    cw = n_blade_chunk * d_half
    gp = jnp.zeros((T, d_half), f32)
    jn = jnp.zeros((T, d_half), f32)
    for c in range(16 // n_blade_chunk):
        c0, c1 = c * cw, (c + 1) * cw
        pb = jnp.dot(lglj, pcat_ref[:, c0:c1], preferred_element_type=f32).astype(bf16)
        gb = jnp.dot(rg, gcat_ref[:, c0:c1], preferred_element_type=f32).astype(bf16)
        jb = jnp.dot(rj, jcat_ref[:, c0:c1], preferred_element_type=f32).astype(bf16)
        for b in range(n_blade_chunk):
            sl = slice(b * d_half, (b + 1) * d_half)
            gp = gp + pb[:T, sl].astype(f32) * gb[:, sl].astype(f32)
            jn = jn + pb[T:, sl].astype(f32) * jb[:, sl].astype(f32)

    jn = jn * rp                                     # equi_join reference scaling (f32)

    # GeneratorBilinear.proj_next: lane-concat gp|jn and run one full-depth (K=2*d_half) matmul.
    gpjn = jnp.concatenate([gp, jn], axis=-1).astype(bf16)       # (T, 2*d_half)
    h = jnp.dot(gpjn, m2_ref[...], preferred_element_type=f32) + b2_ref[...]   # (T, C*16) f32

    # scalar-gated GELU: select the scalar blade per channel (bf16 0/1 selector), GELU in f32,
    # broadcast back to all 16 blades per channel.
    s = jnp.dot(h.astype(bf16), sels_ref[...], preferred_element_type=f32)      # (T, c_pad)
    gate = jnp.dot(_gelu_tanh(s).astype(bf16), exps_ref[...], preferred_element_type=f32)
    hg = h * gate

    # GeneratorMLP.proj_next + residual connection (residual in f32)
    out = (jnp.dot(hg.astype(bf16), m3_ref[...], preferred_element_type=f32)
           + b3_ref[...] + x)
    o_ref[...] = out.astype(o_ref.dtype)


# ---------------------------------------------------------------------------
# Parameter construction (deterministic) + flattened equivariant-linear matrices
# ---------------------------------------------------------------------------
def make_params(key, c_hidden, c_inter):
    G, J, basis, no_e0 = _build_ga_tables()
    basis_j = jnp.asarray(basis)

    def equi_linear_flat(k, c_in, c_out):
        kw, kb = jax.random.split(k)
        w = jax.random.normal(kw, (c_out, c_in, 9), jnp.float32) / np.sqrt(9.0 * c_in)
        bias = 0.1 * jax.random.normal(kb, (c_out,), jnp.float32)
        # M[c*16+j, o*16+k] = sum_a W[o,c,a] * basis[a,k,j]  (bias only on scalar blade)
        m = jnp.einsum("oca,akj->cjok", w, basis_j).reshape(c_in * 16, c_out * 16)
        bflat = jnp.zeros((1, c_out * 16), jnp.float32).at[0, 0::16].set(bias)
        return m, bflat

    k1, k2, k3 = jax.random.split(key, 3)
    m1, b1 = equi_linear_flat(k1, c_hidden, 2 * c_inter)   # GeneratorBilinear.proj_bili
    m2, b2 = equi_linear_flat(k2, c_inter, c_hidden)       # GeneratorBilinear.proj_next
    m3, b3 = equi_linear_flat(k3, c_hidden, c_hidden)      # GeneratorMLP.proj_next

    c_half = c_inter // 2
    d_half = c_half * 16
    d_h = c_hidden * 16
    c_pad = ((c_hidden + 127) // 128) * 128     # lane-pad the gate selector/expander

    # Packed structure tables: column block i holds blade-i broadcast / blade-i GP / join maps.
    pcat = np.zeros((d_half, 16 * d_half), np.float32)
    gcat = np.zeros((d_half, 16 * d_half), np.float32)
    jcat = np.zeros((d_half, 16 * d_half), np.float32)
    for i in range(16):
        off = i * d_half
        for c in range(c_half):
            r0, r1 = c * 16, (c + 1) * 16
            gcat[r0:r1, off + r0:off + r1] = G[i]
            jcat[r0:r1, off + r0:off + r1] = J[i]
            pcat[r0 + i, off + r0:off + r1] = 1.0

    selS = np.zeros((d_h, c_pad), np.float32)      # per-channel scalar-blade selector (0/1)
    expS = np.zeros((c_pad, d_h), np.float32)      # per-channel broadcast back to 16 blades
    mask = np.zeros((1, d_h), np.float32)          # non-degenerate (e0-free) blade mask
    for c in range(c_hidden):
        selS[c * 16, c] = 1.0
        expS[c, c * 16:(c + 1) * 16] = 1.0
        mask[0, c * 16:(c + 1) * 16] = no_e0
    wn = np.ones((1, d_h), np.float32)             # EquiRMSNorm learnable gain (init 1)

    bf = lambda a: jnp.asarray(a, jnp.bfloat16)
    fp = lambda a: jnp.asarray(a, jnp.float32)
    return (bf(m1), fp(b1), bf(pcat), bf(gcat), bf(jcat),
            bf(m2), fp(b2), bf(selS), bf(expS),
            bf(m3), fp(b3), fp(mask), fp(wn))


# ---------------------------------------------------------------------------
# Wrappers
# ---------------------------------------------------------------------------
def generator_mlp_pallas(hidden, params, eps=1e-6, tile_rows=None):
    B, N, C, MV = hidden.shape
    assert MV == 16
    D = C * MV
    (m1, b1, pcat, gcat, jcat, m2, b2, selS, expS, m3, b3, mask, wn) = params
    d_half = pcat.shape[0]
    # All in-kernel column slices assume lane alignment.
    assert D % 128 == 0 and d_half % 128 == 0, \
        "c_hidden must be a multiple of 8 and c_inter a multiple of 16"

    # Flatten (B, N) into one row axis.
    x = hidden.reshape(B * N, D).astype(jnp.float32)

    # Equi-join reference scalar (mean of the e0123 blade over tokens & channels), per batch
    # item, hoisted out of the kernel and replicated per row (keeps token tiling correct).
    ref_ps = jnp.mean(hidden[..., 15].astype(jnp.float32), axis=(1, 2))   # (B,)
    rp = jnp.repeat(ref_ps, N)[:, None]                                   # (B*N, 1)

    R = B * N
    if tile_rows is None:
        # Large tiles for MXU occupancy; keep an even grid-step count >= 2 so both v7x
        # TensorCores are busy (harmless on v5e/v6e).  T is a multiple of 16 (bf16 sublanes).
        steps = max(2, pl.cdiv(R, 512))
        steps += steps % 2
        tile_rows = max(16, ((pl.cdiv(R, steps) + 15) // 16) * 16)
    T = tile_rows
    Rp = pl.cdiv(R, T) * T
    if Rp != R:
        x = jnp.pad(x, ((0, Rp - R), (0, 0)))
        rp = jnp.pad(rp, ((0, Rp - R), (0, 0)))

    # Blade-chunk width: keep each structure matmul's RHS ~256 lanes wide when d_half is small.
    n_blade_chunk = 2 if d_half <= 128 else 1

    kern = functools.partial(_generator_mlp_kernel, n_channels=C, d_half=d_half,
                             n_blade_chunk=n_blade_chunk, eps=eps)

    def _full(a):
        return pl.BlockSpec(a.shape, lambda r: (0, 0))

    out = pl.pallas_call(
        kern,
        out_shape=jax.ShapeDtypeStruct((Rp, D), jnp.float32),
        grid=(Rp // T,),
        in_specs=[
            pl.BlockSpec((T, D), lambda r: (r, 0)),     # x rows
            pl.BlockSpec((T, 1), lambda r: (r, 0)),     # per-row join scale
            _full(m1), _full(b1), _full(pcat), _full(gcat), _full(jcat),
            _full(m2), _full(b2), _full(selS), _full(expS),
            _full(m3), _full(b3), _full(mask), _full(wn),
        ],
        out_specs=pl.BlockSpec((T, D), lambda r: (r, 0)),
        compiler_params=pltpu.CompilerParams(
            dimension_semantics=("parallel",),
            vmem_limit_bytes=48 * 1024 * 1024),
    )(x, rp, m1, b1, pcat, gcat, jcat, m2, b2, selS, expS, m3, b3, mask, wn)

    return out[:R].reshape(B, N, C, MV)


def generator_mlp_ref(hidden, params, eps=1e-6):
    # Pure-JAX reference mirroring the kernel's math and dtype strategy (plumbing check).
    B, N, C, MV = hidden.shape
    D = C * MV
    (m1, b1, pcat, gcat, jcat, m2, b2, selS, expS, m3, b3, mask, wn) = params
    d_half = pcat.shape[0]
    bf16, f32 = jnp.bfloat16, jnp.float32

    x = hidden.reshape(B * N, D).astype(f32)
    ref_ps = jnp.mean(hidden[..., 15].astype(f32), axis=(1, 2))
    rp = jnp.repeat(ref_ps, N)[:, None]

    sq = jnp.sum(x * x * mask, axis=-1, keepdims=True) / C
    xn = x * jax.lax.rsqrt(sq + eps) * wn
    y = jnp.dot(xn.astype(bf16), m1, preferred_element_type=f32) + b1
    lg, rg, lj, rj = [y[:, k * d_half:(k + 1) * d_half].astype(bf16) for k in range(4)]
    lgb = jnp.dot(lg, pcat, preferred_element_type=f32).astype(bf16)
    rgg = jnp.dot(rg, gcat, preferred_element_type=f32).astype(bf16)
    ljb = jnp.dot(lj, pcat, preferred_element_type=f32).astype(bf16)
    rjj = jnp.dot(rj, jcat, preferred_element_type=f32).astype(bf16)
    gp = sum(lgb[:, i * d_half:(i + 1) * d_half].astype(f32)
             * rgg[:, i * d_half:(i + 1) * d_half].astype(f32) for i in range(16))
    jn = sum(ljb[:, i * d_half:(i + 1) * d_half].astype(f32)
             * rjj[:, i * d_half:(i + 1) * d_half].astype(f32) for i in range(16)) * rp
    gpjn = jnp.concatenate([gp, jn], axis=-1).astype(bf16)
    h = jnp.dot(gpjn, m2, preferred_element_type=f32) + b2
    s = jnp.dot(h.astype(bf16), selS, preferred_element_type=f32)
    gate = jnp.dot(_gelu_tanh(s).astype(bf16), expS, preferred_element_type=f32)
    h = h * gate
    out = jnp.dot(h.astype(bf16), m3, preferred_element_type=f32) + b3 + x
    return out.reshape(B, N, C, MV)


if __name__ == "__main__":
    # Small config consistent with GeneratorMLP: gnrt_dim_hidden=16, gnrt_dim_intermediate=16,
    # batch=2, 128 points (tokens), multivector dim 16.
    B, N, C_HIDDEN, C_INTER = 2, 128, 16, 16
    key = jax.random.PRNGKey(0)
    kp, kx = jax.random.split(key)
    params = make_params(kp, C_HIDDEN, C_INTER)
    hidden = jax.random.normal(kx, (B, N, C_HIDDEN, 16), jnp.float32)

    out = generator_mlp_pallas(hidden, params)
    out = jax.block_until_ready(out)

    ref = generator_mlp_ref(hidden, params)
    np.testing.assert_allclose(np.asarray(out), np.asarray(ref), rtol=2e-2, atol=2e-2)
    print("KERNEL_OK")
</pallas_src>

<mosaic_0001>
module attributes {stable_mosaic.version = 11 : i64} {
  func.func @_generator_mlp_kernel(%arg0: i32, %arg1: memref<128x256xf32, #tpu.memory_space<vmem>>, %arg2: memref<128x1xf32, #tpu.memory_space<vmem>>, %arg3: memref<256x512xbf16, #tpu.memory_space<vmem>>, %arg4: memref<1x512xf32, #tpu.memory_space<vmem>>, %arg5: memref<128x2048xbf16, #tpu.memory_space<vmem>>, %arg6: memref<128x2048xbf16, #tpu.memory_space<vmem>>, %arg7: memref<128x2048xbf16, #tpu.memory_space<vmem>>, %arg8: memref<256x256xbf16, #tpu.memory_space<vmem>>, %arg9: memref<1x256xf32, #tpu.memory_space<vmem>>, %arg10: memref<256x128xbf16, #tpu.memory_space<vmem>>, %arg11: memref<128x256xbf16, #tpu.memory_space<vmem>>, %arg12: memref<256x256xbf16, #tpu.memory_space<vmem>>, %arg13: memref<1x256xf32, #tpu.memory_space<vmem>>, %arg14: memref<1x256xf32, #tpu.memory_space<vmem>>, %arg15: memref<1x256xf32, #tpu.memory_space<vmem>>, %arg16: memref<128x256xf32, #tpu.memory_space<vmem>>) attributes {dimension_semantics = [#tpu.dimension_semantics<parallel>], iteration_bounds = array<i64: 2>, scalar_prefetch = 0 : i64, scratch_operands = 0 : i64, tpu.core_type = #tpu.core_type<tc>, window_params = [{transform_indices = @transform_0, window_bounds = array<i64: 128, 256>}, {transform_indices = @transform_1, window_bounds = array<i64: 128, 1>}, {pipeline_mode = #tpu.pipeline_mode<synchronous>, transform_indices = @transform_2, window_bounds = array<i64: 256, 512>}, {pipeline_mode = #tpu.pipeline_mode<synchronous>, transform_indices = @transform_3, window_bounds = array<i64: 1, 512>}, {pipeline_mode = #tpu.pipeline_mode<synchronous>, transform_indices = @transform_4, window_bounds = array<i64: 128, 2048>}, {pipeline_mode = #tpu.pipeline_mode<synchronous>, transform_indices = @transform_5, window_bounds = array<i64: 128, 2048>}, {pipeline_mode = #tpu.pipeline_mode<synchronous>, transform_indices = @transform_6, window_bounds = array<i64: 128, 2048>}, {pipeline_mode = #tpu.pipeline_mode<synchronous>, transform_indices = @transform_7, window_bounds = array<i64: 256, 256>}, {pipeline_mode = #tpu.pipeline_mode<synchronous>, transform_indices = @transform_8, window_bounds = array<i64: 1, 256>}, {pipeline_mode = #tpu.pipeline_mode<synchronous>, transform_indices = @transform_9, window_bounds = array<i64: 256, 128>}, {pipeline_mode = #tpu.pipeline_mode<synchronous>, transform_indices = @transform_10, window_bounds = array<i64: 128, 256>}, {pipeline_mode = #tpu.pipeline_mode<synchronous>, transform_indices = @transform_11, window_bounds = array<i64: 256, 256>}, {pipeline_mode = #tpu.pipeline_mode<synchronous>, transform_indices = @transform_12, window_bounds = array<i64: 1, 256>}, {pipeline_mode = #tpu.pipeline_mode<synchronous>, transform_indices = @transform_13, window_bounds = array<i64: 1, 256>}, {pipeline_mode = #tpu.pipeline_mode<synchronous>, transform_indices = @transform_14, window_bounds = array<i64: 1, 256>}, {transform_indices = @transform_15, window_bounds = array<i64: 128, 256>}]} {
    %c0 = arith.constant 0 : index
    %c0_0 = arith.constant 0 : index
    %0 = vector.load %arg1[%c0, %c0_0] : memref<128x256xf32, #tpu.memory_space<vmem>>, vector<128x256xf32>
    %c0_1 = arith.constant 0 : index
    %c0_2 = arith.constant 0 : index
    %1 = vector.load %arg2[%c0_1, %c0_2] : memref<128x1xf32, #tpu.memory_space<vmem>>, vector<128x1xf32>
    %2 = arith.mulf %0, %0 : vector<128x256xf32>
    %c0_3 = arith.constant 0 : index
    %c0_4 = arith.constant 0 : index
    %3 = vector.load %arg14[%c0_3, %c0_4] : memref<1x256xf32, #tpu.memory_space<vmem>>, vector<1x256xf32>
    %4 = vector.broadcast %3 : vector<1x256xf32> to vector<128x256xf32>
    %5 = arith.mulf %2, %4 : vector<128x256xf32>
    %cst = arith.constant dense<0.000000e+00> : vector<128xf32>
    %6 = vector.multi_reduction <add>, %5, %cst [1] : vector<128x256xf32> to vector<128xf32>
    %7 = vector.shape_cast %6 : vector<128xf32> to vector<128x1xf32>
    %cst_5 = arith.constant 6.250000e-02 : f32
    %8 = vector.broadcast %cst_5 : f32 to vector<128x1xf32>
    %9 = arith.mulf %7, %8 : vector<128x1xf32>
    %cst_6 = arith.constant 9.99999997E-7 : f32
    %10 = vector.broadcast %cst_6 : f32 to vector<128x1xf32>
    %11 = arith.addf %9, %10 : vector<128x1xf32>
    %12 = math.rsqrt %11 : vector<128x1xf32>
    %13 = vector.broadcast %12 : vector<128x1xf32> to vector<128x256xf32>
    %14 = arith.mulf %0, %13 : vector<128x256xf32>
    %c0_7 = arith.constant 0 : index
    %c0_8 = arith.constant 0 : index
    %15 = vector.load %arg15[%c0_7, %c0_8] : memref<1x256xf32, #tpu.memory_space<vmem>>, vector<1x256xf32>
    %16 = vector.broadcast %15 : vector<1x256xf32> to vector<128x256xf32>
    %17 = arith.mulf %14, %16 : vector<128x256xf32>
    %18 = arith.truncf %17 : vector<128x256xf32> to vector<128x256xbf16>
    %c0_9 = arith.constant 0 : index
    %c0_10 = arith.constant 0 : index
    %19 = vector.load %arg3[%c0_9, %c0_10] : memref<256x512xbf16, #tpu.memory_space<vmem>>, vector<256x512xbf16>
    %cst_11 = arith.constant dense<0.000000e+00> : vector<128x512xf32>
    %20 = tpu.matmul %18, %19, %cst_11 {dimension_numbers = #tpu.dot_dimension_numbers<[1], [0], [0], [1], [0, 0, 1, 1], [], []>} : vector<128x256xbf16>, vector<256x512xbf16>, vector<128x512xf32> -> vector<128x512xf32>
    %c0_12 = arith.constant 0 : index
    %c0_13 = arith.constant 0 : index
    %21 = vector.load %arg4[%c0_12, %c0_13] : memref<1x512xf32, #tpu.memory_space<vmem>>, vector<1x512xf32>
    %22 = vector.broadcast %21 : vector<1x512xf32> to vector<128x512xf32>
    %23 = arith.addf %20, %22 : vector<128x512xf32>
    %24 = vector.extract_strided_slice %23 {offsets = [0, 0], sizes = [128, 128], strides = [1, 1]} : vector<128x512xf32> to vector<128x128xf32>
    %25 = arith.truncf %24 : vector<128x128xf32> to vector<128x128xbf16>
    %26 = vector.extract_strided_slice %23 {offsets = [0, 128], sizes = [128, 128], strides = [1, 1]} : vector<128x512xf32> to vector<128x128xf32>
    %27 = arith.truncf %26 : vector<128x128xf32> to vector<128x128xbf16>
    %28 = vector.extract_strided_slice %23 {offsets = [0, 256], sizes = [128, 128], strides = [1, 1]} : vector<128x512xf32> to vector<128x128xf32>
    %29 = arith.truncf %28 : vector<128x128xf32> to vector<128x128xbf16>
    %30 = vector.extract_strided_slice %23 {offsets = [0, 384], sizes = [128, 128], strides = [1, 1]} : vector<128x512xf32> to vector<128x128xf32>
    %31 = arith.truncf %30 : vector<128x128xf32> to vector<128x128xbf16>
    %32 = tpu.concatenate %25, %29 in 0 : vector<128x128xbf16>, vector<128x128xbf16> -> vector<256x128xbf16>
    %cst_14 = arith.constant 0.000000e+00 : f32
    %33 = vector.broadcast %cst_14 : f32 to vector<128x128xf32>
    %cst_15 = arith.constant 0.000000e+00 : f32
    %34 = vector.broadcast %cst_15 : f32 to vector<128x128xf32>
    %c0_16 = arith.constant 0 : index
    %c0_17 = arith.constant 0 : index
    %35 = vector.load %arg5[%c0_16, %c0_17] : memref<128x2048xbf16, #tpu.memory_space<vmem>>, vector<128x256xbf16>
    %cst_18 = arith.constant dense<0.000000e+00> : vector<256x256xf32>
    %36 = tpu.matmul %32, %35, %cst_18 {dimension_numbers = #tpu.dot_dimension_numbers<[1], [0], [0], [1], [0, 0, 1, 1], [], []>} : vector<256x128xbf16>, vector<128x256xbf16>, vector<256x256xf32> -> vector<256x256xf32>
    %37 = arith.truncf %36 : vector<256x256xf32> to vector<256x256xbf16>
    %c0_19 = arith.constant 0 : index
    %c0_20 = arith.constant 0 : index
    %38 = vector.load %arg6[%c0_19, %c0_20] : memref<128x2048xbf16, #tpu.memory_space<vmem>>, vector<128x256xbf16>
    %cst_21 = arith.constant dense<0.000000e+00> : vector<128x256xf32>
    %39 = tpu.matmul %27, %38, %cst_21 {dimension_numbers = #tpu.dot_dimension_numbers<[1], [0], [0], [1], [0, 0, 1, 1], [], []>} : vector<128x128xbf16>, vector<128x256xbf16>, vector<128x256xf32> -> vector<128x256xf32>
    %40 = arith.truncf %39 : vector<128x256xf32> to vector<128x256xbf16>
    %c0_22 = arith.constant 0 : index
    %c0_23 = arith.constant 0 : index
    %41 = vector.load %arg7[%c0_22, %c0_23] : memref<128x2048xbf16, #tpu.memory_space<vmem>>, vector<128x256xbf16>
    %cst_24 = arith.constant dense<0.000000e+00> : vector<128x256xf32>
    %42 = tpu.matmul %31, %41, %cst_24 {dimension_numbers = #tpu.dot_dimension_numbers<[1], [0], [0], [1], [0, 0, 1, 1], [], []>} : vector<128x128xbf16>, vector<128x256xbf16>, vector<128x256xf32> -> vector<128x256xf32>
    %43 = arith.truncf %42 : vector<128x256xf32> to vector<128x256xbf16>
    %44 = vector.extract_strided_slice %37 {offsets = [0, 0], sizes = [128, 128], strides = [1, 1]} : vector<256x256xbf16> to vector<128x128xbf16>
    %45 = arith.extf %44 : vector<128x128xbf16> to vector<128x128xf32>
    %46 = vector.extract_strided_slice %40 {offsets = [0, 0], sizes = [128, 128], strides = [1, 1]} : vector<128x256xbf16> to vector<128x128xbf16>
    %47 = arith.extf %46 : vector<128x128xbf16> to vector<128x128xf32>
    %48 = arith.mulf %45, %47 : vector<128x128xf32>
    %49 = arith.addf %33, %48 : vector<128x128xf32>
    %50 = vector.extract_strided_slice %37 {offsets = [128, 0], sizes = [128, 128], strides = [1, 1]} : vector<256x256xbf16> to vector<128x128xbf16>
    %51 = arith.extf %50 : vector<128x128xbf16> to vector<128x128xf32>
    %52 = vector.extract_strided_slice %43 {offsets = [0, 0], sizes = [128, 128], strides = [1, 1]} : vector<128x256xbf16> to vector<128x128xbf16>
    %53 = arith.extf %52 : vector<128x128xbf16> to vector<128x128xf32>
    %54 = arith.mulf %51, %53 : vector<128x128xf32>
    %55 = arith.addf %34, %54 : vector<128x128xf32>
    %56 = vector.extract_strided_slice %37 {offsets = [0, 128], sizes = [128, 128], strides = [1, 1]} : vector<256x256xbf16> to vector<128x128xbf16>
    %57 = arith.extf %56 : vector<128x128xbf16> to vector<128x128xf32>
    %58 = vector.extract_strided_slice %40 {offsets = [0, 128], sizes = [128, 128], strides = [1, 1]} : vector<128x256xbf16> to vector<128x128xbf16>
    %59 = arith.extf %58 : vector<128x128xbf16> to vector<128x128xf32>
    %60 = arith.mulf %57, %59 : vector<128x128xf32>
    %61 = arith.addf %49, %60 : vector<128x128xf32>
    %62 = vector.extract_strided_slice %37 {offsets = [128, 128], sizes = [128, 128], strides = [1, 1]} : vector<256x256xbf16> to vector<128x128xbf16>
    %63 = arith.extf %62 : vector<128x128xbf16> to vector<128x128xf32>
    %64 = vector.extract_strided_slice %43 {offsets = [0, 128], sizes = [128, 128], strides = [1, 1]} : vector<128x256xbf16> to vector<128x128xbf16>
    %65 = arith.extf %64 : vector<128x128xbf16> to vector<128x128xf32>
    %66 = arith.mulf %63, %65 : vector<128x128xf32>
    %67 = arith.addf %55, %66 : vector<128x128xf32>
    %c0_25 = arith.constant 0 : index
    %c256 = arith.constant 256 : index
    %68 = vector.load %arg5[%c0_25, %c256] : memref<128x2048xbf16, #tpu.memory_space<vmem>>, vector<128x256xbf16>
    %cst_26 = arith.constant dense<0.000000e+00> : vector<256x256xf32>
    %69 = tpu.matmul %32, %68, %cst_26 {dimension_numbers = #tpu.dot_dimension_numbers<[1], [0], [0], [1], [0, 0, 1, 1], [], []>} : vector<256x128xbf16>, vector<128x256xbf16>, vector<256x256xf32> -> vector<256x256xf32>
    %70 = arith.truncf %69 : vector<256x256xf32> to vector<256x256xbf16>
    %c0_27 = arith.constant 0 : index
    %c256_28 = arith.constant 256 : index
    %71 = vector.load %arg6[%c0_27, %c256_28] : memref<128x2048xbf16, #tpu.memory_space<vmem>>, vector<128x256xbf16>
    %cst_29 = arith.constant dense<0.000000e+00> : vector<128x256xf32>
    %72 = tpu.matmul %27, %71, %cst_29 {dimension_numbers = #tpu.dot_dimension_numbers<[1], [0], [0], [1], [0, 0, 1, 1], [], []>} : vector<128x128xbf16>, vector<128x256xbf16>, vector<128x256xf32> -> vector<128x256xf32>
    %73 = arith.truncf %72 : vector<128x256xf32> to vector<128x256xbf16>
    %c0_30 = arith.constant 0 : index
    %c256_31 = arith.constant 256 : index
    %74 = vector.load %arg7[%c0_30, %c256_31] : memref<128x2048xbf16, #tpu.memory_space<vmem>>, vector<128x256xbf16>
    %cst_32 = arith.constant dense<0.000000e+00> : vector<128x256xf32>
    %75 = tpu.matmul %31, %74, %cst_32 {dimension_numbers = #tpu.dot_dimension_numbers<[1], [0], [0], [1], [0, 0, 1, 1], [], []>} : vector<128x128xbf16>, vector<128x256xbf16>, vector<128x256xf32> -> vector<128x256xf32>
    %76 = arith.truncf %75 : vector<128x256xf32> to vector<128x256xbf16>
    %77 = vector.extract_strided_slice %70 {offsets = [0, 0], sizes = [128, 128], strides = [1, 1]} : vector<256x256xbf16> to vector<128x128xbf16>
    %78 = arith.extf %77 : vector<128x128xbf16> to vector<128x128xf32>
    %79 = vector.extract_strided_slice %73 {offsets = [0, 0], sizes = [128, 128], strides = [1, 1]} : vector<128x256xbf16> to vector<128x128xbf16>
    %80 = arith.extf %79 : vector<128x128xbf16> to vector<128x128xf32>
    %81 = arith.mulf %78, %80 : vector<128x128xf32>
    %82 = arith.addf %61, %81 : vector<128x128xf32>
    %83 = vector.extract_strided_slice %70 {offsets = [128, 0], sizes = [128, 128], strides = [1, 1]} : vector<256x256xbf16> to vector<128x128xbf16>
    %84 = arith.extf %83 : vector<128x128xbf16> to vector<128x128xf32>
    %85 = vector.extract_strided_slice %76 {offsets = [0, 0], sizes = [128, 128], strides = [1, 1]} : vector<128x256xbf16> to vector<128x128xbf16>
    %86 = arith.extf %85 : vector<128x128xbf16> to vector<128x128xf32>
    %87 = arith.mulf %84, %86 : vector<128x128xf32>
    %88 = arith.addf %67, %87 : vector<128x128xf32>
    %89 = vector.extract_strided_slice %70 {offsets = [0, 128], sizes = [128, 128], strides = [1, 1]} : vector<256x256xbf16> to vector<128x128xbf16>
    %90 = arith.extf %89 : vector<128x128xbf16> to vector<128x128xf32>
    %91 = vector.extract_strided_slice %73 {offsets = [0, 128], sizes = [128, 128], strides = [1, 1]} : vector<128x256xbf16> to vector<128x128xbf16>
    %92 = arith.extf %91 : vector<128x128xbf16> to vector<128x128xf32>
    %93 = arith.mulf %90, %92 : vector<128x128xf32>
    %94 = arith.addf %82, %93 : vector<128x128xf32>
    %95 = vector.extract_strided_slice %70 {offsets = [128, 128], sizes = [128, 128], strides = [1, 1]} : vector<256x256xbf16> to vector<128x128xbf16>
    %96 = arith.extf %95 : vector<128x128xbf16> to vector<128x128xf32>
    %97 = vector.extract_strided_slice %76 {offsets = [0, 128], sizes = [128, 128], strides = [1, 1]} : vector<128x256xbf16> to vector<128x128xbf16>
    %98 = arith.extf %97 : vector<128x128xbf16> to vector<128x128xf32>
    %99 = arith.mulf %96, %98 : vector<128x128xf32>
    %100 = arith.addf %88, %99 : vector<128x128xf32>
    %c0_33 = arith.constant 0 : index
    %c512 = arith.constant 512 : index
    %101 = vector.load %arg5[%c0_33, %c512] : memref<128x2048xbf16, #tpu.memory_space<vmem>>, vector<128x256xbf16>
    %cst_34 = arith.constant dense<0.000000e+00> : vector<256x256xf32>
    %102 = tpu.matmul %32, %101, %cst_34 {dimension_numbers = #tpu.dot_dimension_numbers<[1], [0], [0], [1], [0, 0, 1, 1], [], []>} : vector<256x128xbf16>, vector<128x256xbf16>, vector<256x256xf32> -> vector<256x256xf32>
    %103 = arith.truncf %102 : vector<256x256xf32> to vector<256x256xbf16>
    %c0_35 = arith.constant 0 : index
    %c512_36 = arith.constant 512 : index
    %104 = vector.load %arg6[%c0_35, %c512_36] : memref<128x2048xbf16, #tpu.memory_space<vmem>>, vector<128x256xbf16>
    %cst_37 = arith.constant dense<0.000000e+00> : vector<128x256xf32>
    %105 = tpu.matmul %27, %104, %cst_37 {dimension_numbers = #tpu.dot_dimension_numbers<[1], [0], [0], [1], [0, 0, 1, 1], [], []>} : vector<128x128xbf16>, vector<128x256xbf16>, vector<128x256xf32> -> vector<128x256xf32>
    %106 = arith.truncf %105 : vector<128x256xf32> to vector<128x256xbf16>
    %c0_38 = arith.constant 0 : index
    %c512_39 = arith.constant 512 : index
    %107 = vector.load %arg7[%c0_38, %c512_39] : memref<128x2048xbf16, #tpu.memory_space<vmem>>, vector<128x256xbf16>
    %cst_40 = arith.constant dense<0.000000e+00> : vector<128x256xf32>
    %108 = tpu.matmul %31, %107, %cst_40 {dimension_numbers = #tpu.dot_dimension_numbers<[1], [0], [0], [1], [0, 0, 1, 1], [], []>} : vector<128x128xbf16>, vector<128x256xbf16>, vector<128x256xf32> -> vector<128x256xf32>
    %109 = arith.truncf %108 : vector<128x256xf32> to vector<128x256xbf16>
    %110 = vector.extract_strided_slice %103 {offsets = [0, 0], sizes = [128, 128], strides = [1, 1]} : vector<256x256xbf16> to vector<128x128xbf16>
    %111 = arith.extf %110 : vector<128x128xbf16> to vector<128x128xf32>
    %112 = vector.extract_strided_slice %106 {offsets = [0, 0], sizes = [128, 128], strides = [1, 1]} : vector<128x256xbf16> to vector<128x128xbf16>
    %113 = arith.extf %112 : vector<128x128xbf16> to vector<128x128xf32>
    %114 = arith.mulf %111, %113 : vector<128x128xf32>
    %115 = arith.addf %94, %114 : vector<128x128xf32>
    %116 = vector.extract_strided_slice %103 {offsets = [128, 0], sizes = [128, 128], strides = [1, 1]} : vector<256x256xbf16> to vector<128x128xbf16>
    %117 = arith.extf %116 : vector<128x128xbf16> to vector<128x128xf32>
    %118 = vector.extract_strided_slice %109 {offsets = [0, 0], sizes = [128, 128], strides = [1, 1]} : vector<128x256xbf16> to vector<128x128xbf16>
    %119 = arith.extf %118 : vector<128x128xbf16> to vector<128x128xf32>
    %120 = arith.mulf %117, %119 : vector<128x128xf32>
    %121 = arith.addf %100, %120 : vector<128x128xf32>
    %122 = vector.extract_strided_slice %103 {offsets = [0, 128], sizes = [128, 128], strides = [1, 1]} : vector<256x256xbf16> to vector<128x128xbf16>
    %123 = arith.extf %122 : vector<128x128xbf16> to vector<128x128xf32>
    %124 = vector.extract_strided_slice %106 {offsets = [0, 128], sizes = [128, 128], strides = [1, 1]} : vector<128x256xbf16> to vector<128x128xbf16>
    %125 = arith.extf %124 : vector<128x128xbf16> to vector<128x128xf32>
    %126 = arith.mulf %123, %125 : vector<128x128xf32>
    %127 = arith.addf %115, %126 : vector<128x128xf32>
    %128 = vector.extract_strided_slice %103 {offsets = [128, 128], sizes = [128, 128], strides = [1, 1]} : vector<256x256xbf16> to vector<128x128xbf16>
    %129 = arith.extf %128 : vector<128x128xbf16> to vector<128x128xf32>
    %130 = vector.extract_strided_slice %109 {offsets = [0, 128], sizes = [128, 128], strides = [1, 1]} : vector<128x256xbf16> to vector<128x128xbf16>
    %131 = arith.extf %130 : vector<128x128xbf16> to vector<128x128xf32>
    %132 = arith.mulf %129, %131 : vector<128x128xf32>
    %133 = arith.addf %121, %132 : vector<128x128xf32>
    %c0_41 = arith.constant 0 : index
    %c768 = arith.constant 768 : index
    %134 = vector.load %arg5[%c0_41, %c768] : memref<128x2048xbf16, #tpu.memory_space<vmem>>, vector<128x256xbf16>
    %cst_42 = arith.constant dense<0.000000e+00> : vector<256x256xf32>
    %135 = tpu.matmul %32, %134, %cst_42 {dimension_numbers = #tpu.dot_dimension_numbers<[1], [0], [0], [1], [0, 0, 1, 1], [], []>} : vector<256x128xbf16>, vector<128x256xbf16>, vector<256x256xf32> -> vector<256x256xf32>
    %136 = arith.truncf %135 : vector<256x256xf32> to vector<256x256xbf16>
    %c0_43 = arith.constant 0 : index
    %c768_44 = arith.constant 768 : index
    %137 = vector.load %arg6[%c0_43, %c768_44] : memref<128x2048xbf16, #tpu.memory_space<vmem>>, vector<128x256xbf16>
    %cst_45 = arith.constant dense<0.000000e+00> : vector<128x256xf32>
    %138 = tpu.matmul %27, %137, %cst_45 {dimension_numbers = #tpu.dot_dimension_numbers<[1], [0], [0], [1], [0, 0, 1, 1], [], []>} : vector<128x128xbf16>, vector<128x256xbf16>, vector<128x256xf32> -> vector<128x256xf32>
    %139 = arith.truncf %138 : vector<128x256xf32> to vector<128x256xbf16>
    %c0_46 = arith.constant 0 : index
    %c768_47 = arith.constant 768 : index
    %140 = vector.load %arg7[%c0_46, %c768_47] : memref<128x2048xbf16, #tpu.memory_space<vmem>>, vector<128x256xbf16>
    %cst_48 = arith.constant dense<0.000000e+00> : vector<128x256xf32>
    %141 = tpu.matmul %31, %140, %cst_48 {dimension_numbers = #tpu.dot_dimension_numbers<[1], [0], [0], [1], [0, 0, 1, 1], [], []>} : vector<128x128xbf16>, vector<128x256xbf16>, vector<128x256xf32> -> vector<128x256xf32>
    %142 = arith.truncf %141 : vector<128x256xf32> to vector<128x256xbf16>
    %143 = vector.extract_strided_slice %136 {offsets = [0, 0], sizes = [128, 128], strides = [1, 1]} : vector<256x256xbf16> to vector<128x128xbf16>
    %144 = arith.extf %143 : vector<128x128xbf16> to vector<128x128xf32>
    %145 = vector.extract_strided_slice %139 {offsets = [0, 0], sizes = [128, 128], strides = [1, 1]} : vector<128x256xbf16> to vector<128x128xbf16>
    %146 = arith.extf %145 : vector<128x128xbf16> to vector<128x128xf32>
    %147 = arith.mulf %144, %146 : vector<128x128xf32>
    %148 = arith.addf %127, %147 : vector<128x128xf32>
    %149 = vector.extract_strided_slice %136 {offsets = [128, 0], sizes = [128, 128], strides = [1, 1]} : vector<256x256xbf16> to vector<128x128xbf16>
    %150 = arith.extf %149 : vector<128x128xbf16> to vector<128x128xf32>
    %151 = vector.extract_strided_slice %142 {offsets = [0, 0], sizes = [128, 128], strides = [1, 1]} : vector<128x256xbf16> to vector<128x128xbf16>
    %152 = arith.extf %151 : vector<128x128xbf16> to vector<128x128xf32>
    %153 = arith.mulf %150, %152 : vector<128x128xf32>
    %154 = arith.addf %133, %153 : vector<128x128xf32>
    %155 = vector.extract_strided_slice %136 {offsets = [0, 128], sizes = [128, 128], strides = [1, 1]} : vector<256x256xbf16> to vector<128x128xbf16>
    %156 = arith.extf %155 : vector<128x128xbf16> to vector<128x128xf32>
    %157 = vector.extract_strided_slice %139 {offsets = [0, 128], sizes = [128, 128], strides = [1, 1]} : vector<128x256xbf16> to vector<128x128xbf16>
    %158 = arith.extf %157 : vector<128x128xbf16> to vector<128x128xf32>
    %159 = arith.mulf %156, %158 : vector<128x128xf32>
    %160 = arith.addf %148, %159 : vector<128x128xf32>
    %161 = vector.extract_strided_slice %136 {offsets = [128, 128], sizes = [128, 128], strides = [1, 1]} : vector<256x256xbf16> to vector<128x128xbf16>
    %162 = arith.extf %161 : vector<128x128xbf16> to vector<128x128xf32>
    %163 = vector.extract_strided_slice %142 {offsets = [0, 128], sizes = [128, 128], strides = [1, 1]} : vector<128x256xbf16> to vector<128x128xbf16>
    %164 = arith.extf %163 : vector<128x128xbf16> to vector<128x128xf32>
    %165 = arith.mulf %162, %164 : vector<128x128xf32>
    %166 = arith.addf %154, %165 : vector<128x128xf32>
    %c0_49 = arith.constant 0 : index
    %c1024 = arith.constant 1024 : index
    %167 = vector.load %arg5[%c0_49, %c1024] : memref<128x2048xbf16, #tpu.memory_space<vmem>>, vector<128x256xbf16>
    %cst_50 = arith.constant dense<0.000000e+00> : vector<256x256xf32>
    %168 = tpu.matmul %32, %167, %cst_50 {dimension_numbers = #tpu.dot_dimension_numbers<[1], [0], [0], [1], [0, 0, 1, 1], [], []>} : vector<256x128xbf16>, vector<128x256xbf16>, vector<256x256xf32> -> vector<256x256xf32>
    %169 = arith.truncf %168 : vector<256x256xf32> to vector<256x256xbf16>
    %c0_51 = arith.constant 0 : index
    %c1024_52 = arith.constant 1024 : index
    %170 = vector.load %arg6[%c0_51, %c1024_52] : memref<128x2048xbf16, #tpu.memory_space<vmem>>, vector<128x256xbf16>
    %cst_53 = arith.constant dense<0.000000e+00> : vector<128x256xf32>
    %171 = tpu.matmul %27, %170, %cst_53 {dimension_numbers = #tpu.dot_dimension_numbers<[1], [0], [0], [1], [0, 0, 1, 1], [], []>} : vector<128x128xbf16>, vector<128x256xbf16>, vector<128x256xf32> -> vector<128x256xf32>
    %172 = arith.truncf %171 : vector<128x256xf32> to vector<128x256xbf16>
    %c0_54 = arith.constant 0 : index
    %c1024_55 = arith.constant 1024 : index
    %173 = vector.load %arg7[%c0_54, %c1024_55] : memref<128x2048xbf16, #tpu.memory_space<vmem>>, vector<128x256xbf16>
    %cst_56 = arith.constant dense<0.000000e+00> : vector<128x256xf32>
    %174 = tpu.matmul %31, %173, %cst_56 {dimension_numbers = #tpu.dot_dimension_numbers<[1], [0], [0], [1], [0, 0, 1, 1], [], []>} : vector<128x128xbf16>, vector<128x256xbf16>, vector<128x256xf32> -> vector<128x256xf32>
    %175 = arith.truncf %174 : vector<128x256xf32> to vector<128x256xbf16>
    %176 = vector.extract_strided_slice %169 {offsets = [0, 0], sizes = [128, 128], strides = [1, 1]} : vector<256x256xbf16> to vector<128x128xbf16>
    %177 = arith.extf %176 : vector<128x128xbf16> to vector<128x128xf32>
    %178 = vector.extract_strided_slice %172 {offsets = [0, 0], sizes = [128, 128], strides = [1, 1]} : vector<128x256xbf16> to vector<128x128xbf16>
    %179 = arith.extf %178 : vector<128x128xbf16> to vector<128x128xf32>
    %180 = arith.mulf %177, %179 : vector<128x128xf32>
    %181 = arith.addf %160, %180 : vector<128x128xf32>
    %182 = vector.extract_strided_slice %169 {offsets = [128, 0], sizes = [128, 128], strides = [1, 1]} : vector<256x256xbf16> to vector<128x128xbf16>
    %183 = arith.extf %182 : vector<128x128xbf16> to vector<128x128xf32>
    %184 = vector.extract_strided_slice %175 {offsets = [0, 0], sizes = [128, 128], strides = [1, 1]} : vector<128x256xbf16> to vector<128x128xbf16>
    %185 = arith.extf %184 : vector<128x128xbf16> to vector<128x128xf32>
    %186 = arith.mulf %183, %185 : vector<128x128xf32>
    %187 = arith.addf %166, %186 : vector<128x128xf32>
    %188 = vector.extract_strided_slice %169 {offsets = [0, 128], sizes = [128, 128], strides = [1, 1]} : vector<256x256xbf16> to vector<128x128xbf16>
    %189 = arith.extf %188 : vector<128x128xbf16> to vector<128x128xf32>
    %190 = vector.extract_strided_slice %172 {offsets = [0, 128], sizes = [128, 128], strides = [1, 1]} : vector<128x256xbf16> to vector<128x128xbf16>
    %191 = arith.extf %190 : vector<128x128xbf16> to vector<128x128xf32>
    %192 = arith.mulf %189, %191 : vector<128x128xf32>
    %193 = arith.addf %181, %192 : vector<128x128xf32>
    %194 = vector.extract_strided_slice %169 {offsets = [128, 128], sizes = [128, 128], strides = [1, 1]} : vector<256x256xbf16> to vector<128x128xbf16>
    %195 = arith.extf %194 : vector<128x128xbf16> to vector<128x128xf32>
    %196 = vector.extract_strided_slice %175 {offsets = [0, 128], sizes = [128, 128], strides = [1, 1]} : vector<128x256xbf16> to vector<128x128xbf16>
    %197 = arith.extf %196 : vector<128x128xbf16> to vector<128x128xf32>
    %198 = arith.mulf %195, %197 : vector<128x128xf32>
    %199 = arith.addf %187, %198 : vector<128x128xf32>
    %c0_57 = arith.constant 0 : index
    %c1280 = arith.constant 1280 : index
    %200 = vector.load %arg5[%c0_57, %c1280] : memref<128x2048xbf16, #tpu.memory_space<vmem>>, vector<128x256xbf16>
    %cst_58 = arith.constant dense<0.000000e+00> : vector<256x256xf32>
    %201 = tpu.matmul %32, %200, %cst_58 {dimension_numbers = #tpu.dot_dimension_numbers<[1], [0], [0], [1], [0, 0, 1, 1], [], []>} : vector<256x128xbf16>, vector<128x256xbf16>, vector<256x256xf32> -> vector<256x256xf32>
    %202 = arith.truncf %201 : vector<256x256xf32> to vector<256x256xbf16>
    %c0_59 = arith.constant 0 : index
    %c1280_60 = arith.constant 1280 : index
    %203 = vector.load %arg6[%c0_59, %c1280_60] : memref<128x2048xbf16, #tpu.memory_space<vmem>>, vector<128x256xbf16>
    %cst_61 = arith.constant dense<0.000000e+00> : vector<128x256xf32>
    %204 = tpu.matmul %27, %203, %cst_61 {dimension_numbers = #tpu.dot_dimension_numbers<[1], [0], [0], [1], [0, 0, 1, 1], [], []>} : vector<128x128xbf16>, vector<128x256xbf16>, vector<128x256xf32> -> vector<128x256xf32>
    %205 = arith.truncf %204 : vector<128x256xf32> to vector<128x256xbf16>
    %c0_62 = arith.constant 0 : index
    %c1280_63 = arith.constant 1280 : index
    %206 = vector.load %arg7[%c0_62, %c1280_63] : memref<128x2048xbf16, #tpu.memory_space<vmem>>, vector<128x256xbf16>
    %cst_64 = arith.constant dense<0.000000e+00> : vector<128x256xf32>
    %207 = tpu.matmul %31, %206, %cst_64 {dimension_numbers = #tpu.dot_dimension_numbers<[1], [0], [0], [1], [0, 0, 1, 1], [], []>} : vector<128x128xbf16>, vector<128x256xbf16>, vector<128x256xf32> -> vector<128x256xf32>
    %208 = arith.truncf %207 : vector<128x256xf32> to vector<128x256xbf16>
    %209 = vector.extract_strided_slice %202 {offsets = [0, 0], sizes = [128, 128], strides = [1, 1]} : vector<256x256xbf16> to vector<128x128xbf16>
    %210 = arith.extf %209 : vector<128x128xbf16> to vector<128x128xf32>
    %211 = vector.extract_strided_slice %205 {offsets = [0, 0], sizes = [128, 128], strides = [1, 1]} : vector<128x256xbf16> to vector<128x128xbf16>
    %212 = arith.extf %211 : vector<128x128xbf16> to vector<128x128xf32>
    %213 = arith.mulf %210, %212 : vector<128x128xf32>
    %214 = arith.addf %193, %213 : vector<128x128xf32>
    %215 = vector.extract_strided_slice %202 {offsets = [128, 0], sizes = [128, 128], strides = [1, 1]} : vector<256x256xbf16> to vector<128x128xbf16>
    %216 = arith.extf %215 : vector<128x128xbf16> to vector<128x128xf32>
    %217 = vector.extract_strided_slice %208 {offsets = [0, 0], sizes = [128, 128], strides = [1, 1]} : vector<128x256xbf16> to vector<128x128xbf16>
    %218 = arith.extf %217 : vector<128x128xbf16> to vector<128x128xf32>
    %219 = arith.mulf %216, %218 : vector<128x128xf32>
    %220 = arith.addf %199, %219 : vector<128x128xf32>
    %221 = vector.extract_strided_slice %202 {offsets = [0, 128], sizes = [128, 128], strides = [1, 1]} : vector<256x256xbf16> to vector<128x128xbf16>
    %222 = arith.extf %221 : vector<128x128xbf16> to vector<128x128xf32>
    %223 = vector.extract_strided_slice %205 {offsets = [0, 128], sizes = [128, 128], strides = [1, 1]} : vector<128x256xbf16> to vector<128x128xbf16>
    %224 = arith.extf %223 : vector<128x128xbf16> to vector<128x128xf32>
    %225 = arith.mulf %222, %224 : vector<128x128xf32>
    %226 = arith.addf %214, %225 : vector<128x128xf32>
    %227 = vector.extract_strided_slice %202 {offsets = [128, 128], sizes = [128, 128], strides = [1, 1]} : vector<256x256xbf16> to vector<128x128xbf16>
    %228 = arith.extf %227 : vector<128x128xbf16> to vector<128x128xf32>
    %229 = vector.extract_strided_slice %208 {offsets = [0, 128], sizes = [128, 128], strides = [1, 1]} : vector<128x256xbf16> to vector<128x128xbf16>
    %230 = arith.extf %229 : vector<128x128xbf16> to vector<128x128xf32>
    %231 = arith.mulf %228, %230 : vector<128x128xf32>
    %232 = arith.addf %220, %231 : vector<128x128xf32>
    %c0_65 = arith.constant 0 : index
    %c1536 = arith.constant 1536 : index
    %233 = vector.load %arg5[%c0_65, %c1536] : memref<128x2048xbf16, #tpu.memory_space<vmem>>, vector<128x256xbf16>
    %cst_66 = arith.constant dense<0.000000e+00> : vector<256x256xf32>
    %234 = tpu.matmul %32, %233, %cst_66 {dimension_numbers = #tpu.dot_dimension_numbers<[1], [0], [0], [1], [0, 0, 1, 1], [], []>} : vector<256x128xbf16>, vector<128x256xbf16>, vector<256x256xf32> -> vector<256x256xf32>
    %235 = arith.truncf %234 : vector<256x256xf32> to vector<256x256xbf16>
    %c0_67 = arith.constant 0 : index
    %c1536_68 = arith.constant 1536 : index
    %236 = vector.load %arg6[%c0_67, %c1536_68] : memref<128x2048xbf16, #tpu.memory_space<vmem>>, vector<128x256xbf16>
    %cst_69 = arith.constant dense<0.000000e+00> : vector<128x256xf32>
    %237 = tpu.matmul %27, %236, %cst_69 {dimension_numbers = #tpu.dot_dimension_numbers<[1], [0], [0], [1], [0, 0, 1, 1], [], []>} : vector<128x128xbf16>, vector<128x256xbf16>, vector<128x256xf32> -> vector<128x256xf32>
    %238 = arith.truncf %237 : vector<128x256xf32> to vector<128x256xbf16>
    %c0_70 = arith.constant 0 : index
    %c1536_71 = arith.constant 1536 : index
    %239 = vector.load %arg7[%c0_70, %c1536_71] : memref<128x2048xbf16, #tpu.memory_space<vmem>>, vector<128x256xbf16>
    %cst_72 = arith.constant dense<0.000000e+00> : vector<128x256xf32>
    %240 = tpu.matmul %31, %239, %cst_72 {dimension_numbers = #tpu.dot_dimension_numbers<[1], [0], [0], [1], [0, 0, 1, 1], [], []>} : vector<128x128xbf16>, vector<128x256xbf16>, vector<128x256xf32> -> vector<128x256xf32>
    %241 = arith.truncf %240 : vector<128x256xf32> to vector<128x256xbf16>
    %242 = vector.extract_strided_slice %235 {offsets = [0, 0], sizes = [128, 128], strides = [1, 1]} : vector<256x256xbf16> to vector<128x128xbf16>
    %243 = arith.extf %242 : vector<128x128xbf16> to vector<128x128xf32>
    %244 = vector.extract_strided_slice %238 {offsets = [0, 0], sizes = [128, 128], strides = [1, 1]} : vector<128x256xbf16> to vector<128x128xbf16>
    %245 = arith.extf %244 : vector<128x128xbf16> to vector<128x128xf32>
    %246 = arith.mulf %243, %245 : vector<128x128xf32>
    %247 = arith.addf %226, %246 : vector<128x128xf32>
    %248 = vector.extract_strided_slice %235 {offsets = [128, 0], sizes = [128, 128], strides = [1, 1]} : vector<256x256xbf16> to vector<128x128xbf16>
    %249 = arith.extf %248 : vector<128x128xbf16> to vector<128x128xf32>
    %250 = vector.extract_strided_slice %241 {offsets = [0, 0], sizes = [128, 128], strides = [1, 1]} : vector<128x256xbf16> to vector<128x128xbf16>
    %251 = arith.extf %250 : vector<128x128xbf16> to vector<128x128xf32>
    %252 = arith.mulf %249, %251 : vector<128x128xf32>
    %253 = arith.addf %232, %252 : vector<128x128xf32>
    %254 = vector.extract_strided_slice %235 {offsets = [0, 128], sizes = [128, 128], strides = [1, 1]} : vector<256x256xbf16> to vector<128x128xbf16>
    %255 = arith.extf %254 : vector<128x128xbf16> to vector<128x128xf32>
    %256 = vector.extract_strided_slice %238 {offsets = [0, 128], sizes = [128, 128], strides = [1, 1]} : vector<128x256xbf16> to vector<128x128xbf16>
    %257 = arith.extf %256 : vector<128x128xbf16> to vector<128x128xf32>
    %258 = arith.mulf %255, %257 : vector<128x128xf32>
    %259 = arith.addf %247, %258 : vector<128x128xf32>
    %260 = vector.extract_strided_slice %235 {offsets = [128, 128], sizes = [128, 128], strides = [1, 1]} : vector<256x256xbf16> to vector<128x128xbf16>
    %261 = arith.extf %260 : vector<128x128xbf16> to vector<128x128xf32>
    %262 = vector.extract_strided_slice %241 {offsets = [0, 128], sizes = [128, 128], strides = [1, 1]} : vector<128x256xbf16> to vector<128x128xbf16>
    %263 = arith.extf %262 : vector<128x128xbf16> to vector<128x128xf32>
    %264 = arith.mulf %261, %263 : vector<128x128xf32>
    %265 = arith.addf %253, %264 : vector<128x128xf32>
    %c0_73 = arith.constant 0 : index
    %c1792 = arith.constant 1792 : index
    %266 = vector.load %arg5[%c0_73, %c1792] : memref<128x2048xbf16, #tpu.memory_space<vmem>>, vector<128x256xbf16>
    %cst_74 = arith.constant dense<0.000000e+00> : vector<256x256xf32>
    %267 = tpu.matmul %32, %266, %cst_74 {dimension_numbers = #tpu.dot_dimension_numbers<[1], [0], [0], [1], [0, 0, 1, 1], [], []>} : vector<256x128xbf16>, vector<128x256xbf16>, vector<256x256xf32> -> vector<256x256xf32>
    %268 = arith.truncf %267 : vector<256x256xf32> to vector<256x256xbf16>
    %c0_75 = arith.constant 0 : index
    %c1792_76 = arith.constant 1792 : index
    %269 = vector.load %arg6[%c0_75, %c1792_76] : memref<128x2048xbf16, #tpu.memory_space<vmem>>, vector<128x256xbf16>
    %cst_77 = arith.constant dense<0.000000e+00> : vector<128x256xf32>
    %270 = tpu.matmul %27, %269, %cst_77 {dimension_numbers = #tpu.dot_dimension_numbers<[1], [0], [0], [1], [0, 0, 1, 1], [], []>} : vector<128x128xbf16>, vector<128x256xbf16>, vector<128x256xf32> -> vector<128x256xf32>
    %271 = arith.truncf %270 : vector<128x256xf32> to vector<128x256xbf16>
    %c0_78 = arith.constant 0 : index
    %c1792_79 = arith.constant 1792 : index
    %272 = vector.load %arg7[%c0_78, %c1792_79] : memref<128x2048xbf16, #tpu.memory_space<vmem>>, vector<128x256xbf16>
    %cst_80 = arith.constant dense<0.000000e+00> : vector<128x256xf32>
    %273 = tpu.matmul %31, %272, %cst_80 {dimension_numbers = #tpu.dot_dimension_numbers<[1], [0], [0], [1], [0, 0, 1, 1], [], []>} : vector<128x128xbf16>, vector<128x256xbf16>, vector<128x256xf32> -> vector<128x256xf32>
    %274 = arith.truncf %273 : vector<128x256xf32> to vector<128x256xbf16>
    %275 = vector.extract_strided_slice %268 {offsets = [0, 0], sizes = [128, 128], strides = [1, 1]} : vector<256x256xbf16> to vector<128x128xbf16>
    %276 = arith.extf %275 : vector<128x128xbf16> to vector<128x128xf32>
    %277 = vector.extract_strided_slice %271 {offsets = [0, 0], sizes = [128, 128], strides = [1, 1]} : vector<128x256xbf16> to vector<128x128xbf16>
    %278 = arith.extf %277 : vector<128x128xbf16> to vector<128x128xf32>
    %279 = arith.mulf %276, %278 : vector<128x128xf32>
    %280 = arith.addf %259, %279 : vector<128x128xf32>
    %281 = vector.extract_strided_slice %268 {offsets = [128, 0], sizes = [128, 128], strides = [1, 1]} : vector<256x256xbf16> to vector<128x128xbf16>
    %282 = arith.extf %281 : vector<128x128xbf16> to vector<128x128xf32>
    %283 = vector.extract_strided_slice %274 {offsets = [0, 0], sizes = [128, 128], strides = [1, 1]} : vector<128x256xbf16> to vector<128x128xbf16>
    %284 = arith.extf %283 : vector<128x128xbf16> to vector<128x128xf32>
    %285 = arith.mulf %282, %284 : vector<128x128xf32>
    %286 = arith.addf %265, %285 : vector<128x128xf32>
    %287 = vector.extract_strided_slice %268 {offsets = [0, 128], sizes = [128, 128], strides = [1, 1]} : vector<256x256xbf16> to vector<128x128xbf16>
    %288 = arith.extf %287 : vector<128x128xbf16> to vector<128x128xf32>
    %289 = vector.extract_strided_slice %271 {offsets = [0, 128], sizes = [128, 128], strides = [1, 1]} : vector<128x256xbf16> to vector<128x128xbf16>
    %290 = arith.extf %289 : vector<128x128xbf16> to vector<128x128xf32>
    %291 = arith.mulf %288, %290 : vector<128x128xf32>
    %292 = arith.addf %280, %291 : vector<128x128xf32>
    %293 = vector.extract_strided_slice %268 {offsets = [128, 128], sizes = [128, 128], strides = [1, 1]} : vector<256x256xbf16> to vector<128x128xbf16>
    %294 = arith.extf %293 : vector<128x128xbf16> to vector<128x128xf32>
    %295 = vector.extract_strided_slice %274 {offsets = [0, 128], sizes = [128, 128], strides = [1, 1]} : vector<128x256xbf16> to vector<128x128xbf16>
    %296 = arith.extf %295 : vector<128x128xbf16> to vector<128x128xf32>
    %297 = arith.mulf %294, %296 : vector<128x128xf32>
    %298 = arith.addf %286, %297 : vector<128x128xf32>
    %299 = vector.broadcast %1 : vector<128x1xf32> to vector<128x128xf32>
    %300 = arith.mulf %298, %299 : vector<128x128xf32>
    %301 = tpu.concatenate %292, %300 in 1 : vector<128x128xf32>, vector<128x128xf32> -> vector<128x256xf32>
    %302 = arith.truncf %301 : vector<128x256xf32> to vector<128x256xbf16>
    %c0_81 = arith.constant 0 : index
    %c0_82 = arith.constant 0 : index
    %303 = vector.load %arg8[%c0_81, %c0_82] : memref<256x256xbf16, #tpu.memory_space<vmem>>, vector<256x256xbf16>
    %cst_83 = arith.constant dense<0.000000e+00> : vector<128x256xf32>
    %304 = tpu.matmul %302, %303, %cst_83 {dimension_numbers = #tpu.dot_dimension_numbers<[1], [0], [0], [1], [0, 0, 1, 1], [], []>} : vector<128x256xbf16>, vector<256x256xbf16>, vector<128x256xf32> -> vector<128x256xf32>
    %c0_84 = arith.constant 0 : index
    %c0_85 = arith.constant 0 : index
    %305 = vector.load %arg9[%c0_84, %c0_85] : memref<1x256xf32, #tpu.memory_space<vmem>>, vector<1x256xf32>
    %306 = vector.broadcast %305 : vector<1x256xf32> to vector<128x256xf32>
    %307 = arith.addf %304, %306 : vector<128x256xf32>
    %308 = arith.truncf %307 : vector<128x256xf32> to vector<128x256xbf16>
    %c0_86 = arith.constant 0 : index
    %c0_87 = arith.constant 0 : index
    %309 = vector.load %arg10[%c0_86, %c0_87] : memref<256x128xbf16, #tpu.memory_space<vmem>>, vector<256x128xbf16>
    %cst_88 = arith.constant dense<0.000000e+00> : vector<128x128xf32>
    %310 = tpu.matmul %308, %309, %cst_88 {dimension_numbers = #tpu.dot_dimension_numbers<[1], [0], [0], [1], [0, 0, 1, 1], [], []>} : vector<128x256xbf16>, vector<256x128xbf16>, vector<128x128xf32> -> vector<128x128xf32>
    %cst_89 = arith.constant 5.000000e-01 : f32
    %311 = vector.broadcast %cst_89 : f32 to vector<128x128xf32>
    %312 = arith.mulf %311, %310 : vector<128x128xf32>
    %cst_90 = arith.constant 4.471500e-02 : f32
    %313 = vector.broadcast %cst_90 : f32 to vector<128x128xf32>
    %314 = arith.mulf %313, %310 : vector<128x128xf32>
    %315 = arith.mulf %314, %310 : vector<128x128xf32>
    %316 = arith.mulf %315, %310 : vector<128x128xf32>
    %317 = arith.addf %310, %316 : vector<128x128xf32>
    %cst_91 = arith.constant 0.797884583 : f32
    %318 = vector.broadcast %cst_91 : f32 to vector<128x128xf32>
    %319 = arith.mulf %318, %317 : vector<128x128xf32>
    %320 = math.tanh %319 : vector<128x128xf32>
    %cst_92 = arith.constant 1.000000e+00 : f32
    %321 = vector.broadcast %cst_92 : f32 to vector<128x128xf32>
    %322 = arith.addf %321, %320 : vector<128x128xf32>
    %323 = arith.mulf %312, %322 : vector<128x128xf32>
    %324 = arith.truncf %323 : vector<128x128xf32> to vector<128x128xbf16>
    %c0_93 = arith.constant 0 : index
    %c0_94 = arith.constant 0 : index
    %325 = vector.load %arg11[%c0_93, %c0_94] : memref<128x256xbf16, #tpu.memory_space<vmem>>, vector<128x256xbf16>
    %cst_95 = arith.constant dense<0.000000e+00> : vector<128x256xf32>
    %326 = tpu.matmul %324, %325, %cst_95 {dimension_numbers = #tpu.dot_dimension_numbers<[1], [0], [0], [1], [0, 0, 1, 1], [], []>} : vector<128x128xbf16>, vector<128x256xbf16>, vector<128x256xf32> -> vector<128x256xf32>
    %327 = arith.mulf %307, %326 : vector<128x256xf32>
    %328 = arith.truncf %327 : vector<128x256xf32> to vector<128x256xbf16>
    %c0_96 = arith.constant 0 : index
    %c0_97 = arith.constant 0 : index
    %329 = vector.load %arg12[%c0_96, %c0_97] : memref<256x256xbf16, #tpu.memory_space<vmem>>, vector<256x256xbf16>
    %cst_98 = arith.constant dense<0.000000e+00> : vector<128x256xf32>
    %330 = tpu.matmul %328, %329, %cst_98 {dimension_numbers = #tpu.dot_dimension_numbers<[1], [0], [0], [1], [0, 0, 1, 1], [], []>} : vector<128x256xbf16>, vector<256x256xbf16>, vector<128x256xf32> -> vector<128x256xf32>
    %c0_99 = arith.constant 0 : index
    %c0_100 = arith.constant 0 : index
    %331 = vector.load %arg13[%c0_99, %c0_100] : memref<1x256xf32, #tpu.memory_space<vmem>>, vector<1x256xf32>
    %332 = vector.broadcast %331 : vector<1x256xf32> to vector<128x256xf32>
    %333 = arith.addf %330, %332 : vector<128x256xf32>
    %334 = arith.addf %333, %0 : vector<128x256xf32>
    %c0_101 = arith.constant 0 : index
    %c0_102 = arith.constant 0 : index
    %335 = vector.load %arg16[%c0_101, %c0_102] : memref<128x256xf32, #tpu.memory_space<vmem>>, vector<128x256xf32>
    tpu.vector_store %arg16[%c0_101, %c0_102], %334 {strides = array<i32>} : memref<128x256xf32, #tpu.memory_space<vmem>>, vector<128x256xf32>,
    return
  }
  func.func @transform_0(%arg0: i32) -> (i32, i32) {
    %c0_i32 = arith.constant 0 : i32
    %c0_i32_0 = arith.constant 0 : i32
    return %arg0, %c0_i32 : i32, i32
  }
  func.func @transform_1(%arg0: i32) -> (i32, i32) {
    %c0_i32 = arith.constant 0 : i32
    %c0_i32_0 = arith.constant 0 : i32
    return %arg0, %c0_i32 : i32, i32
  }
  func.func @transform_2(%arg0: i32) -> (i32, i32) {
    %c0_i32 = arith.constant 0 : i32
    %c0_i32_0 = arith.constant 0 : i32
    %c0_i32_1 = arith.constant 0 : i32
    return %c0_i32, %c0_i32_0 : i32, i32
  }
  func.func @transform_3(%arg0: i32) -> (i32, i32) {
    %c0_i32 = arith.constant 0 : i32
    %c0_i32_0 = arith.constant 0 : i32
    %c0_i32_1 = arith.constant 0 : i32
    return %c0_i32, %c0_i32_0 : i32, i32
  }
  func.func @transform_4(%arg0: i32) -> (i32, i32) {
    %c0_i32 = arith.constant 0 : i32
    %c0_i32_0 = arith.constant 0 : i32
    %c0_i32_1 = arith.constant 0 : i32
    return %c0_i32, %c0_i32_0 : i32, i32
  }
  func.func @transform_5(%arg0: i32) -> (i32, i32) {
    %c0_i32 = arith.constant 0 : i32
    %c0_i32_0 = arith.constant 0 : i32
    %c0_i32_1 = arith.constant 0 : i32
    return %c0_i32, %c0_i32_0 : i32, i32
  }
  func.func @transform_6(%arg0: i32) -> (i32, i32) {
    %c0_i32 = arith.constant 0 : i32
    %c0_i32_0 = arith.constant 0 : i32
    %c0_i32_1 = arith.constant 0 : i32
    return %c0_i32, %c0_i32_0 : i32, i32
  }
  func.func @transform_7(%arg0: i32) -> (i32, i32) {
    %c0_i32 = arith.constant 0 : i32
    %c0_i32_0 = arith.constant 0 : i32
    %c0_i32_1 = arith.constant 0 : i32
    return %c0_i32, %c0_i32_0 : i32, i32
  }
  func.func @transform_8(%arg0: i32) -> (i32, i32) {
    %c0_i32 = arith.constant 0 : i32
    %c0_i32_0 = arith.constant 0 : i32
    %c0_i32_1 = arith.constant 0 : i32
    return %c0_i32, %c0_i32_0 : i32, i32
  }
  func.func @transform_9(%arg0: i32) -> (i32, i32) {
    %c0_i32 = arith.constant 0 : i32
    %c0_i32_0 = arith.constant 0 : i32
    %c0_i32_1 = arith.constant 0 : i32
    return %c0_i32, %c0_i32_0 : i32, i32
  }
  func.func @transform_10(%arg0: i32) -> (i32, i32) {
    %c0_i32 = arith.constant 0 : i32
    %c0_i32_0 = arith.constant 0 : i32
    %c0_i32_1 = arith.constant 0 : i32
    return %c0_i32, %c0_i32_0 : i32, i32
  }
  func.func @transform_11(%arg0: i32) -> (i32, i32) {
    %c0_i32 = arith.constant 0 : i32
    %c0_i32_0 = arith.constant 0 : i32
    %c0_i32_1 = arith.constant 0 : i32
    return %c0_i32, %c0_i32_0 : i32, i32
  }
  func.func @transform_12(%arg0: i32) -> (i32, i32) {
    %c0_i32 = arith.constant 0 : i32
    %c0_i32_0 = arith.constant 0 : i32
    %c0_i32_1 = arith.constant 0 : i32
    return %c0_i32, %c0_i32_0 : i32, i32
  }
  func.func @transform_13(%arg0: i32) -> (i32, i32) {
    %c0_i32 = arith.constant 0 : i32
    %c0_i32_0 = arith.constant 0 : i32
    %c0_i32_1 = arith.constant 0 : i32
    return %c0_i32, %c0_i32_0 : i32, i32
  }
  func.func @transform_14(%arg0: i32) -> (i32, i32) {
    %c0_i32 = arith.constant 0 : i32
    %c0_i32_0 = arith.constant 0 : i32
    %c0_i32_1 = arith.constant 0 : i32
    return %c0_i32, %c0_i32_0 : i32, i32
  }
  func.func @transform_15(%arg0: i32) -> (i32, i32) {
    %c0_i32 = arith.constant 0 : i32
    %c0_i32_0 = arith.constant 0 : i32
    return %arg0, %c0_i32 : i32, i32
  }
}

</mosaic_0001>

<bundles_post_ra>
// kernel: tpu_custom_call.1
= control target key start
LH: loop header
LB: loop body
LE: loop exit
PB: predicated region body
PF: predicated region fallthrough
CT: control target
= control target key end

     0   :  { %s16155_s0 = inlined_call_operand.hbm [shape: f32[256,256], index: 0, kind: input, shape index: {}]   ;;  %s16156_s1 = inlined_call_operand.vmem [shape: f32[256,1], index: 1, kind: input, shape index: {}]   ;;  %s16157_s2 = inlined_call_operand.hbm [shape: bf16[256,512], index: 2, kind: input, shape index: {}]   ;;  %s16158_s3 = inlined_call_operand.vmem [shape: f32[1,512], index: 3, kind: input, shape index: {}]   ;;  %s16159_s4 = inlined_call_operand.hbm [shape: bf16[128,2048], index: 4, kind: input, shape index: {}]   ;;  %s16160_s5 = inlined_call_operand.hbm [shape: bf16[128,2048], index: 5, kind: input, shape index: {}]   ;;  %s16161_s6 = inlined_call_operand.hbm [shape: bf16[128,2048], index: 6, kind: input, shape index: {}]   ;;  %s16162_s7 = inlined_call_operand.vmem [shape: bf16[256,256], index: 7, kind: input, shape index: {}]   ;;  %s16163_s8 = inlined_call_operand.vmem [shape: f32[1,256], index: 8, kind: input, shape index: {}]   ;;  %s16164_s9 = inlined_call_operand.hbm [shape: bf16[256,128], index: 9, kind: input, shape index: {}]   ;;  %s16165_s10 = inlined_call_operand.hbm [shape: bf16[128,256], index: 10, kind: input, shape index: {}]   ;;  %s16166_s11 = inlined_call_operand.hbm [shape: bf16[256,256], index: 11, kind: input, shape index: {}]   ;;  %s16167_s12 = inlined_call_operand.vmem [shape: f32[1,256], index: 12, kind: input, shape index: {}]   ;;  %s16168_s13 = inlined_call_operand.vmem [shape: f32[1,256], index: 13, kind: input, shape index: {}]   ;;  %s16169_s14 = inlined_call_operand.vmem [shape: f32[1,256], index: 14, kind: input, shape index: {}]   ;;  %s16170_s15 = inlined_call_operand.hbm [shape: f32[256,256], index: 15, kind: output, shape index: {}]  }
   0x1   :  { %16231 = sst [smem:[#allocation60_spill]] %s16157_s2 }
   0x2   :  { %16232 = sst [smem:[#allocation61_spill]] %s16159_s4 }
   0x3   :  { %16233 = sst [smem:[#allocation62_spill]] %s16160_s5 }
   0x4   :  { %16234 = sst [smem:[#allocation63_spill]] %s16161_s6 }
   0x5   :  { %16235 = sst [smem:[#allocation64_spill]] %s16163_s8 }
   0x6   :  { %16236 = sst [smem:[#allocation65_spill]] %s16164_s9 }
   0x7   :  { %16237 = sst [smem:[#allocation66_spill]] %s16165_s10 }
   0x8   :  { %16238 = sst [smem:[#allocation67_spill]] %s16167_s12 }
   0x9   :  { %16239 = sst [smem:[#allocation68_spill]] %s16170_s15 }
   0xa   :  { %20 = vsyncpa [#allocation3], 0 }
   0xb   :  { %22 = vsyncpa [#allocation3 + $0x1], 0 }
   0xc   :  { %23 = vsyncpa [#allocation6], 0 }
   0xd   :  { %24 = vsyncpa [#allocation9], 0 }
   0xe   :  { %25 = vsyncpa [#allocation12], 0 }
   0xf   :  { %26 = vsyncpa [#allocation15], 0 }
  0x10   :  { %27 = vsyncpa [#allocation4], 0 }
  0x11   :  { %29 = vsyncpa [#allocation4 + $0x1], 0  ;;  %s13103_s18 = smov 0   ;;  %s13105_s19 = smov 0  }
  0x12   :  { %s13107_s20 = smov 0   ;;  %s13109_s21 = smov 0  }
  0x13 LB: > { %s13003_s22 = smov [#allocation5]   ;;  %s13124_s24 = sadd.s32 4294967295, %s13001_s21   ;;  %s13001_s21 = sphi %s13109_s21, %s16528_s21   ;;  %s12997_s20 = sphi %s13107_s20, %s16527_s20   ;;  %s12993_s19 = sphi %s13105_s19, %s16526_s19   ;;  %s12989_s18 = sphi %s13103_s18, %s16525_s18  }
  0x14   : > { %s403_s23 = sshll.u32 %s13003_s22, 4  ;;  %p11461_p0 = scmp.ge.s32.totalorder %s13001_s21, 1  ;;  %s404_s23 = int_to_ptr.vmem [resolvable:$true] %s403_s23 }
  0x15   : > { %p16176_p1 = scmp.eq.s32.totalorder %s13124_s24, 0  ;;  %p391_p2 = scmp.lt.s32.totalorder %s13001_s21, 3 }
  0x16   : > { %s13004_s27 = smov [#allocation8]   ;;  %s13005_s29 = smov [#allocation11]  }
  0x17   : > { %p13129_p3 = pnand %p11461_p0, %p391_p2  ;;  %s432_s28 = sshll.u32 %s13004_s27, 4  ;;  %s13142_s28 = int_to_ptr.vmem [resolvable:$true] %s432_s28 }
  0x18   : > { %s13144_s30 = sshll.u32 %s13005_s29, 4  ;;  %s12594_s17 = scalar_lea.vmem %s404_s23, 8192  ;;  %s465_s30 = int_to_ptr.vmem [resolvable:$true] %s13144_s30 }
  0x19   : > { %s16240_s25 = scalar_select %p13129_p3, 1, 0 }
  0x1a   : > { %p12136_p5 = pneg %p13129_p3  ;;  %p12595_p8 = scmp.ne.s32.totalorder %s404_s23, %s12594_s17 }
  0x1b   : > { %p12602_p11 = scmp.lt.s32.totalorder %s404_s23, %s404_s23  ;;  %p12603_p12 = scmp.lt.s32.totalorder %s12594_s17, %s12594_s17 }
  0x1c   : > { %p13138_p6 = pnand %p12136_p5, %p16176_p1 }
  0x1d   : > { %p12604_p13 = por %p12603_p12, %p12602_p11 }
  0x1e   : > { %p13148_p7 = pneg %p13138_p6 }
  0x20   : > { %p12597_p9 = pnand %p12595_p8, %p13148_p7 }
  0x22   : > { %p12598_p10 = pneg %p12597_p9 }
  0x24   : > { %p12605_p0 = pnand %p12604_p13, %p12598_p10 }
  0x26   : > { %12608 = shalt.err (!%p12605_p0)
}
  0x27   : > { %s16172_s22 = smov 256   ;;  %s16173_s27 = smov 16  }
  0x28   : > { %s16243_s2 = sld [smem:[#allocation60_spill]]  ;;  %s12620_s12 = scalar_lea.vmem %s13142_s28, 16384 }
  0x29   : > { %p12621_p2 = scmp.ne.s32.totalorder %s13142_s28, %s12620_s12  ;;  %p12628_p9 = scmp.lt.s32.totalorder %s13142_s28, %s13142_s28 }
  0x2a   : > { %p12629_p10 = scmp.lt.s32.totalorder %s12620_s12, %s12620_s12 }
  0x2b   : > { %p12623_p5 = pnand %p12621_p2, %p13148_p7 }
  0x2c   : > { %p12630_p11 = por %p12629_p10, %p12628_p9 }
  0x2d   : > { %p12624_p8 = pneg %p12623_p5 }
  0x2e   : > { %12139 = dma.hbm_to_vmem [thread:$0]  (!%p13138_p6), %s16243_s2, 8192, %s404_s23, [#allocation6], %s16172_s22, %s16172_s22, %s16173_s27  }
  0x2f   : > { %p12631_p12 = pnand %p12630_p11, %p12624_p8 }
  0x31   : > { %12634 = shalt.err (!%p12631_p12)
}
  0x32   : > { %s16174_s17 = smov 1024   ;;  %s13009_s8 = smov 64  }
  0x33   : > { %s16244_s5 = sld [smem:[#allocation62_spill]]  ;;  %s12646_s29 = scalar_lea.vmem %s465_s30, 2048 }
  0x34   : > { %p12647_p13 = scmp.ne.s32.totalorder %s465_s30, %s12646_s29  ;;  %p12654_p5 = scmp.lt.s32.totalorder %s465_s30, %s465_s30 }
  0x35   : > { %p12655_p8 = scmp.lt.s32.totalorder %s12646_s29, %s12646_s29 }
  0x36   : > { %p12649_p0 = pnand %p12647_p13, %p13148_p7 }
  0x37   : > { %p12656_p9 = por %p12655_p8, %p12654_p5 }
  0x38   : > { %p12650_p2 = pneg %p12649_p0 }
  0x39   : > { %12145 = dma.hbm_to_vmem [thread:$0]  (!%p13138_p6), %s16244_s5, 16384, %s13142_s28, [#allocation9], %s16174_s17, %s16174_s17, %s13009_s8  }
  0x3a   : > { %p12657_p10 = pnand %p12656_p9, %p12650_p2 }
  0x3c   : > { %12660 = shalt.err (!%p12657_p10)
}
  0x3d   : > { %s13010_s12 = smov 4   ;;  %s16245_s9 = sld [smem:[#allocation65_spill]] }
  0x3e   : > { %s13011_s28 = smov [#allocation7]   ;;  %s13012_s23 = smov [#allocation10]  }
  0x3f   : > { %s419_s15 = sshll.u32 %s13011_s28, 4  ;;  %s445_s17 = sshll.u32 %s13012_s23, 4  ;;  %s420_s15 = int_to_ptr.vmem [resolvable:$true] %s419_s15  ;;  %s446_s17 = int_to_ptr.vmem [resolvable:$true] %s445_s17 }
  0x40   : > { %s12672_s29 = scalar_lea.vmem %s420_s15, 16384  ;;  %p12680_p0 = scmp.lt.s32.totalorder %s420_s15, %s420_s15 }
  0x41   : > { %p12673_p11 = scmp.ne.s32.totalorder %s420_s15, %s12672_s29  ;;  %p12681_p2 = scmp.lt.s32.totalorder %s12672_s29, %s12672_s29 }
  0x43   : > { %12151 = dma.hbm_to_vmem [thread:$0]  (!%p13138_p6), %s16245_s9, 2048, %s465_s30, [#allocation12], %s13009_s8, %s13009_s8, %s13010_s12  }
  0x44   : > { %p12675_p12 = pnand %p12673_p11, %p13148_p7  ;;  %p12682_p5 = por %p12681_p2, %p12680_p0 }
  0x46   : > { %p12676_p13 = pneg %p12675_p12 }
  0x48   : > { %p12683_p8 = pnand %p12682_p5, %p12676_p13 }
  0x4a   : > { %12686 = shalt.err (!%p12683_p8)
}
  0x4b   : > { %s16246_s30 = smov 1024   ;;  %s16247_s4 = sld [smem:[#allocation61_spill]] }
  0x4c   : > { %s12698_s12 = scalar_lea.vmem %s446_s17, 16384  ;;  %p12706_p12 = scmp.lt.s32.totalorder %s446_s17, %s446_s17 }
  0x4d   : > { %p12699_p9 = scmp.ne.s32.totalorder %s446_s17, %s12698_s12  ;;  %p12707_p4 = scmp.lt.s32.totalorder %s12698_s12, %s12698_s12 }
  0x4f   : > { %p12701_p10 = pnand %p12699_p9, %p13148_p7  ;;  %p12708_p0 = por %p12707_p4, %p12706_p12 }
  0x51   : > { %12142 = dma.hbm_to_vmem [thread:$0]  (!%p13138_p6), %s16247_s4, 16384, %s420_s15, [#allocation6], %s16246_s30, %s16246_s30, %s13009_s8  }
  0x52   : > { %p12702_p11 = pneg %p12701_p10 }
  0x54   : > { %p12709_p13 = pnand %p12708_p0, %p12702_p11 }
  0x56   : > { %12712 = shalt.err (!%p12709_p13)
}
  0x57   : > { %s16248_s6 = sld [smem:[#allocation63_spill]]  ;;  %s13013_s15 = smov [#allocation13]  }
  0x58   : > { %s477_s29 = sshll.u32 %s13013_s15, 4  ;;  %s478_s29 = int_to_ptr.vmem [resolvable:$true] %s477_s29 }
  0x59   : > { %s12724_s22 = scalar_lea.vmem %s478_s29, 2048  ;;  %p12732_p8 = scmp.lt.s32.totalorder %s478_s29, %s478_s29 }
  0x5a   : > { %p12725_p2 = scmp.ne.s32.totalorder %s478_s29, %s12724_s22  ;;  %p12733_p9 = scmp.lt.s32.totalorder %s12724_s22, %s12724_s22 }
  0x5c   : > { %p12727_p5 = pnand %p12725_p2, %p13148_p7  ;;  %p12734_p10 = por %p12733_p9, %p12732_p8 }
  0x5d   : > { %12148 = dma.hbm_to_vmem [thread:$0]  (!%p13138_p6), %s16248_s6, 16384, %s446_s17, [#allocation9], %s16246_s30, %s16246_s30, %s13009_s8  }
  0x5e   : > { %p12728_p4 = pneg %p12727_p5 }
  0x60   : > { %p12735_p11 = pnand %p12734_p10, %p12728_p4 }
  0x62   : > { %12738 = shalt.err (!%p12735_p11)
}
  0x63   : > { %s13014_s27 = smov 128   ;;  %s13015_s12 = smov 8  }
  0x64   : > { %s16249_s10 = sld [smem:[#allocation66_spill]]  ;;  %s13016_s17 = smov [#allocation14]  }
  0x65   : > { %s490_s30 = sshll.u32 %s13016_s17, 4  ;;  %s491_s30 = int_to_ptr.vmem [resolvable:$true] %s490_s30 }
  0x66   : > { %s12750_s23 = scalar_lea.vmem %s491_s30, 4096  ;;  %p12758_p2 = scmp.lt.s32.totalorder %s491_s30, %s491_s30 }
  0x67   : > { %p12751_p12 = scmp.ne.s32.totalorder %s491_s30, %s12750_s23  ;;  %p12759_p5 = scmp.lt.s32.totalorder %s12750_s23, %s12750_s23 }
  0x69   : > { %p12753_p0 = pnand %p12751_p12, %p13148_p7  ;;  %p12760_p4 = por %p12759_p5, %p12758_p2 }
  0x6a   : > { %12154 = dma.hbm_to_vmem [thread:$0]  (!%p13138_p6), %s16249_s10, 2048, %s478_s29, [#allocation12], %s13014_s27, %s13014_s27, %s13015_s12  }
  0x6b   : > { %p12754_p13 = pneg %p12753_p0 }
  0x6d   : > { %p12761_p8 = pnand %p12760_p4, %p12754_p13 }
  0x6f   : > { %12764 = shalt.err (!%p12761_p8)
}
  0x70   : > { %12157 = dma.hbm_to_vmem [thread:$0]  (!%p13138_p6), %s16166_s11, 4096, %s491_s30, [#allocation15], %s13014_s27, %s13014_s27, %s13015_s12  }
  0x71   : > { %s11460_s16 = sadd.s32 4294967294, %s13001_s21   ;;  %s13223_s26 = sadd.s32 1, %s13001_s21  }
  0x72   : > { %s39_s29 = ssub.s32 %s13001_s21, %s13223_s26  ;;  %s42_s28 = sadd.s32 1, %s12997_s20 }
  0x73   : > { %p40_p7 = scmp.eq.s32.totalorder %s39_s29, 0  ;;  %p49_p9 = scmp.ne.s32.totalorder %s12997_s20, %s12993_s19 }
  0x74   : > { %p50_p10 = scmp.eq.s32.totalorder %s13001_s21, 0  ;;  %p55_p11 = scmp.ne.s32.totalorder %s12993_s19, %s12989_s18 }
  0x75   : > { %s13234_s8 = scalar_select %p40_p7, %s12997_s20, %s42_s28  }
  0x76   : > { %p13236_p12 = por %p50_p10, %p49_p9  ;;  %p13242_p6 = por %p16176_p1, %p55_p11 }
  0x77   : > { %p378_p0 = scmp.eq.s32.totalorder %s13124_s24, 1  ;;  %p384_p13 = scmp.eq.s32.totalorder %s11460_s16, 1 }
  0x78   : > { %s16251_s27 = scalar_select %p13242_p6, 1, 0 }
  0x79   : > { %p12173_p2 = scmp.lt.s32.totalorder %s13001_s21, 2  ;;  %s513_s12 = sand.u32 1, %s12997_s20  }
  0x7a   : > { %p13249_p5 = por %p378_p0, %p49_p9  ;;  %p13253_p4 = por %p384_p13, %p55_p11 }
  0x7b   : > { %s11470_s15 = sshll.u32 %s513_s12, 8  ;;  %s12037_s22 = sshll.u32 %s13001_s21, 12 }
  0x7c   : > { %s16252_s30 = scalar_select %p13249_p5, 1, 0 }
  0x7d   : > { %s16253_s23 = scalar_select %p13253_p4, 1, 0 }
  0x7e   : > { %s13261_s2 = scalar_lea.hbm %s16155_s0, %s12037_s22  ;;  %s517_s16 = scalar_lea.vmem [#allocation2], %s11470_s15 }
  0x7f   : > { %s525_s4 = sshll.u32 %s517_s16, 4  ;;  %p13267_p8 = pnand %p12173_p2, %p13236_p12  ;;  %s13263_s4 = int_to_ptr.vmem [resolvable:$true] %s525_s4 }
  0x80   : > { %s13271_s6 = scalar_lea.sflag [#allocation3], %s513_s12  ;;  %s12765_s9 = scalar_lea.hbm %s13261_s2, 4096 }
  0x81   : > { %p12766_p7 = scmp.ne.s32.totalorder %s13261_s2, %s12765_s9  ;;  %p12767_p9 = pneg %p13267_p8 }
  0x82   : > { %s12770_s15 = scalar_lea.hbm %s16155_s0, 8192  ;;  %p12771_p12 = scmp.lt.s32.totalorder %s13261_s2, %s16155_s0 }
  0x83   : > { %p12768_p10 = pnand %p12767_p9, %p12766_p7  ;;  %p12772_p0 = scmp.lt.s32.totalorder %s12770_s15, %s12765_s9 }
  0x85   : > { %p12769_p11 = pneg %p12768_p10  ;;  %p12773_p13 = por %p12772_p0, %p12771_p12 }
  0x87   : > { %p12774_p2 = pnand %p12773_p13, %p12769_p11 }
  0x89   : > { %12777 = shalt.err (!%p12774_p2)
}
  0x8a   : > { %s12778_s17 = scalar_lea.vmem %s13263_s4, 4096  ;;  %s13017_s12 = smov [#allocation2]  }
  0x8b   : > { %p12779_p1 = scmp.ne.s32.totalorder %s13263_s4, %s12778_s17  ;;  %s12783_s10 = sshll.u32 %s13017_s12, 4  ;;  %s12784_s10 = int_to_ptr.vmem [resolvable:$false] %s12783_s10 }
  0x8c   : > { %s12785_s22 = scalar_lea.vmem %s12784_s10, 8192  ;;  %p12786_p10 = scmp.lt.s32.totalorder %s13263_s4, %s12784_s10 }
  0x8d   : > { %p12781_p4 = pnand %p12779_p1, %p12767_p9  ;;  %p12787_p5 = scmp.lt.s32.totalorder %s12785_s22, %s12778_s17 }
  0x8f   : > { %p12782_p7 = pneg %p12781_p4  ;;  %p12788_p6 = por %p12787_p5, %p12786_p10 }
  0x91   : > { %p12789_p3 = pnand %p12788_p6, %p12782_p7 }
  0x93   : > { %12792 = shalt.err (!%p12789_p3)
}
  0x94   : > { %s16255_s9 = smov 16   ;;  %s16256_s29 = smov 256  }
  0x95   : > { %12161 = dma.hbm_to_vmem [thread:$0]  (!%p13267_p8), %s13261_s2, 4096, %s13263_s4, %s13271_s6, %s16256_s29, %s16256_s29, %s16255_s9  }
  0x96   : > { %p16257_p1 = scmp.ne.s32.totalorder %s16240_s25, 0 }
  0x98   : > { %546 = sbr.rel (%p16257_p1) target bundleno = 2644 (0xa54), region = 80 }
  0x9d   : > { %s13298_s15 = sand.u32 1, %s12993_s19   ;;  %p16258_p3 = scmp.ne.s32.totalorder %s16251_s27, 0 }
  0x9e   : > { %s11475_s10 = sshll.u32 %s13298_s15, 8  ;;  %s549_s28 = scalar_lea.sflag [#allocation3], %s13298_s15 }
  0x9f   : > { %s13304_s5 = scalar_lea.vmem [#allocation2], %s11475_s10 }
  0xa0   : > { %12836 = dma.done.wait (%p16258_p3), %s549_s28, 4096  }
  0xa1   : > { %12838 = vsyncadd (%p16258_p3), %s549_s28, 4294963200  ;;  %p16259_p6 = scmp.eq.s32.totalorder %s13124_s24, 0 }
  0xa3   : > { %12840 = dma.done.wait (%p16259_p6), [#allocation6], 24576   ;;  %p16260_p5 = pmov %p16259_p6 }
  0xa5   : > { %12842 = vsyncadd (%p16260_p5), [#allocation6], 4294942720  ;;  %p16261_p4 = pmov %p16260_p5 }
  0xa7   : > { %12844 = dma.done.wait (%p16261_p4), [#allocation9], 32768   ;;  %p16262_p8 = pmov %p16261_p4 }
  0xa8   : > { %p16263_p9 = pmov %p16261_p4 }
  0xa9   : > { %12846 = vsyncadd (%p16262_p8), [#allocation9], 4294934528 }
  0xaa   : > { %12848 = dma.done.wait (%p16263_p9), [#allocation12], 4096   ;;  %p16264_p11 = pmov %p16261_p4 }
  0xab   : > { %p16265_p12 = pmov %p16261_p4 }
  0xac   : > { %12850 = vsyncadd (%p16264_p11), [#allocation12], 4294963200 }
  0xad   : > { %12852 = dma.done.wait (%p16265_p12), [#allocation15], 4096   ;;  %p16266_p0 = pmov %p16261_p4 }
  0xae   : > { %v723_v0 = vlaneseq  ;;  %v13335_v4 = vld [vmem:[%s13304_s5] sm:$0xff]  ;;  %v13338_v5 = vld [vmem:[%s13304_s5 + $0x8] sm:$0xff]  ;;  %v13360_v13 = vld [vmem:[%s13304_s5 + $0x10] sm:$0xff]  ;;  %s11484_s17 = sshll.u32 %s13124_s24, 4  ;;  %s16516_s16 = sld [smem:[#allocation64_spill]] }
  0xaf   : > { %12854 = vsyncadd (%p16266_p0), [#allocation15], 4294963200  ;;  %v721_v6 = vld [vmem:[%s16168_s13] sm:$0x3]  ;;  %v689_v7 = vmul.f32 %v13335_v4, %v13335_v4  ;;  %v690_v8 = vmul.f32 %v13338_v5, %v13338_v5  ;;  %v13357_v12 = vld [vmem:[%s13304_s5 + $0x28] sm:$0xff]  ;;  %v691_v17 = vmul.f32 %v13360_v13, %v13360_v13  ;;  %p634_p13 = scmp.lt.s32.totalorder %s11484_s17, 31 }
  0xb0   : > { %v13326_v1 = vshrl.u32 %v723_v0, 7  ;;  %v13354_v11 = vld [vmem:[%s13304_s5 + $0x20] sm:$0xff]  ;;  %v694_v15 = vmul.f32 %v13357_v12, %v13357_v12  ;;  %v13367_v16 = vld [vmem:[%s13304_s5 + $0x18] sm:$0xff]  ;;  %v13372_v18 = vld [vmem:[%s13304_s5 + $0x30] sm:$0xff]  ;;  %s16519_s22 = sld [smem:[#allocation67_spill]]  ;;  %s16010_s9 = scalar_lea.vmem [#allocation16], %s11475_s10 }
  0xb1   : > { %v693_v14 = vmul.f32 %v13354_v11, %v13354_v11  ;;  %v13375_v19 = vld [vmem:[%s13304_s5 + $0x38] sm:$0xff]  ;;  %v692_v22 = vmul.f32 %v13367_v16, %v13367_v16  ;;  %v695_v23 = vmul.f32 %v13372_v18, %v13372_v18  ;;  %v651_v24 = vld [vmem:[%s13304_s5 + $0x50] sm:$0xff]  ;;  %v649_v26 = vld [vmem:[%s13304_s5 + $0x40] sm:$0xff]  ;;  %s16530_s17 = smov (!%p634_p13, %s11484_s17), 31  ;;  %s12039_s10 = sshll.u32 %s13124_s24, 12 }
  0xb2   : > { %16267 = vst [vmem:[#allocation23_spill] sm:$0xff] %v13326_v1  ;;  %v13329_v2 = vsub.s32 0, %v13326_v1  ;;  %v13332_v3 = vsub.s32 1, %v13326_v1  ;;  %v13385_v25 = vld [vmem:[%s13304_s5 + $0x58] sm:$0xff]  ;;  %v696_v30 = vmul.f32 %v13375_v19, %v13375_v19  ;;  %v13394_v31 = vld [vmem:[%s13304_s5 + $0x48] sm:$0xff]  ;;  %v655_v32 = vld [vmem:[%s13304_s5 + $0x70] sm:$0xff]  ;;  %v699_v36 = vmul.f32 %v651_v24, %v651_v24 }
  0xb3   : > { %v656_v37 = vld [vmem:[%s13304_s5 + $0x78] sm:$0xff]  ;;  %v700_v40 = vmul.f32 %v13385_v25, %v13385_v25  ;;  %v697_v41 = vmul.f32 %v649_v26, %v649_v26  ;;  %v653_v42 = vld [vmem:[%s13304_s5 + $0x60] sm:$0xff]  ;;  %v654_v43 = vld [vmem:[%s13304_s5 + $0x68] sm:$0xff]  ;;  %v698_v46 = vmul.f32 %v13394_v31, %v13394_v31  ;;  %v703_v47 = vmul.f32 %v655_v32, %v655_v32  ;;  %s11485_s12 = sshll.u32 %s16530_s17, 3  ;;  %s16521_s4 = sld [smem:[#allocation68_spill]] }
  0xb4   : > { %16268 = vst [vmem:[#allocation24_spill] sm:$0xff] %v13329_v2  ;;  %16269 = vst [vmem:[#allocation25_spill] sm:$0xff] %v13332_v3  ;;  %v13348_v9 = vrot.slane %v721_v6, %v13329_v2  ;;  %v13351_v10 = vrot.slane %v721_v6, %v13332_v3  ;;  %v704_v51 = vmul.f32 %v656_v37, %v656_v37  ;;  %v659_v52 = vld [vmem:[%s13304_s5 + $0x90] sm:$0xff]  ;;  %v657_v53 = vld [vmem:[%s13304_s5 + $0x80] sm:$0xff]  ;;  %s15273_s29 = scalar_lea.vmem %s16156_s1, %s11485_s12  ;;  %s11294_s24 = scalar_lea.sflag [#allocation4], %s13298_s15 }
  0xb5   : > { %v701_v55 = vmul.f32 %v653_v42, %v653_v42  ;;  %v702_v56 = vmul.f32 %v654_v43, %v654_v43  ;;  %v660_v57 = vld [vmem:[%s13304_s5 + $0x98] sm:$0xff]  ;;  %v658_v58 = vld [vmem:[%s13304_s5 + $0x88] sm:$0xff]  ;;  %v663_v59 = vld [vmem:[%s13304_s5 + $0xb0] sm:$0xff]  ;;  %p16522_p7 = scmp.ne.s32.totalorder %s16252_s30, 0  ;;  %s13020_s27 = smov [#allocation16]  }
  0xb6   : > { %v733_v20 = vmul.f32 %v13348_v9, %v689_v7  ;;  %v734_v21 = vmul.f32 %v13351_v10, %v690_v8  ;;  %v737_v27 = vmul.f32 %v13348_v9, %v693_v14  ;;  %v738_v28 = vmul.f32 %v13351_v10, %v694_v15  ;;  %v664_v62 = vld [vmem:[%s13304_s5 + $0xb8] sm:$0xff]  ;;  %v661_v63 = vld [vmem:[%s13304_s5 + $0xa0] sm:$0xff]  ;;  %v662_v0 = vld [vmem:[%s13304_s5 + $0xa8] sm:$0xff] }
  0xb7   : > { %v735_v29 = vmul.f32 %v13348_v9, %v691_v17  ;;  %v736_v34 = vmul.f32 %v13351_v10, %v692_v22  ;;  %v739_v35 = vmul.f32 %v13348_v9, %v695_v23  ;;  %v740_v39 = vmul.f32 %v13351_v10, %v696_v30  ;;  %v12233_v15 = vld [vmem:[#allocation5 + $0xe4] ss:$16 sps:$4 sm:$0xff]   ;;  %v12235_v23 = vld [vmem:[#allocation5 + $0xec] ss:$16 sps:$4 sm:$0xff]   ;;  %v12238_v32 = vld [vmem:[#allocation5 + $0xe8] ss:$16 sps:$4 sm:$0xff]  }
  0xb8   : > { %v765_v33 = vadd.f32 %v734_v21, %v733_v20  ;;  %v771_v38 = vadd.f32 %v738_v28, %v737_v27  ;;  %v743_v45 = vmul.f32 %v13348_v9, %v699_v36  ;;  %v744_v49 = vmul.f32 %v13351_v10, %v700_v40  ;;  %v665_v26 = vld [vmem:[%s13304_s5 + $0xc0] sm:$0xff]  ;;  %1359 = vmatprep.subr.bf16.mxu0 %v12233_v15  ;;  %v667_v36 = vld [vmem:[%s13304_s5 + $0xd0] sm:$0xff]  ;;  %v668_v37 = vld [vmem:[%s13304_s5 + $0xd8] sm:$0xff] }
  0xb9   : > { %v768_v44 = vadd.f32 %v736_v34, %v735_v29  ;;  %v774_v48 = vadd.f32 %v740_v39, %v739_v35  ;;  %v741_v50 = vmul.f32 %v13348_v9, %v697_v41  ;;  %v742_v54 = vmul.f32 %v13351_v10, %v698_v46  ;;  %v12237_v27 = vld [vmem:[#allocation5 + $0xe0] ss:$16 sps:$4 sm:$0xff]   ;;  %1472 = vmatprep.subr.bf16.mxu1 %v12235_v23  ;;  %v12239_v39 = vld [vmem:[#allocation5 + $0xc4] ss:$16 sps:$4 sm:$0xff]   ;;  %v12241_v43 = vld [vmem:[#allocation5 + $0xcc] ss:$16 sps:$4 sm:$0xff]   ;;  %s16107_s6 = scalar_lea.hbm %s16521_s4, %s12039_s10 }
  0xba   : > { %766 = vadd.xlane.f32.xlu0 %v765_v33  ;;  %772 = vadd.xlane.f32.xlu1 %v771_v38  ;;  %v780_v60 = vadd.f32 %v744_v49, %v743_v45  ;;  %v747_v61 = vmul.f32 %v13348_v9, %v703_v47  ;;  %v745_v7 = vmul.f32 %v13348_v9, %v701_v55  ;;  %v666_v38 = vld [vmem:[%s13304_s5 + $0xc8] sm:$0xff]  ;;  %v12243_v45 = vld [vmem:[#allocation5 + $0xc0] ss:$16 sps:$4 sm:$0xff]  }
  0xbb   : > { %v777_v6 = vadd.f32 %v742_v54, %v741_v50  ;;  %v746_v8 = vmul.f32 %v13351_v10, %v702_v56  ;;  %v705_v14 = vmul.f32 %v657_v53, %v657_v53  ;;  %v748_v17 = vmul.f32 %v13351_v10, %v704_v51  ;;  %1360 = vmatpush1.bf16.msra.mxu0 %v12237_v27  ;;  %v669_v50 = vld [vmem:[%s13304_s5 + $0xe0] sm:$0xff]  ;;  %v12244_v51 = vld [vmem:[#allocation5 + $0xc8] ss:$16 sps:$4 sm:$0xff]   ;;  %v671_v55 = vld [vmem:[%s13304_s5 + $0xf0] sm:$0xff] }
  0xbc   : > { %v707_v20 = vmul.f32 %v659_v52, %v659_v52  ;;  %v708_v21 = vmul.f32 %v660_v57, %v660_v57  ;;  %v706_v22 = vmul.f32 %v658_v58, %v658_v58  ;;  %v711_v24 = vmul.f32 %v663_v59, %v663_v59  ;;  %1473 = vmatpush1.bf16.msra.mxu1 %v12238_v32  ;;  %v12245_v52 = vld [vmem:[#allocation5 + $0xa4] ss:$16 sps:$4 sm:$0xff]   ;;  %v672_v56 = vld [vmem:[%s13304_s5 + $0xf8] sm:$0xff] }
  0xbd   : > { %v712_v28 = vmul.f32 %v664_v62, %v664_v62  ;;  %v709_v29 = vmul.f32 %v661_v63, %v661_v63  ;;  %v710_v30 = vmul.f32 %v662_v0, %v662_v0  ;;  %v783_v33 = vadd.f32 %v746_v8, %v745_v7  ;;  %v12247_v57 = vld [vmem:[#allocation5 + $0xac] ss:$16 sps:$4 sm:$0xff]   ;;  %1361 = vmatprep.subr.bf16.mxu0 %v12239_v39  ;;  %v12249_v62 = vld [vmem:[#allocation5 + $0xa0] ss:$16 sps:$4 sm:$0xff]   ;;  %v12250_v63 = vld [vmem:[#allocation5 + $0xa8] ss:$16 sps:$4 sm:$0xff]  }
  0xbe   : > { %769 = vadd.xlane.f32.xlu0 %v768_v44  ;;  %775 = vadd.xlane.f32.xlu1 %v774_v48  ;;  %v749_v34 = vmul.f32 %v13348_v9, %v705_v14  ;;  %v750_v35 = vmul.f32 %v13351_v10, %v706_v22  ;;  %v786_v40 = vadd.f32 %v748_v17, %v747_v61  ;;  %v670_v61 = vld [vmem:[%s13304_s5 + $0xe8] sm:$0xff]  ;;  %v12251_v8 = vld [vmem:[#allocation5 + $0x84] ss:$16 sps:$4 sm:$0xff]  }
  0xbf   : > { %v751_v41 = vmul.f32 %v13348_v9, %v707_v20  ;;  %v752_v42 = vmul.f32 %v13351_v10, %v708_v21  ;;  %v755_v44 = vmul.f32 %v13348_v9, %v711_v24  ;;  %v756_v46 = vmul.f32 %v13351_v10, %v712_v28  ;;  %1474 = vmatprep.subr.bf16.mxu1 %v12241_v43  ;;  %v12253_v20 = vld [vmem:[#allocation5 + $0x8c] ss:$16 sps:$4 sm:$0xff]   ;;  %v12256_v27 = vld [vmem:[#allocation5 + $0x88] ss:$16 sps:$4 sm:$0xff]   ;;  %v12257_v28 = vld [vmem:[#allocation5 + $0x64] ss:$16 sps:$4 sm:$0xff]  }
  0xc0   : > { %v753_v47 = vmul.f32 %v13348_v9, %v709_v29  ;;  %v754_v48 = vmul.f32 %v13351_v10, %v710_v30  ;;  %v713_v49 = vmul.f32 %v665_v26, %v665_v26  ;;  %v789_v53 = vadd.f32 %v750_v35, %v749_v34  ;;  %1362 = vmatpush1.bf16.msra.mxu0 %v12243_v45  ;;  %v12255_v26 = vld [vmem:[#allocation5 + $0x80] ss:$16 sps:$4 sm:$0xff]   ;;  %v12263_v39 = vld [vmem:[#allocation5 + $0x44] ss:$16 sps:$4 sm:$0xff]  }
  0xc1   : > { %v714_v54 = vmul.f32 %v666_v38, %v666_v38  ;;  %v792_v58 = vadd.f32 %v752_v42, %v751_v41  ;;  %v715_v59 = vmul.f32 %v667_v36, %v667_v36  ;;  %v798_v0 = vadd.f32 %v756_v46, %v755_v44  ;;  %1475 = vmatpush1.bf16.msra.mxu1 %v12244_v51  ;;  %v12262_v38 = vld [vmem:[#allocation5 + $0x68] ss:$16 sps:$4 sm:$0xff]   ;;  %v12265_v41 = vld [vmem:[#allocation5 + $0x4c] ss:$16 sps:$4 sm:$0xff]   ;;  %v12267_v43 = vld [vmem:[#allocation5 + $0x40] ss:$16 sps:$4 sm:$0xff]  }
  0xc2   : > { %778 = vadd.xlane.f32.xlu0 %v777_v6  ;;  %781 = vadd.xlane.f32.xlu1 %v780_v60  ;;  %v716_v60 = vmul.f32 %v668_v37, %v668_v37  ;;  %v795_v6 = vadd.f32 %v754_v48, %v753_v47  ;;  %v757_v7 = vmul.f32 %v13348_v9, %v713_v49  ;;  %v12261_v37 = vld [vmem:[#allocation5 + $0x60] ss:$16 sps:$4 sm:$0xff]   ;;  %v12268_v44 = vld [vmem:[#allocation5 + $0x48] ss:$16 sps:$4 sm:$0xff]   ;;  %v12275_v47 = vld [vmem:[#allocation5 + $0x4] ss:$16 sps:$4 sm:$0xff]  }
  0xc3   : > { %1363 = vmatprep.subr.bf16.mxu0 %v12245_v52  ;;  %v758_v14 = vmul.f32 %v13351_v10, %v714_v54  ;;  %v717_v15 = vmul.f32 %v669_v50, %v669_v50  ;;  %v718_v17 = vmul.f32 %v670_v61, %v670_v61  ;;  %1476 = vmatprep.subr.bf16.mxu1 %v12247_v57  ;;  %v12273_v45 = vld [vmem:[#allocation5 + $0x20] ss:$16 sps:$4 sm:$0xff]   ;;  %v12274_v46 = vld [vmem:[#allocation5 + $0x28] ss:$16 sps:$4 sm:$0xff]   ;;  %v12277_v48 = vld [vmem:[#allocation5 + $0xc] ss:$16 sps:$4 sm:$0xff]  }
  0xc4   : > { %v759_v21 = vmul.f32 %v13348_v9, %v715_v59  ;;  %v760_v22 = vmul.f32 %v13351_v10, %v716_v60  ;;  %v719_v23 = vmul.f32 %v671_v55, %v671_v55  ;;  %v720_v24 = vmul.f32 %v672_v56, %v672_v56  ;;  %1364 = vmatpush1.bf16.msra.mxu0 %v12249_v62  ;;  %v12279_v49 = vld [vmem:[#allocation5] ss:$16 sps:$4 sm:$0xff]   ;;  %v12280_v50 = vld [vmem:[#allocation5 + $0x8] ss:$16 sps:$4 sm:$0xff]   ;;  %v12281_v51 = vld [vmem:[#allocation5 + $0x1e4] ss:$16 sps:$4 sm:$0xff]  }
  0xc5   : > { %1477 = vmatpush1.bf16.msra.mxu1 %v12250_v63  ;;  %1365 = vmatprep.subr.bf16.mxu0 %v12251_v8  ;;  %v801_v29 = vadd.f32 %v758_v14, %v757_v7  ;;  %v761_v30 = vmul.f32 %v13348_v9, %v717_v15  ;;  %v762_v32 = vmul.f32 %v13351_v10, %v718_v17  ;;  %v12283_v52 = vld [vmem:[#allocation5 + $0x1ec] ss:$16 sps:$4 sm:$0xff]   ;;  %v12286_v54 = vld [vmem:[#allocation5 + $0x1e8] ss:$16 sps:$4 sm:$0xff]   ;;  %v12287_v55 = vld [vmem:[#allocation5 + $0x1c4] ss:$16 sps:$4 sm:$0xff]  }
  0xc6   : > { %784 = vadd.xlane.f32.xlu0 %v783_v33  ;;  %787 = vadd.xlane.f32.xlu1 %v786_v40  ;;  %v12259_v33 = vld [vmem:[#allocation5 + $0x6c] ss:$16 sps:$4 sm:$0xff]   ;;  %v804_v34 = vadd.f32 %v760_v22, %v759_v21  ;;  %v763_v35 = vmul.f32 %v13348_v9, %v719_v23  ;;  %v764_v36 = vmul.f32 %v13351_v10, %v720_v24  ;;  %v12269_v9 = vld [vmem:[#allocation5 + $0x24] ss:$16 sps:$4 sm:$0xff]   ;;  %v12291_v57 = vld [vmem:[#allocation5 + $0x1c0] ss:$16 sps:$4 sm:$0xff]  }
  0xc7   : > { %1478 = vmatprep.subr.bf16.mxu1 %v12253_v20  ;;  %v807_v40 = vadd.f32 %v762_v32, %v761_v30  ;;  %v12271_v10 = vld [vmem:[#allocation5 + $0x2c] ss:$16 sps:$4 sm:$0xff]   ;;  %v12293_v59 = vld [vmem:[#allocation5 + $0x1a4] ss:$16 sps:$4 sm:$0xff]   ;;  %v12297_v61 = vld [vmem:[#allocation5 + $0x1a0] ss:$16 sps:$4 sm:$0xff]  }
  0xc8   : > { %1366 = vmatpush1.bf16.msra.mxu0 %v12255_v26  ;;  %v810_v42 = vadd.f32 %v764_v36, %v763_v35  ;;  %v12289_v56 = vld [vmem:[#allocation5 + $0x1cc] ss:$16 sps:$4 sm:$0xff]   ;;  %v12298_v62 = vld [vmem:[#allocation5 + $0x1a8] ss:$16 sps:$4 sm:$0xff]   ;;  %v12299_v63 = vld [vmem:[#allocation5 + $0x184] ss:$16 sps:$4 sm:$0xff]  }
  0xc9   : > { %1479 = vmatpush1.bf16.msra.mxu1 %v12256_v27  ;;  %1367 = vmatprep.subr.bf16.mxu0 %v12257_v28  ;;  %v12295_v60 = vld [vmem:[#allocation5 + $0x1ac] ss:$16 sps:$4 sm:$0xff]   ;;  %v12304_v7 = vld [vmem:[#allocation5 + $0x188] ss:$16 sps:$4 sm:$0xff]   ;;  %v12305_v8 = vld [vmem:[#allocation5 + $0x164] ss:$16 sps:$4 sm:$0xff]  }
  0xca   : > { %790 = vadd.xlane.f32.xlu0 %v789_v53  ;;  %793 = vadd.xlane.f32.xlu1 %v792_v58  ;;  %v12285_v53 = vld [vmem:[#allocation5 + $0x1e0] ss:$16 sps:$4 sm:$0xff]   ;;  %v12292_v58 = vld [vmem:[#allocation5 + $0x1c8] ss:$16 sps:$4 sm:$0xff]   ;;  %v12307_v14 = vld [vmem:[#allocation5 + $0x16c] ss:$16 sps:$4 sm:$0xff]  }
  0xcb   : > { %1480 = vmatprep.subr.bf16.mxu1 %v12259_v33  ;;  %v12309_v15 = vld [vmem:[#allocation5 + $0x160] ss:$16 sps:$4 sm:$0xff]   ;;  %v12310_v17 = vld [vmem:[#allocation5 + $0x168] ss:$16 sps:$4 sm:$0xff]   ;;  %v12311_v20 = vld [vmem:[#allocation5 + $0x144] ss:$16 sps:$4 sm:$0xff]  }
  0xcc   : > { %1368 = vmatpush1.bf16.msra.mxu0 %v12261_v37  ;;  %v12313_v21 = vld [vmem:[#allocation5 + $0x14c] ss:$16 sps:$4 sm:$0xff]   ;;  %v12315_v22 = vld [vmem:[#allocation5 + $0x140] ss:$16 sps:$4 sm:$0xff]   ;;  %v12316_v23 = vld [vmem:[#allocation5 + $0x148] ss:$16 sps:$4 sm:$0xff]  }
  0xcd   : > { %1481 = vmatpush1.bf16.msra.mxu1 %v12262_v38  ;;  %1369 = vmatprep.subr.bf16.mxu0 %v12263_v39  ;;  %v12317_v24 = vld [vmem:[#allocation5 + $0x124] ss:$16 sps:$4 sm:$0xff]   ;;  %v12319_v26 = vld [vmem:[#allocation5 + $0x12c] ss:$16 sps:$4 sm:$0xff]   ;;  %v12321_v27 = vld [vmem:[#allocation5 + $0x120] ss:$16 sps:$4 sm:$0xff]  }
  0xce   : > { %796 = vadd.xlane.f32.xlu0 %v795_v6  ;;  %799 = vadd.xlane.f32.xlu1 %v798_v0  ;;  %v12301_v0 = vld [vmem:[#allocation5 + $0x18c] ss:$16 sps:$4 sm:$0xff]   ;;  %v12303_v6 = vld [vmem:[#allocation5 + $0x180] ss:$16 sps:$4 sm:$0xff]   ;;  %v12322_v28 = vld [vmem:[#allocation5 + $0x128] ss:$16 sps:$4 sm:$0xff]  }
  0xcf   : > { %1482 = vmatprep.subr.bf16.mxu1 %v12265_v41  ;;  %v12325_v30 = vld [vmem:[#allocation5 + $0x10c] ss:$16 sps:$4 sm:$0xff]   ;;  %v12327_v32 = vld [vmem:[#allocation5 + $0x100] ss:$16 sps:$4 sm:$0xff]   ;;  %v12328_v33 = vld [vmem:[#allocation5 + $0x108] ss:$16 sps:$4 sm:$0xff]  }
  0xd0   : > { %1370 = vmatpush1.bf16.msra.mxu0 %v12267_v43  ;;  %v13449_v35 = vld [vmem:[#allocation7 + $0x3c0] sm:$0xff] }
  0xd1   : > { %1483 = vmatpush1.bf16.msra.mxu1 %v12268_v44  ;;  %1371 = vmatprep.subr.bf16.mxu0 %v12269_v9  ;;  %v13451_v36 = vld [vmem:[#allocation8 + $0x380] sm:$0xff] }
  0xd2   : > { %802 = vadd.xlane.f32.xlu0 %v801_v29  ;;  %805 = vadd.xlane.f32.xlu1 %v804_v34  ;;  %v12323_v29 = vld [vmem:[#allocation5 + $0x104] ss:$16 sps:$4 sm:$0xff]  }
  0xd3   : > { %1484 = vmatprep.subr.bf16.mxu1 %v12271_v10  ;;  %v13447_v34 = vld [vmem:[#allocation7 + $0x380] sm:$0xff] }
  0xd4   : > { %1372 = vmatpush1.bf16.msra.mxu0 %v12273_v45  ;;  %v11564_v37 = vcombine.low %v13447_v34, %v13449_v35  ;;  %v11565_v38 = vcombine.high %v13447_v34, %v13449_v35  ;;  %v13457_v39 = vld [vmem:[#allocation8 + $0x3c0] sm:$0xff]  ;;  %v12530_v34 = vld [vmem:[%s13304_s5 + $0x50] sm:$0xff] }
  0xd5   : > { %1485 = vmatpush1.bf16.msra.mxu1 %v12274_v46  ;;  %1373 = vmatprep.subr.bf16.mxu0 %v12275_v47  ;;  %v11581_v41 = vcombine.high %v13451_v36, %v13457_v39 }
  0xd6   : > { %808 = vadd.xlane.f32.xlu0 %v807_v40  ;;  %811 = vadd.xlane.f32.xlu1 %v810_v42  ;;  %v11580_v40 = vcombine.low %v13451_v36, %v13457_v39  ;;  %v1625_v36 = vld [vmem:[#allocation7 + $0x200] sm:$0xff] }
  0xd7   : > { %1486 = vmatprep.subr.bf16.mxu1 %v12277_v48  ;;  %v1626_v39 = vld [vmem:[#allocation7 + $0x240] sm:$0xff] }
  0xd8   : > { %1374 = vmatpush1.bf16.msra.mxu0 %v12279_v49 }
  0xd9   : > { %1487 = vmatpush1.bf16.msra.mxu1 %v12280_v50  ;;  %1375 = vmatprep.subr.bf16.mxu0 %v12281_v51 }
  0xda   : > { %1488 = vmatprep.subr.bf16.mxu1 %v12283_v52 }
  0xdc   : > { %1376 = vmatpush2.bf16.msra.mxu0 %v12285_v53 }
  0xdd   : > { %1489 = vmatpush2.bf16.msra.mxu1 %v12286_v54  ;;  %1377 = vmatprep.subr.bf16.mxu0 %v12287_v55 }
  0xde   : > { %1490 = vmatprep.subr.bf16.mxu1 %v12289_v56 }
  0xe0   : > { %1378 = vmatpush2.bf16.msra.mxu0 %v12291_v57 }
  0xe1   : > { %1491 = vmatpush2.bf16.msra.mxu1 %v12292_v58  ;;  %1379 = vmatprep.subr.bf16.mxu0 %v12293_v59 }
  0xe2   : > { %1492 = vmatprep.subr.bf16.mxu1 %v12295_v60 }
  0xe4   : > { %1380 = vmatpush2.bf16.msra.mxu0 %v12297_v61 }
  0xe5   : > { %1493 = vmatpush2.bf16.msra.mxu1 %v12298_v62  ;;  %1381 = vmatprep.subr.bf16.mxu0 %v12299_v63 }
  0xe6   : > { %1494 = vmatprep.subr.bf16.mxu1 %v12301_v0  ;;  %v893_v0 = vld [vmem:[%s16169_s14] sm:$0x3] }
  0xe8   : > { %1382 = vmatpush2.bf16.msra.mxu0 %v12303_v6 }
  0xe9   : > { %1495 = vmatpush2.bf16.msra.mxu1 %v12304_v7  ;;  %1383 = vmatprep.subr.bf16.mxu0 %v12305_v8 }
  0xea   : > { %1496 = vmatprep.subr.bf16.mxu1 %v12307_v14 }
  0xec   : > { %1384 = vmatpush2.bf16.msra.mxu0 %v12309_v15 }
  0xed   : > { %1497 = vmatpush2.bf16.msra.mxu1 %v12310_v17  ;;  %1385 = vmatprep.subr.bf16.mxu0 %v12311_v20  ;;  %v13467_v20 = vrot.slane %v893_v0, %v13329_v2 }
  0xee   : > { %1498 = vmatprep.subr.bf16.mxu1 %v12313_v21 }
  0xf0   : > { %1386 = vmatpush2.bf16.msra.mxu0 %v12315_v22  ;;  %v13471_v22 = vrot.slane %v893_v0, %v13332_v3 }
  0xf1   : > { %1499 = vmatpush2.bf16.msra.mxu1 %v12316_v23  ;;  %1387 = vmatprep.subr.bf16.mxu0 %v12317_v24 }
  0xf2   : > { %1500 = vmatprep.subr.bf16.mxu1 %v12319_v26 }
  0xf4   : > { %1388 = vmatpush2.bf16.msra.mxu0 %v12321_v27 }
  0xf5   : > { %1501 = vmatpush2.bf16.msra.mxu1 %v12322_v28  ;;  %1389 = vmatprep.subr.bf16.mxu0 %v12323_v29 }
  0xf6   : > { %1502 = vmatprep.subr.bf16.mxu1 %v12325_v30 }
  0xf8   : > { %1390 = vmatpush2.bf16.msra.mxu0 %v12327_v32 }
  0xf9   : > { %1503 = vmatpush2.bf16.msra.mxu1 %v12328_v33  ;;  %1713 = vmatprep.subr.bf16.mxu0 %v11565_v38 }
  0xfa   : > { %2034 = vmatprep.subr.bf16.mxu1 %v11581_v41 }
 0x143   : > { %v767_v42 = vpop.xlane.xlu0 %766  ;;  %v773_v44 = vpop.xlane.xlu1 %772 }
 0x144   : > { %v813_v43 = vmul.f32 0.0625, %v767_v42  ;;  %v815_v9 = vmul.f32 0.0625, %v773_v44 }
 0x146   : > { %v829_v10 = vadd.f32 1e-06, %v813_v43  ;;  %v831_v45 = vadd.f32 1e-06, %v815_v9  ;;  %v13483_v9 = vld [vmem:[#allocation7 + $0x300] sm:$0xff] }
 0x147   : > { %v770_v46 = vpop.xlane.xlu0 %769  ;;  %v776_v48 = vpop.xlane.xlu1 %775 }
 0x148   : > { %12465 = vrsqrt.f32 %v829_v10  ;;  %v814_v47 = vmul.f32 0.0625, %v770_v46  ;;  %v816_v49 = vmul.f32 0.0625, %v776_v48  ;;  %v1630_v10 = vld [vmem:[#allocation7 + $0x340] sm:$0xff] }
 0x149   : > { %12467 = vrsqrt.f32 %v831_v45  ;;  %v1950_v45 = vld [vmem:[#allocation8 + $0x300] sm:$0xff]  ;;  %v11562_v0 = vcombine.low %v13483_v9, %v1630_v10 }
 0x14a   : > { %v830_v50 = vadd.f32 1e-06, %v814_v47  ;;  %v832_v51 = vadd.f32 1e-06, %v816_v49  ;;  %v1951_v46 = vld [vmem:[#allocation8 + $0x340] sm:$0xff] }
 0x14b   : > { %v779_v52 = vpop.xlane.xlu0 %778  ;;  %v782_v53 = vpop.xlane.xlu1 %781 }
 0x14c   : > { %12469 = vrsqrt.f32 %v830_v50  ;;  %v817_v54 = vmul.f32 0.0625, %v779_v52  ;;  %v818_v55 = vmul.f32 0.0625, %v782_v53 }
 0x14d   : > { %12471 = vrsqrt.f32 %v832_v51 }
 0x14e   : > { %v833_v56 = vadd.f32 1e-06, %v817_v54  ;;  %v834_v57 = vadd.f32 1e-06, %v818_v55 }
 0x14f   : > { %v785_v58 = vpop.xlane.xlu0 %784  ;;  %v788_v59 = vpop.xlane.xlu1 %787 }
 0x150   : > { %12473 = vrsqrt.f32 %v833_v56  ;;  %v819_v60 = vmul.f32 0.0625, %v785_v58  ;;  %v820_v61 = vmul.f32 0.0625, %v788_v59  ;;  %v11563_v56 = vcombine.high %v13483_v9, %v1630_v10  ;;  %v13491_v58 = vld [vmem:[#allocation7 + $0x280] sm:$0xff] }
 0x151   : > { %12475 = vrsqrt.f32 %v834_v57  ;;  %v11579_v57 = vcombine.high %v1950_v45, %v1951_v46  ;;  %v13493_v59 = vld [vmem:[#allocation7 + $0x2c0] sm:$0xff] }
 0x152   : > { %v835_v62 = vadd.f32 1e-06, %v819_v60  ;;  %v836_v63 = vadd.f32 1e-06, %v820_v61  ;;  %v13497_v60 = vld [vmem:[#allocation8 + $0x2c0] sm:$0xff] }
 0x153   : > { %v791_v6 = vpop.xlane.xlu0 %790  ;;  %v794_v7 = vpop.xlane.xlu1 %793  ;;  %v1624_v10 = vld [vmem:[#allocation7 + $0x1c0] sm:$0xff] }
 0x154   : > { %v821_v8 = vmul.f32 0.0625, %v791_v6  ;;  %12477 = vrsqrt.f32 %v835_v62  ;;  %v822_v15 = vmul.f32 0.0625, %v794_v7 }
 0x155   : > { %v12466_v14 = vpop.eup %12465  ;;  %12479 = vrsqrt.f32 %v836_v63 }
 0x156   : > { %v12468_v17 = vpop.eup %12467  ;;  %v862_v21 = vmul.f32 %v12466_v14, %v13338_v5  ;;  %v861_v23 = vmul.f32 %v12466_v14, %v13335_v4  ;;  %v837_v26 = vadd.f32 1e-06, %v821_v8  ;;  %v838_v28 = vadd.f32 1e-06, %v822_v15 }
 0x157   : > { %v866_v24 = vmul.f32 %v12468_v17, %v13357_v12  ;;  %v797_v29 = vpop.xlane.xlu0 %796  ;;  %v800_v4 = vpop.xlane.xlu1 %799  ;;  %v865_v52 = vmul.f32 %v12468_v17, %v13354_v11  ;;  %v11578_v14 = vcombine.low %v1950_v45, %v1951_v46  ;;  %v11561_v15 = vcombine.high %v13491_v58, %v13493_v59 }
 0x158   : > { %v906_v38 = vmul.f32 %v13471_v22, %v862_v21  ;;  %v905_v5 = vmul.f32 %v13467_v20, %v861_v23  ;;  %12481 = vrsqrt.f32 %v837_v26  ;;  %v823_v44 = vmul.f32 0.0625, %v797_v29  ;;  %v12529_v21 = vld [vmem:[%s13304_s5 + $0x40] sm:$0xff]  ;;  %v12531_v26 = vld [vmem:[%s13304_s5 + $0x68] sm:$0xff] }
 0x159   : > { %v12470_v27 = vpop.eup %12469  ;;  %v910_v42 = vmul.f32 %v13471_v22, %v866_v24  ;;  %12483 = vrsqrt.f32 %v838_v28  ;;  %v824_v49 = vmul.f32 0.0625, %v800_v4  ;;  %v909_v7 = vmul.f32 %v13467_v20, %v865_v52  ;;  %v12532_v28 = vld [vmem:[%s13304_s5 + $0x78] sm:$0xff] }
 0x15a   : > { %v12472_v30 = vpop.eup %12471  ;;  %v864_v32 = vmul.f32 %v12470_v27, %v13367_v16  ;;  %v863_v33 = vmul.f32 %v12470_v27, %v13360_v13  ;;  %v839_v55 = vadd.f32 1e-06, %v823_v44 }
 0x15b   : > { %v868_v41 = vmul.f32 %v12472_v30, %v13375_v19  ;;  %v867_v53 = vmul.f32 %v12472_v30, %v13372_v18  ;;  %v840_v18 = vadd.f32 1e-06, %v824_v49  ;;  %v806_v62 = vpop.xlane.xlu1 %805  ;;  %v803_v63 = vpop.xlane.xlu0 %802  ;;  %v1946_v30 = vld [vmem:[#allocation8 + $0x200] sm:$0xff] }
 0x15c   : > { %v908_v12 = vmul.f32 %v13471_v22, %v864_v32  ;;  %v907_v43 = vmul.f32 %v13467_v20, %v863_v33  ;;  %12485 = vrsqrt.f32 %v839_v55  ;;  %v825_v24 = vmul.f32 0.0625, %v803_v63  ;;  %v1947_v32 = vld [vmem:[#allocation8 + $0x240] sm:$0xff] }
 0x15d   : > { %v12474_v16 = vpop.eup %12473  ;;  %v912_v13 = vmul.f32 %v13471_v22, %v868_v41  ;;  %v911_v8 = vmul.f32 %v13467_v20, %v867_v53  ;;  %12487 = vrsqrt.f32 %v840_v18  ;;  %v11559_v41 = vcombine.high %v1625_v36, %v1626_v39  ;;  %v1944_v53 = vld [vmem:[#allocation8 + $0x180] sm:$0xff] }
 0x15e   : > { %v12476_v47 = vpop.eup %12475  ;;  %v938_v19 = vpack.c.bf16 %v908_v12, %v906_v38  ;;  %v937_v48 = vpack.c.bf16 %v907_v43, %v905_v5  ;;  %v870_v50 = vmul.f32 %v12474_v16, %v13394_v31  ;;  %v13495_v31 = vld [vmem:[#allocation8 + $0x280] sm:$0xff]  ;;  %v869_v23 = vmul.f32 %v12529_v21, %v12474_v16 }
 0x15f   : > { %v940_v51 = vpack.c.bf16 %v912_v13, %v910_v42  ;;  %v872_v54 = vmul.f32 %v12476_v47, %v13385_v25  ;;  %v11577_v17 = vcombine.high %v13495_v31, %v13497_v60  ;;  %v871_v35 = vmul.f32 %v12530_v34, %v12476_v47  ;;  %v812_v44 = vpop.xlane.xlu1 %811  ;;  %v809_v9 = vpop.xlane.xlu0 %808  ;;  %v1623_v13 = vld [vmem:[#allocation7 + $0x180] sm:$0xff] }
 0x160   : > { %1391 = vmatprep.mubr.bf16.mxu0 %v938_v19  ;;  %1504 = vmatprep.mubr.bf16.mxu1 %v938_v19  ;;  %v914_v25 = vmul.f32 %v13471_v22, %v870_v50  ;;  %v939_v33 = vpack.c.bf16 %v911_v8, %v909_v7  ;;  %v11560_v38 = vcombine.low %v13491_v58, %v13493_v59  ;;  %v841_v46 = vadd.f32 1e-06, %v825_v24  ;;  %v12534_v58 = vld [vmem:[%s13304_s5 + $0x70] sm:$0xff]  ;;  %v1943_v7 = vld [vmem:[#allocation8 + $0x140] sm:$0xff] }
 0x161   : > { %1392 = vmatmul.mubr.bf16.vlgmr.msra.gmra.mxu0 %v937_v48  ;;  %1505 = vmatmul.mubr.bf16.vlgmr.msra.gmra.mxu1 %v937_v48  ;;  %v13499_v11 = vpop.eup %12477  ;;  %v916_v61 = vmul.f32 %v13471_v22, %v872_v54  ;;  %v11576_v5 = vcombine.low %v13495_v31, %v13497_v60  ;;  %v913_v4 = vmul.f32 %v13467_v20, %v869_v23  ;;  %v828_v49 = vmul.f32 0.0625, %v812_v44  ;;  %v1945_v54 = vld [vmem:[#allocation8 + $0x1c0] sm:$0xff]  ;;  %v12540_v44 = vld [vmem:[%s13304_s5 + $0xb8] sm:$0xff] }
 0x162   : > { %1401 = vmatprep.mubr.bf16.mxu0 %v940_v51  ;;  %1514 = vmatprep.mubr.bf16.mxu1 %v940_v51  ;;  %v13504_v6 = vpop.eup %12479  ;;  %v874_v27 = vmul.f32 %v12531_v26, %v13499_v11  ;;  %v915_v12 = vmul.f32 %v13467_v20, %v871_v35  ;;  %v11575_v16 = vcombine.high %v1946_v30, %v1947_v32  ;;  %v827_v50 = vmul.f32 0.0625, %v809_v9  ;;  %v1621_v31 = vld [vmem:[#allocation7 + $0x100] sm:$0xff] }
 0x163   : > { %1714 = vmatpush1.bf16.msra.mxu0 %v11564_v37  ;;  %2035 = vmatpush1.bf16.msra.mxu1 %v11580_v40  ;;  %v826_v37 = vmul.f32 0.0625, %v806_v62  ;;  %v942_v40 = vpack.c.bf16 %v916_v61, %v914_v25  ;;  %v876_v29 = vmul.f32 %v12532_v28, %v13504_v6  ;;  %v11558_v48 = vcombine.low %v1625_v36, %v1626_v39  ;;  %v1622_v60 = vld [vmem:[#allocation7 + $0x140] sm:$0xff]  ;;  %v12535_v25 = vld [vmem:[%s13304_s5 + $0x88] sm:$0xff]  ;;  %v12536_v62 = vld [vmem:[%s13304_s5 + $0x98] sm:$0xff] }
 0x164   : > { %1715 = vmatprep.subr.bf16.mxu0 %v11563_v56  ;;  %2036 = vmatprep.subr.bf16.mxu1 %v11579_v57  ;;  %v918_v47 = vmul.f32 %v13471_v22, %v874_v27  ;;  %v11574_v51 = vcombine.low %v1946_v30, %v1947_v32  ;;  %v11557_v52 = vcombine.high %v1623_v13, %v1624_v10  ;;  %v12533_v56 = vld [vmem:[%s13304_s5 + $0x60] sm:$0xff]  ;;  %v844_v23 = vadd.f32 1e-06, %v828_v49 }
 0x165   : > { %v13528_v42 = vpop.eup %12481  ;;  %v842_v43 = vadd.f32 1e-06, %v826_v37  ;;  %v920_v19 = vmul.f32 %v13471_v22, %v876_v29  ;;  %v941_v55 = vpack.c.bf16 %v915_v12, %v913_v4  ;;  %v873_v57 = vmul.f32 %v12533_v56, %v13499_v11  ;;  %v1619_v35 = vld [vmem:[#allocation7 + $0x80] sm:$0xff]  ;;  %v12539_v12 = vld [vmem:[%s13304_s5 + $0xa8] sm:$0xff] }
 0x166   : > { %v13532_v45 = vpop.eup %12483  ;;  %v875_v59 = vmul.f32 %v12534_v58, %v13504_v6  ;;  %v878_v61 = vmul.f32 %v12535_v25, %v13528_v42  ;;  %v11556_v8 = vcombine.low %v1623_v13, %v1624_v10  ;;  %v11572_v11 = vcombine.low %v1944_v53, %v1945_v54  ;;  %v1620_v37 = vld [vmem:[#allocation7 + $0xc0] sm:$0xff] }
 0x167   : > { %1716 = vmatpush1.bf16.msra.mxu0 %v11562_v0  ;;  %2037 = vmatpush1.bf16.msra.mxu1 %v11578_v14  ;;  %12489 = vrsqrt.f32 %v842_v43  ;;  %v944_v18 = vpack.c.bf16 %v920_v19, %v918_v47  ;;  %v880_v63 = vmul.f32 %v12536_v62, %v13532_v45  ;;  %v1942_v0 = vld [vmem:[#allocation8 + $0x100] sm:$0xff]  ;;  %v11573_v14 = vcombine.high %v1944_v53, %v1945_v54 }
 0x168   : > { %1717 = vmatprep.subr.bf16.mxu0 %v11561_v15  ;;  %2038 = vmatprep.subr.bf16.mxu1 %v11577_v17  ;;  %12491 = vrsqrt.f32 %v841_v46  ;;  %v11555_v6 = vcombine.high %v1621_v31, %v1622_v60  ;;  %v917_v17 = vmul.f32 %v13467_v20, %v873_v57  ;;  %v919_v21 = vmul.f32 %v13467_v20, %v875_v59  ;;  %v1940_v29 = vld [vmem:[#allocation8 + $0x80] sm:$0xff]  ;;  %v12544_v57 = vld [vmem:[%s13304_s5 + $0xd8] sm:$0xff] }
 0x169   : > { %1402 = vmatmul.mubr.bf16.gmra.mxu0 %v939_v33  ;;  %1515 = vmatmul.mubr.bf16.gmra.mxu1 %v939_v33  ;;  %v12486_v15 = vpop.eup %12485  ;;  %v11571_v34 = vcombine.high %v1942_v0, %v1943_v7  ;;  %v843_v24 = vadd.f32 1e-06, %v827_v50  ;;  %v922_v36 = vmul.f32 %v13471_v22, %v878_v61  ;;  %v924_v39 = vmul.f32 %v13471_v22, %v880_v63  ;;  %v1941_v30 = vld [vmem:[#allocation8 + $0xc0] sm:$0xff] }
 0x16a   : > { %1411 = vmatprep.mubr.bf16.mxu0 %v942_v40  ;;  %1524 = vmatprep.mubr.bf16.mxu1 %v942_v40  ;;  %v12488_v40 = vpop.eup %12487  ;;  %v11554_v26 = vcombine.low %v1621_v31, %v1622_v60  ;;  %v11570_v27 = vcombine.low %v1942_v0, %v1943_v7  ;;  %v11553_v28 = vcombine.high %v1619_v35, %v1620_v37  ;;  %12493 = vrsqrt.f32 %v844_v23  ;;  %v12537_v33 = vld [vmem:[%s13304_s5 + $0x80] sm:$0xff]  ;;  %v12546_v7 = vld [vmem:[%s13304_s5 + $0xd0] sm:$0xff] }
 0x16b   : > { %1718 = vmatpush1.bf16.msra.mxu0 %v11560_v38  ;;  %2039 = vmatpush1.bf16.msra.mxu1 %v11576_v5  ;;  %v943_v32 = vpack.c.bf16 %v919_v21, %v917_v17  ;;  %v877_v38 = vmul.f32 %v12537_v33, %v13528_v42  ;;  %v12538_v5 = vld [vmem:[%s13304_s5 + $0x90] sm:$0xff]  ;;  %12495 = vrsqrt.f32 %v843_v24  ;;  %v946_v4 = vpack.c.bf16 %v924_v39, %v922_v36  ;;  %v12541_v50 = vld [vmem:[%s13304_s5 + $0xa0] sm:$0xff] }
 0x16c   : > { %1719 = vmatprep.subr.bf16.mxu0 %v11559_v41  ;;  %2040 = vmatprep.subr.bf16.mxu1 %v11575_v16  ;;  %v879_v41 = vmul.f32 %v12538_v5, %v13532_v45  ;;  %v882_v43 = vmul.f32 %v12539_v12, %v12486_v15  ;;  %v884_v9 = vmul.f32 %v12540_v44, %v12488_v40  ;;  %v12545_v63 = vld [vmem:[%s13304_s5 + $0xc0] sm:$0xff]  ;;  %v12550_v39 = vld [vmem:[%s13304_s5 + $0xf0] sm:$0xff]  ;;  %v16207_v12 = vmov 0   ;;  %v2658_v44 = vld [vmem:[#allocation7 + $0x388] sm:$0xff] }
 0x16d   : > { %v11552_v16 = vcombine.low %v1619_v35, %v1620_v37  ;;  %v11569_v13 = vcombine.high %v1940_v29, %v1941_v30  ;;  %v11568_v10 = vcombine.low %v1940_v29, %v1941_v30  ;;  %v921_v42 = vmul.f32 %v13467_v20, %v877_v38  ;;  %v12549_v24 = vld [vmem:[%s13304_s5 + $0xe0] sm:$0xff]  ;;  %12232 = vset.pattern.permute.xlu1 %v16207_v12 }
 0x16e   : > { %v923_v45 = vmul.f32 %v13467_v20, %v879_v41  ;;  %v926_v47 = vmul.f32 %v13471_v22, %v882_v43  ;;  %v928_v19 = vmul.f32 %v13471_v22, %v884_v9  ;;  %v1617_v30 = vld [vmem:[#allocation7] sm:$0xff]  ;;  %12231 = vset.pattern.permute.xlu0 %v16207_v12 }
 0x16f   : > { %1720 = vmatpush1.bf16.msra.mxu0 %v11558_v48  ;;  %2041 = vmatpush1.bf16.msra.mxu1 %v11574_v51  ;;  %v881_v51 = vmul.f32 %v12541_v50, %v12486_v15  ;;  %v12548_v15 = vld [vmem:[%s13304_s5 + $0xf8] sm:$0xff]  ;;  %v1938_v38 = vld [vmem:[#allocation8] sm:$0xff] }
 0x170   : > { %1721 = vmatprep.subr.bf16.mxu0 %v11557_v52  ;;  %2042 = vmatprep.subr.bf16.mxu1 %v11573_v14  ;;  %v945_v49 = vpack.c.bf16 %v923_v45, %v921_v42  ;;  %v12542_v52 = vld [vmem:[%s13304_s5 + $0xb0] sm:$0xff]  ;;  %v948_v54 = vpack.c.bf16 %v928_v19, %v926_v47  ;;  %v1939_v5 = vld [vmem:[#allocation8 + $0x40] sm:$0xff] }
 0x171   : > { %1412 = vmatmul.mubr.bf16.gmra.mxu0 %v941_v55  ;;  %1525 = vmatmul.mubr.bf16.gmra.mxu1 %v941_v55  ;;  %v883_v53 = vmul.f32 %v12542_v52, %v12488_v40  ;;  %v12543_v55 = vld [vmem:[%s13304_s5 + $0xc8] sm:$0xff]  ;;  %v925_v59 = vmul.f32 %v13467_v20, %v881_v51  ;;  %v11566_v41 = vcombine.low %v1938_v38, %v1939_v5  ;;  %v2178_v43 = vld [vmem:[#allocation10 + $0x3c0] sm:$0xff] }
 0x172   : > { %1421 = vmatprep.mubr.bf16.mxu0 %v944_v18  ;;  %1534 = vmatprep.mubr.bf16.mxu1 %v944_v18  ;;  %v13585_v45 = vld [vmem:[%s16158_s3] sm:$0xf]  ;;  %v2656_v52 = vld [vmem:[#allocation7 + $0x308] sm:$0xff] }
 0x173   : > { %1722 = vmatpush1.bf16.msra.mxu0 %v11556_v8  ;;  %2043 = vmatpush1.bf16.msra.mxu1 %v11572_v11  ;;  %v927_v31 = vmul.f32 %v13467_v20, %v883_v53  ;;  %v12547_v11 = vld [vmem:[%s13304_s5 + $0xe8] sm:$0xff]  ;;  %v13591_v19 = vrot.slane %v13585_v45, %v13329_v2  ;;  %v13597_v50 = vrot.slane %v13585_v45, %v13332_v3 }
 0x174   : > { %1723 = vmatprep.subr.bf16.mxu0 %v11555_v6  ;;  %2044 = vmatprep.subr.bf16.mxu1 %v11571_v34  ;;  %v12490_v46 = vpop.eup %12489  ;;  %v2657_v53 = vld [vmem:[#allocation7 + $0x348] sm:$0xff] }
 0x175   : > { %v12492_v48 = vpop.eup %12491  ;;  %v888_v58 = vmul.f32 %v12544_v57, %v12490_v46  ;;  %v947_v62 = vpack.c.bf16 %v927_v31, %v925_v59  ;;  %v887_v8 = vmul.f32 %v12546_v7, %v12490_v46  ;;  %v2176_v59 = vld [vmem:[#allocation10 + $0x340] sm:$0xff] }
 0x176   : > { %v886_v56 = vmul.f32 %v12543_v55, %v12492_v48  ;;  %v885_v0 = vmul.f32 %v12545_v63, %v12492_v48  ;;  %v2655_v63 = vld [vmem:[#allocation7 + $0x2c8] sm:$0xff] }
 0x177   : > { %1724 = vmatpush1.bf16.msra.mxu0 %v11554_v26  ;;  %2045 = vmatpush1.bf16.msra.mxu1 %v11570_v27  ;;  %v12494_v60 = vpop.eup %12493  ;;  %v932_v25 = vmul.f32 %v13471_v22, %v888_v58  ;;  %v931_v23 = vmul.f32 %v13467_v20, %v887_v8  ;;  %v2175_v58 = vld [vmem:[#allocation10 + $0x300] sm:$0xff]  ;;  %v13610_v8 = vld [vmem:[#allocation7 + $0x390] sm:$0xff] }
 0x178   : > { %1725 = vmatprep.subr.bf16.mxu0 %v11553_v28  ;;  %2046 = vmatprep.subr.bf16.mxu1 %v11569_v13  ;;  %v930_v18 = vmul.f32 %v13471_v22, %v886_v56  ;;  %v12496_v61 = vpop.eup %12495  ;;  %v892_v17 = vmul.f32 %v12548_v15, %v12494_v60  ;;  %v929_v21 = vmul.f32 %v13467_v20, %v885_v0  ;;  %v2659_v13 = vld [vmem:[#allocation7 + $0x3c8] sm:$0xff]  ;;  %v13615_v15 = vld [vmem:[#allocation7 + $0x3d0] sm:$0xff] }
 0x179   : > { %1422 = vmatmul.mubr.bf16.gmra.mxu0 %v943_v32  ;;  %1535 = vmatmul.mubr.bf16.gmra.mxu1 %v943_v32  ;;  %v890_v6 = vmul.f32 %v12547_v11, %v12496_v61  ;;  %v889_v36 = vmul.f32 %v12549_v24, %v12496_v61  ;;  %v891_v40 = vmul.f32 %v12550_v39, %v12494_v60  ;;  %v1618_v32 = vld [vmem:[#allocation7 + $0x40] sm:$0xff] }
 0x17a   : > { %1431 = vmatprep.mubr.bf16.mxu0 %v946_v4  ;;  %1544 = vmatprep.mubr.bf16.mxu1 %v946_v4  ;;  %v950_v14 = vpack.c.bf16 %v932_v25, %v930_v18  ;;  %v936_v35 = vmul.f32 %v13471_v22, %v892_v17  ;;  %v949_v37 = vpack.c.bf16 %v931_v23, %v929_v21  ;;  %v2173_v17 = vld [vmem:[#allocation10 + $0x280] sm:$0xff] }
 0x17b   : > { %1726 = vmatpush1.bf16.msra.mxu0 %v11552_v16  ;;  %2047 = vmatpush1.bf16.msra.mxu1 %v11568_v10  ;;  %v934_v34 = vmul.f32 %v13471_v22, %v890_v6  ;;  %v933_v27 = vmul.f32 %v13467_v20, %v889_v36  ;;  %v935_v28 = vmul.f32 %v13467_v20, %v891_v40  ;;  %v2177_v20 = vld [vmem:[#allocation10 + $0x380] sm:$0xff] }
 0x17c   : > { %v11550_v22 = vcombine.low %v1617_v30, %v1618_v32  ;;  %v11551_v33 = vcombine.high %v1617_v30, %v1618_v32  ;;  %v11567_v4 = vcombine.high %v1938_v38, %v1939_v5  ;;  %v11596_v9 = vcombine.low %v2177_v20, %v2178_v43  ;;  %v2174_v21 = vld [vmem:[#allocation10 + $0x2c0] sm:$0xff]  ;;  %v2653_v30 = vld [vmem:[#allocation7 + $0x248] sm:$0xff] }
 0x17d   : > { %v952_v26 = vpack.c.bf16 %v936_v35, %v934_v34  ;;  %v951_v29 = vpack.c.bf16 %v935_v28, %v933_v27  ;;  %v11597_v16 = vcombine.high %v2177_v20, %v2178_v43  ;;  %v11612_v10 = vcombine.low %v2658_v44, %v2659_v13  ;;  %v2171_v39 = vld [vmem:[#allocation10 + $0x200] sm:$0xff] }
 0x17e   : > { %1727 = vmatprep.subr.bf16.mxu0 %v11551_v33  ;;  %2048 = vmatprep.subr.bf16.mxu1 %v11567_v4  ;;  %v11613_v42 = vcombine.high %v2658_v44, %v2659_v13  ;;  %v11611_v25 = vcombine.high %v2656_v52, %v2657_v53  ;;  %v11595_v7 = vcombine.high %v2175_v58, %v2176_v59  ;;  %v2172_v28 = vld [vmem:[#allocation10 + $0x240] sm:$0xff]  ;;  %v2650_v44 = vld [vmem:[#allocation7 + $0x188] sm:$0xff] }
 0x17f   : > { %1728 = vmatpush1.bf16.msra.mxu0 %v11550_v22  ;;  %2049 = vmatpush1.bf16.msra.mxu1 %v11566_v41  ;;  %v11610_v6 = vcombine.low %v2656_v52, %v2657_v53  ;;  %v11660_v34 = vcombine.low %v13610_v8, %v13615_v15  ;;  %v11593_v27 = vcombine.high %v2173_v17, %v2174_v21 }
 0x180   : > { %2259 = vmatprep.subr.bf16.mxu1 %v11597_v16  ;;  %2740 = vmatprep.subr.bf16.mxu0 %v11613_v42  ;;  %v11592_v41 = vcombine.low %v2173_v17, %v2174_v21  ;;  %v11591_v20 = vcombine.high %v2171_v39, %v2172_v28  ;;  %v2170_v42 = vld [vmem:[#allocation10 + $0x1c0] sm:$0xff] }
 0x181   : > { %1432 = vmatmul.mubr.bf16.gmra.mxu0 %v945_v49  ;;  %1545 = vmatmul.mubr.bf16.gmra.mxu1 %v945_v49 }
 0x182   : > { %1441 = vmatprep.mubr.bf16.mxu0 %v948_v54  ;;  %1554 = vmatprep.mubr.bf16.mxu1 %v948_v54 }
 0x189   : > { %1442 = vmatmul.mubr.bf16.gmra.mxu0 %v947_v62  ;;  %1555 = vmatmul.mubr.bf16.gmra.mxu1 %v947_v62  ;;  %v2654_v62 = vld [vmem:[#allocation7 + $0x288] sm:$0xff] }
 0x18a   : > { %1451 = vmatprep.mubr.bf16.mxu0 %v950_v14  ;;  %1564 = vmatprep.mubr.bf16.mxu1 %v950_v14  ;;  %v11609_v23 = vcombine.high %v2654_v62, %v2655_v63  ;;  %v11608_v38 = vcombine.low %v2654_v62, %v2655_v63 }
 0x191   : > { %1452 = vmatmul.mubr.bf16.gmra.mxu0 %v949_v37  ;;  %1565 = vmatmul.mubr.bf16.gmra.mxu1 %v949_v37  ;;  %v11594_v37 = vcombine.low %v2175_v58, %v2176_v59 }
 0x192   : > { %1461 = vmatprep.mubr.bf16.mxu0 %v952_v26  ;;  %1574 = vmatprep.mubr.bf16.mxu1 %v952_v26 }
 0x199   : > { %1462 = vmatmul.mubr.bf16.gmra.mxu0 %v951_v29  ;;  %1575 = vmatmul.mubr.bf16.gmra.mxu1 %v951_v29  ;;  %v2652_v29 = vld [vmem:[#allocation7 + $0x208] sm:$0xff] }
 0x19a   : > { %1745 = vmatprep.mubr.bf16.mxu0 %v16207_v12  ;;  %2066 = vmatprep.mubr.bf16.mxu1 %v16207_v12  ;;  %v11607_v43 = vcombine.high %v2652_v29, %v2653_v30 }
 0x221   : > { %v1393_v46 = vpop.f32.mrf.mxu0  ;;  %v13587_v47 = vpop.f32.mrf.mxu1 }
 0x222   : > { %v1394_v54 = vadd.f32 %v1393_v46, %v13591_v19  ;;  %v11606_v46 = vcombine.low %v2652_v29, %v2653_v30 }
 0x223   : > { %v1395_v48 = vpop.f32.mrf.mxu0  ;;  %v13593_v49 = vpop.f32.mrf.mxu1 }
 0x224   : > { %v1396_v31 = vadd.f32 %v1395_v48, %v13597_v50 }
 0x225   : > { %v1397_v51 = vpop.f32.mrf.mxu0  ;;  %v13601_v56 = vpop.f32.mrf.mxu1 }
 0x226   : > { %v1398_v55 = vadd.f32 %v1397_v51, %v13591_v19  ;;  %v11590_v51 = vcombine.low %v2171_v39, %v2172_v28  ;;  %v2165_v39 = vld [vmem:[#allocation10 + $0x80] sm:$0xff] }
 0x227   : > { %v1399_v57 = vpop.f32.mrf.mxu0  ;;  %v13612_v14 = vpop.f32.mrf.mxu1 }
 0x228   : > { %v13604_v60 = vpack.c.bf16 %v1398_v55, %v1394_v54  ;;  %v1400_v18 = vadd.f32 %v1399_v57, %v13597_v50  ;;  %v2167_v55 = vld [vmem:[#allocation10 + $0x100] sm:$0xff] }
 0x229   : > { %v1403_v61 = vpop.f32.mrf.mxu0  ;;  %v13623_v40 = vpop.f32.mrf.mxu1 }
 0x22a   : > { %16270 = vst [vmem:[#allocation26_spill] sm:$0xff] %v13604_v60  ;;  %v13607_v0 = vpack.c.bf16 %v1400_v18, %v1396_v31  ;;  %1746 = vmatmul.mubr.bf16.vlgmr.msra.gmra.mxu0 %v13604_v60  ;;  %v1404_v24 = vadd.f32 %v1403_v61, %v13591_v19  ;;  %v2168_v31 = vld [vmem:[#allocation10 + $0x140] sm:$0xff]  ;;  %v2648_v18 = vld [vmem:[#allocation7 + $0x108] sm:$0xff] }
 0x22b   : > { %v1405_v11 = vpop.f32.mrf.mxu0  ;;  %2741 = vmatpush1.bf16.msra.mxu0 %v11612_v10  ;;  %1755 = vmatprep.mubr.bf16.mxu0 %v16207_v12  ;;  %v13632_v16 = vpop.f32.mrf.mxu1  ;;  %v2169_v10 = vld [vmem:[#allocation10 + $0x180] sm:$0xff]  ;;  %v11587_v21 = vcombine.high %v2167_v55, %v2168_v31  ;;  %v11586_v29 = vcombine.low %v2167_v55, %v2168_v31  ;;  %v13670_v31 = vld [vmem:[#allocation8 + $0x3c8] sm:$0xff] }
 0x22c   : > { %16271 = vst [vmem:[#allocation27_spill] sm:$0xff] %v13607_v0  ;;  %2067 = vmatmul.mubr.bf16.vlgmr.msra.gmra.mxu1 %v13607_v0  ;;  %2742 = vmatprep.subr.bf16.mxu0 %v11611_v25  ;;  %v1406_v32 = vadd.f32 %v1405_v11, %v13597_v50  ;;  %v11589_v59 = vcombine.high %v2169_v10, %v2170_v42  ;;  %v2649_v25 = vld [vmem:[#allocation7 + $0x148] sm:$0xff] }
 0x22d   : > { %2260 = vmatpush1.bf16.msra.mxu1 %v11596_v9  ;;  %v1407_v35 = vpop.f32.mrf.mxu0  ;;  %2076 = vmatprep.mubr.bf16.mxu1 %v16207_v12  ;;  %v2651_v9 = vld [vmem:[#allocation7 + $0x1c8] sm:$0xff]  ;;  %v13639_v57 = vpop.f32.mrf.mxu1 }
 0x22e   : > { %v1408_v36 = vadd.f32 %v1407_v35, %v13591_v19  ;;  %2261 = vmatprep.subr.bf16.mxu1 %v11595_v7  ;;  %v11605_v52 = vcombine.high %v2650_v44, %v2651_v9  ;;  %v11604_v7 = vcombine.low %v2650_v44, %v2651_v9  ;;  %v2646_v35 = vld [vmem:[#allocation7 + $0x88] sm:$0xff] }
 0x22f   : > { %v1409_v26 = vpop.f32.mrf.mxu0  ;;  %2743 = vmatpush1.bf16.msra.mxu0 %v11610_v6  ;;  %v11588_v6 = vcombine.low %v2169_v10, %v2170_v42  ;;  %v2644_v44 = vld [vmem:[#allocation7 + $0x8] sm:$0xff] }
 0x230   : > { %v13626_v22 = vpack.c.bf16 %v1408_v36, %v1404_v24  ;;  %v1410_v33 = vadd.f32 %v1409_v26, %v13597_v50  ;;  %2744 = vmatprep.subr.bf16.mxu0 %v11609_v23  ;;  %v11603_v23 = vcombine.high %v2648_v18, %v2649_v25  ;;  %v13648_v24 = vpop.f32.mrf.mxu1  ;;  %v2166_v26 = vld [vmem:[#allocation10 + $0xc0] sm:$0xff]  ;;  %v2645_v9 = vld [vmem:[#allocation7 + $0x48] sm:$0xff] }
 0x231   : > { %v1413_v5 = vpop.f32.mrf.mxu0  ;;  %2262 = vmatpush1.bf16.msra.mxu1 %v11594_v37  ;;  %v2647_v37 = vld [vmem:[#allocation7 + $0xc8] sm:$0xff] }
 0x232   : > { %16272 = vst [vmem:[#allocation28_spill] sm:$0xff] %v13626_v22  ;;  %v13629_v4 = vpack.c.bf16 %v1410_v33, %v1406_v32  ;;  %1756 = vmatmul.mubr.bf16.gmra.mxu0 %v13626_v22  ;;  %2263 = vmatprep.subr.bf16.mxu1 %v11593_v27  ;;  %v1414_v53 = vadd.f32 %v1413_v5, %v13591_v19  ;;  %v13655_v5 = vpop.f32.mrf.mxu1 }
 0x233   : > { %v1415_v13 = vpop.f32.mrf.mxu0  ;;  %1765 = vmatprep.mubr.bf16.mxu0 %v16207_v12  ;;  %2745 = vmatpush1.bf16.msra.mxu0 %v11608_v38  ;;  %v11602_v27 = vcombine.low %v2648_v18, %v2649_v25  ;;  %v11601_v30 = vcombine.high %v2646_v35, %v2647_v37  ;;  %v2163_v38 = vld [vmem:[#allocation10] sm:$0xff]  ;;  %v11598_v18 = vcombine.low %v2644_v44, %v2645_v9 }
 0x234   : > { %16273 = vst [vmem:[#allocation29_spill] sm:$0xff] %v13629_v4  ;;  %2077 = vmatmul.mubr.bf16.gmra.mxu1 %v13629_v4  ;;  %2746 = vmatprep.subr.bf16.mxu0 %v11607_v43  ;;  %v1416_v61 = vadd.f32 %v1415_v13, %v13597_v50  ;;  %v2164_v43 = vld [vmem:[#allocation10 + $0x40] sm:$0xff]  ;;  %v13664_v55 = vpop.f32.mrf.mxu1 }
 0x235   : > { %v1417_v48 = vpop.f32.mrf.mxu0  ;;  %2086 = vmatprep.mubr.bf16.mxu1 %v16207_v12  ;;  %2264 = vmatpush1.bf16.msra.mxu1 %v11592_v41 }
 0x236   : > { %v1418_v54 = vadd.f32 %v1417_v48, %v13591_v19  ;;  %2265 = vmatprep.subr.bf16.mxu1 %v11591_v20  ;;  %v11585_v20 = vcombine.high %v2165_v39, %v2166_v26 }
 0x237   : > { %v1419_v58 = vpop.f32.mrf.mxu0  ;;  %2747 = vmatpush1.bf16.msra.mxu0 %v11606_v46  ;;  %v11600_v46 = vcombine.low %v2646_v35, %v2647_v37 }
 0x238   : > { %v13642_v62 = vpack.c.bf16 %v1418_v54, %v1414_v53  ;;  %v1420_v63 = vadd.f32 %v1419_v58, %v13597_v50  ;;  %2748 = vmatprep.subr.bf16.mxu0 %v11605_v52  ;;  %v11583_v53 = vcombine.high %v2163_v38, %v2164_v43  ;;  %v11599_v54 = vcombine.high %v2644_v44, %v2645_v9 }
 0x239   : > { %v1423_v11 = vpop.f32.mrf.mxu0  ;;  %2266 = vmatpush1.bf16.msra.mxu1 %v11590_v51  ;;  %v11584_v51 = vcombine.low %v2165_v39, %v2166_v26 }
 0x23a   : > { %16274 = vst [vmem:[#allocation30_spill] sm:$0xff] %v13642_v62  ;;  %v13645_v17 = vpack.c.bf16 %v1420_v63, %v1416_v61  ;;  %1766 = vmatmul.mubr.bf16.gmra.mxu0 %v13642_v62  ;;  %2267 = vmatprep.subr.bf16.mxu1 %v11589_v59  ;;  %v1424_v32 = vadd.f32 %v1423_v11, %v13591_v19  ;;  %v13668_v59 = vld [vmem:[#allocation8 + $0x388] sm:$0xff] }
 0x23b   : > { %v1425_v36 = vpop.f32.mrf.mxu0  ;;  %1775 = vmatprep.mubr.bf16.mxu0 %v16207_v12  ;;  %2749 = vmatpush1.bf16.msra.mxu0 %v11604_v7  ;;  %v11582_v61 = vcombine.low %v2163_v38, %v2164_v43  ;;  %v11661_v63 = vcombine.high %v13610_v8, %v13615_v15  ;;  %v3198_v8 = vld [vmem:[#allocation10 + $0x208] sm:$0xff] }
 0x23c   : > { %16275 = vst [vmem:[#allocation31_spill] sm:$0xff] %v13645_v17  ;;  %2087 = vmatmul.mubr.bf16.gmra.mxu1 %v13645_v17  ;;  %2750 = vmatprep.subr.bf16.mxu0 %v11603_v23  ;;  %v1426_v13 = vadd.f32 %v1425_v36, %v13597_v50  ;;  %v11629_v23 = vcombine.high %v13668_v59, %v13670_v31  ;;  %v3199_v15 = vld [vmem:[#allocation10 + $0x248] sm:$0xff] }
 0x23d   : > { %v1427_v28 = vpop.f32.mrf.mxu0  ;;  %2096 = vmatprep.mubr.bf16.mxu1 %v16207_v12  ;;  %2268 = vmatpush1.bf16.msra.mxu1 %v11588_v6  ;;  %v13677_v6 = vpop.f32.mrf.mxu1 }
 0x23e   : > { %v1428_v33 = vadd.f32 %v1427_v28, %v13591_v19  ;;  %2269 = vmatprep.subr.bf16.mxu1 %v11587_v21 }
 0x23f   : > { %v1429_v41 = vpop.f32.mrf.mxu0  ;;  %2751 = vmatpush1.bf16.msra.mxu0 %v11602_v27  ;;  %v13688_v27 = vpop.f32.mrf.mxu1 }
 0x240   : > { %v13658_v10 = vpack.c.bf16 %v1428_v33, %v1424_v32  ;;  %v1430_v42 = vadd.f32 %v1429_v41, %v13597_v50  ;;  %2752 = vmatprep.subr.bf16.mxu0 %v11601_v30 }
 0x241   : > { %v1433_v48 = vpop.f32.mrf.mxu0  ;;  %2270 = vmatpush1.bf16.msra.mxu1 %v11586_v29  ;;  %v13695_v33 = vpop.f32.mrf.mxu1 }
 0x242   : > { %v13661_v52 = vpack.c.bf16 %v1430_v42, %v1426_v13  ;;  %1776 = vmatmul.mubr.bf16.gmra.mxu0 %v13658_v10  ;;  %2271 = vmatprep.subr.bf16.mxu1 %v11585_v20  ;;  %v1434_v7 = vadd.f32 %v1433_v48, %v13591_v19 }
 0x243   : > { %v1435_v58 = vpop.f32.mrf.mxu0  ;;  %1785 = vmatprep.mubr.bf16.mxu0 %v16207_v12  ;;  %2753 = vmatpush1.bf16.msra.mxu0 %v11600_v46  ;;  %v13704_v13 = vpop.f32.mrf.mxu1 }
 0x244   : > { %2097 = vmatmul.mubr.bf16.gmra.mxu1 %v13661_v52  ;;  %2754 = vmatprep.subr.bf16.mxu0 %v11599_v54  ;;  %v1436_v35 = vadd.f32 %v1435_v58, %v13597_v50 }
 0x245   : > { %v1437_v25 = vpop.f32.mrf.mxu0  ;;  %2106 = vmatprep.mubr.bf16.mxu1 %v16207_v12  ;;  %2272 = vmatpush1.bf16.msra.mxu1 %v11584_v51 }
 0x246   : > { %v1438_v11 = vadd.f32 %v1437_v25, %v13591_v19  ;;  %2273 = vmatprep.subr.bf16.mxu1 %v11583_v53  ;;  %v13711_v53 = vpop.f32.mrf.mxu1 }
 0x247   : > { %v1439_v21 = vpop.f32.mrf.mxu0  ;;  %2755 = vmatpush1.bf16.msra.mxu0 %v11598_v18 }
 0x248   : > { %v13682_v37 = vpack.c.bf16 %v1438_v11, %v1434_v7  ;;  %v1440_v36 = vadd.f32 %v1439_v21, %v13597_v50  ;;  %3767 = vmatprep.subr.bf16.mxu0 %v11661_v63  ;;  %v13720_v7 = vpop.f32.mrf.mxu1 }
 0x249   : > { %v1443_v39 = vpop.f32.mrf.mxu0  ;;  %2274 = vmatpush1.bf16.msra.mxu1 %v11582_v61 }
 0x24a   : > { %v13685_v26 = vpack.c.bf16 %v1440_v36, %v1436_v35  ;;  %1786 = vmatmul.mubr.bf16.gmra.mxu0 %v13682_v37  ;;  %3061 = vmatprep.subr.bf16.mxu1 %v11629_v23  ;;  %v1444_v30 = vadd.f32 %v1443_v39, %v13591_v19  ;;  %v1029_v23 = vsub.s32 2, %v13326_v1  ;;  %v13728_v39 = vpop.f32.mrf.mxu1 }
 0x24b   : > { %v1445_v28 = vpop.f32.mrf.mxu0  ;;  %1795 = vmatprep.mubr.bf16.mxu0 %v16207_v12 }
 0x24c   : > { %2107 = vmatmul.mubr.bf16.gmra.mxu1 %v13685_v26  ;;  %v1446_v41 = vadd.f32 %v1445_v28, %v13597_v50 }
 0x24d   : > { %v1447_v29 = vpop.f32.mrf.mxu0  ;;  %2116 = vmatprep.mubr.bf16.mxu1 %v16207_v12 }
 0x24e   : > { %v1448_v32 = vadd.f32 %v1447_v29, %v13591_v19  ;;  %v1033_v29 = vsub.s32 3, %v13326_v1 }
 0x24f   : > { %v1449_v38 = vpop.f32.mrf.mxu0 }
 0x250   : > { %v13698_v20 = vpack.c.bf16 %v1448_v32, %v1444_v30  ;;  %v1450_v43 = vadd.f32 %v1449_v38, %v13597_v50 }
 0x251   : > { %v1453_v44 = vpop.f32.mrf.mxu0 }
 0x252   : > { %v13701_v9 = vpack.c.bf16 %v1450_v43, %v1446_v41  ;;  %1796 = vmatmul.mubr.bf16.gmra.mxu0 %v13698_v20  ;;  %v1454_v48 = vadd.f32 %v1453_v44, %v13591_v19  ;;  %v13736_v41 = vrot.slane %v13585_v45, %v1029_v23  ;;  %v13741_v44 = vpop.f32.mrf.mxu1 }
 0x253   : > { %v1455_v42 = vpop.f32.mrf.mxu0  ;;  %1805 = vmatprep.mubr.bf16.mxu0 %v16207_v12 }
 0x254   : > { %2117 = vmatmul.mubr.bf16.gmra.mxu1 %v13701_v9  ;;  %v1456_v58 = vadd.f32 %v1455_v42, %v13597_v50  ;;  %v1511_v42 = vadd.f32 %v13601_v56, %v13736_v41  ;;  %v11628_v56 = vcombine.low %v13668_v59, %v13670_v31  ;;  %v1517_v59 = vadd.f32 %v13623_v40, %v13736_v41 }
 0x255   : > { %v1457_v46 = vpop.f32.mrf.mxu0  ;;  %2126 = vmatprep.mubr.bf16.mxu1 %v16207_v12 }
 0x256   : > { %v1458_v51 = vadd.f32 %v1457_v46, %v13591_v19 }
 0x257   : > { %v1459_v54 = vpop.f32.mrf.mxu0 }
 0x258   : > { %v13714_v18 = vpack.c.bf16 %v1458_v51, %v1454_v48  ;;  %v1460_v25 = vadd.f32 %v1459_v54, %v13597_v50  ;;  %v13755_v48 = vpop.f32.mrf.mxu1  ;;  %v2977_v51 = vld [vmem:[#allocation8 + $0x308] sm:$0xff] }
 0x259   : > { %v1463_v61 = vpop.f32.mrf.mxu0  ;;  %v2978_v54 = vld [vmem:[#allocation8 + $0x348] sm:$0xff] }
 0x25a   : > { %v13717_v63 = vpack.c.bf16 %v1460_v25, %v1456_v58  ;;  %1806 = vmatmul.mubr.bf16.gmra.mxu0 %v13714_v18  ;;  %v1464_v35 = vadd.f32 %v1463_v61, %v13591_v19  ;;  %v13766_v61 = vpop.f32.mrf.mxu1 }
 0x25b   : > { %v1465_v11 = vpop.f32.mrf.mxu0  ;;  %1815 = vmatprep.mubr.bf16.mxu0 %v16207_v12 }
 0x25c   : > { %2127 = vmatmul.mubr.bf16.gmra.mxu1 %v13717_v63  ;;  %v1466_v30 = vadd.f32 %v1465_v11, %v13597_v50  ;;  %v2976_v11 = vld [vmem:[#allocation8 + $0x2c8] sm:$0xff] }
 0x25d   : > { %v1467_v21 = vpop.f32.mrf.mxu0  ;;  %2136 = vmatprep.mubr.bf16.mxu1 %v16207_v12 }
 0x25e   : > { %v1468_v36 = vadd.f32 %v1467_v21, %v13591_v19  ;;  %v13745_v19 = vrot.slane %v13585_v45, %v1033_v29  ;;  %v1521_v21 = vadd.f32 %v13639_v57, %v13736_v41 }
 0x25f   : > { %v1469_v28 = vpop.f32.mrf.mxu0 }
 0x260   : > { %v13732_v32 = vpack.c.bf16 %v1468_v36, %v1464_v35  ;;  %v1470_v38 = vadd.f32 %v1469_v28, %v13597_v50  ;;  %v1507_v50 = vadd.f32 %v13587_v47, %v13736_v41  ;;  %v1513_v46 = vadd.f32 %v13612_v14, %v13745_v19  ;;  %v2975_v14 = vld [vmem:[#allocation8 + $0x288] sm:$0xff]  ;;  %v13777_v35 = vpop.f32.mrf.mxu1 }
 0x261   : > { %v1509_v45 = vadd.f32 %v13593_v49, %v13745_v19  ;;  %v11627_v47 = vcombine.high %v2977_v51, %v2978_v54  ;;  %v11626_v49 = vcombine.low %v2977_v51, %v2978_v54  ;;  %v1523_v31 = vadd.f32 %v13648_v24, %v13745_v19  ;;  %v2973_v36 = vld [vmem:[#allocation8 + $0x208] sm:$0xff] }
 0x262   : > { %v13738_v43 = vpack.c.bf16 %v1470_v38, %v1466_v30  ;;  %1816 = vmatmul.mubr.bf16.gmra.mxu0 %v13732_v32  ;;  %v13759_v58 = vpack.c.bf16 %v1511_v42, %v1507_v50  ;;  %v11625_v23 = vcombine.high %v2975_v14, %v2976_v11  ;;  %v2974_v28 = vld [vmem:[#allocation8 + $0x248] sm:$0xff]  ;;  %v1519_v57 = vadd.f32 %v13632_v16, %v13745_v19  ;;  %v13786_v24 = vpop.f32.mrf.mxu1 }
 0x263   : > { %1825 = vmatprep.mubr.bf16.mxu0 %v16207_v12  ;;  %v13763_v25 = vpack.c.bf16 %v1513_v46, %v1509_v45  ;;  %v13781_v29 = vpack.c.bf16 %v1521_v21, %v1517_v59  ;;  %v11624_v30 = vcombine.low %v2975_v14, %v2976_v11  ;;  %v11623_v40 = vcombine.high %v2973_v36, %v2974_v28  ;;  %v2971_v42 = vld [vmem:[#allocation8 + $0x188] sm:$0xff] }
 0x264   : > { %2137 = vmatmul.mubr.bf16.gmra.mxu1 %v13738_v43  ;;  %16276 = vst [vmem:[#allocation32_spill] sm:$0xff] %v13759_v58  ;;  %v13783_v38 = vpack.c.bf16 %v1523_v31, %v1519_v57  ;;  %v2972_v50 = vld [vmem:[#allocation8 + $0x1c8] sm:$0xff]  ;;  %v1531_v46 = vadd.f32 %v13677_v6, %v13736_v41  ;;  %v11622_v16 = vcombine.low %v2973_v36, %v2974_v28 }
 0x265   : > { %2291 = vmatprep.mubr.bf16.mxu1 %v16207_v12  ;;  %16277 = vst [vmem:[#allocation33_spill] sm:$0xff] %v13763_v25  ;;  %16278 = vst [vmem:[#allocation34_spill] sm:$0xff] %v13781_v29  ;;  %v1527_v51 = vadd.f32 %v13655_v5, %v13736_v41  ;;  %v1533_v54 = vadd.f32 %v13688_v27, %v13745_v19  ;;  %v11621_v45 = vcombine.high %v2971_v42, %v2972_v50  ;;  %v2970_v14 = vld [vmem:[#allocation8 + $0x148] sm:$0xff] }
 0x266   : > { %16279 = vst [vmem:[#allocation35_spill] sm:$0xff] %v13783_v38  ;;  %v1529_v6 = vadd.f32 %v13664_v55, %v13745_v19  ;;  %v11620_v21 = vcombine.low %v2971_v42, %v2972_v50  ;;  %v2967_v27 = vld [vmem:[#allocation8 + $0x88] sm:$0xff]  ;;  %v1537_v36 = vadd.f32 %v13695_v33, %v13736_v41  ;;  %v1543_v28 = vadd.f32 %v13720_v7, %v13745_v19 }
 0x267   : > { %v13799_v11 = vpack.c.bf16 %v1531_v46, %v1527_v51  ;;  %v2968_v31 = vld [vmem:[#allocation8 + $0xc8] sm:$0xff] }
 0x268   : > { %v11617_v57 = vcombine.high %v2967_v27, %v2968_v31  ;;  %v2966_v42 = vld [vmem:[#allocation8 + $0x48] sm:$0xff]  ;;  %v11616_v46 = vcombine.low %v2967_v27, %v2968_v31 }
 0x269   : > { %16280 = vst [vmem:[#allocation36_spill] sm:$0xff] %v13799_v11  ;;  %v13821_v7 = vld [vmem:[#allocation10 + $0x388] sm:$0xff] }
 0x26a   : > { %1826 = vmatmul.mubr.bf16.gmra.mxu0 %v13759_v58 }
 0x26b   : > { %1835 = vmatprep.mubr.bf16.mxu0 %v16207_v12 }
 0x26c   : > { %2292 = vmatmul.mubr.bf16.vlgmr.msra.gmra.mxu1 %v13763_v25 }
 0x26d   : > { %3062 = vmatpush1.bf16.msra.mxu1 %v11628_v56  ;;  %2301 = vmatprep.mubr.bf16.mxu1 %v16207_v12  ;;  %v1560_v56 = vpop.f32.mrf.mxu1 }
 0x26e   : > { %3063 = vmatprep.subr.bf16.mxu1 %v11627_v47  ;;  %v2969_v47 = vld [vmem:[#allocation8 + $0x108] sm:$0xff] }
 0x26f   : > { %v11619_v5 = vcombine.high %v2969_v47, %v2970_v14  ;;  %v1562_v59 = vpop.f32.mrf.mxu1  ;;  %v11618_v55 = vcombine.low %v2969_v47, %v2970_v14  ;;  %v1547_v47 = vadd.f32 %v13728_v39, %v13736_v41  ;;  %v1553_v14 = vadd.f32 %v13766_v61, %v13745_v19 }
 0x270   : > { %v1561_v61 = vadd.f32 %v1560_v56, %v13736_v41  ;;  %v1563_v31 = vadd.f32 %v1562_v59, %v13745_v19 }
 0x271   : > { %3064 = vmatpush1.bf16.msra.mxu1 %v11626_v49  ;;  %v13801_v49 = vpack.c.bf16 %v1533_v54, %v1529_v6  ;;  %v13823_v54 = vld [vmem:[#allocation10 + $0x3c8] sm:$0xff] }
 0x272   : > { %1836 = vmatmul.mubr.bf16.gmra.mxu0 %v13781_v29  ;;  %3065 = vmatprep.subr.bf16.mxu1 %v11625_v23  ;;  %v1541_v23 = vadd.f32 %v13711_v53, %v13736_v41  ;;  %v1539_v53 = vadd.f32 %v13704_v13, %v13745_v19  ;;  %v1551_v13 = vadd.f32 %v13755_v48, %v13736_v41 }
 0x273   : > { %1845 = vmatprep.mubr.bf16.mxu0 %v16207_v12  ;;  %16281 = vst [vmem:[#allocation37_spill] sm:$0xff] %v13801_v49  ;;  %v11645_v6 = vcombine.high %v13821_v7, %v13823_v54  ;;  %v1549_v48 = vadd.f32 %v13741_v44, %v13745_v19  ;;  %v1557_v44 = vadd.f32 %v13777_v35, %v13736_v41 }
 0x274   : > { %2302 = vmatmul.mubr.bf16.gmra.mxu1 %v13783_v38  ;;  %v13815_v50 = vpack.c.bf16 %v1541_v23, %v1537_v36 }
 0x275   : > { %2311 = vmatprep.mubr.bf16.mxu1 %v16207_v12  ;;  %3066 = vmatpush1.bf16.msra.mxu1 %v11624_v30  ;;  %v1566_v30 = vpop.f32.mrf.mxu1  ;;  %v13839_v27 = vpack.c.bf16 %v1553_v14, %v1549_v48  ;;  %v13851_v36 = vpack.c.bf16 %v1561_v61, %v1557_v44  ;;  %v3683_v14 = vld [vmem:[#allocation7 + $0x310] sm:$0xff] }
 0x276   : > { %3067 = vmatprep.subr.bf16.mxu1 %v11623_v40  ;;  %v2965_v40 = vld [vmem:[#allocation8 + $0x8] sm:$0xff]  ;;  %16282 = vst [vmem:[#allocation38_spill] sm:$0xff] %v13815_v50  ;;  %v1567_v35 = vadd.f32 %v1566_v30, %v13736_v41  ;;  %v3682_v61 = vld [vmem:[#allocation7 + $0x2d0] sm:$0xff] }
 0x277   : > { %v11615_v33 = vcombine.high %v2965_v40, %v2966_v42  ;;  %v1568_v51 = vpop.f32.mrf.mxu1  ;;  %16285 = vst [vmem:[#allocation41_spill] sm:$0xff] %v13839_v27  ;;  %16286 = vst [vmem:[#allocation42_spill] sm:$0xff] %v13851_v36 }
 0x279   : > { %3068 = vmatpush1.bf16.msra.mxu1 %v11622_v16  ;;  %v13817_v16 = vpack.c.bf16 %v1543_v28, %v1539_v53 }
 0x27a   : > { %1846 = vmatmul.mubr.bf16.gmra.mxu0 %v13799_v11  ;;  %3069 = vmatprep.subr.bf16.mxu1 %v11621_v45  ;;  %v11614_v45 = vcombine.low %v2965_v40, %v2966_v42  ;;  %v1569_v40 = vadd.f32 %v1568_v51, %v13745_v19 }
 0x27b   : > { %1855 = vmatprep.mubr.bf16.mxu0 %v16207_v12  ;;  %16283 = vst [vmem:[#allocation39_spill] sm:$0xff] %v13817_v16 }
 0x27c   : > { %2312 = vmatmul.mubr.bf16.gmra.mxu1 %v13801_v49 }
 0x27d   : > { %2321 = vmatprep.mubr.bf16.mxu1 %v16207_v12  ;;  %3070 = vmatpush1.bf16.msra.mxu1 %v11620_v21  ;;  %v1570_v21 = vpop.f32.mrf.mxu1 }
 0x27e   : > { %3071 = vmatprep.subr.bf16.mxu1 %v11619_v5  ;;  %v13837_v5 = vpack.c.bf16 %v1551_v13, %v1547_v47 }
 0x27f   : > { %v1572_v39 = vpop.f32.mrf.mxu1 }
 0x280   : > { %16284 = vst [vmem:[#allocation40_spill] sm:$0xff] %v13837_v5  ;;  %v1573_v59 = vadd.f32 %v1572_v39, %v13745_v19  ;;  %v3681_v39 = vld [vmem:[#allocation7 + $0x290] sm:$0xff] }
 0x281   : > { %3072 = vmatpush1.bf16.msra.mxu1 %v11618_v55  ;;  %v1576_v23 = vpop.f32.mrf.mxu1  ;;  %v1559_v55 = vadd.f32 %v13786_v24, %v13745_v19 }
 0x282   : > { %1856 = vmatmul.mubr.bf16.gmra.mxu0 %v13815_v50  ;;  %3073 = vmatprep.subr.bf16.mxu1 %v11617_v57  ;;  %v1571_v57 = vadd.f32 %v1570_v21, %v13736_v41  ;;  %v13865_v53 = vpack.c.bf16 %v1573_v59, %v1569_v40  ;;  %v1577_v30 = vadd.f32 %v1576_v23, %v13736_v41  ;;  %v3202_v21 = vld [vmem:[#allocation10 + $0x308] sm:$0xff]  ;;  %v3677_v40 = vld [vmem:[#allocation7 + $0x190] sm:$0xff] }
 0x283   : > { %1865 = vmatprep.mubr.bf16.mxu0 %v16207_v12  ;;  %v13853_v28 = vpack.c.bf16 %v1563_v31, %v1559_v55  ;;  %v1578_v56 = vpop.f32.mrf.mxu1  ;;  %v3200_v31 = vld [vmem:[#allocation10 + $0x288] sm:$0xff] }
 0x284   : > { %2322 = vmatmul.mubr.bf16.gmra.mxu1 %v13817_v16  ;;  %v13863_v42 = vpack.c.bf16 %v1571_v57, %v1567_v35  ;;  %16289 = vst [vmem:[#allocation45_spill] sm:$0xff] %v13865_v53  ;;  %v1579_v51 = vadd.f32 %v1578_v56, %v13745_v19  ;;  %v3201_v23 = vld [vmem:[#allocation10 + $0x2c8] sm:$0xff]  ;;  %v11657_v56 = vcombine.high %v3681_v39, %v3682_v61  ;;  %v3680_v57 = vld [vmem:[#allocation7 + $0x250] sm:$0xff] }
 0x285   : > { %2331 = vmatprep.mubr.bf16.mxu1 %v16207_v12  ;;  %3074 = vmatpush1.bf16.msra.mxu1 %v11616_v46  ;;  %16287 = vst [vmem:[#allocation43_spill] sm:$0xff] %v13853_v28  ;;  %v1580_v24 = vpop.f32.mrf.mxu1  ;;  %v11641_v35 = vcombine.high %v3200_v31, %v3201_v23 }
 0x286   : > { %3075 = vmatprep.subr.bf16.mxu1 %v11615_v33  ;;  %16288 = vst [vmem:[#allocation44_spill] sm:$0xff] %v13863_v42  ;;  %v1581_v33 = vadd.f32 %v1580_v24, %v13736_v41  ;;  %v3203_v41 = vld [vmem:[#allocation10 + $0x348] sm:$0xff]  ;;  %v11640_v24 = vcombine.low %v3200_v31, %v3201_v23 }
 0x287   : > { %v1582_v46 = vpop.f32.mrf.mxu1  ;;  %v11643_v44 = vcombine.high %v3202_v21, %v3203_v41  ;;  %v3195_v31 = vld [vmem:[#allocation10 + $0x148] sm:$0xff] }
 0x288   : > { %v1583_v13 = vadd.f32 %v1582_v46, %v13745_v19  ;;  %v11644_v19 = vcombine.low %v13821_v7, %v13823_v54  ;;  %v11642_v7 = vcombine.low %v3202_v21, %v3203_v41  ;;  %v3679_v54 = vld [vmem:[#allocation7 + $0x210] sm:$0xff] }
 0x289   : > { %3076 = vmatpush1.bf16.msra.mxu1 %v11614_v45  ;;  %v13875_v45 = vpack.c.bf16 %v1581_v33, %v1577_v30  ;;  %v11655_v59 = vcombine.high %v3679_v54, %v3680_v57  ;;  %v3678_v46 = vld [vmem:[#allocation7 + $0x1d0] sm:$0xff]  ;;  %v11639_v33 = vcombine.high %v3198_v8, %v3199_v15  ;;  %v13893_v30 = vld [vmem:[#allocation7 + $0x398] sm:$0xff] }
 0x28a   : > { %1866 = vmatmul.mubr.bf16.gmra.mxu0 %v13837_v5  ;;  %3286 = vmatprep.subr.bf16.mxu1 %v11645_v6  ;;  %v13877_v47 = vpack.c.bf16 %v1583_v13, %v1579_v51  ;;  %v3684_v6 = vld [vmem:[#allocation7 + $0x350] sm:$0xff]  ;;  %v3196_v13 = vld [vmem:[#allocation10 + $0x188] sm:$0xff]  ;;  %v11653_v21 = vcombine.high %v3677_v40, %v3678_v46  ;;  %v11652_v23 = vcombine.low %v3677_v40, %v3678_v46 }
 0x28b   : > { %1875 = vmatprep.mubr.bf16.mxu0 %v16207_v12  ;;  %16290 = vst [vmem:[#allocation46_spill] sm:$0xff] %v13875_v45  ;;  %v11659_v48 = vcombine.high %v3683_v14, %v3684_v6  ;;  %v11658_v55 = vcombine.low %v3683_v14, %v3684_v6  ;;  %v3197_v51 = vld [vmem:[#allocation10 + $0x1c8] sm:$0xff]  ;;  %v11654_v14 = vcombine.low %v3679_v54, %v3680_v57  ;;  %v13896_v6 = vld [vmem:[#allocation7 + $0x3d8] sm:$0xff]  ;;  %v3674_v54 = vld [vmem:[#allocation7 + $0xd0] sm:$0xff] }
 0x28c   : > { %2332 = vmatmul.mubr.bf16.gmra.mxu1 %v13839_v27  ;;  %16291 = vst [vmem:[#allocation47_spill] sm:$0xff] %v13877_v47  ;;  %v3672_v40 = vld [vmem:[#allocation7 + $0x50] sm:$0xff] }
 0x28d   : > { %2341 = vmatprep.mubr.bf16.mxu1 %v16207_v12 }
 0x292   : > { %1876 = vmatmul.mubr.bf16.gmra.mxu0 %v13851_v36 }
 0x293   : > { %1885 = vmatprep.mubr.bf16.mxu0 %v16207_v12 }
 0x294   : > { %2342 = vmatmul.mubr.bf16.gmra.mxu1 %v13853_v28 }
 0x295   : > { %2351 = vmatprep.mubr.bf16.mxu1 %v16207_v12 }
 0x29a   : > { %1886 = vmatmul.mubr.bf16.gmra.mxu0 %v13863_v42 }
 0x29b   : > { %1895 = vmatprep.mubr.bf16.mxu0 %v16207_v12 }
 0x29c   : > { %2352 = vmatmul.mubr.bf16.gmra.mxu1 %v13865_v53 }
 0x29d   : > { %2361 = vmatprep.mubr.bf16.mxu1 %v16207_v12 }
 0x2a2   : > { %1896 = vmatmul.mubr.bf16.gmra.mxu0 %v13875_v45 }
 0x2a3   : > { %2772 = vmatprep.mubr.bf16.mxu0 %v16207_v12 }
 0x2a4   : > { %2362 = vmatmul.mubr.bf16.gmra.mxu1 %v13877_v47 }
 0x2a5   : > { %3093 = vmatprep.mubr.bf16.mxu1 %v16207_v12 }
 0x2aa   : > { %2773 = vmatmul.mubr.bf16.vlgmr.msra.gmra.mxu0 %v13604_v60 }
 0x2ab   : > { %3768 = vmatpush1.bf16.msra.mxu0 %v11660_v34  ;;  %2782 = vmatprep.mubr.bf16.mxu0 %v16207_v12  ;;  %v11656_v34 = vcombine.low %v3681_v39, %v3682_v61  ;;  %v3676_v39 = vld [vmem:[#allocation7 + $0x150] sm:$0xff]  ;;  %v11637_v61 = vcombine.high %v3196_v13, %v3197_v51 }
 0x2ac   : > { %3094 = vmatmul.mubr.bf16.vlgmr.msra.gmra.mxu1 %v13607_v0  ;;  %3769 = vmatprep.subr.bf16.mxu0 %v11659_v48  ;;  %v11638_v48 = vcombine.low %v3198_v8, %v3199_v15  ;;  %v3193_v8 = vld [vmem:[#allocation10 + $0xc8] sm:$0xff] }
 0x2ad   : > { %3287 = vmatpush1.bf16.msra.mxu1 %v11644_v19  ;;  %3103 = vmatprep.mubr.bf16.mxu1 %v16207_v12  ;;  %v3675_v19 = vld [vmem:[#allocation7 + $0x110] sm:$0xff] }
 0x2ae   : > { %3288 = vmatprep.subr.bf16.mxu1 %v11643_v44  ;;  %v3194_v44 = vld [vmem:[#allocation10 + $0x108] sm:$0xff]  ;;  %v11650_v15 = vcombine.low %v3675_v19, %v3676_v39 }
 0x2af   : > { %3770 = vmatpush1.bf16.msra.mxu0 %v11658_v55  ;;  %v11651_v55 = vcombine.high %v3675_v19, %v3676_v39  ;;  %v11635_v57 = vcombine.high %v3194_v44, %v3195_v31  ;;  %v4006_v19 = vld [vmem:[#allocation8 + $0x390] sm:$0xff] }
 0x2b0   : > { %3771 = vmatprep.subr.bf16.mxu0 %v11657_v56  ;;  %v11636_v56 = vcombine.low %v3196_v13, %v3197_v51  ;;  %v3191_v13 = vld [vmem:[#allocation10 + $0x48] sm:$0xff]  ;;  %v4007_v39 = vld [vmem:[#allocation8 + $0x3d0] sm:$0xff] }
 0x2b1   : > { %3289 = vmatpush1.bf16.msra.mxu1 %v11642_v7  ;;  %v3673_v7 = vld [vmem:[#allocation7 + $0x90] sm:$0xff] }
 0x2b2   : > { %2783 = vmatmul.mubr.bf16.gmra.mxu0 %v13626_v22  ;;  %3290 = vmatprep.subr.bf16.mxu1 %v11641_v35  ;;  %v3192_v35 = vld [vmem:[#allocation10 + $0x88] sm:$0xff]  ;;  %v11648_v51 = vcombine.low %v3673_v7, %v3674_v54 }
 0x2b3   : > { %2792 = vmatprep.mubr.bf16.mxu0 %v16207_v12  ;;  %3772 = vmatpush1.bf16.msra.mxu0 %v11656_v34  ;;  %v11649_v34 = vcombine.high %v3673_v7, %v3674_v54  ;;  %v11633_v46 = vcombine.high %v3192_v35, %v3193_v8  ;;  %v11676_v7 = vcombine.low %v4006_v19, %v4007_v39 }
 0x2b4   : > { %3104 = vmatmul.mubr.bf16.gmra.mxu1 %v13629_v4  ;;  %3773 = vmatprep.subr.bf16.mxu0 %v11655_v59  ;;  %v11634_v59 = vcombine.low %v3194_v44, %v3195_v31  ;;  %v11709_v44 = vcombine.high %v13893_v30, %v13896_v6 }
 0x2b5   : > { %3113 = vmatprep.mubr.bf16.mxu1 %v16207_v12  ;;  %3291 = vmatpush1.bf16.msra.mxu1 %v11640_v24  ;;  %v3671_v24 = vld [vmem:[#allocation7 + $0x10] sm:$0xff] }
 0x2b6   : > { %3292 = vmatprep.subr.bf16.mxu1 %v11639_v33  ;;  %v3190_v33 = vld [vmem:[#allocation10 + $0x8] sm:$0xff] }
 0x2b7   : > { %3774 = vmatpush1.bf16.msra.mxu0 %v11654_v14  ;;  %v11647_v14 = vcombine.high %v3671_v24, %v3672_v40  ;;  %v11630_v31 = vcombine.low %v3190_v33, %v3191_v13 }
 0x2b8   : > { %3775 = vmatprep.subr.bf16.mxu0 %v11653_v21  ;;  %v11632_v21 = vcombine.low %v3192_v35, %v3193_v8  ;;  %v4002_v35 = vld [vmem:[#allocation8 + $0x290] sm:$0xff] }
 0x2b9   : > { %3293 = vmatpush1.bf16.msra.mxu1 %v11638_v48  ;;  %v11631_v48 = vcombine.high %v3190_v33, %v3191_v13  ;;  %v4003_v8 = vld [vmem:[#allocation8 + $0x2d0] sm:$0xff] }
 0x2ba   : > { %2793 = vmatmul.mubr.bf16.gmra.mxu0 %v13642_v62  ;;  %3294 = vmatprep.subr.bf16.mxu1 %v11637_v61  ;;  %v11646_v61 = vcombine.low %v3671_v24, %v3672_v40  ;;  %v4000_v13 = vld [vmem:[#allocation8 + $0x210] sm:$0xff] }
 0x2bb   : > { %2802 = vmatprep.mubr.bf16.mxu0 %v16207_v12  ;;  %3776 = vmatpush1.bf16.msra.mxu0 %v11652_v23  ;;  %v11677_v23 = vcombine.high %v4006_v19, %v4007_v39  ;;  %v11672_v39 = vcombine.low %v4002_v35, %v4003_v8 }
 0x2bc   : > { %3114 = vmatmul.mubr.bf16.gmra.mxu1 %v13645_v17  ;;  %3777 = vmatprep.subr.bf16.mxu0 %v11651_v55  ;;  %v4004_v55 = vld [vmem:[#allocation8 + $0x310] sm:$0xff] }
 0x2bd   : > { %3123 = vmatprep.mubr.bf16.mxu1 %v16207_v12  ;;  %3295 = vmatpush1.bf16.msra.mxu1 %v11636_v56  ;;  %v4005_v56 = vld [vmem:[#allocation8 + $0x350] sm:$0xff] }
 0x2be   : > { %3296 = vmatprep.subr.bf16.mxu1 %v11635_v57  ;;  %v11675_v57 = vcombine.high %v4004_v55, %v4005_v56 }
 0x2bf   : > { %3778 = vmatpush1.bf16.msra.mxu0 %v11650_v15 }
 0x2c0   : > { %3779 = vmatprep.subr.bf16.mxu0 %v11649_v34 }
 0x2c1   : > { %3297 = vmatpush1.bf16.msra.mxu1 %v11634_v59  ;;  %v11674_v59 = vcombine.low %v4004_v55, %v4005_v56  ;;  %v3999_v55 = vld [vmem:[#allocation8 + $0x1d0] sm:$0xff] }
 0x2c2   : > { %2803 = vmatmul.mubr.bf16.gmra.mxu0 %v13658_v10  ;;  %3298 = vmatprep.subr.bf16.mxu1 %v11633_v46  ;;  %v11673_v46 = vcombine.high %v4002_v35, %v4003_v8 }
 0x2c3   : > { %2812 = vmatprep.mubr.bf16.mxu0 %v16207_v12  ;;  %3780 = vmatpush1.bf16.msra.mxu0 %v11648_v51  ;;  %v4001_v51 = vld [vmem:[#allocation8 + $0x250] sm:$0xff] }
 0x2c4   : > { %3124 = vmatmul.mubr.bf16.gmra.mxu1 %v13661_v52  ;;  %3781 = vmatprep.subr.bf16.mxu0 %v11647_v14  ;;  %v11670_v35 = vcombine.low %v4000_v13, %v4001_v51 }
 0x2c5   : > { %3133 = vmatprep.mubr.bf16.mxu1 %v16207_v12  ;;  %3299 = vmatpush1.bf16.msra.mxu1 %v11632_v21 }
 0x2c6   : > { %3300 = vmatprep.subr.bf16.mxu1 %v11631_v48 }
 0x2c7   : > { %3782 = vmatpush1.bf16.msra.mxu0 %v11646_v61 }
 0x2c8   : > { %4794 = vmatprep.subr.bf16.mxu0 %v11709_v44 }
 0x2c9   : > { %3301 = vmatpush1.bf16.msra.mxu1 %v11630_v31  ;;  %v11671_v31 = vcombine.high %v4000_v13, %v4001_v51 }
 0x2ca   : > { %2813 = vmatmul.mubr.bf16.gmra.mxu0 %v13682_v37  ;;  %4088 = vmatprep.subr.bf16.mxu1 %v11677_v23  ;;  %v3998_v23 = vld [vmem:[#allocation8 + $0x190] sm:$0xff] }
 0x2cb   : > { %2822 = vmatprep.mubr.bf16.mxu0 %v16207_v12 }
 0x2cc   : > { %3134 = vmatmul.mubr.bf16.gmra.mxu1 %v13685_v26 }
 0x2cd   : > { %3143 = vmatprep.mubr.bf16.mxu1 %v16207_v12 }
 0x2d2   : > { %2823 = vmatmul.mubr.bf16.gmra.mxu0 %v13698_v20 }
 0x2d3   : > { %2832 = vmatprep.mubr.bf16.mxu0 %v16207_v12 }
 0x2d4   : > { %3144 = vmatmul.mubr.bf16.gmra.mxu1 %v13701_v9 }
 0x2d5   : > { %3153 = vmatprep.mubr.bf16.mxu1 %v16207_v12 }
 0x2da   : > { %2833 = vmatmul.mubr.bf16.gmra.mxu0 %v13714_v18 }
 0x2db   : > { %2842 = vmatprep.mubr.bf16.mxu0 %v16207_v12 }
 0x2dc   : > { %3154 = vmatmul.mubr.bf16.gmra.mxu1 %v13717_v63 }
 0x2dd   : > { %3163 = vmatprep.mubr.bf16.mxu1 %v16207_v12 }
 0x2e2   : > { %2843 = vmatmul.mubr.bf16.gmra.mxu0 %v13732_v32 }
 0x2e3   : > { %2852 = vmatprep.mubr.bf16.mxu0 %v16207_v12 }
 0x2e4   : > { %3164 = vmatmul.mubr.bf16.gmra.mxu1 %v13738_v43 }
 0x2e5   : > { %3318 = vmatprep.mubr.bf16.mxu1 %v16207_v12 }
 0x2ea   : > { %v1747_v54 = vpop.f32.mrf.mxu0  ;;  %2853 = vmatmul.mubr.bf16.gmra.mxu0 %v13759_v58 }
 0x2eb   : > { %2862 = vmatprep.mubr.bf16.mxu0 %v16207_v12 }
 0x2ec   : > { %v1749_v15 = vpop.f32.mrf.mxu0  ;;  %v2068_v34 = vpop.f32.mrf.mxu1  ;;  %3319 = vmatmul.mubr.bf16.vlgmr.msra.gmra.mxu1 %v13763_v25 }
 0x2ed   : > { %4089 = vmatpush1.bf16.msra.mxu1 %v11676_v7  ;;  %3328 = vmatprep.mubr.bf16.mxu1 %v16207_v12 }
 0x2ee   : > { %v1751_v24 = vpop.f32.mrf.mxu0  ;;  %v2070_v40 = vpop.f32.mrf.mxu1  ;;  %4090 = vmatprep.subr.bf16.mxu1 %v11675_v57 }
 0x2ef   : > { %v1906_v33 = vpack.c.bf16 %v1751_v24, %v1747_v54 }
 0x2f0   : > { %v1753_v14 = vpop.f32.mrf.mxu0  ;;  %v2072_v21 = vpop.f32.mrf.mxu1 }
 0x2f1   : > { %v1907_v48 = vpack.c.bf16 %v1753_v14, %v1749_v15  ;;  %v2147_v19 = vpack.c.bf16 %v2072_v21, %v2068_v34  ;;  %4091 = vmatpush1.bf16.msra.mxu1 %v11674_v59  ;;  %v2388_v56 = vunpack.c.l.bf16 %v1906_v33  ;;  %v2389_v7 = vunpack.c.h.bf16 %v1906_v33 }
 0x2f2   : > { %v1757_v61 = vpop.f32.mrf.mxu0  ;;  %v2074_v44 = vpop.f32.mrf.mxu1  ;;  %2863 = vmatmul.mubr.bf16.gmra.mxu0 %v13781_v29  ;;  %4092 = vmatprep.subr.bf16.mxu1 %v11673_v46  ;;  %v11669_v59 = vcombine.high %v3998_v23, %v3999_v55 }
 0x2f3   : > { %v2404_v57 = vunpack.c.l.bf16 %v2147_v19  ;;  %v2405_v54 = vunpack.c.h.bf16 %v2147_v19  ;;  %2872 = vmatprep.mubr.bf16.mxu0 %v16207_v12  ;;  %v2148_v24 = vpack.c.bf16 %v2074_v44, %v2070_v40  ;;  %v2516_v46 = vunpack.c.l.bf16 %v1907_v48  ;;  %v3996_v40 = vld [vmem:[#allocation8 + $0x110] sm:$0xff] }
 0x2f4   : > { %v1759_v41 = vpop.f32.mrf.mxu0  ;;  %v2078_v15 = vpop.f32.mrf.mxu1  ;;  %3329 = vmatmul.mubr.bf16.gmra.mxu1 %v13783_v38  ;;  %v2517_v14 = vunpack.c.h.bf16 %v1907_v48  ;;  %v3997_v44 = vld [vmem:[#allocation8 + $0x150] sm:$0xff] }
 0x2f5   : > { %v2420_v8 = vmul.f32 %v2404_v57, %v2388_v56  ;;  %v2421_v34 = vmul.f32 %v2405_v54, %v2389_v7  ;;  %3338 = vmatprep.mubr.bf16.mxu1 %v16207_v12  ;;  %4093 = vmatpush1.bf16.msra.mxu1 %v11672_v39  ;;  %v2532_v21 = vunpack.c.l.bf16 %v2148_v24  ;;  %v2533_v33 = vunpack.c.h.bf16 %v2148_v24 }
 0x2f6   : > { %v1761_v2 = vpop.f32.mrf.mxu0  ;;  %v2080_v19 = vpop.f32.mrf.mxu1  ;;  %4094 = vmatprep.subr.bf16.mxu1 %v11671_v31  ;;  %v11668_v7 = vcombine.low %v3998_v23, %v3999_v55  ;;  %v3995_v31 = vld [vmem:[#allocation8 + $0xd0] sm:$0xff] }
 0x2f7   : > { %v1908_v3 = vpack.c.bf16 %v1761_v2, %v1757_v61  ;;  %v2548_v1 = vmul.f32 %v2532_v21, %v2516_v46  ;;  %v2549_v29 = vmul.f32 %v2533_v33, %v2517_v14  ;;  %v11667_v2 = vcombine.high %v3996_v40, %v3997_v44  ;;  %v3994_v61 = vld [vmem:[#allocation8 + $0x90] sm:$0xff] }
 0x2f8   : > { %v1763_v38 = vpop.f32.mrf.mxu0  ;;  %v2082_v13 = vpop.f32.mrf.mxu1 }
 0x2f9   : > { %v1909_v51 = vpack.c.bf16 %v1763_v38, %v1759_v41  ;;  %v2149_v56 = vpack.c.bf16 %v2082_v13, %v2078_v15  ;;  %4095 = vmatpush1.bf16.msra.mxu1 %v11670_v35  ;;  %v13936_v39 = vadd.f32 %v2548_v1, %v2420_v8  ;;  %v13938_v57 = vadd.f32 %v2549_v29, %v2421_v34 }
 0x2fa   : > { %v1767_v48 = vpop.f32.mrf.mxu0  ;;  %v2084_v54 = vpop.f32.mrf.mxu1  ;;  %2873 = vmatmul.mubr.bf16.gmra.mxu0 %v13799_v11  ;;  %4096 = vmatprep.subr.bf16.mxu1 %v11669_v59  ;;  %v2390_v24 = vunpack.c.l.bf16 %v1908_v3  ;;  %v2391_v46 = vunpack.c.h.bf16 %v1908_v3  ;;  %v11666_v29 = vcombine.low %v3996_v40, %v3997_v44  ;;  %v11665_v15 = vcombine.high %v3994_v61, %v3995_v31 }
 0x2fb   : > { %v2406_v14 = vunpack.c.l.bf16 %v2149_v56  ;;  %v2407_v21 = vunpack.c.h.bf16 %v2149_v56  ;;  %2882 = vmatprep.mubr.bf16.mxu0 %v16207_v12  ;;  %v2150_v38 = vpack.c.bf16 %v2084_v54, %v2080_v19  ;;  %v2518_v35 = vunpack.c.l.bf16 %v1909_v51  ;;  %v3992_v19 = vld [vmem:[#allocation8 + $0x10] sm:$0xff] }
 0x2fc   : > { %v1769_v41 = vpop.f32.mrf.mxu0  ;;  %v2088_v1 = vpop.f32.mrf.mxu1  ;;  %3339 = vmatmul.mubr.bf16.gmra.mxu1 %v13801_v49  ;;  %v2519_v8 = vunpack.c.h.bf16 %v1909_v51  ;;  %v3993_v56 = vld [vmem:[#allocation8 + $0x50] sm:$0xff] }
 0x2fd   : > { %v2422_v23 = vmul.f32 %v2406_v14, %v2390_v24  ;;  %v2423_v55 = vmul.f32 %v2407_v21, %v2391_v46  ;;  %3348 = vmatprep.mubr.bf16.mxu1 %v16207_v12  ;;  %4097 = vmatpush1.bf16.msra.mxu1 %v11668_v7  ;;  %v2534_v34 = vunpack.c.l.bf16 %v2150_v38  ;;  %v2535_v3 = vunpack.c.h.bf16 %v2150_v38  ;;  %v13951_v38 = vld [vmem:[#allocation10 + $0x3d0] sm:$0xff] }
 0x2fe   : > { %v1771_v59 = vpop.f32.mrf.mxu0  ;;  %v2090_v33 = vpop.f32.mrf.mxu1  ;;  %4098 = vmatprep.subr.bf16.mxu1 %v11667_v2  ;;  %v11664_v46 = vcombine.low %v3994_v61, %v3995_v31  ;;  %v13949_v2 = vld [vmem:[#allocation10 + $0x390] sm:$0xff] }
 0x2ff   : > { %v1910_v13 = vpack.c.bf16 %v1771_v59, %v1767_v48  ;;  %v2550_v54 = vmul.f32 %v2534_v34, %v2518_v35  ;;  %v2551_v11 = vmul.f32 %v2535_v3, %v2519_v8  ;;  %v11663_v48 = vcombine.high %v3992_v19, %v3993_v56 }
 0x300   : > { %v1773_v49 = vpop.f32.mrf.mxu0  ;;  %v2092_v40 = vpop.f32.mrf.mxu1 }
 0x301   : > { %v1911_v44 = vpack.c.bf16 %v1773_v49, %v1769_v41  ;;  %v2151_v24 = vpack.c.bf16 %v2092_v40, %v2088_v1  ;;  %4099 = vmatpush1.bf16.msra.mxu1 %v11666_v29  ;;  %v13944_v7 = vadd.f32 %v2550_v54, %v2422_v23  ;;  %v13946_v14 = vadd.f32 %v2551_v11, %v2423_v55 }
 0x302   : > { %v1777_v51 = vpop.f32.mrf.mxu0  ;;  %v2094_v21 = vpop.f32.mrf.mxu1  ;;  %2883 = vmatmul.mubr.bf16.gmra.mxu0 %v13815_v50  ;;  %4100 = vmatprep.subr.bf16.mxu1 %v11665_v15  ;;  %v2392_v35 = vunpack.c.l.bf16 %v1910_v13  ;;  %v2393_v8 = vunpack.c.h.bf16 %v1910_v13  ;;  %v11662_v1 = vcombine.low %v3992_v19, %v3993_v56  ;;  %v11693_v55 = vcombine.high %v13949_v2, %v13951_v38 }
 0x303   : > { %v2408_v49 = vunpack.c.l.bf16 %v2151_v24  ;;  %v2409_v41 = vunpack.c.h.bf16 %v2151_v24  ;;  %2892 = vmatprep.mubr.bf16.mxu0 %v16207_v12  ;;  %v2152_v61 = vpack.c.bf16 %v2094_v21, %v2090_v33  ;;  %v2520_v15 = vunpack.c.l.bf16 %v1911_v44 }
 0x304   : > { %v1779_v31 = vpop.f32.mrf.mxu0  ;;  %v2098_v11 = vpop.f32.mrf.mxu1  ;;  %3349 = vmatmul.mubr.bf16.gmra.mxu1 %v13817_v16  ;;  %v2521_v34 = vunpack.c.h.bf16 %v1911_v44 }
 0x305   : > { %v2424_v29 = vmul.f32 %v2408_v49, %v2392_v35  ;;  %v2425_v23 = vmul.f32 %v2409_v41, %v2393_v8  ;;  %3358 = vmatprep.mubr.bf16.mxu1 %v16207_v12  ;;  %4101 = vmatpush1.bf16.msra.mxu1 %v11664_v46  ;;  %v2536_v3 = vunpack.c.l.bf16 %v2152_v61  ;;  %v2537_v59 = vunpack.c.h.bf16 %v2152_v61 }
 0x306   : > { %v1781_v13 = vpop.f32.mrf.mxu0  ;;  %v2100_v54 = vpop.f32.mrf.mxu1  ;;  %4102 = vmatprep.subr.bf16.mxu1 %v11663_v48 }
 0x307   : > { %v1912_v33 = vpack.c.bf16 %v1781_v13, %v1777_v51  ;;  %v2552_v40 = vmul.f32 %v2536_v3, %v2520_v15  ;;  %v2553_v24 = vmul.f32 %v2537_v59, %v2521_v34 }
 0x308   : > { %v1783_v21 = vpop.f32.mrf.mxu0  ;;  %v2102_v19 = vpop.f32.mrf.mxu1 }
 0x309   : > { %v1913_v56 = vpack.c.bf16 %v1783_v21, %v1779_v31  ;;  %v2153_v35 = vpack.c.bf16 %v2102_v19, %v2098_v11  ;;  %4103 = vmatpush1.bf16.msra.mxu1 %v11662_v1  ;;  %v13958_v8 = vadd.f32 %v2552_v40, %v2424_v29  ;;  %v13960_v46 = vadd.f32 %v2553_v24, %v2425_v23 }
 0x30a   : > { %v1787_v49 = vpop.f32.mrf.mxu0  ;;  %v2104_v41 = vpop.f32.mrf.mxu1  ;;  %2893 = vmatmul.mubr.bf16.gmra.mxu0 %v13837_v5  ;;  %4313 = vmatprep.subr.bf16.mxu1 %v11693_v55  ;;  %v2394_v44 = vunpack.c.l.bf16 %v1912_v33  ;;  %v2395_v61 = vunpack.c.h.bf16 %v1912_v33 }
 0x30b   : > { %v2410_v48 = vunpack.c.l.bf16 %v2153_v35  ;;  %v2411_v51 = vunpack.c.h.bf16 %v2153_v35  ;;  %2902 = vmatprep.mubr.bf16.mxu0 %v16207_v12  ;;  %v2154_v15 = vpack.c.bf16 %v2104_v41, %v2100_v54  ;;  %v2522_v29 = vunpack.c.l.bf16 %v1913_v56 }
 0x30c   : > { %v1789_v34 = vpop.f32.mrf.mxu0  ;;  %v2108_v31 = vpop.f32.mrf.mxu1  ;;  %3359 = vmatmul.mubr.bf16.gmra.mxu1 %v13839_v27  ;;  %v2523_v23 = vunpack.c.h.bf16 %v1913_v56 }
 0x30d   : > { %v2426_v11 = vmul.f32 %v2410_v48, %v2394_v44  ;;  %v2427_v1 = vmul.f32 %v2411_v51, %v2395_v61  ;;  %3368 = vmatprep.mubr.bf16.mxu1 %v16207_v12  ;;  %v2538_v3 = vunpack.c.l.bf16 %v2154_v15  ;;  %v2539_v59 = vunpack.c.h.bf16 %v2154_v15 }
 0x30e   : > { %v1791_v55 = vpop.f32.mrf.mxu0  ;;  %v2110_v13 = vpop.f32.mrf.mxu1 }
 0x30f   : > { %v1914_v33 = vpack.c.bf16 %v1791_v55, %v1787_v49  ;;  %v2554_v40 = vmul.f32 %v2538_v3, %v2522_v29  ;;  %v2555_v24 = vmul.f32 %v2539_v59, %v2523_v23 }
 0x310   : > { %v1793_v21 = vpop.f32.mrf.mxu0  ;;  %v2112_v19 = vpop.f32.mrf.mxu1 }
 0x311   : > { %v1915_v54 = vpack.c.bf16 %v1793_v21, %v1789_v34  ;;  %v2155_v35 = vpack.c.bf16 %v2112_v19, %v2108_v31  ;;  %v13966_v41 = vadd.f32 %v2554_v40, %v2426_v11  ;;  %v13968_v27 = vadd.f32 %v2555_v24, %v2427_v1 }
 0x312   : > { %v1797_v44 = vpop.f32.mrf.mxu0  ;;  %v2114_v61 = vpop.f32.mrf.mxu1  ;;  %2903 = vmatmul.mubr.bf16.gmra.mxu0 %v13851_v36  ;;  %v2396_v56 = vunpack.c.l.bf16 %v1914_v33  ;;  %v2397_v48 = vunpack.c.h.bf16 %v1914_v33 }
 0x313   : > { %v2412_v51 = vunpack.c.l.bf16 %v2155_v35  ;;  %v2413_v15 = vunpack.c.h.bf16 %v2155_v35  ;;  %2912 = vmatprep.mubr.bf16.mxu0 %v16207_v12  ;;  %v2156_v49 = vpack.c.bf16 %v2114_v61, %v2110_v13  ;;  %v2524_v11 = vunpack.c.l.bf16 %v1915_v54 }
 0x314   : > { %v1799_v29 = vpop.f32.mrf.mxu0  ;;  %v2118_v23 = vpop.f32.mrf.mxu1  ;;  %3369 = vmatmul.mubr.bf16.gmra.mxu1 %v13853_v28  ;;  %v2525_v1 = vunpack.c.h.bf16 %v1915_v54 }
 0x315   : > { %v2428_v34 = vmul.f32 %v2412_v51, %v2396_v56  ;;  %v2429_v31 = vmul.f32 %v2413_v15, %v2397_v48  ;;  %3378 = vmatprep.mubr.bf16.mxu1 %v16207_v12  ;;  %v2540_v3 = vunpack.c.l.bf16 %v2156_v49  ;;  %v2541_v59 = vunpack.c.h.bf16 %v2156_v49 }
 0x316   : > { %v1801_v55 = vpop.f32.mrf.mxu0  ;;  %v2120_v40 = vpop.f32.mrf.mxu1 }
 0x317   : > { %v1916_v33 = vpack.c.bf16 %v1801_v55, %v1797_v44  ;;  %v2556_v24 = vmul.f32 %v2540_v3, %v2524_v11  ;;  %v2557_v21 = vmul.f32 %v2541_v59, %v2525_v1 }
 0x318   : > { %v1803_v19 = vpop.f32.mrf.mxu0  ;;  %v2122_v35 = vpop.f32.mrf.mxu1 }
 0x319   : > { %v1917_v13 = vpack.c.bf16 %v1803_v19, %v1799_v29  ;;  %v2157_v61 = vpack.c.bf16 %v2122_v35, %v2118_v23  ;;  %v13974_v36 = vadd.f32 %v2556_v24, %v2428_v34  ;;  %v13976_v28 = vadd.f32 %v2557_v21, %v2429_v31 }
 0x31a   : > { %v1807_v56 = vpop.f32.mrf.mxu0  ;;  %v2124_v48 = vpop.f32.mrf.mxu1  ;;  %2913 = vmatmul.mubr.bf16.gmra.mxu0 %v13863_v42  ;;  %v2398_v54 = vunpack.c.l.bf16 %v1916_v33  ;;  %v2399_v51 = vunpack.c.h.bf16 %v1916_v33 }
 0x31b   : > { %v2414_v15 = vunpack.c.l.bf16 %v2157_v61  ;;  %v2415_v49 = vunpack.c.h.bf16 %v2157_v61  ;;  %2922 = vmatprep.mubr.bf16.mxu0 %v16207_v12  ;;  %v2158_v44 = vpack.c.bf16 %v2124_v48, %v2120_v40  ;;  %v2526_v34 = vunpack.c.l.bf16 %v1917_v13 }
 0x31c   : > { %v1809_v11 = vpop.f32.mrf.mxu0  ;;  %v2128_v1 = vpop.f32.mrf.mxu1  ;;  %3379 = vmatmul.mubr.bf16.gmra.mxu1 %v13865_v53  ;;  %v2527_v31 = vunpack.c.h.bf16 %v1917_v13 }
 0x31d   : > { %v2430_v29 = vmul.f32 %v2414_v15, %v2398_v54  ;;  %v2431_v23 = vmul.f32 %v2415_v49, %v2399_v51  ;;  %3388 = vmatprep.mubr.bf16.mxu1 %v16207_v12  ;;  %v2542_v3 = vunpack.c.l.bf16 %v2158_v44  ;;  %v2543_v59 = vunpack.c.h.bf16 %v2158_v44 }
 0x31e   : > { %v1811_v55 = vpop.f32.mrf.mxu0  ;;  %v2130_v24 = vpop.f32.mrf.mxu1 }
 0x31f   : > { %v1918_v33 = vpack.c.bf16 %v1811_v55, %v1807_v56  ;;  %v2558_v21 = vmul.f32 %v2542_v3, %v2526_v34  ;;  %v2559_v19 = vmul.f32 %v2543_v59, %v2527_v31 }
 0x320   : > { %v1813_v35 = vpop.f32.mrf.mxu0  ;;  %v2132_v61 = vpop.f32.mrf.mxu1 }
 0x321   : > { %v1919_v40 = vpack.c.bf16 %v1813_v35, %v1809_v11  ;;  %v2159_v48 = vpack.c.bf16 %v2132_v61, %v2128_v1  ;;  %v13982_v42 = vadd.f32 %v2558_v21, %v2430_v29  ;;  %v13984_v53 = vadd.f32 %v2559_v19, %v2431_v23  ;;  %v4710_v29 = vld [vmem:[#allocation7 + $0x318] sm:$0xff]  ;;  %v13990_v61 = vld [vmem:[#allocation10 + $0x310] sm:$0xff] }
 0x322   : > { %v1817_v54 = vpop.f32.mrf.mxu0  ;;  %v2134_v51 = vpop.f32.mrf.mxu1  ;;  %2923 = vmatmul.mubr.bf16.gmra.mxu0 %v13875_v45  ;;  %v2400_v13 = vunpack.c.l.bf16 %v1918_v33  ;;  %v2401_v15 = vunpack.c.h.bf16 %v1918_v33  ;;  %v4711_v23 = vld [vmem:[#allocation7 + $0x358] sm:$0xff] }
 0x323   : > { %16292 = vst [vmem:[#allocation48_spill] sm:$0xff] %v13982_v42  ;;  %16293 = vst [vmem:[#allocation49_spill] sm:$0xff] %v13984_v53  ;;  %v2416_v49 = vunpack.c.l.bf16 %v2159_v48  ;;  %v2417_v44 = vunpack.c.h.bf16 %v2159_v48  ;;  %3799 = vmatprep.mubr.bf16.mxu0 %v16207_v12  ;;  %v2160_v56 = vpack.c.bf16 %v2134_v51, %v2130_v24  ;;  %v2528_v3 = vunpack.c.l.bf16 %v1919_v40  ;;  %v4230_v24 = vld [vmem:[#allocation10 + $0x350] sm:$0xff] }
 0x324   : > { %v1819_v34 = vpop.f32.mrf.mxu0  ;;  %v2138_v31 = vpop.f32.mrf.mxu1  ;;  %3389 = vmatmul.mubr.bf16.gmra.mxu1 %v13877_v47  ;;  %v2529_v59 = vunpack.c.h.bf16 %v1919_v40  ;;  %v13996_v40 = vld [vmem:[#allocation7 + $0x2d8] sm:$0xff] }
 0x325   : > { %v2432_v11 = vmul.f32 %v2416_v49, %v2400_v13  ;;  %v2433_v1 = vmul.f32 %v2417_v44, %v2401_v15  ;;  %4120 = vmatprep.mubr.bf16.mxu1 %v16207_v12  ;;  %v2544_v55 = vunpack.c.l.bf16 %v2160_v56  ;;  %v2545_v21 = vunpack.c.h.bf16 %v2160_v56  ;;  %v13994_v12 = vld [vmem:[#allocation7 + $0x298] sm:$0xff] }
 0x326   : > { %v1821_v33 = vpop.f32.mrf.mxu0  ;;  %v2140_v19 = vpop.f32.mrf.mxu1  ;;  %v11707_v13 = vcombine.high %v4710_v29, %v4711_v23  ;;  %v11692_v44 = vcombine.low %v13949_v2, %v13951_v38 }
 0x327   : > { %v1920_v35 = vpack.c.bf16 %v1821_v33, %v1817_v54  ;;  %v2560_v48 = vmul.f32 %v2544_v55, %v2528_v3  ;;  %v2561_v51 = vmul.f32 %v2545_v21, %v2529_v59  ;;  %v11691_v3 = vcombine.high %v13990_v61, %v4230_v24  ;;  %v14004_v59 = vld [vmem:[#allocation10 + $0x290] sm:$0xff] }
 0x328   : > { %v1823_v45 = vpop.f32.mrf.mxu0  ;;  %v2142_v47 = vpop.f32.mrf.mxu1 }
 0x329   : > { %v1921_v15 = vpack.c.bf16 %v1823_v45, %v1819_v34  ;;  %v2161_v49 = vpack.c.bf16 %v2142_v47, %v2138_v31  ;;  %v13998_v56 = vadd.f32 %v2560_v48, %v2432_v11  ;;  %v14000_v54 = vadd.f32 %v2561_v51, %v2433_v1  ;;  %v14006_v45 = vld [vmem:[#allocation10 + $0x2d0] sm:$0xff] }
 0x32a   : > { %v1827_v33 = vpop.f32.mrf.mxu0  ;;  %v2144_v53 = vpop.f32.mrf.mxu1  ;;  %3800 = vmatmul.mubr.bf16.vlgmr.msra.gmra.mxu0 %v13604_v60  ;;  %v11706_v47 = vcombine.low %v4710_v29, %v4711_v23  ;;  %v2402_v2 = vunpack.c.l.bf16 %v1920_v35  ;;  %v2403_v38 = vunpack.c.h.bf16 %v1920_v35  ;;  %v16296_v11 = vcombine.low %v13893_v30, %v13896_v6  ;;  %v14019_v6 = vld [vmem:[#allocation7 + $0x218] sm:$0xff] }
 0x32b   : > { %16294 = vst [vmem:[#allocation50_spill] sm:$0xff] %v13998_v56  ;;  %16295 = vst [vmem:[#allocation51_spill] sm:$0xff] %v14000_v54  ;;  %v2418_v34 = vunpack.c.l.bf16 %v2161_v49  ;;  %v2419_v31 = vunpack.c.h.bf16 %v2161_v49  ;;  %v16297_v1 = vmov 0   ;;  %v2162_v55 = vpack.c.bf16 %v2144_v53, %v2140_v19  ;;  %v14021_v53 = vld [vmem:[#allocation7 + $0x258] sm:$0xff] }
 0x32c   : > { %4795 = vmatpush1.bf16.msra.mxu0 %v16296_v11  ;;  %3809 = vmatprep.mubr.bf16.mxu0 %v16297_v1  ;;  %v1829_v21 = vpop.f32.mrf.mxu0  ;;  %v2293_v48 = vpop.f32.mrf.mxu1  ;;  %v11690_v51 = vcombine.low %v13990_v61, %v4230_v24  ;;  %v11705_v29 = vcombine.high %v13994_v12, %v13996_v40  ;;  %v11689_v30 = vcombine.high %v14004_v59, %v14006_v45  ;;  %v2530_v19 = vunpack.c.l.bf16 %v1921_v15 }
 0x32d   : > { %4121 = vmatmul.mubr.bf16.vlgmr.msra.gmra.mxu1 %v13607_v0  ;;  %4796 = vmatprep.subr.bf16.mxu0 %v11707_v13  ;;  %v2434_v23 = vmul.f32 %v2418_v34, %v2402_v2  ;;  %v2435_v35 = vmul.f32 %v2419_v31, %v2403_v38  ;;  %v2531_v49 = vunpack.c.h.bf16 %v1921_v15  ;;  %v2546_v11 = vunpack.c.l.bf16 %v2162_v55  ;;  %v14023_v0 = vld [vmem:[#allocation10 + $0x210] sm:$0xff] }
 0x32e   : > { %4314 = vmatpush1.bf16.msra.mxu1 %v11692_v44  ;;  %4130 = vmatprep.mubr.bf16.mxu1 %v16297_v1  ;;  %v2547_v61 = vunpack.c.h.bf16 %v2162_v55  ;;  %v1831_v24 = vpop.f32.mrf.mxu0  ;;  %v2295_v13 = vpop.f32.mrf.mxu1  ;;  %v14025_v2 = vld [vmem:[#allocation10 + $0x250] sm:$0xff]  ;;  %v11704_v38 = vcombine.low %v13994_v12, %v13996_v40  ;;  %v11688_v15 = vcombine.low %v14004_v59, %v14006_v45  ;;  %v14043_v59 = vld [vmem:[#allocation7 + $0x1d8] sm:$0xff] }
 0x32f   : > { %4315 = vmatprep.subr.bf16.mxu1 %v11691_v3  ;;  %v1922_v44 = vpack.c.bf16 %v1831_v24, %v1827_v33  ;;  %v2562_v34 = vmul.f32 %v2546_v11, %v2530_v19  ;;  %v14031_v55 = vld [vmem:[#allocation10 + $0x190] sm:$0xff]  ;;  %v11703_v3 = vcombine.high %v14019_v6, %v14021_v53  ;;  %v11686_v33 = vcombine.low %v14023_v0, %v14025_v2 }
 0x330   : > { %4797 = vmatpush1.bf16.msra.mxu0 %v11706_v47  ;;  %v2563_v31 = vmul.f32 %v2547_v61, %v2531_v49  ;;  %v1833_v60 = vpop.f32.mrf.mxu0  ;;  %v2297_v54 = vpop.f32.mrf.mxu1  ;;  %v11687_v12 = vcombine.high %v14023_v0, %v14025_v2  ;;  %v14039_v40 = vld [vmem:[#allocation10 + $0x1d0] sm:$0xff]  ;;  %v14041_v47 = vld [vmem:[#allocation7 + $0x198] sm:$0xff] }
 0x331   : > { %4798 = vmatprep.subr.bf16.mxu0 %v11705_v29  ;;  %v1923_v56 = vpack.c.bf16 %v1833_v60, %v1829_v21  ;;  %v2372_v42 = vpack.c.bf16 %v2297_v54, %v2293_v48  ;;  %v14045_v45 = vadd.f32 %v2562_v34, %v2434_v23  ;;  %v11702_v54 = vcombine.low %v14019_v6, %v14021_v53  ;;  %v14052_v21 = vld [vmem:[#allocation7 + $0x3a0] sm:$0xff]  ;;  %v14065_v2 = vld [vmem:[#allocation7 + $0x158] sm:$0xff] }
 0x332   : > { %4316 = vmatpush1.bf16.msra.mxu1 %v11690_v51  ;;  %v14047_v29 = vadd.f32 %v2563_v31, %v2435_v35  ;;  %v1837_v19 = vpop.f32.mrf.mxu0  ;;  %v2299_v60 = vpop.f32.mrf.mxu1  ;;  %3810 = vmatmul.mubr.bf16.gmra.mxu0 %v13626_v22  ;;  %v2452_v0 = vunpack.c.l.bf16 %v1922_v44  ;;  %v2453_v48 = vunpack.c.h.bf16 %v1922_v44  ;;  %v14055_v23 = vld [vmem:[#allocation7 + $0x3e0] sm:$0xff]  ;;  %v11701_v6 = vcombine.high %v14041_v47, %v14043_v59 }
 0x333   : > { %4317 = vmatprep.subr.bf16.mxu1 %v11689_v30  ;;  %v2468_v51 = vunpack.c.l.bf16 %v2372_v42  ;;  %v2469_v49 = vunpack.c.h.bf16 %v2372_v42  ;;  %3819 = vmatprep.mubr.bf16.mxu0 %v16297_v1  ;;  %v2373_v35 = vpack.c.bf16 %v2299_v60, %v2295_v13  ;;  %v11685_v30 = vcombine.high %v14031_v55, %v14039_v40  ;;  %v14063_v42 = vld [vmem:[#allocation7 + $0x118] sm:$0xff] }
 0x334   : > { %16298 = vst [vmem:[#allocation52_spill] sm:$0xff] %v14047_v29  ;;  %4799 = vmatpush1.bf16.msra.mxu0 %v11704_v38  ;;  %v1839_v11 = vpop.f32.mrf.mxu0  ;;  %v2303_v61 = vpop.f32.mrf.mxu1  ;;  %v2580_v44 = vunpack.c.l.bf16 %v1923_v56  ;;  %v2581_v38 = vunpack.c.h.bf16 %v1923_v56  ;;  %v11699_v56 = vcombine.high %v14063_v42, %v14065_v2 }
 0x335   : > { %4131 = vmatmul.mubr.bf16.gmra.mxu1 %v13629_v4  ;;  %4800 = vmatprep.subr.bf16.mxu0 %v11703_v3  ;;  %v2484_v53 = vmul.f32 %v2468_v51, %v2452_v0  ;;  %v2485_v24 = vmul.f32 %v2469_v49, %v2453_v48  ;;  %v2596_v34 = vunpack.c.l.bf16 %v2373_v35  ;;  %v2597_v31 = vunpack.c.h.bf16 %v2373_v35  ;;  %v14069_v4 = vld [vmem:[#allocation10 + $0x110] sm:$0xff] }
 0x336   : > { %4140 = vmatprep.mubr.bf16.mxu1 %v16297_v1  ;;  %4318 = vmatpush1.bf16.msra.mxu1 %v11688_v15  ;;  %v1841_v3 = vpop.f32.mrf.mxu0  ;;  %v2305_v60 = vpop.f32.mrf.mxu1  ;;  %v14071_v0 = vld [vmem:[#allocation10 + $0x150] sm:$0xff]  ;;  %v11700_v15 = vcombine.low %v14041_v47, %v14043_v59  ;;  %v14083_v47 = vld [vmem:[#allocation7 + $0xd8] sm:$0xff] }
 0x337   : > { %4319 = vmatprep.subr.bf16.mxu1 %v11687_v12  ;;  %v1924_v48 = vpack.c.bf16 %v1841_v3, %v1837_v19  ;;  %v2612_v51 = vmul.f32 %v2596_v34, %v2580_v44  ;;  %v2613_v49 = vmul.f32 %v2597_v31, %v2581_v38  ;;  %v11684_v12 = vcombine.low %v14031_v55, %v14039_v40  ;;  %v4698_v3 = vld [vmem:[#allocation7 + $0x18] sm:$0xff] }
 0x338   : > { %4801 = vmatpush1.bf16.msra.mxu0 %v11702_v54  ;;  %v1843_v22 = vpop.f32.mrf.mxu0  ;;  %v2307_v13 = vpop.f32.mrf.mxu1  ;;  %v11683_v19 = vcombine.high %v14069_v4, %v14071_v0  ;;  %v14081_v54 = vld [vmem:[#allocation7 + $0x98] sm:$0xff]  ;;  %v11698_v55 = vcombine.low %v14063_v42, %v14065_v2 }
 0x339   : > { %4802 = vmatprep.subr.bf16.mxu0 %v11701_v6  ;;  %v1925_v35 = vpack.c.bf16 %v1843_v22, %v1839_v11  ;;  %v2374_v29 = vpack.c.bf16 %v2307_v13, %v2303_v61  ;;  %v14085_v59 = vadd.f32 %v2612_v51, %v2484_v53  ;;  %v14087_v44 = vadd.f32 %v2613_v49, %v2485_v24  ;;  %v14090_v22 = vld [vmem:[#allocation10 + $0x90] sm:$0xff] }
 0x33a   : > { %4320 = vmatpush1.bf16.msra.mxu1 %v11686_v33  ;;  %v1847_v6 = vpop.f32.mrf.mxu0  ;;  %v2309_v38 = vpop.f32.mrf.mxu1  ;;  %3820 = vmatmul.mubr.bf16.gmra.mxu0 %v13642_v62  ;;  %v14092_v33 = vld [vmem:[#allocation10 + $0xd0] sm:$0xff]  ;;  %v2454_v40 = vunpack.c.l.bf16 %v1924_v48  ;;  %v2455_v11 = vunpack.c.h.bf16 %v1924_v48  ;;  %v11697_v31 = vcombine.high %v14081_v54, %v14083_v47 }
 0x33b   : > { %16299 = vst [vmem:[#allocation53_spill] sm:$0xff] %v14085_v59  ;;  %16300 = vst [vmem:[#allocation54_spill] sm:$0xff] %v14087_v44  ;;  %4321 = vmatprep.subr.bf16.mxu1 %v11685_v30  ;;  %v2470_v61 = vunpack.c.l.bf16 %v2374_v29  ;;  %v2471_v13 = vunpack.c.h.bf16 %v2374_v29  ;;  %3829 = vmatprep.mubr.bf16.mxu0 %v16297_v1  ;;  %v2375_v53 = vpack.c.bf16 %v2309_v38, %v2305_v60  ;;  %v4699_v60 = vld [vmem:[#allocation7 + $0x58] sm:$0xff]  ;;  %v2582_v48 = vunpack.c.l.bf16 %v1925_v35 }
 0x33c   : > { %4803 = vmatpush1.bf16.msra.mxu0 %v11700_v15  ;;  %v1849_v24 = vpop.f32.mrf.mxu0  ;;  %v2313_v34 = vpop.f32.mrf.mxu1  ;;  %v11682_v30 = vcombine.low %v14069_v4, %v14071_v0  ;;  %v11681_v29 = vcombine.high %v14090_v22, %v14092_v33  ;;  %v2583_v15 = vunpack.c.h.bf16 %v1925_v35  ;;  %v4217_v0 = vld [vmem:[#allocation10 + $0x10] sm:$0xff]  ;;  %v11695_v62 = vcombine.high %v4698_v3, %v4699_v60 }
 0x33d   : > { %4141 = vmatmul.mubr.bf16.gmra.mxu1 %v13645_v17  ;;  %4804 = vmatprep.subr.bf16.mxu0 %v11699_v56  ;;  %v2486_v42 = vmul.f32 %v2470_v61, %v2454_v40  ;;  %v2487_v2 = vmul.f32 %v2471_v13, %v2455_v11  ;;  %v2598_v51 = vunpack.c.l.bf16 %v2375_v53  ;;  %v2599_v49 = vunpack.c.h.bf16 %v2375_v53  ;;  %v4218_v56 = vld [vmem:[#allocation10 + $0x50] sm:$0xff] }
 0x33e   : > { %4150 = vmatprep.mubr.bf16.mxu1 %v16297_v1  ;;  %4322 = vmatpush1.bf16.msra.mxu1 %v11684_v12  ;;  %v1851_v38 = vpop.f32.mrf.mxu0  ;;  %v2315_v4 = vpop.f32.mrf.mxu1  ;;  %v11696_v40 = vcombine.low %v14081_v54, %v14083_v47  ;;  %v11680_v53 = vcombine.low %v14090_v22, %v14092_v33  ;;  %v14114_v54 = vld [vmem:[#allocation8 + $0x398] sm:$0xff] }
 0x33f   : > { %4323 = vmatprep.subr.bf16.mxu1 %v11683_v19  ;;  %v1926_v17 = vpack.c.bf16 %v1851_v38, %v1847_v6  ;;  %v2614_v12 = vmul.f32 %v2598_v51, %v2582_v48  ;;  %v2615_v11 = vmul.f32 %v2599_v49, %v2583_v15  ;;  %v11679_v19 = vcombine.high %v4217_v0, %v4218_v56  ;;  %v14116_v47 = vld [vmem:[#allocation8 + $0x3d8] sm:$0xff] }
 0x340   : > { %4805 = vmatpush1.bf16.msra.mxu0 %v11698_v55  ;;  %v1853_v61 = vpop.f32.mrf.mxu0  ;;  %v2317_v13 = vpop.f32.mrf.mxu1 }
 0x341   : > { %4806 = vmatprep.subr.bf16.mxu0 %v11697_v31  ;;  %v1927_v44 = vpack.c.bf16 %v1853_v61, %v1849_v24  ;;  %v2376_v35 = vpack.c.bf16 %v2317_v13, %v2313_v34  ;;  %v14109_v59 = vadd.f32 %v2614_v12, %v2486_v42  ;;  %v14111_v6 = vadd.f32 %v2615_v11, %v2487_v2 }
 0x342   : > { %4324 = vmatpush1.bf16.msra.mxu1 %v11682_v30  ;;  %v1857_v55 = vpop.f32.mrf.mxu0  ;;  %v2319_v38 = vpop.f32.mrf.mxu1  ;;  %3830 = vmatmul.mubr.bf16.gmra.mxu0 %v13658_v10  ;;  %v11694_v24 = vcombine.low %v4698_v3, %v4699_v60  ;;  %v2456_v34 = vunpack.c.l.bf16 %v1926_v17  ;;  %v2457_v30 = vunpack.c.h.bf16 %v1926_v17  ;;  %v11678_v2 = vcombine.low %v4217_v0, %v4218_v56 }
 0x343   : > { %4325 = vmatprep.subr.bf16.mxu1 %v11681_v29  ;;  %v2472_v31 = vunpack.c.l.bf16 %v2376_v35  ;;  %v2473_v48 = vunpack.c.h.bf16 %v2376_v35  ;;  %3839 = vmatprep.mubr.bf16.mxu0 %v16297_v1  ;;  %v2377_v22 = vpack.c.bf16 %v2319_v38, %v2315_v4  ;;  %v11757_v29 = vcombine.high %v14052_v21, %v14055_v23 }
 0x344   : > { %4807 = vmatpush1.bf16.msra.mxu0 %v11696_v40  ;;  %v1859_v33 = vpop.f32.mrf.mxu0  ;;  %v2323_v42 = vpop.f32.mrf.mxu1  ;;  %v11725_v17 = vcombine.high %v14114_v54, %v14116_v47  ;;  %v2584_v3 = vunpack.c.l.bf16 %v1927_v44  ;;  %v2585_v60 = vunpack.c.h.bf16 %v1927_v44 }
 0x345   : > { %4151 = vmatmul.mubr.bf16.gmra.mxu1 %v13661_v52  ;;  %4808 = vmatprep.subr.bf16.mxu0 %v11695_v62  ;;  %v2488_v15 = vmul.f32 %v2472_v31, %v2456_v34  ;;  %v2489_v51 = vmul.f32 %v2473_v48, %v2457_v30  ;;  %v2600_v49 = vunpack.c.l.bf16 %v2377_v22  ;;  %v2601_v4 = vunpack.c.h.bf16 %v2377_v22 }
 0x346   : > { %4160 = vmatprep.mubr.bf16.mxu1 %v16297_v1  ;;  %4326 = vmatpush1.bf16.msra.mxu1 %v11680_v53  ;;  %v1861_v40 = vpop.f32.mrf.mxu0  ;;  %v2325_v12 = vpop.f32.mrf.mxu1 }
 0x347   : > { %4327 = vmatprep.subr.bf16.mxu1 %v11679_v19  ;;  %v1928_v0 = vpack.c.bf16 %v1861_v40, %v1857_v55  ;;  %v2616_v62 = vmul.f32 %v2600_v49, %v2584_v3  ;;  %v2617_v56 = vmul.f32 %v2601_v4, %v2585_v60 }
 0x348   : > { %4809 = vmatpush1.bf16.msra.mxu0 %v11694_v24  ;;  %v1863_v11 = vpop.f32.mrf.mxu0  ;;  %v2327_v61 = vpop.f32.mrf.mxu1 }
 0x349   : > { %5821 = vmatprep.subr.bf16.mxu0 %v11757_v29  ;;  %v1929_v13 = vpack.c.bf16 %v1863_v11, %v1859_v33  ;;  %v2378_v35 = vpack.c.bf16 %v2327_v61, %v2323_v42  ;;  %v14125_v53 = vadd.f32 %v2616_v62, %v2488_v15  ;;  %v14127_v38 = vadd.f32 %v2617_v56, %v2489_v51 }
 0x34a   : > { %4328 = vmatpush1.bf16.msra.mxu1 %v11678_v2  ;;  %v1867_v44 = vpop.f32.mrf.mxu0  ;;  %v2329_v34 = vpop.f32.mrf.mxu1  ;;  %3840 = vmatmul.mubr.bf16.gmra.mxu0 %v13682_v37  ;;  %v2458_v19 = vunpack.c.l.bf16 %v1928_v0  ;;  %v2459_v55 = vunpack.c.h.bf16 %v1928_v0 }
 0x34b   : > { %5115 = vmatprep.subr.bf16.mxu1 %v11725_v17  ;;  %v2474_v24 = vunpack.c.l.bf16 %v2378_v35  ;;  %v2475_v30 = vunpack.c.h.bf16 %v2378_v35  ;;  %3849 = vmatprep.mubr.bf16.mxu0 %v16297_v1  ;;  %v2379_v31 = vpack.c.bf16 %v2329_v34, %v2325_v12  ;;  %v2586_v2 = vunpack.c.l.bf16 %v1929_v13 }
 0x34c   : > { %v1869_v48 = vpop.f32.mrf.mxu0  ;;  %v2333_v22 = vpop.f32.mrf.mxu1  ;;  %v2587_v29 = vunpack.c.h.bf16 %v1929_v13 }
 0x34d   : > { %4161 = vmatmul.mubr.bf16.gmra.mxu1 %v13685_v26  ;;  %v2490_v33 = vmul.f32 %v2474_v24, %v2458_v19  ;;  %v2491_v42 = vmul.f32 %v2475_v30, %v2459_v55  ;;  %v2602_v15 = vunpack.c.l.bf16 %v2379_v31  ;;  %v2603_v51 = vunpack.c.h.bf16 %v2379_v31 }
 0x34e   : > { %4170 = vmatprep.mubr.bf16.mxu1 %v16297_v1  ;;  %v1871_v17 = vpop.f32.mrf.mxu0  ;;  %v2335_v3 = vpop.f32.mrf.mxu1 }
 0x34f   : > { %v1930_v60 = vpack.c.bf16 %v1871_v17, %v1867_v44  ;;  %v2618_v49 = vmul.f32 %v2602_v15, %v2586_v2  ;;  %v2619_v4 = vmul.f32 %v2603_v51, %v2587_v29 }
 0x350   : > { %v1873_v40 = vpop.f32.mrf.mxu0  ;;  %v2337_v0 = vpop.f32.mrf.mxu1 }
 0x351   : > { %v1931_v12 = vpack.c.bf16 %v1873_v40, %v1869_v48  ;;  %v2380_v62 = vpack.c.bf16 %v2337_v0, %v2333_v22  ;;  %v14133_v56 = vadd.f32 %v2618_v49, %v2490_v33  ;;  %v14135_v11 = vadd.f32 %v2619_v4, %v2491_v42 }
 0x352   : > { %v1877_v61 = vpop.f32.mrf.mxu0  ;;  %v2339_v35 = vpop.f32.mrf.mxu1  ;;  %3850 = vmatmul.mubr.bf16.gmra.mxu0 %v13698_v20 }
 0x353   : > { %3859 = vmatprep.mubr.bf16.mxu0 %v16297_v1  ;;  %v2381_v13 = vpack.c.bf16 %v2339_v35, %v2335_v3  ;;  %12955 = vmul.bf16.f32.vacc3 %v2380_v62, %v1930_v60 }
 0x354   : > { %v1879_v34 = vpop.f32.mrf.mxu0  ;;  %v2343_v19 = vpop.f32.mrf.mxu1 }
 0x355   : > { %4171 = vmatmul.mubr.bf16.gmra.mxu1 %v13701_v9  ;;  %12956 = vmac.bf16.f32.vacc3 %v2381_v13, %v1931_v12 }
 0x356   : > { %4180 = vmatprep.mubr.bf16.mxu1 %v16297_v1  ;;  %v1881_v44 = vpop.f32.mrf.mxu0  ;;  %v2345_v55 = vpop.f32.mrf.mxu1 }
 0x357   : > { %v1932_v24 = vpack.c.bf16 %v1881_v44, %v1877_v61  ;;  %v5031_v44 = vld [vmem:[#allocation8 + $0x318] sm:$0xff] }
 0x358   : > { %v1883_v30 = vpop.f32.mrf.mxu0  ;;  %v2347_v31 = vpop.f32.mrf.mxu1 }
 0x359   : > { %v1933_v48 = vpack.c.bf16 %v1883_v30, %v1879_v34  ;;  %v2382_v22 = vpack.c.bf16 %v2347_v31, %v2343_v19 }
 0x35a   : > { %v1887_v33 = vpop.f32.mrf.mxu0  ;;  %v2349_v42 = vpop.f32.mrf.mxu1  ;;  %3860 = vmatmul.mubr.bf16.gmra.mxu0 %v13714_v18 }
 0x35b   : > { %3869 = vmatprep.mubr.bf16.mxu0 %v16297_v1  ;;  %v2383_v2 = vpack.c.bf16 %v2349_v42, %v2345_v55  ;;  %12923 = vmul.bf16.f32.vacc2 %v2382_v22, %v1932_v24  ;;  %v5032_v55 = vld [vmem:[#allocation8 + $0x358] sm:$0xff]  ;;  %v11724_v22 = vcombine.low %v14114_v54, %v14116_v47 }
 0x35c   : > { %v1889_v29 = vpop.f32.mrf.mxu0  ;;  %v2353_v15 = vpop.f32.mrf.mxu1 }
 0x35d   : > { %4181 = vmatmul.mubr.bf16.gmra.mxu1 %v13717_v63  ;;  %12924 = vmac.bf16.f32.vacc2 %v2383_v2, %v1933_v48  ;;  %v11723_v2 = vcombine.high %v5031_v44, %v5032_v55 }
 0x35e   : > { %4190 = vmatprep.mubr.bf16.mxu1 %v16297_v1  ;;  %v1891_v51 = vpop.f32.mrf.mxu0  ;;  %v2355_v17 = vpop.f32.mrf.mxu1 }
 0x35f   : > { %v1934_v3 = vpack.c.bf16 %v1891_v51, %v1887_v33 }
 0x360   : > { %v1893_v49 = vpop.f32.mrf.mxu0  ;;  %v2357_v4 = vpop.f32.mrf.mxu1 }
 0x361   : > { %v1935_v60 = vpack.c.bf16 %v1893_v49, %v1889_v29  ;;  %v2384_v40 = vpack.c.bf16 %v2357_v4, %v2353_v15  ;;  %v5029_v29 = vld [vmem:[#allocation8 + $0x298] sm:$0xff]  ;;  %v11722_v4 = vcombine.low %v5031_v44, %v5032_v55 }
 0x362   : > { %v1897_v0 = vpop.f32.mrf.mxu0  ;;  %v2359_v12 = vpop.f32.mrf.mxu1  ;;  %3870 = vmatmul.mubr.bf16.gmra.mxu0 %v13732_v32  ;;  %v5030_v15 = vld [vmem:[#allocation8 + $0x2d8] sm:$0xff] }
 0x363   : > { %3879 = vmatprep.mubr.bf16.mxu0 %v16297_v1  ;;  %v2385_v62 = vpack.c.bf16 %v2359_v12, %v2355_v17  ;;  %12891 = vmul.bf16.f32.vacc1 %v2384_v40, %v1934_v3  ;;  %v11721_v54 = vcombine.high %v5029_v29, %v5030_v15  ;;  %v5027_v40 = vld [vmem:[#allocation8 + $0x218] sm:$0xff] }
 0x364   : > { %v1899_v61 = vpop.f32.mrf.mxu0  ;;  %v2363_v35 = vpop.f32.mrf.mxu1  ;;  %v16301_v55 = vld [vmem:[#allocation34_spill] sm:$0xff] }
 0x365   : > { %4191 = vmatmul.mubr.bf16.gmra.mxu1 %v13738_v43  ;;  %12892 = vmac.bf16.f32.vacc1 %v2385_v62, %v1935_v60 }
 0x366   : > { %4345 = vmatprep.mubr.bf16.mxu1 %v16297_v1  ;;  %v1901_v13 = vpop.f32.mrf.mxu0  ;;  %v2365_v34 = vpop.f32.mrf.mxu1 }
 0x367   : > { %v1936_v19 = vpack.c.bf16 %v1901_v13, %v1897_v0  ;;  %v5028_v0 = vld [vmem:[#allocation8 + $0x258] sm:$0xff]  ;;  %v11720_v13 = vcombine.low %v5029_v29, %v5030_v15  ;;  %v16302_v29 = vld [vmem:[#allocation35_spill] sm:$0xff] }
 0x368   : > { %v1903_v24 = vpop.f32.mrf.mxu0  ;;  %v2367_v30 = vpop.f32.mrf.mxu1 }
 0x369   : > { %v1937_v31 = vpack.c.bf16 %v1903_v24, %v1899_v61  ;;  %v2386_v48 = vpack.c.bf16 %v2367_v30, %v2363_v35  ;;  %v11719_v24 = vcombine.high %v5027_v40, %v5028_v0  ;;  %v5025_v30 = vld [vmem:[#allocation8 + $0x198] sm:$0xff] }
 0x36a   : > { %v2369_v33 = vpop.f32.mrf.mxu1  ;;  %v2774_v42 = vpop.f32.mrf.mxu0  ;;  %3880 = vmatmul.mubr.bf16.gmra.mxu0 %v13759_v58 }
 0x36b   : > { %3889 = vmatprep.mubr.bf16.mxu0 %v16297_v1  ;;  %v2387_v51 = vpack.c.bf16 %v2369_v33, %v2365_v34  ;;  %12859 = vmul.bf16.f32.vacc0 %v2386_v48, %v1936_v19  ;;  %v11718_v19 = vcombine.low %v5027_v40, %v5028_v0  ;;  %v5024_v40 = vld [vmem:[#allocation8 + $0x158] sm:$0xff] }
 0x36c   : > { %v2776_v17 = vpop.f32.mrf.mxu0  ;;  %v3095_v49 = vpop.f32.mrf.mxu1 }
 0x36d   : > { %4346 = vmatmul.mubr.bf16.vlgmr.msra.gmra.mxu1 %v13763_v25  ;;  %12860 = vmac.bf16.f32.vacc0 %v2387_v51, %v1937_v31 }
 0x36e   : > { %5116 = vmatpush1.bf16.msra.mxu1 %v11724_v22  ;;  %4355 = vmatprep.mubr.bf16.mxu1 %v16297_v1  ;;  %v2778_v47 = vpop.f32.mrf.mxu0  ;;  %v3097_v3 = vpop.f32.mrf.mxu1  ;;  %v5026_v22 = vld [vmem:[#allocation8 + $0x1d8] sm:$0xff] }
 0x36f   : > { %5117 = vmatprep.subr.bf16.mxu1 %v11723_v2  ;;  %v2933_v60 = vpack.c.bf16 %v2778_v47, %v2774_v42  ;;  %v11717_v15 = vcombine.high %v5025_v30, %v5026_v22 }
 0x370   : > { %v2780_v12 = vpop.f32.mrf.mxu0  ;;  %v3099_v62 = vpop.f32.mrf.mxu1 }
 0x371   : > { %v2934_v61 = vpack.c.bf16 %v2780_v12, %v2776_v17  ;;  %v3174_v35 = vpack.c.bf16 %v3099_v62, %v3095_v49  ;;  %v3415_v33 = vunpack.c.l.bf16 %v2933_v60  ;;  %v3416_v42 = vunpack.c.h.bf16 %v2933_v60 }
 0x372   : > { %5118 = vmatpush1.bf16.msra.mxu1 %v11722_v4  ;;  %v2784_v34 = vpop.f32.mrf.mxu0  ;;  %v3101_v44 = vpop.f32.mrf.mxu1  ;;  %3890 = vmatmul.mubr.bf16.gmra.mxu0 %v16301_v55 }
 0x373   : > { %5119 = vmatprep.subr.bf16.mxu1 %v11721_v54  ;;  %v3431_v2 = vunpack.c.l.bf16 %v3174_v35  ;;  %v3432_v47 = vunpack.c.h.bf16 %v3174_v35  ;;  %3899 = vmatprep.mubr.bf16.mxu0 %v16297_v1  ;;  %v3175_v17 = vpack.c.bf16 %v3101_v44, %v3097_v3  ;;  %v3543_v51 = vunpack.c.l.bf16 %v2934_v61 }
 0x374   : > { %v2786_v49 = vpop.f32.mrf.mxu0  ;;  %v3105_v4 = vpop.f32.mrf.mxu1  ;;  %v3544_v54 = vunpack.c.h.bf16 %v2934_v61  ;;  %v11716_v61 = vcombine.low %v5025_v30, %v5026_v22 }
 0x375   : > { %4356 = vmatmul.mubr.bf16.gmra.mxu1 %v16302_v29  ;;  %v3447_v31 = vmul.f32 %v3431_v2, %v3415_v33  ;;  %v3448_v48 = vmul.f32 %v3432_v47, %v3416_v42  ;;  %v3559_v12 = vunpack.c.l.bf16 %v3175_v17  ;;  %v3560_v60 = vunpack.c.h.bf16 %v3175_v17  ;;  %v5023_v29 = vld [vmem:[#allocation8 + $0x118] sm:$0xff] }
 0x376   : > { %4365 = vmatprep.mubr.bf16.mxu1 %v16297_v1  ;;  %5120 = vmatpush1.bf16.msra.mxu1 %v11720_v13  ;;  %v2788_v62 = vpop.f32.mrf.mxu0  ;;  %v3107_v35 = vpop.f32.mrf.mxu1 }
 0x377   : > { %5121 = vmatprep.subr.bf16.mxu1 %v11719_v24  ;;  %v3463_v3 = vadd.f32 %v3447_v31, %v13936_v39  ;;  %v3464_v44 = vadd.f32 %v3448_v48, %v13938_v57  ;;  %v2935_v55 = vpack.c.bf16 %v2788_v62, %v2784_v34  ;;  %v3575_v0 = vmul.f32 %v3559_v12, %v3543_v51  ;;  %v16303_v39 = vld [vmem:[#allocation36_spill] sm:$0xff]  ;;  %v5021_v34 = vld [vmem:[#allocation8 + $0x98] sm:$0xff] }
 0x378   : > { %v3576_v33 = vmul.f32 %v3560_v60, %v3544_v54  ;;  %v2790_v42 = vpop.f32.mrf.mxu0  ;;  %v3109_v2 = vpop.f32.mrf.mxu1  ;;  %v11715_v57 = vcombine.high %v5023_v29, %v5024_v40  ;;  %v5022_v31 = vld [vmem:[#allocation8 + $0xd8] sm:$0xff] }
 0x379   : > { %v2936_v13 = vpack.c.bf16 %v2790_v42, %v2786_v49  ;;  %v3176_v47 = vpack.c.bf16 %v3109_v2, %v3105_v4  ;;  %v14161_v25 = vadd.f32 %v3575_v0, %v3463_v3  ;;  %v3417_v48 = vunpack.c.l.bf16 %v2935_v55  ;;  %v16304_v4 = vld [vmem:[#allocation37_spill] sm:$0xff] }
 0x37a   : > { %5122 = vmatpush1.bf16.msra.mxu1 %v11718_v19  ;;  %v14163_v17 = vadd.f32 %v3576_v33, %v3464_v44  ;;  %v2794_v24 = vpop.f32.mrf.mxu0  ;;  %v3111_v58 = vpop.f32.mrf.mxu1  ;;  %3900 = vmatmul.mubr.bf16.gmra.mxu0 %v16303_v39  ;;  %v3418_v51 = vunpack.c.h.bf16 %v2935_v55  ;;  %v11714_v19 = vcombine.low %v5023_v29, %v5024_v40  ;;  %v5020_v29 = vld [vmem:[#allocation8 + $0x58] sm:$0xff] }
 0x37b   : > { %5123 = vmatprep.subr.bf16.mxu1 %v11717_v15  ;;  %v3433_v54 = vunpack.c.l.bf16 %v3176_v47  ;;  %v3434_v12 = vunpack.c.h.bf16 %v3176_v47  ;;  %3909 = vmatprep.mubr.bf16.mxu0 %v16297_v1  ;;  %v3177_v49 = vpack.c.bf16 %v3111_v58, %v3107_v35  ;;  %v11713_v15 = vcombine.high %v5021_v34, %v5022_v31  ;;  %v5019_v47 = vld [vmem:[#allocation8 + $0x18] sm:$0xff] }
 0x37c   : > { %v2796_v30 = vpop.f32.mrf.mxu0  ;;  %v3115_v22 = vpop.f32.mrf.mxu1  ;;  %v3545_v3 = vunpack.c.l.bf16 %v2936_v13  ;;  %v3546_v44 = vunpack.c.h.bf16 %v2936_v13  ;;  %v11712_v13 = vcombine.low %v5021_v34, %v5022_v31 }
 0x37d   : > { %4366 = vmatmul.mubr.bf16.gmra.mxu1 %v16304_v4  ;;  %v3449_v60 = vmul.f32 %v3433_v54, %v3417_v48  ;;  %v3450_v62 = vmul.f32 %v3434_v12, %v3418_v51  ;;  %v3561_v0 = vunpack.c.l.bf16 %v3177_v49  ;;  %v3562_v55 = vunpack.c.h.bf16 %v3177_v49 }
 0x37e   : > { %4375 = vmatprep.mubr.bf16.mxu1 %v16297_v1  ;;  %5124 = vmatpush1.bf16.msra.mxu1 %v11716_v61  ;;  %v2798_v33 = vpop.f32.mrf.mxu0  ;;  %v3117_v42 = vpop.f32.mrf.mxu1 }
 0x37f   : > { %5125 = vmatprep.subr.bf16.mxu1 %v11715_v57  ;;  %v3465_v58 = vadd.f32 %v3449_v60, %v13944_v7  ;;  %v3466_v35 = vadd.f32 %v3450_v62, %v13946_v14  ;;  %v2937_v2 = vpack.c.bf16 %v2798_v33, %v2794_v24  ;;  %v3577_v40 = vmul.f32 %v3561_v0, %v3545_v3  ;;  %v14176_v14 = vld [vmem:[#allocation10 + $0x398] sm:$0xff] }
 0x380   : > { %v3578_v48 = vmul.f32 %v3562_v55, %v3546_v44  ;;  %v2800_v51 = vpop.f32.mrf.mxu0  ;;  %v3119_v54 = vpop.f32.mrf.mxu1  ;;  %v11711_v7 = vcombine.high %v5019_v47, %v5020_v29  ;;  %v14178_v24 = vld [vmem:[#allocation10 + $0x3d8] sm:$0xff]  ;;  %v11710_v3 = vcombine.low %v5019_v47, %v5020_v29 }
 0x381   : > { %v2938_v61 = vpack.c.bf16 %v2800_v51, %v2796_v30  ;;  %v3178_v12 = vpack.c.bf16 %v3119_v54, %v3115_v22  ;;  %v14171_v4 = vadd.f32 %v3577_v40, %v3465_v58  ;;  %v3419_v60 = vunpack.c.l.bf16 %v2937_v2 }
 0x382   : > { %5126 = vmatpush1.bf16.msra.mxu1 %v11714_v19  ;;  %v14173_v49 = vadd.f32 %v3578_v48, %v3466_v35  ;;  %v2804_v57 = vpop.f32.mrf.mxu0  ;;  %v3121_v39 = vpop.f32.mrf.mxu1  ;;  %3910 = vmatmul.mubr.bf16.gmra.mxu0 %v13815_v50  ;;  %v3420_v62 = vunpack.c.h.bf16 %v2937_v2 }
 0x383   : > { %5127 = vmatprep.subr.bf16.mxu1 %v11713_v15  ;;  %v3435_v30 = vunpack.c.l.bf16 %v3178_v12  ;;  %v3436_v22 = vunpack.c.h.bf16 %v3178_v12  ;;  %3919 = vmatprep.mubr.bf16.mxu0 %v16297_v1  ;;  %v3179_v34 = vpack.c.bf16 %v3121_v39, %v3117_v42  ;;  %v11741_v15 = vcombine.high %v14176_v14, %v14178_v24 }
 0x384   : > { %v2806_v31 = vpop.f32.mrf.mxu0  ;;  %v3125_v19 = vpop.f32.mrf.mxu1  ;;  %v3547_v55 = vunpack.c.l.bf16 %v2938_v61  ;;  %v3548_v33 = vunpack.c.h.bf16 %v2938_v61 }
 0x385   : > { %4376 = vmatmul.mubr.bf16.gmra.mxu1 %v13817_v16  ;;  %v3451_v44 = vmul.f32 %v3435_v30, %v3419_v60  ;;  %v3452_v0 = vmul.f32 %v3436_v22, %v3420_v62  ;;  %v3563_v58 = vunpack.c.l.bf16 %v3179_v34  ;;  %v3564_v35 = vunpack.c.h.bf16 %v3179_v34 }
 0x386   : > { %4385 = vmatprep.mubr.bf16.mxu1 %v16297_v1  ;;  %5128 = vmatpush1.bf16.msra.mxu1 %v11712_v13  ;;  %v2808_v2 = vpop.f32.mrf.mxu0  ;;  %v3127_v40 = vpop.f32.mrf.mxu1 }
 0x387   : > { %5129 = vmatprep.subr.bf16.mxu1 %v11711_v7  ;;  %v3467_v39 = vadd.f32 %v3451_v44, %v13958_v8  ;;  %v3468_v42 = vadd.f32 %v3452_v0, %v13960_v46  ;;  %v2939_v47 = vpack.c.bf16 %v2808_v2, %v2804_v57  ;;  %v3579_v29 = vmul.f32 %v3563_v58, %v3547_v55 }
 0x388   : > { %v3580_v48 = vmul.f32 %v3564_v35, %v3548_v33  ;;  %v2810_v51 = vpop.f32.mrf.mxu0  ;;  %v3129_v54 = vpop.f32.mrf.mxu1 }
 0x389   : > { %v2940_v12 = vpack.c.bf16 %v2810_v51, %v2806_v31  ;;  %v3180_v13 = vpack.c.bf16 %v3129_v54, %v3125_v19  ;;  %v14187_v60 = vadd.f32 %v3579_v29, %v3467_v39  ;;  %v3421_v8 = vunpack.c.l.bf16 %v2939_v47  ;;  %v16305_v19 = vld [vmem:[#allocation41_spill] sm:$0xff] }
 0x38a   : > { %5130 = vmatpush1.bf16.msra.mxu1 %v11710_v3  ;;  %v14189_v61 = vadd.f32 %v3580_v48, %v3468_v42  ;;  %v2814_v62 = vpop.f32.mrf.mxu0  ;;  %v3131_v30 = vpop.f32.mrf.mxu1  ;;  %3920 = vmatmul.mubr.bf16.gmra.mxu0 %v13837_v5  ;;  %v3422_v7 = vunpack.c.h.bf16 %v2939_v47 }
 0x38b   : > { %5340 = vmatprep.subr.bf16.mxu1 %v11741_v15  ;;  %v3437_v46 = vunpack.c.l.bf16 %v3180_v13  ;;  %v3438_v57 = vunpack.c.h.bf16 %v3180_v13  ;;  %3929 = vmatprep.mubr.bf16.mxu0 %v16297_v1  ;;  %v3181_v22 = vpack.c.bf16 %v3131_v30, %v3127_v40  ;;  %v3549_v0 = vunpack.c.l.bf16 %v2940_v12 }
 0x38c   : > { %v2816_v34 = vpop.f32.mrf.mxu0  ;;  %v3135_v31 = vpop.f32.mrf.mxu1  ;;  %v3550_v55 = vunpack.c.h.bf16 %v2940_v12 }
 0x38d   : > { %4386 = vmatmul.mubr.bf16.gmra.mxu1 %v16305_v19  ;;  %v3453_v3 = vmul.f32 %v3437_v46, %v3421_v8  ;;  %v3454_v44 = vmul.f32 %v3438_v57, %v3422_v7  ;;  %v3565_v33 = vunpack.c.l.bf16 %v3181_v22  ;;  %v3566_v58 = vunpack.c.h.bf16 %v3181_v22  ;;  %v16308_v7 = vld [vmem:[#allocation42_spill] sm:$0xff] }
 0x38e   : > { %4395 = vmatprep.mubr.bf16.mxu1 %v16297_v1  ;;  %v2818_v15 = vpop.f32.mrf.mxu0  ;;  %v3137_v35 = vpop.f32.mrf.mxu1 }
 0x38f   : > { %v3469_v2 = vadd.f32 %v3453_v3, %v13966_v41  ;;  %v3470_v39 = vadd.f32 %v3454_v44, %v13968_v27  ;;  %v2941_v42 = vpack.c.bf16 %v2818_v15, %v2814_v62  ;;  %v3581_v40 = vmul.f32 %v3565_v33, %v3549_v0  ;;  %v16309_v44 = vld [vmem:[#allocation43_spill] sm:$0xff] }
 0x390   : > { %v3582_v47 = vmul.f32 %v3566_v58, %v3550_v55  ;;  %v2820_v29 = vpop.f32.mrf.mxu0  ;;  %v3139_v48 = vpop.f32.mrf.mxu1 }
 0x391   : > { %v2942_v51 = vpack.c.bf16 %v2820_v29, %v2816_v34  ;;  %v3182_v54 = vpack.c.bf16 %v3139_v48, %v3135_v31  ;;  %v14197_v13 = vadd.f32 %v3581_v40, %v3469_v2  ;;  %v3423_v46 = vunpack.c.l.bf16 %v2941_v42 }
 0x392   : > { %v14199_v30 = vadd.f32 %v3582_v47, %v3470_v39  ;;  %v2824_v12 = vpop.f32.mrf.mxu0  ;;  %v3141_v8 = vpop.f32.mrf.mxu1  ;;  %3930 = vmatmul.mubr.bf16.gmra.mxu0 %v16308_v7  ;;  %v3424_v57 = vunpack.c.h.bf16 %v2941_v42  ;;  %v14282_v7 = vld [vmem:[#allocation10 + $0x198] sm:$0xff] }
 0x393   : > { %16306 = vst [vmem:[#allocation55_spill] sm:$0xff] %v14197_v13  ;;  %v3439_v41 = vunpack.c.l.bf16 %v3182_v54  ;;  %v3440_v22 = vunpack.c.h.bf16 %v3182_v54  ;;  %3939 = vmatprep.mubr.bf16.mxu0 %v16297_v1  ;;  %v3183_v27 = vpack.c.bf16 %v3141_v8, %v3137_v35  ;;  %v3551_v0 = vunpack.c.l.bf16 %v2942_v51 }
 0x394   : > { %16307 = vst [vmem:[#allocation56_spill] sm:$0xff] %v14199_v30  ;;  %v2826_v62 = vpop.f32.mrf.mxu0  ;;  %v3145_v3 = vpop.f32.mrf.mxu1  ;;  %v3552_v55 = vunpack.c.h.bf16 %v2942_v51 }
 0x395   : > { %4396 = vmatmul.mubr.bf16.gmra.mxu1 %v16309_v44  ;;  %v3455_v34 = vmul.f32 %v3439_v41, %v3423_v46  ;;  %v3456_v31 = vmul.f32 %v3440_v22, %v3424_v57  ;;  %v3567_v33 = vunpack.c.l.bf16 %v3183_v27  ;;  %v3568_v58 = vunpack.c.h.bf16 %v3183_v27  ;;  %v16312_v22 = vld [vmem:[#allocation44_spill] sm:$0xff] }
 0x396   : > { %4405 = vmatprep.mubr.bf16.mxu1 %v16297_v1  ;;  %v2828_v15 = vpop.f32.mrf.mxu0  ;;  %v3147_v2 = vpop.f32.mrf.mxu1 }
 0x397   : > { %v3471_v39 = vadd.f32 %v3455_v34, %v13974_v36  ;;  %v3472_v42 = vadd.f32 %v3456_v31, %v13976_v28  ;;  %v2943_v40 = vpack.c.bf16 %v2828_v15, %v2824_v12  ;;  %v3583_v35 = vmul.f32 %v3567_v33, %v3551_v0  ;;  %v16313_v0 = vld [vmem:[#allocation45_spill] sm:$0xff] }
 0x398   : > { %v3584_v47 = vmul.f32 %v3568_v58, %v3552_v55  ;;  %v2830_v29 = vpop.f32.mrf.mxu0  ;;  %v3149_v48 = vpop.f32.mrf.mxu1 }
 0x399   : > { %v2944_v54 = vpack.c.bf16 %v2830_v29, %v2826_v62  ;;  %v3184_v8 = vpack.c.bf16 %v3149_v48, %v3145_v3  ;;  %v14207_v46 = vadd.f32 %v3583_v35, %v3471_v39  ;;  %v3425_v27 = vunpack.c.l.bf16 %v2943_v40 }
 0x39a   : > { %v14209_v57 = vadd.f32 %v3584_v47, %v3472_v42  ;;  %v2834_v51 = vpop.f32.mrf.mxu0  ;;  %v3151_v41 = vpop.f32.mrf.mxu1  ;;  %3940 = vmatmul.mubr.bf16.gmra.mxu0 %v16312_v22  ;;  %v3426_v44 = vunpack.c.h.bf16 %v2943_v40  ;;  %v16314_v40 = vld [vmem:[#allocation48_spill] sm:$0xff]  ;;  %v16315_v47 = vld [vmem:[#allocation49_spill] sm:$0xff] }
 0x39b   : > { %16310 = vst [vmem:[#allocation57_spill] sm:$0xff] %v14207_v46  ;;  %v3441_v36 = vunpack.c.l.bf16 %v3184_v8  ;;  %v3442_v34 = vunpack.c.h.bf16 %v3184_v8  ;;  %3949 = vmatprep.mubr.bf16.mxu0 %v16297_v1  ;;  %v3185_v28 = vpack.c.bf16 %v3151_v41, %v3147_v2  ;;  %v3553_v55 = vunpack.c.l.bf16 %v2944_v54 }
 0x39c   : > { %16311 = vst [vmem:[#allocation58_spill] sm:$0xff] %v14209_v57  ;;  %v2836_v12 = vpop.f32.mrf.mxu0  ;;  %v3155_v31 = vpop.f32.mrf.mxu1  ;;  %v3554_v33 = vunpack.c.h.bf16 %v2944_v54 }
 0x39d   : > { %4406 = vmatmul.mubr.bf16.gmra.mxu1 %v16313_v0  ;;  %v3457_v62 = vmul.f32 %v3441_v36, %v3425_v27  ;;  %v3458_v3 = vmul.f32 %v3442_v34, %v3426_v44  ;;  %v3569_v58 = vunpack.c.l.bf16 %v3185_v28  ;;  %v3570_v15 = vunpack.c.h.bf16 %v3185_v28  ;;  %v16318_v28 = vld [vmem:[#allocation46_spill] sm:$0xff] }
 0x39e   : > { %4415 = vmatprep.mubr.bf16.mxu1 %v16297_v1  ;;  %v2838_v39 = vpop.f32.mrf.mxu0  ;;  %v3157_v42 = vpop.f32.mrf.mxu1 }
 0x39f   : > { %v3473_v35 = vadd.f32 %v3457_v62, %v16314_v40  ;;  %v3474_v29 = vadd.f32 %v3458_v3, %v16315_v47  ;;  %v2945_v48 = vpack.c.bf16 %v2838_v39, %v2834_v51  ;;  %v3585_v2 = vmul.f32 %v3569_v58, %v3553_v55  ;;  %v14227_v58 = vld [vmem:[#allocation7 + $0x360] sm:$0xff] }
 0x3a0   : > { %v3586_v8 = vmul.f32 %v3570_v15, %v3554_v33  ;;  %v2840_v41 = vpop.f32.mrf.mxu0  ;;  %v3159_v22 = vpop.f32.mrf.mxu1  ;;  %v16319_v33 = vld [vmem:[#allocation47_spill] sm:$0xff] }
 0x3a1   : > { %v2946_v0 = vpack.c.bf16 %v2840_v41, %v2836_v12  ;;  %v3186_v27 = vpack.c.bf16 %v3159_v22, %v3155_v31  ;;  %v14217_v44 = vadd.f32 %v3585_v2, %v3473_v35  ;;  %v3427_v57 = vunpack.c.l.bf16 %v2945_v48  ;;  %v14225_v31 = vld [vmem:[#allocation7 + $0x320] sm:$0xff]  ;;  %v16320_v2 = vld [vmem:[#allocation50_spill] sm:$0xff] }
 0x3a2   : > { %v14219_v36 = vadd.f32 %v3586_v8, %v3474_v29  ;;  %v2844_v54 = vpop.f32.mrf.mxu0  ;;  %v3161_v34 = vpop.f32.mrf.mxu1  ;;  %3950 = vmatmul.mubr.bf16.gmra.mxu0 %v16318_v28  ;;  %v3428_v46 = vunpack.c.h.bf16 %v2945_v48  ;;  %v16321_v8 = vld [vmem:[#allocation51_spill] sm:$0xff] }
 0x3a3   : > { %16316 = vst [vmem:[#allocation48_spill] sm:$0xff] %v14217_v44  ;;  %v3443_v62 = vunpack.c.l.bf16 %v3186_v27  ;;  %v3444_v40 = vunpack.c.h.bf16 %v3186_v27  ;;  %4826 = vmatprep.mubr.bf16.mxu0 %v16297_v1  ;;  %v3187_v51 = vpack.c.bf16 %v3161_v34, %v3157_v42  ;;  %v3555_v15 = vunpack.c.l.bf16 %v2946_v0  ;;  %v14231_v34 = vld [vmem:[#allocation10 + $0x318] sm:$0xff] }
 0x3a4   : > { %16317 = vst [vmem:[#allocation49_spill] sm:$0xff] %v14219_v36  ;;  %v2846_v3 = vpop.f32.mrf.mxu0  ;;  %v3165_v55 = vpop.f32.mrf.mxu1  ;;  %v3556_v39 = vunpack.c.h.bf16 %v2946_v0  ;;  %v11755_v0 = vcombine.high %v14225_v31, %v14227_v58  ;;  %v11740_v36 = vcombine.low %v14176_v14, %v14178_v24  ;;  %v11754_v14 = vcombine.low %v14225_v31, %v14227_v58 }
 0x3a5   : > { %4416 = vmatmul.mubr.bf16.gmra.mxu1 %v16319_v33  ;;  %v3459_v22 = vmul.f32 %v3443_v62, %v3427_v57  ;;  %v3460_v12 = vmul.f32 %v3444_v40, %v3428_v46  ;;  %v3571_v35 = vunpack.c.l.bf16 %v3187_v51  ;;  %v3572_v47 = vunpack.c.h.bf16 %v3187_v51  ;;  %v14233_v46 = vld [vmem:[#allocation10 + $0x358] sm:$0xff] }
 0x3a6   : > { %5147 = vmatprep.mubr.bf16.mxu1 %v16297_v1  ;;  %v2848_v29 = vpop.f32.mrf.mxu0  ;;  %v3167_v48 = vpop.f32.mrf.mxu1 }
 0x3a7   : > { %v3475_v42 = vadd.f32 %v3459_v22, %v16320_v2  ;;  %v3476_v41 = vadd.f32 %v3460_v12, %v16321_v8  ;;  %v2947_v27 = vpack.c.bf16 %v2848_v29, %v2844_v54  ;;  %v3587_v57 = vmul.f32 %v3571_v35, %v3555_v15  ;;  %v14239_v22 = vld [vmem:[#allocation7 + $0x2a0] sm:$0xff]  ;;  %v16324_v35 = vld [vmem:[#allocation26_spill] sm:$0xff] }
 0x3a8   : > { %v3588_v62 = vmul.f32 %v3572_v47, %v3556_v39  ;;  %v2850_v40 = vpop.f32.mrf.mxu0  ;;  %v3169_v33 = vpop.f32.mrf.mxu1  ;;  %v14241_v12 = vld [vmem:[#allocation7 + $0x2e0] sm:$0xff]  ;;  %v11739_v47 = vcombine.high %v14231_v34, %v14233_v46  ;;  %v16325_v8 = vcombine.low %v14052_v21, %v14055_v23 }
 0x3a9   : > { %v2948_v28 = vpack.c.bf16 %v2850_v40, %v2846_v3  ;;  %v3188_v51 = vpack.c.bf16 %v3169_v33, %v3165_v55  ;;  %v14243_v54 = vadd.f32 %v3587_v57, %v3475_v42  ;;  %v14250_v3 = vld [vmem:[#allocation10 + $0x298] sm:$0xff]  ;;  %v3429_v24 = vunpack.c.l.bf16 %v2947_v27  ;;  %v16326_v40 = vld [vmem:[#allocation27_spill] sm:$0xff] }
 0x3aa   : > { %v14245_v29 = vadd.f32 %v3588_v62, %v3476_v41  ;;  %v2854_v15 = vpop.f32.mrf.mxu0  ;;  %v3171_v39 = vpop.f32.mrf.mxu1  ;;  %4827 = vmatmul.mubr.bf16.vlgmr.msra.gmra.mxu0 %v16324_v35  ;;  %v14252_v55 = vld [vmem:[#allocation10 + $0x2d8] sm:$0xff]  ;;  %v3430_v33 = vunpack.c.h.bf16 %v2947_v27  ;;  %v11738_v35 = vcombine.low %v14231_v34, %v14233_v46  ;;  %v11753_v31 = vcombine.high %v14239_v22, %v14241_v12  ;;  %v14268_v23 = vld [vmem:[#allocation7 + $0x220] sm:$0xff] }
 0x3ab   : > { %16322 = vst [vmem:[#allocation50_spill] sm:$0xff] %v14243_v54  ;;  %v3445_v2 = vunpack.c.l.bf16 %v3188_v51  ;;  %v3446_v42 = vunpack.c.h.bf16 %v3188_v51  ;;  %5822 = vmatpush1.bf16.msra.mxu0 %v16325_v8  ;;  %4836 = vmatprep.mubr.bf16.mxu0 %v16297_v1  ;;  %v3189_v41 = vpack.c.bf16 %v3171_v39, %v3167_v48  ;;  %v11737_v21 = vcombine.high %v14250_v3, %v14252_v55  ;;  %v14270_v48 = vld [vmem:[#allocation7 + $0x260] sm:$0xff] }
 0x3ac   : > { %16323 = vst [vmem:[#allocation51_spill] sm:$0xff] %v14245_v29  ;;  %v2856_v57 = vpop.f32.mrf.mxu0  ;;  %v3320_v62 = vpop.f32.mrf.mxu1  ;;  %5823 = vmatprep.subr.bf16.mxu0 %v11755_v0  ;;  %v3557_v51 = vunpack.c.l.bf16 %v2948_v28  ;;  %v3558_v39 = vunpack.c.h.bf16 %v2948_v28  ;;  %v11752_v29 = vcombine.low %v14239_v22, %v14241_v12  ;;  %v14290_v12 = vld [vmem:[#allocation10 + $0x1d8] sm:$0xff] }
 0x3ad   : > { %5148 = vmatmul.mubr.bf16.vlgmr.msra.gmra.mxu1 %v16326_v40  ;;  %v3461_v58 = vmul.f32 %v3445_v2, %v3429_v24  ;;  %v3462_v27 = vmul.f32 %v3446_v42, %v3430_v33  ;;  %v3573_v8 = vunpack.c.l.bf16 %v3189_v41  ;;  %v3574_v34 = vunpack.c.h.bf16 %v3189_v41  ;;  %v14272_v40 = vld [vmem:[#allocation10 + $0x218] sm:$0xff]  ;;  %v16327_v33 = vld [vmem:[#allocation52_spill] sm:$0xff] }
 0x3ae   : > { %5341 = vmatpush1.bf16.msra.mxu1 %v11740_v36  ;;  %5157 = vmatprep.mubr.bf16.mxu1 %v16297_v1  ;;  %v2858_v46 = vpop.f32.mrf.mxu0  ;;  %v3322_v0 = vpop.f32.mrf.mxu1  ;;  %v14274_v24 = vld [vmem:[#allocation10 + $0x258] sm:$0xff] }
 0x3af   : > { %5342 = vmatprep.subr.bf16.mxu1 %v11739_v47  ;;  %v3477_v36 = vadd.f32 %v3461_v58, %v14045_v45  ;;  %v3478_v2 = vadd.f32 %v3462_v27, %v16327_v33  ;;  %v2949_v42 = vpack.c.bf16 %v2858_v46, %v2854_v15  ;;  %5824 = vmatpush1.bf16.msra.mxu0 %v11754_v14  ;;  %v14292_v14 = vld [vmem:[#allocation7 + $0x1a0] sm:$0xff]  ;;  %v16331_v33 = vld [vmem:[#allocation29_spill] sm:$0xff] }
 0x3b0   : > { %v3589_v54 = vmul.f32 %v3573_v8, %v3557_v51  ;;  %v3590_v28 = vmul.f32 %v3574_v34, %v3558_v39  ;;  %v2860_v44 = vpop.f32.mrf.mxu0  ;;  %v3324_v41 = vpop.f32.mrf.mxu1  ;;  %v11736_v47 = vcombine.low %v14250_v3, %v14252_v55  ;;  %5825 = vmatprep.subr.bf16.mxu0 %v11753_v31  ;;  %v11751_v45 = vcombine.high %v14268_v23, %v14270_v48  ;;  %v14294_v3 = vld [vmem:[#allocation7 + $0x1e0] sm:$0xff] }
 0x3b1   : > { %v2950_v58 = vpack.c.bf16 %v2860_v44, %v2856_v57  ;;  %v3399_v27 = vpack.c.bf16 %v3324_v41, %v3320_v62  ;;  %v11734_v15 = vcombine.low %v14272_v40, %v14274_v24  ;;  %v11735_v22 = vcombine.high %v14272_v40, %v14274_v24  ;;  %v16330_v57 = vld [vmem:[#allocation28_spill] sm:$0xff] }
 0x3b2   : > { %5343 = vmatpush1.bf16.msra.mxu1 %v11738_v35  ;;  %v14296_v55 = vadd.f32 %v3589_v54, %v3477_v36  ;;  %v14298_v31 = vadd.f32 %v3590_v28, %v3478_v2  ;;  %v2864_v51 = vpop.f32.mrf.mxu0  ;;  %v3326_v44 = vpop.f32.mrf.mxu1  ;;  %4837 = vmatmul.mubr.bf16.gmra.mxu0 %v16330_v57  ;;  %v11750_v35 = vcombine.low %v14268_v23, %v14270_v48  ;;  %v14303_v62 = vld [vmem:[#allocation7 + $0x3a8] sm:$0xff]  ;;  %v3479_v40 = vunpack.c.l.bf16 %v2949_v42  ;;  %v14320_v57 = vld [vmem:[#allocation10 + $0x118] sm:$0xff] }
 0x3b3   : > { %5344 = vmatprep.subr.bf16.mxu1 %v11737_v21  ;;  %v3480_v39 = vunpack.c.h.bf16 %v2949_v42  ;;  %v3495_v8 = vunpack.c.l.bf16 %v3399_v27  ;;  %v3496_v34 = vunpack.c.h.bf16 %v3399_v27  ;;  %4846 = vmatprep.mubr.bf16.mxu0 %v16297_v1  ;;  %v14306_v54 = vld [vmem:[#allocation7 + $0x3e8] sm:$0xff]  ;;  %v3400_v46 = vpack.c.bf16 %v3326_v44, %v3322_v0  ;;  %v14316_v42 = vld [vmem:[#allocation7 + $0x160] sm:$0xff] }
 0x3b4   : > { %16328 = vst [vmem:[#allocation52_spill] sm:$0xff] %v14296_v55  ;;  %16329 = vst [vmem:[#allocation59_spill] sm:$0xff] %v14298_v31  ;;  %5826 = vmatpush1.bf16.msra.mxu0 %v11752_v29  ;;  %v2866_v24 = vpop.f32.mrf.mxu0  ;;  %v3330_v36 = vpop.f32.mrf.mxu1  ;;  %v11733_v21 = vcombine.high %v14282_v7, %v14290_v12  ;;  %v11749_v23 = vcombine.high %v14292_v14, %v14294_v3  ;;  %v14314_v29 = vld [vmem:[#allocation7 + $0x120] sm:$0xff]  ;;  %v3607_v28 = vunpack.c.l.bf16 %v2950_v58  ;;  %v3608_v41 = vunpack.c.h.bf16 %v2950_v58 }
 0x3b5   : > { %5158 = vmatmul.mubr.bf16.gmra.mxu1 %v16331_v33  ;;  %5827 = vmatprep.subr.bf16.mxu0 %v11751_v45  ;;  %v3511_v48 = vmul.f32 %v3495_v8, %v3479_v40  ;;  %v3512_v2 = vmul.f32 %v3496_v34, %v3480_v39  ;;  %v3623_v27 = vunpack.c.l.bf16 %v3400_v46  ;;  %v3624_v44 = vunpack.c.h.bf16 %v3400_v46  ;;  %v14322_v40 = vld [vmem:[#allocation10 + $0x158] sm:$0xff]  ;;  %v16332_v39 = vld [vmem:[#allocation53_spill] sm:$0xff] }
 0x3b6   : > { %5167 = vmatprep.mubr.bf16.mxu1 %v16297_v1  ;;  %5345 = vmatpush1.bf16.msra.mxu1 %v11736_v47  ;;  %v2868_v45 = vpop.f32.mrf.mxu0  ;;  %v3332_v33 = vpop.f32.mrf.mxu1  ;;  %v16333_v8 = vld [vmem:[#allocation54_spill] sm:$0xff]  ;;  %v11748_v0 = vcombine.low %v14292_v14, %v14294_v3  ;;  %v14336_v14 = vld [vmem:[#allocation7 + $0xe0] sm:$0xff] }
 0x3b7   : > { %5346 = vmatprep.subr.bf16.mxu1 %v11735_v22  ;;  %v3527_v47 = vadd.f32 %v3511_v48, %v16332_v39  ;;  %v3528_v34 = vadd.f32 %v3512_v2, %v16333_v8  ;;  %v2951_v31 = vpack.c.bf16 %v2868_v45, %v2864_v51  ;;  %v3639_v55 = vmul.f32 %v3623_v27, %v3607_v28  ;;  %v16335_v39 = vld [vmem:[#allocation31_spill] sm:$0xff] }
 0x3b8   : > { %5828 = vmatpush1.bf16.msra.mxu0 %v11750_v35  ;;  %v3640_v58 = vmul.f32 %v3624_v44, %v3608_v41  ;;  %v2870_v30 = vpop.f32.mrf.mxu0  ;;  %v3334_v46 = vpop.f32.mrf.mxu1  ;;  %v11747_v22 = vcombine.high %v14314_v29, %v14316_v42  ;;  %v11732_v48 = vcombine.low %v14282_v7, %v14290_v12  ;;  %v11731_v51 = vcombine.high %v14320_v57, %v14322_v40  ;;  %v14334_v35 = vld [vmem:[#allocation7 + $0xa0] sm:$0xff]  ;;  %v16334_v41 = vld [vmem:[#allocation30_spill] sm:$0xff] }
 0x3b9   : > { %5829 = vmatprep.subr.bf16.mxu0 %v11749_v23  ;;  %v2952_v13 = vpack.c.bf16 %v2870_v30, %v2866_v24  ;;  %v3401_v19 = vpack.c.bf16 %v3334_v46, %v3330_v36  ;;  %v14338_v3 = vadd.f32 %v3639_v55, %v3527_v47  ;;  %v14343_v30 = vld [vmem:[#allocation10 + $0x98] sm:$0xff]  ;;  %v11746_v7 = vcombine.low %v14314_v29, %v14316_v42 }
 0x3ba   : > { %5347 = vmatpush1.bf16.msra.mxu1 %v11734_v15  ;;  %v14340_v2 = vadd.f32 %v3640_v58, %v3528_v34  ;;  %v2874_v23 = vpop.f32.mrf.mxu0  ;;  %v3336_v28 = vpop.f32.mrf.mxu1  ;;  %4847 = vmatmul.mubr.bf16.gmra.mxu0 %v16334_v41  ;;  %v14345_v15 = vld [vmem:[#allocation10 + $0xd8] sm:$0xff]  ;;  %v3481_v12 = vunpack.c.l.bf16 %v2951_v31  ;;  %v3482_v24 = vunpack.c.h.bf16 %v2951_v31  ;;  %v11745_v47 = vcombine.high %v14334_v35, %v14336_v14  ;;  %v14358_v31 = vld [vmem:[#allocation7 + $0x20] sm:$0xff] }
 0x3bb   : > { %5348 = vmatprep.subr.bf16.mxu1 %v11733_v21  ;;  %v3497_v36 = vunpack.c.l.bf16 %v3401_v19  ;;  %v3498_v27 = vunpack.c.h.bf16 %v3401_v19  ;;  %4856 = vmatprep.mubr.bf16.mxu0 %v16297_v1  ;;  %v3402_v55 = vpack.c.bf16 %v3336_v28, %v3332_v33  ;;  %v11730_v21 = vcombine.low %v14320_v57, %v14322_v40  ;;  %v14360_v33 = vld [vmem:[#allocation7 + $0x60] sm:$0xff]  ;;  %v14362_v46 = vld [vmem:[#allocation10 + $0x18] sm:$0xff] }
 0x3bc   : > { %5830 = vmatpush1.bf16.msra.mxu0 %v11748_v0  ;;  %v2876_v44 = vpop.f32.mrf.mxu0  ;;  %v3340_v45 = vpop.f32.mrf.mxu1  ;;  %v11729_v19 = vcombine.high %v14343_v30, %v14345_v15  ;;  %v3609_v0 = vunpack.c.l.bf16 %v2952_v13  ;;  %v3610_v8 = vunpack.c.h.bf16 %v2952_v13 }
 0x3bd   : > { %5168 = vmatmul.mubr.bf16.gmra.mxu1 %v16335_v39  ;;  %5831 = vmatprep.subr.bf16.mxu0 %v11747_v22  ;;  %v3513_v29 = vmul.f32 %v3497_v36, %v3481_v12  ;;  %v3514_v42 = vmul.f32 %v3498_v27, %v3482_v24  ;;  %v3625_v34 = vunpack.c.l.bf16 %v3402_v55  ;;  %v3626_v57 = vunpack.c.h.bf16 %v3402_v55  ;;  %v5245_v22 = vld [vmem:[#allocation10 + $0x58] sm:$0xff] }
 0x3be   : > { %5177 = vmatprep.mubr.bf16.mxu1 %v16297_v1  ;;  %5349 = vmatpush1.bf16.msra.mxu1 %v11732_v48  ;;  %v2878_v40 = vpop.f32.mrf.mxu0  ;;  %v3342_v58 = vpop.f32.mrf.mxu1  ;;  %v11744_v24 = vcombine.low %v14334_v35, %v14336_v14 }
 0x3bf   : > { %5350 = vmatprep.subr.bf16.mxu1 %v11731_v51  ;;  %v3529_v28 = vadd.f32 %v3513_v29, %v14109_v59  ;;  %v3530_v48 = vadd.f32 %v3514_v42, %v14111_v6  ;;  %v2953_v12 = vpack.c.bf16 %v2878_v40, %v2874_v23  ;;  %v3641_v36 = vmul.f32 %v3625_v34, %v3609_v0  ;;  %v14380_v29 = vld [vmem:[#allocation8 + $0x3e0] sm:$0xff] }
 0x3c0   : > { %5832 = vmatpush1.bf16.msra.mxu0 %v11746_v7  ;;  %v3642_v27 = vmul.f32 %v3626_v57, %v3610_v8  ;;  %v2880_v13 = vpop.f32.mrf.mxu0  ;;  %v3344_v39 = vpop.f32.mrf.mxu1  ;;  %v11743_v51 = vcombine.high %v14358_v31, %v14360_v33  ;;  %v11728_v59 = vcombine.low %v14343_v30, %v14345_v15  ;;  %v11727_v6 = vcombine.high %v14362_v46, %v5245_v22 }
 0x3c1   : > { %5833 = vmatprep.subr.bf16.mxu0 %v11745_v47  ;;  %v2954_v55 = vpack.c.bf16 %v2880_v13, %v2876_v44  ;;  %v3403_v41 = vpack.c.bf16 %v3344_v39, %v3340_v45  ;;  %v14373_v23 = vadd.f32 %v3641_v36, %v3529_v28  ;;  %v14378_v47 = vld [vmem:[#allocation8 + $0x3a0] sm:$0xff]  ;;  %v11742_v44 = vcombine.low %v14358_v31, %v14360_v33 }
 0x3c2   : > { %5351 = vmatpush1.bf16.msra.mxu1 %v11730_v21  ;;  %v14375_v7 = vadd.f32 %v3642_v27, %v3530_v48  ;;  %v2884_v35 = vpop.f32.mrf.mxu0  ;;  %v3346_v14 = vpop.f32.mrf.mxu1  ;;  %4857 = vmatmul.mubr.bf16.gmra.mxu0 %v13658_v10  ;;  %v3483_v45 = vunpack.c.l.bf16 %v2953_v12  ;;  %v3484_v30 = vunpack.c.h.bf16 %v2953_v12  ;;  %v11805_v8 = vcombine.high %v14303_v62, %v14306_v54 }
 0x3c3   : > { %5352 = vmatprep.subr.bf16.mxu1 %v11729_v19  ;;  %v3499_v15 = vunpack.c.l.bf16 %v3403_v41  ;;  %v3500_v39 = vunpack.c.h.bf16 %v3403_v41  ;;  %4866 = vmatprep.mubr.bf16.mxu0 %v16297_v1  ;;  %v3404_v21 = vpack.c.bf16 %v3346_v14, %v3342_v58  ;;  %v11726_v19 = vcombine.low %v14362_v46, %v5245_v22 }
 0x3c4   : > { %5834 = vmatpush1.bf16.msra.mxu0 %v11744_v24  ;;  %v2886_v42 = vpop.f32.mrf.mxu0  ;;  %v3350_v0 = vpop.f32.mrf.mxu1  ;;  %v11773_v41 = vcombine.high %v14378_v47, %v14380_v29  ;;  %v3611_v33 = vunpack.c.l.bf16 %v2954_v55  ;;  %v3612_v57 = vunpack.c.h.bf16 %v2954_v55 }
 0x3c5   : > { %5178 = vmatmul.mubr.bf16.gmra.mxu1 %v13661_v52  ;;  %5835 = vmatprep.subr.bf16.mxu0 %v11743_v51  ;;  %v3515_v34 = vmul.f32 %v3499_v15, %v3483_v45  ;;  %v3516_v31 = vmul.f32 %v3500_v39, %v3484_v30  ;;  %v3627_v40 = vunpack.c.l.bf16 %v3404_v21  ;;  %v3628_v58 = vunpack.c.h.bf16 %v3404_v21 }
 0x3c6   : > { %5187 = vmatprep.mubr.bf16.mxu1 %v16297_v1  ;;  %5353 = vmatpush1.bf16.msra.mxu1 %v11728_v59  ;;  %v2888_v28 = vpop.f32.mrf.mxu0  ;;  %v3352_v48 = vpop.f32.mrf.mxu1 }
 0x3c7   : > { %5354 = vmatprep.subr.bf16.mxu1 %v11727_v6  ;;  %v3531_v46 = vadd.f32 %v3515_v34, %v14125_v53  ;;  %v3532_v22 = vadd.f32 %v3516_v31, %v14127_v38  ;;  %v2955_v12 = vpack.c.bf16 %v2888_v28, %v2884_v35  ;;  %v3643_v24 = vmul.f32 %v3627_v40, %v3611_v33 }
 0x3c8   : > { %5836 = vmatpush1.bf16.msra.mxu0 %v11742_v44  ;;  %v3644_v36 = vmul.f32 %v3628_v58, %v3612_v57  ;;  %v2890_v27 = vpop.f32.mrf.mxu0  ;;  %v3354_v13 = vpop.f32.mrf.mxu1 }
 0x3c9   : > { %6848 = vmatprep.subr.bf16.mxu0 %v11805_v8  ;;  %v2956_v51 = vpack.c.bf16 %v2890_v27, %v2886_v42  ;;  %v3405_v59 = vpack.c.bf16 %v3354_v13, %v3350_v0  ;;  %v14394_v55 = vadd.f32 %v3643_v24, %v3531_v46  ;;  %v3485_v53 = vunpack.c.l.bf16 %v2955_v12 }
 0x3ca   : > { %5355 = vmatpush1.bf16.msra.mxu1 %v11726_v19  ;;  %v14396_v14 = vadd.f32 %v3644_v36, %v3532_v22  ;;  %v2894_v45 = vpop.f32.mrf.mxu0  ;;  %v3356_v6 = vpop.f32.mrf.mxu1  ;;  %4867 = vmatmul.mubr.bf16.gmra.mxu0 %v13682_v37  ;;  %v3486_v38 = vunpack.c.h.bf16 %v2955_v12 }
 0x3cb   : > { %6142 = vmatprep.subr.bf16.mxu1 %v11773_v41  ;;  %v3501_v35 = vunpack.c.l.bf16 %v3405_v59  ;;  %v3502_v44 = vunpack.c.h.bf16 %v3405_v59  ;;  %4876 = vmatprep.mubr.bf16.mxu0 %v16297_v1  ;;  %v3406_v30 = vpack.c.bf16 %v3356_v6, %v3352_v48  ;;  %v3613_v0 = vunpack.c.l.bf16 %v2956_v51 }
 0x3cc   : > { %v2896_v15 = vpop.f32.mrf.mxu0  ;;  %v3360_v39 = vpop.f32.mrf.mxu1  ;;  %v3614_v19 = vunpack.c.h.bf16 %v2956_v51 }
 0x3cd   : > { %5188 = vmatmul.mubr.bf16.gmra.mxu1 %v13685_v26  ;;  %v3517_v21 = vmul.f32 %v3501_v35, %v3485_v53  ;;  %v3518_v42 = vmul.f32 %v3502_v44, %v3486_v38  ;;  %v3629_v8 = vunpack.c.l.bf16 %v3406_v30  ;;  %v3630_v34 = vunpack.c.h.bf16 %v3406_v30 }
 0x3ce   : > { %5197 = vmatprep.mubr.bf16.mxu1 %v16297_v1  ;;  %v2898_v31 = vpop.f32.mrf.mxu0  ;;  %v3362_v41 = vpop.f32.mrf.mxu1 }
 0x3cf   : > { %v3533_v33 = vadd.f32 %v3517_v21, %v14133_v56  ;;  %v3534_v57 = vadd.f32 %v3518_v42, %v14135_v11  ;;  %v2957_v40 = vpack.c.bf16 %v2898_v31, %v2894_v45  ;;  %v3645_v58 = vmul.f32 %v3629_v8, %v3613_v0 }
 0x3d0   : > { %v3646_v28 = vmul.f32 %v3630_v34, %v3614_v19  ;;  %v2900_v48 = vpop.f32.mrf.mxu0  ;;  %v3364_v46 = vpop.f32.mrf.mxu1 }
 0x3d1   : > { %v2958_v22 = vpack.c.bf16 %v2900_v48, %v2896_v15  ;;  %v3407_v12 = vpack.c.bf16 %v3364_v46, %v3360_v39  ;;  %v14404_v24 = vadd.f32 %v3645_v58, %v3533_v33 }
 0x3d2   : > { %v14406_v36 = vadd.f32 %v3646_v28, %v3534_v57  ;;  %v2904_v27 = vpop.f32.mrf.mxu0  ;;  %v3366_v13 = vpop.f32.mrf.mxu1  ;;  %4877 = vmatmul.mubr.bf16.gmra.mxu0 %v13698_v20 }
 0x3d3   : > { %4886 = vmatprep.mubr.bf16.mxu0 %v16297_v1  ;;  %v3408_v56 = vpack.c.bf16 %v3366_v13, %v3362_v41  ;;  %12957 = vmac.bf16.f32.vacc3 %v3407_v12, %v2957_v40  ;;  %v6059_v13 = vld [vmem:[#allocation8 + $0x360] sm:$0xff] }
 0x3d4   : > { %v2906_v51 = vpop.f32.mrf.mxu0  ;;  %v3370_v11 = vpop.f32.mrf.mxu1 }
 0x3d5   : > { %5198 = vmatmul.mubr.bf16.gmra.mxu1 %v13701_v9  ;;  %12958 = vmac.bf16.f32.vacc3 %v3408_v56, %v2958_v22 }
 0x3d6   : > { %5207 = vmatprep.mubr.bf16.mxu1 %v16297_v1  ;;  %v2908_v59 = vpop.f32.mrf.mxu0  ;;  %v3372_v45 = vpop.f32.mrf.mxu1 }
 0x3d7   : > { %v2959_v6 = vpack.c.bf16 %v2908_v59, %v2904_v27  ;;  %v6058_v27 = vld [vmem:[#allocation8 + $0x320] sm:$0xff] }
 0x3d8   : > { %v2910_v53 = vpop.f32.mrf.mxu0  ;;  %v3374_v38 = vpop.f32.mrf.mxu1 }
 0x3d9   : > { %v2960_v35 = vpack.c.bf16 %v2910_v53, %v2906_v51  ;;  %v3409_v44 = vpack.c.bf16 %v3374_v38, %v3370_v11  ;;  %v16336_v38 = vld [vmem:[#allocation32_spill] sm:$0xff] }
 0x3da   : > { %v2914_v30 = vpop.f32.mrf.mxu0  ;;  %v3376_v15 = vpop.f32.mrf.mxu1  ;;  %4887 = vmatmul.mubr.bf16.gmra.mxu0 %v13714_v18 }
 0x3db   : > { %4896 = vmatprep.mubr.bf16.mxu0 %v16297_v1  ;;  %v3410_v39 = vpack.c.bf16 %v3376_v15, %v3372_v45  ;;  %12925 = vmac.bf16.f32.vacc2 %v3409_v44, %v2959_v6  ;;  %v11772_v45 = vcombine.low %v14378_v47, %v14380_v29  ;;  %v6056_v44 = vld [vmem:[#allocation8 + $0x2a0] sm:$0xff] }
 0x3dc   : > { %v2916_v21 = vpop.f32.mrf.mxu0  ;;  %v3380_v42 = vpop.f32.mrf.mxu1 }
 0x3dd   : > { %5208 = vmatmul.mubr.bf16.gmra.mxu1 %v13717_v63  ;;  %12926 = vmac.bf16.f32.vacc2 %v3410_v39, %v2960_v35  ;;  %v11771_v35 = vcombine.high %v6058_v27, %v6059_v13 }
 0x3de   : > { %5217 = vmatprep.mubr.bf16.mxu1 %v16297_v1  ;;  %v2918_v0 = vpop.f32.mrf.mxu0  ;;  %v3382_v19 = vpop.f32.mrf.mxu1 }
 0x3df   : > { %v2961_v8 = vpack.c.bf16 %v2918_v0, %v2914_v30  ;;  %v6057_v30 = vld [vmem:[#allocation8 + $0x2e0] sm:$0xff]  ;;  %v11770_v0 = vcombine.low %v6058_v27, %v6059_v13 }
 0x3e0   : > { %v2920_v34 = vpop.f32.mrf.mxu0  ;;  %v3384_v31 = vpop.f32.mrf.mxu1  ;;  %v11769_v47 = vcombine.high %v6056_v44, %v6057_v30  ;;  %v6052_v27 = vld [vmem:[#allocation8 + $0x1a0] sm:$0xff] }
 0x3e1   : > { %v2962_v41 = vpack.c.bf16 %v2920_v34, %v2916_v21  ;;  %v3411_v33 = vpack.c.bf16 %v3384_v31, %v3380_v42  ;;  %v16337_v42 = vld [vmem:[#allocation33_spill] sm:$0xff]  ;;  %v6054_v34 = vld [vmem:[#allocation8 + $0x220] sm:$0xff] }
 0x3e2   : > { %v2924_v57 = vpop.f32.mrf.mxu0  ;;  %v3386_v40 = vpop.f32.mrf.mxu1  ;;  %4897 = vmatmul.mubr.bf16.gmra.mxu0 %v13732_v32  ;;  %v6055_v31 = vld [vmem:[#allocation8 + $0x260] sm:$0xff] }
 0x3e3   : > { %4906 = vmatprep.mubr.bf16.mxu0 %v16297_v1  ;;  %v3412_v58 = vpack.c.bf16 %v3386_v40, %v3382_v19  ;;  %12893 = vmac.bf16.f32.vacc1 %v3411_v33, %v2961_v8  ;;  %v6053_v13 = vld [vmem:[#allocation8 + $0x1e0] sm:$0xff] }
 0x3e4   : > { %v2926_v28 = vpop.f32.mrf.mxu0  ;;  %v3390_v48 = vpop.f32.mrf.mxu1 }
 0x3e5   : > { %5218 = vmatmul.mubr.bf16.gmra.mxu1 %v13738_v43  ;;  %12894 = vmac.bf16.f32.vacc1 %v3412_v58, %v2962_v41  ;;  %v11768_v58 = vcombine.low %v6056_v44, %v6057_v30 }
 0x3e6   : > { %5372 = vmatprep.mubr.bf16.mxu1 %v16297_v1  ;;  %v2928_v46 = vpop.f32.mrf.mxu0  ;;  %v3392_v22 = vpop.f32.mrf.mxu1 }
 0x3e7   : > { %v2963_v12 = vpack.c.bf16 %v2928_v46, %v2924_v57  ;;  %v16338_v46 = vld [vmem:[#allocation34_spill] sm:$0xff] }
 0x3e8   : > { %v2930_v56 = vpop.f32.mrf.mxu0  ;;  %v3394_v51 = vpop.f32.mrf.mxu1 }
 0x3e9   : > { %v2964_v11 = vpack.c.bf16 %v2930_v56, %v2926_v28  ;;  %v3413_v59 = vpack.c.bf16 %v3394_v51, %v3390_v48 }
 0x3ea   : > { %v3396_v6 = vpop.f32.mrf.mxu1  ;;  %v3801_v53 = vpop.f32.mrf.mxu0  ;;  %4907 = vmatmul.mubr.bf16.gmra.mxu0 %v16336_v38 }
 0x3eb   : > { %4916 = vmatprep.mubr.bf16.mxu0 %v16297_v1  ;;  %v3414_v15 = vpack.c.bf16 %v3396_v6, %v3392_v22  ;;  %12861 = vmac.bf16.f32.vacc0 %v3413_v59, %v2963_v12  ;;  %v11767_v22 = vcombine.high %v6054_v34, %v6055_v31 }
 0x3ec   : > { %v3803_v39 = vpop.f32.mrf.mxu0 }
 0x3ed   : > { %v4122_v21 = vpop.f32.mrf.mxu1  ;;  %5373 = vmatmul.mubr.bf16.vlgmr.msra.gmra.mxu1 %v16337_v42  ;;  %12862 = vmac.bf16.f32.vacc0 %v3414_v15, %v2964_v11  ;;  %v11766_v11 = vcombine.low %v6054_v34, %v6055_v31  ;;  %v11765_v15 = vcombine.high %v6052_v27, %v6053_v13  ;;  %v6051_v34 = vld [vmem:[#allocation8 + $0x160] sm:$0xff] }
 0x3ee   : > { %6143 = vmatpush1.bf16.msra.mxu1 %v11772_v45  ;;  %5382 = vmatprep.mubr.bf16.mxu1 %v16297_v1  ;;  %v3805_v29 = vpop.f32.mrf.mxu0 }
 0x3ef   : > { %v4124_v19 = vpop.f32.mrf.mxu1  ;;  %6144 = vmatprep.subr.bf16.mxu1 %v11771_v35  ;;  %v3960_v8 = vpack.c.bf16 %v3805_v29, %v3801_v53  ;;  %v16339_v35 = vld [vmem:[#allocation35_spill] sm:$0xff] }
 0x3f0   : > { %v3807_v41 = vpop.f32.mrf.mxu0 }
 0x3f1   : > { %v4126_v33 = vpop.f32.mrf.mxu1  ;;  %v3961_v57 = vpack.c.bf16 %v3807_v41, %v3803_v39  ;;  %v4442_v56 = vunpack.c.l.bf16 %v3960_v8  ;;  %v4443_v12 = vunpack.c.h.bf16 %v3960_v8 }
 0x3f2   : > { %v4201_v40 = vpack.c.bf16 %v4126_v33, %v4122_v21  ;;  %6145 = vmatpush1.bf16.msra.mxu1 %v11770_v0  ;;  %v3811_v28 = vpop.f32.mrf.mxu0  ;;  %4917 = vmatmul.mubr.bf16.gmra.mxu0 %v16338_v46 }
 0x3f3   : > { %v4128_v48 = vpop.f32.mrf.mxu1  ;;  %6146 = vmatprep.subr.bf16.mxu1 %v11769_v47  ;;  %4926 = vmatprep.mubr.bf16.mxu0 %v16297_v1  ;;  %v4570_v39 = vunpack.c.l.bf16 %v3961_v57  ;;  %v4571_v21 = vunpack.c.h.bf16 %v3961_v57  ;;  %v11764_v57 = vcombine.low %v6052_v27, %v6053_v13 }
 0x3f4   : > { %v4458_v51 = vunpack.c.l.bf16 %v4201_v40  ;;  %v4459_v59 = vunpack.c.h.bf16 %v4201_v40  ;;  %v4202_v45 = vpack.c.bf16 %v4128_v48, %v4124_v19  ;;  %v3813_v6 = vpop.f32.mrf.mxu0  ;;  %v6050_v40 = vld [vmem:[#allocation8 + $0x120] sm:$0xff] }
 0x3f5   : > { %v4132_v53 = vpop.f32.mrf.mxu1  ;;  %5383 = vmatmul.mubr.bf16.gmra.mxu1 %v16339_v35 }
 0x3f6   : > { %v4474_v44 = vmul.f32 %v4458_v51, %v4442_v56  ;;  %v4475_v30 = vmul.f32 %v4459_v59, %v4443_v12  ;;  %5392 = vmatprep.mubr.bf16.mxu1 %v16297_v1  ;;  %6147 = vmatpush1.bf16.msra.mxu1 %v11768_v58  ;;  %v4586_v0 = vunpack.c.l.bf16 %v4202_v45  ;;  %v4587_v47 = vunpack.c.h.bf16 %v4202_v45  ;;  %v3815_v29 = vpop.f32.mrf.mxu0 }
 0x3f7   : > { %v4134_v8 = vpop.f32.mrf.mxu1  ;;  %6148 = vmatprep.subr.bf16.mxu1 %v11767_v22  ;;  %v3962_v33 = vpack.c.bf16 %v3815_v29, %v3811_v28  ;;  %v6048_v28 = vld [vmem:[#allocation8 + $0xa0] sm:$0xff] }
 0x3f8   : > { %v4490_v19 = vadd.f32 %v4474_v44, %v14161_v25  ;;  %v4491_v41 = vadd.f32 %v4475_v30, %v14163_v17  ;;  %v4602_v31 = vmul.f32 %v4586_v0, %v4570_v39  ;;  %v4603_v48 = vmul.f32 %v4587_v47, %v4571_v21  ;;  %v3817_v56 = vpop.f32.mrf.mxu0  ;;  %v16340_v25 = vld [vmem:[#allocation36_spill] sm:$0xff]  ;;  %v6049_v44 = vld [vmem:[#allocation8 + $0xe0] sm:$0xff] }
 0x3f9   : > { %v4136_v12 = vpop.f32.mrf.mxu1  ;;  %v3963_v58 = vpack.c.bf16 %v3817_v56, %v3813_v6  ;;  %v11763_v17 = vcombine.high %v6050_v40, %v6051_v34  ;;  %v4444_v30 = vunpack.c.l.bf16 %v3962_v33  ;;  %v4445_v39 = vunpack.c.h.bf16 %v3962_v33 }
 0x3fa   : > { %v4203_v51 = vpack.c.bf16 %v4136_v12, %v4132_v53  ;;  %6149 = vmatpush1.bf16.msra.mxu1 %v11766_v11  ;;  %v14432_v59 = vadd.f32 %v4602_v31, %v4490_v19  ;;  %v14434_v45 = vadd.f32 %v4603_v48, %v4491_v41  ;;  %v3821_v22 = vpop.f32.mrf.mxu0  ;;  %4927 = vmatmul.mubr.bf16.gmra.mxu0 %v16340_v25  ;;  %v16341_v53 = vld [vmem:[#allocation37_spill] sm:$0xff] }
 0x3fb   : > { %v4138_v35 = vpop.f32.mrf.mxu1  ;;  %6150 = vmatprep.subr.bf16.mxu1 %v11765_v15  ;;  %4936 = vmatprep.mubr.bf16.mxu0 %v16297_v1  ;;  %v11762_v11 = vcombine.low %v6050_v40, %v6051_v34  ;;  %v11761_v15 = vcombine.high %v6048_v28, %v6049_v44  ;;  %v4572_v19 = vunpack.c.l.bf16 %v3963_v58  ;;  %v4573_v41 = vunpack.c.h.bf16 %v3963_v58  ;;  %v6047_v40 = vld [vmem:[#allocation8 + $0x60] sm:$0xff] }
 0x3fc   : > { %v4460_v21 = vunpack.c.l.bf16 %v4203_v51  ;;  %v4461_v0 = vunpack.c.h.bf16 %v4203_v51  ;;  %v4204_v6 = vpack.c.bf16 %v4138_v35, %v4134_v8  ;;  %v3823_v27 = vpop.f32.mrf.mxu0  ;;  %v6046_v51 = vld [vmem:[#allocation8 + $0x20] sm:$0xff]  ;;  %v11760_v58 = vcombine.low %v6048_v28, %v6049_v44 }
 0x3fd   : > { %v4142_v13 = vpop.f32.mrf.mxu1  ;;  %5393 = vmatmul.mubr.bf16.gmra.mxu1 %v16341_v53 }
 0x3fe   : > { %v4476_v47 = vmul.f32 %v4460_v21, %v4444_v30  ;;  %v4477_v29 = vmul.f32 %v4461_v0, %v4445_v39  ;;  %5402 = vmatprep.mubr.bf16.mxu1 %v16297_v1  ;;  %6151 = vmatpush1.bf16.msra.mxu1 %v11764_v57  ;;  %v4588_v31 = vunpack.c.l.bf16 %v4204_v6  ;;  %v4589_v33 = vunpack.c.h.bf16 %v4204_v6  ;;  %v3825_v48 = vpop.f32.mrf.mxu0 }
 0x3ff   : > { %v4144_v56 = vpop.f32.mrf.mxu1  ;;  %6152 = vmatprep.subr.bf16.mxu1 %v11763_v17  ;;  %v3964_v12 = vpack.c.bf16 %v3825_v48, %v3821_v22  ;;  %v14449_v22 = vld [vmem:[#allocation10 + $0x3e0] sm:$0xff] }
 0x400   : > { %v4492_v35 = vadd.f32 %v4476_v47, %v14171_v4  ;;  %v4493_v8 = vadd.f32 %v4477_v29, %v14173_v49  ;;  %v4604_v34 = vmul.f32 %v4588_v31, %v4572_v19  ;;  %v4605_v30 = vmul.f32 %v4589_v33, %v4573_v41  ;;  %v3827_v39 = vpop.f32.mrf.mxu0  ;;  %v14447_v49 = vld [vmem:[#allocation10 + $0x3a0] sm:$0xff] }
 0x401   : > { %v4146_v21 = vpop.f32.mrf.mxu1  ;;  %v3965_v57 = vpack.c.bf16 %v3827_v39, %v3823_v27  ;;  %v11759_v4 = vcombine.high %v6046_v51, %v6047_v40  ;;  %v4446_v47 = vunpack.c.l.bf16 %v3964_v12  ;;  %v4447_v29 = vunpack.c.h.bf16 %v3964_v12 }
 0x402   : > { %v4205_v0 = vpack.c.bf16 %v4146_v21, %v4142_v13  ;;  %6153 = vmatpush1.bf16.msra.mxu1 %v11762_v11  ;;  %v14442_v53 = vadd.f32 %v4604_v34, %v4492_v35  ;;  %v14444_v6 = vadd.f32 %v4605_v30, %v4493_v8  ;;  %v3831_v17 = vpop.f32.mrf.mxu0  ;;  %4937 = vmatmul.mubr.bf16.gmra.mxu0 %v13815_v50 }
 0x403   : > { %v4148_v25 = vpop.f32.mrf.mxu1  ;;  %6154 = vmatprep.subr.bf16.mxu1 %v11761_v15  ;;  %4946 = vmatprep.mubr.bf16.mxu0 %v16297_v1  ;;  %v11758_v19 = vcombine.low %v6046_v51, %v6047_v40  ;;  %v11789_v15 = vcombine.high %v14447_v49, %v14449_v22  ;;  %v4574_v33 = vunpack.c.l.bf16 %v3965_v57  ;;  %v4575_v48 = vunpack.c.h.bf16 %v3965_v57 }
 0x404   : > { %v4462_v27 = vunpack.c.l.bf16 %v4205_v0  ;;  %v4463_v13 = vunpack.c.h.bf16 %v4205_v0  ;;  %v4206_v28 = vpack.c.bf16 %v4148_v25, %v4144_v56  ;;  %v3833_v44 = vpop.f32.mrf.mxu0 }
 0x405   : > { %v4152_v11 = vpop.f32.mrf.mxu1  ;;  %5403 = vmatmul.mubr.bf16.gmra.mxu1 %v13817_v16 }
 0x406   : > { %v4478_v41 = vmul.f32 %v4462_v27, %v4446_v47  ;;  %v4479_v31 = vmul.f32 %v4463_v13, %v4447_v29  ;;  %5412 = vmatprep.mubr.bf16.mxu1 %v16297_v1  ;;  %6155 = vmatpush1.bf16.msra.mxu1 %v11760_v58  ;;  %v4590_v35 = vunpack.c.l.bf16 %v4206_v28  ;;  %v4591_v8 = vunpack.c.h.bf16 %v4206_v28  ;;  %v3835_v12 = vpop.f32.mrf.mxu0 }
 0x407   : > { %v4154_v34 = vpop.f32.mrf.mxu1  ;;  %6156 = vmatprep.subr.bf16.mxu1 %v11759_v4  ;;  %v3966_v51 = vpack.c.bf16 %v3835_v12, %v3831_v17  ;;  %v16345_v12 = vld [vmem:[#allocation55_spill] sm:$0xff] }
 0x408   : > { %v4494_v25 = vadd.f32 %v4478_v41, %v14187_v60  ;;  %v4495_v56 = vadd.f32 %v4479_v31, %v14189_v61  ;;  %v4606_v40 = vmul.f32 %v4590_v35, %v4574_v33  ;;  %v4607_v30 = vmul.f32 %v4591_v8, %v4575_v48  ;;  %v3837_v39 = vpop.f32.mrf.mxu0 }
 0x409   : > { %v4156_v21 = vpop.f32.mrf.mxu1  ;;  %v3967_v0 = vpack.c.bf16 %v3837_v39, %v3833_v44  ;;  %v4448_v60 = vunpack.c.l.bf16 %v3966_v51  ;;  %v4449_v4 = vunpack.c.h.bf16 %v3966_v51 }
 0x40a   : > { %v4207_v58 = vpack.c.bf16 %v4156_v21, %v4152_v11  ;;  %6157 = vmatpush1.bf16.msra.mxu1 %v11758_v19  ;;  %v14458_v47 = vadd.f32 %v4606_v40, %v4494_v25  ;;  %v14460_v57 = vadd.f32 %v4607_v30, %v4495_v56  ;;  %v3841_v29 = vpop.f32.mrf.mxu0  ;;  %4947 = vmatmul.mubr.bf16.gmra.mxu0 %v13837_v5  ;;  %v16344_v11 = vld [vmem:[#allocation41_spill] sm:$0xff]  ;;  %v16346_v56 = vld [vmem:[#allocation56_spill] sm:$0xff] }
 0x40b   : > { %v4158_v27 = vpop.f32.mrf.mxu1  ;;  %6367 = vmatprep.subr.bf16.mxu1 %v11789_v15  ;;  %4956 = vmatprep.mubr.bf16.mxu0 %v16297_v1  ;;  %v4576_v31 = vunpack.c.l.bf16 %v3967_v0  ;;  %v4577_v33 = vunpack.c.h.bf16 %v3967_v0 }
 0x40c   : > { %16342 = vst [vmem:[#allocation53_spill] sm:$0xff] %v14458_v47  ;;  %16343 = vst [vmem:[#allocation54_spill] sm:$0xff] %v14460_v57  ;;  %v4464_v61 = vunpack.c.l.bf16 %v4207_v58  ;;  %v4465_v17 = vunpack.c.h.bf16 %v4207_v58  ;;  %v4208_v13 = vpack.c.bf16 %v4158_v27, %v4154_v34  ;;  %v3843_v28 = vpop.f32.mrf.mxu0  ;;  %v14553_v57 = vld [vmem:[#allocation10 + $0x1a0] sm:$0xff] }
 0x40d   : > { %v4162_v44 = vpop.f32.mrf.mxu1  ;;  %5413 = vmatmul.mubr.bf16.gmra.mxu1 %v16344_v11 }
 0x40e   : > { %v4480_v19 = vmul.f32 %v4464_v61, %v4448_v60  ;;  %v4481_v41 = vmul.f32 %v4465_v17, %v4449_v4  ;;  %5422 = vmatprep.mubr.bf16.mxu1 %v16297_v1  ;;  %v4592_v48 = vunpack.c.l.bf16 %v4208_v13  ;;  %v4593_v35 = vunpack.c.h.bf16 %v4208_v13  ;;  %v3845_v15 = vpop.f32.mrf.mxu0  ;;  %v16349_v17 = vld [vmem:[#allocation42_spill] sm:$0xff] }
 0x40f   : > { %v4164_v8 = vpop.f32.mrf.mxu1  ;;  %v3968_v40 = vpack.c.bf16 %v3845_v15, %v3841_v29 }
 0x410   : > { %v4496_v25 = vadd.f32 %v4480_v19, %v16345_v12  ;;  %v4497_v51 = vadd.f32 %v4481_v41, %v16346_v56  ;;  %v4608_v34 = vmul.f32 %v4592_v48, %v4576_v31  ;;  %v4609_v30 = vmul.f32 %v4593_v35, %v4577_v33  ;;  %v3847_v39 = vpop.f32.mrf.mxu0  ;;  %v16350_v33 = vld [vmem:[#allocation43_spill] sm:$0xff] }
 0x411   : > { %v4166_v21 = vpop.f32.mrf.mxu1  ;;  %v3969_v58 = vpack.c.bf16 %v3847_v39, %v3843_v28  ;;  %v4450_v13 = vunpack.c.l.bf16 %v3968_v40  ;;  %v4451_v11 = vunpack.c.h.bf16 %v3968_v40  ;;  %v16351_v40 = vld [vmem:[#allocation57_spill] sm:$0xff] }
 0x412   : > { %v4209_v27 = vpack.c.bf16 %v4166_v21, %v4162_v44  ;;  %v14468_v60 = vadd.f32 %v4608_v34, %v4496_v25  ;;  %v14470_v4 = vadd.f32 %v4609_v30, %v4497_v51  ;;  %v3851_v0 = vpop.f32.mrf.mxu0  ;;  %4957 = vmatmul.mubr.bf16.gmra.mxu0 %v16349_v17  ;;  %v16352_v30 = vld [vmem:[#allocation58_spill] sm:$0xff] }
 0x413   : > { %v4168_v61 = vpop.f32.mrf.mxu1  ;;  %4966 = vmatprep.mubr.bf16.mxu0 %v16297_v1  ;;  %v4578_v48 = vunpack.c.l.bf16 %v3969_v58  ;;  %v4579_v35 = vunpack.c.h.bf16 %v3969_v58 }
 0x414   : > { %16347 = vst [vmem:[#allocation32_spill] sm:$0xff] %v14468_v60  ;;  %16348 = vst [vmem:[#allocation33_spill] sm:$0xff] %v14470_v4  ;;  %v4466_v19 = vunpack.c.l.bf16 %v4209_v27  ;;  %v4467_v12 = vunpack.c.h.bf16 %v4209_v27  ;;  %v4210_v29 = vpack.c.bf16 %v4168_v61, %v4164_v8  ;;  %v3853_v41 = vpop.f32.mrf.mxu0 }
 0x415   : > { %v4172_v31 = vpop.f32.mrf.mxu1  ;;  %5423 = vmatmul.mubr.bf16.gmra.mxu1 %v16350_v33 }
 0x416   : > { %v4482_v28 = vmul.f32 %v4466_v19, %v4450_v13  ;;  %v4483_v44 = vmul.f32 %v4467_v12, %v4451_v11  ;;  %5432 = vmatprep.mubr.bf16.mxu1 %v16297_v1  ;;  %v4594_v15 = vunpack.c.l.bf16 %v4210_v29  ;;  %v4595_v25 = vunpack.c.h.bf16 %v4210_v29  ;;  %v3855_v56 = vpop.f32.mrf.mxu0  ;;  %v16355_v29 = vld [vmem:[#allocation44_spill] sm:$0xff] }
 0x417   : > { %v4174_v51 = vpop.f32.mrf.mxu1  ;;  %v3970_v21 = vpack.c.bf16 %v3855_v56, %v3851_v0 }
 0x418   : > { %v4498_v34 = vadd.f32 %v4482_v28, %v16351_v40  ;;  %v4499_v39 = vadd.f32 %v4483_v44, %v16352_v30  ;;  %v4610_v8 = vmul.f32 %v4594_v15, %v4578_v48  ;;  %v4611_v27 = vmul.f32 %v4595_v25, %v4579_v35  ;;  %v3857_v61 = vpop.f32.mrf.mxu0  ;;  %v16356_v35 = vld [vmem:[#allocation45_spill] sm:$0xff] }
 0x419   : > { %v4176_v17 = vpop.f32.mrf.mxu1  ;;  %v3971_v33 = vpack.c.bf16 %v3857_v61, %v3853_v41  ;;  %v4452_v4 = vunpack.c.l.bf16 %v3970_v21  ;;  %v4453_v60 = vunpack.c.h.bf16 %v3970_v21 }
 0x41a   : > { %v4211_v13 = vpack.c.bf16 %v4176_v17, %v4172_v31  ;;  %v14478_v11 = vadd.f32 %v4610_v8, %v4498_v34  ;;  %v14480_v19 = vadd.f32 %v4611_v27, %v4499_v39  ;;  %v3861_v58 = vpop.f32.mrf.mxu0  ;;  %4967 = vmatmul.mubr.bf16.gmra.mxu0 %v16355_v29  ;;  %v16357_v39 = vld [vmem:[#allocation48_spill] sm:$0xff]  ;;  %v16358_v8 = vld [vmem:[#allocation49_spill] sm:$0xff] }
 0x41b   : > { %v4178_v12 = vpop.f32.mrf.mxu1  ;;  %4976 = vmatprep.mubr.bf16.mxu0 %v16297_v1  ;;  %v4580_v31 = vunpack.c.l.bf16 %v3971_v33  ;;  %v4581_v15 = vunpack.c.h.bf16 %v3971_v33 }
 0x41c   : > { %16353 = vst [vmem:[#allocation34_spill] sm:$0xff] %v14478_v11  ;;  %16354 = vst [vmem:[#allocation55_spill] sm:$0xff] %v14480_v19  ;;  %v4468_v28 = vunpack.c.l.bf16 %v4211_v13  ;;  %v4469_v40 = vunpack.c.h.bf16 %v4211_v13  ;;  %v4212_v0 = vpack.c.bf16 %v4178_v12, %v4174_v51  ;;  %v3863_v44 = vpop.f32.mrf.mxu0 }
 0x41d   : > { %v4182_v48 = vpop.f32.mrf.mxu1  ;;  %5433 = vmatmul.mubr.bf16.gmra.mxu1 %v16356_v35 }
 0x41e   : > { %v4484_v17 = vmul.f32 %v4468_v28, %v4452_v4  ;;  %v4485_v41 = vmul.f32 %v4469_v40, %v4453_v60  ;;  %5442 = vmatprep.mubr.bf16.mxu1 %v16297_v1  ;;  %v4596_v25 = vunpack.c.l.bf16 %v4212_v0  ;;  %v4597_v56 = vunpack.c.h.bf16 %v4212_v0  ;;  %v3865_v34 = vpop.f32.mrf.mxu0  ;;  %v16361_v0 = vld [vmem:[#allocation46_spill] sm:$0xff] }
 0x41f   : > { %v4184_v30 = vpop.f32.mrf.mxu1  ;;  %v3972_v61 = vpack.c.bf16 %v3865_v34, %v3861_v58 }
 0x420   : > { %v4500_v21 = vadd.f32 %v4484_v17, %v16357_v39  ;;  %v4501_v27 = vadd.f32 %v4485_v41, %v16358_v8  ;;  %v4612_v51 = vmul.f32 %v4596_v25, %v4580_v31  ;;  %v4613_v13 = vmul.f32 %v4597_v56, %v4581_v15  ;;  %v3867_v12 = vpop.f32.mrf.mxu0  ;;  %v16362_v15 = vld [vmem:[#allocation47_spill] sm:$0xff]  ;;  %v14498_v25 = vld [vmem:[#allocation7 + $0x368] sm:$0xff] }
 0x421   : > { %v4186_v29 = vpop.f32.mrf.mxu1  ;;  %v3973_v35 = vpack.c.bf16 %v3867_v12, %v3863_v44  ;;  %v4454_v19 = vunpack.c.l.bf16 %v3972_v61  ;;  %v4455_v11 = vunpack.c.h.bf16 %v3972_v61 }
 0x422   : > { %v4213_v4 = vpack.c.bf16 %v4186_v29, %v4182_v48  ;;  %v14488_v60 = vadd.f32 %v4612_v51, %v4500_v21  ;;  %v14490_v28 = vadd.f32 %v4613_v13, %v4501_v27  ;;  %v3871_v33 = vpop.f32.mrf.mxu0  ;;  %4977 = vmatmul.mubr.bf16.gmra.mxu0 %v16361_v0  ;;  %v14496_v48 = vld [vmem:[#allocation7 + $0x328] sm:$0xff]  ;;  %v16363_v51 = vld [vmem:[#allocation50_spill] sm:$0xff]  ;;  %v16364_v13 = vld [vmem:[#allocation51_spill] sm:$0xff] }
 0x423   : > { %v4188_v40 = vpop.f32.mrf.mxu1  ;;  %5853 = vmatprep.mubr.bf16.mxu0 %v16297_v1  ;;  %v4582_v56 = vunpack.c.l.bf16 %v3973_v35  ;;  %v4583_v34 = vunpack.c.h.bf16 %v3973_v35  ;;  %v11803_v35 = vcombine.high %v14496_v48, %v14498_v25 }
 0x424   : > { %16359 = vst [vmem:[#allocation56_spill] sm:$0xff] %v14488_v60  ;;  %16360 = vst [vmem:[#allocation57_spill] sm:$0xff] %v14490_v28  ;;  %v4470_v17 = vunpack.c.l.bf16 %v4213_v4  ;;  %v4471_v39 = vunpack.c.h.bf16 %v4213_v4  ;;  %v4214_v58 = vpack.c.bf16 %v4188_v40, %v4184_v30  ;;  %v3873_v41 = vpop.f32.mrf.mxu0  ;;  %v14502_v40 = vld [vmem:[#allocation10 + $0x320] sm:$0xff]  ;;  %v11788_v28 = vcombine.low %v14447_v49, %v14449_v22 }
 0x425   : > { %v4192_v31 = vpop.f32.mrf.mxu1  ;;  %5443 = vmatmul.mubr.bf16.gmra.mxu1 %v16362_v15  ;;  %v11802_v49 = vcombine.low %v14496_v48, %v14498_v25 }
 0x426   : > { %v4486_v29 = vmul.f32 %v4470_v17, %v4454_v19  ;;  %v4487_v44 = vmul.f32 %v4471_v39, %v4455_v11  ;;  %6174 = vmatprep.mubr.bf16.mxu1 %v16297_v1  ;;  %v4598_v21 = vunpack.c.l.bf16 %v4214_v58  ;;  %v4599_v8 = vunpack.c.h.bf16 %v4214_v58  ;;  %v3875_v27 = vpop.f32.mrf.mxu0  ;;  %v14504_v11 = vld [vmem:[#allocation10 + $0x360] sm:$0xff] }
 0x427   : > { %v4194_v61 = vpop.f32.mrf.mxu1  ;;  %v3974_v4 = vpack.c.bf16 %v3875_v27, %v3871_v33 }
 0x428   : > { %v4502_v30 = vadd.f32 %v4486_v29, %v16363_v51  ;;  %v4503_v12 = vadd.f32 %v4487_v44, %v16364_v13  ;;  %v4614_v19 = vmul.f32 %v4598_v21, %v4582_v56  ;;  %v4615_v17 = vmul.f32 %v4599_v8, %v4583_v34  ;;  %v3877_v39 = vpop.f32.mrf.mxu0  ;;  %v14510_v29 = vld [vmem:[#allocation7 + $0x2a8] sm:$0xff]  ;;  %v16367_v21 = vld [vmem:[#allocation26_spill] sm:$0xff] }
 0x429   : > { %v4196_v15 = vpop.f32.mrf.mxu1  ;;  %v3975_v0 = vpack.c.bf16 %v3877_v39, %v3873_v41  ;;  %v14512_v44 = vld [vmem:[#allocation7 + $0x2e8] sm:$0xff]  ;;  %v11787_v8 = vcombine.high %v14502_v40, %v14504_v11  ;;  %v14521_v41 = vld [vmem:[#allocation10 + $0x2a0] sm:$0xff]  ;;  %v4456_v22 = vunpack.c.l.bf16 %v3974_v4  ;;  %v16368_v13 = vcombine.low %v14303_v62, %v14306_v54 }
 0x42a   : > { %v4215_v58 = vpack.c.bf16 %v4196_v15, %v4192_v31  ;;  %v14514_v33 = vadd.f32 %v4614_v19, %v4502_v30  ;;  %v14516_v27 = vadd.f32 %v4615_v17, %v4503_v12  ;;  %v3881_v56 = vpop.f32.mrf.mxu0  ;;  %5854 = vmatmul.mubr.bf16.vlgmr.msra.gmra.mxu0 %v16367_v21  ;;  %v14523_v31 = vld [vmem:[#allocation10 + $0x2e0] sm:$0xff]  ;;  %v4457_v15 = vunpack.c.h.bf16 %v3974_v4  ;;  %v14539_v54 = vld [vmem:[#allocation7 + $0x228] sm:$0xff] }
 0x42b   : > { %v4198_v34 = vpop.f32.mrf.mxu1  ;;  %6849 = vmatpush1.bf16.msra.mxu0 %v16368_v13  ;;  %5863 = vmatprep.mubr.bf16.mxu0 %v16297_v1  ;;  %v16369_v39 = vld [vmem:[#allocation27_spill] sm:$0xff]  ;;  %v11786_v21 = vcombine.low %v14502_v40, %v14504_v11  ;;  %v11801_v48 = vcombine.high %v14510_v29, %v14512_v44  ;;  %v11785_v62 = vcombine.high %v14521_v41, %v14523_v31 }
 0x42c   : > { %16365 = vst [vmem:[#allocation58_spill] sm:$0xff] %v14514_v33  ;;  %16366 = vst [vmem:[#allocation48_spill] sm:$0xff] %v14516_v27  ;;  %v4472_v51 = vunpack.c.l.bf16 %v4215_v58  ;;  %v4473_v30 = vunpack.c.h.bf16 %v4215_v58  ;;  %v4216_v12 = vpack.c.bf16 %v4198_v34, %v4194_v61  ;;  %v3883_v19 = vpop.f32.mrf.mxu0  ;;  %6850 = vmatprep.subr.bf16.mxu0 %v11803_v35  ;;  %v14541_v61 = vld [vmem:[#allocation7 + $0x268] sm:$0xff]  ;;  %v4584_v58 = vunpack.c.l.bf16 %v3975_v0 }
 0x42d   : > { %v4347_v17 = vpop.f32.mrf.mxu1  ;;  %6175 = vmatmul.mubr.bf16.vlgmr.msra.gmra.mxu1 %v16369_v39  ;;  %v4585_v34 = vunpack.c.h.bf16 %v3975_v0  ;;  %v14543_v39 = vld [vmem:[#allocation10 + $0x220] sm:$0xff]  ;;  %v11800_v33 = vcombine.low %v14510_v29, %v14512_v44 }
 0x42e   : > { %v4488_v25 = vmul.f32 %v4472_v51, %v4456_v22  ;;  %v4489_v4 = vmul.f32 %v4473_v30, %v4457_v15  ;;  %6368 = vmatpush1.bf16.msra.mxu1 %v11788_v28  ;;  %6184 = vmatprep.mubr.bf16.mxu1 %v16297_v1  ;;  %v4600_v13 = vunpack.c.l.bf16 %v4216_v12  ;;  %v4601_v40 = vunpack.c.h.bf16 %v4216_v12  ;;  %v3885_v11 = vpop.f32.mrf.mxu0  ;;  %v14545_v22 = vld [vmem:[#allocation10 + $0x260] sm:$0xff]  ;;  %v16370_v28 = vld [vmem:[#allocation52_spill] sm:$0xff] }
 0x42f   : > { %v4349_v35 = vpop.f32.mrf.mxu1  ;;  %6369 = vmatprep.subr.bf16.mxu1 %v11787_v8  ;;  %v16371_v51 = vld [vmem:[#allocation59_spill] sm:$0xff]  ;;  %v3976_v27 = vpack.c.bf16 %v3885_v11, %v3881_v56  ;;  %6851 = vmatpush1.bf16.msra.mxu0 %v11802_v49  ;;  %v11784_v8 = vcombine.low %v14521_v41, %v14523_v31  ;;  %v11782_v56 = vcombine.low %v14543_v39, %v14545_v22  ;;  %v14563_v49 = vld [vmem:[#allocation7 + $0x1a8] sm:$0xff] }
 0x430   : > { %v4504_v15 = vadd.f32 %v4488_v25, %v16370_v28  ;;  %v4505_v30 = vadd.f32 %v4489_v4, %v16371_v51  ;;  %v4616_v60 = vmul.f32 %v4600_v13, %v4584_v58  ;;  %v4617_v0 = vmul.f32 %v4601_v40, %v4585_v34  ;;  %v3887_v5 = vpop.f32.mrf.mxu0  ;;  %6852 = vmatprep.subr.bf16.mxu0 %v11801_v48  ;;  %v14561_v44 = vld [vmem:[#allocation10 + $0x1e0] sm:$0xff]  ;;  %v14565_v41 = vld [vmem:[#allocation7 + $0x1e8] sm:$0xff]  ;;  %v16375_v51 = vld [vmem:[#allocation29_spill] sm:$0xff] }
 0x431   : > { %v4351_v12 = vpop.f32.mrf.mxu1  ;;  %v11799_v25 = vcombine.high %v14539_v54, %v14541_v61  ;;  %v3977_v28 = vpack.c.bf16 %v3887_v5, %v3883_v19  ;;  %v11783_v29 = vcombine.high %v14543_v39, %v14545_v22  ;;  %v16374_v19 = vld [vmem:[#allocation28_spill] sm:$0xff]  ;;  %v4506_v39 = vunpack.c.l.bf16 %v3976_v27 }
 0x432   : > { %v4426_v4 = vpack.c.bf16 %v4351_v12, %v4347_v17  ;;  %6370 = vmatpush1.bf16.msra.mxu1 %v11786_v21  ;;  %v14567_v31 = vadd.f32 %v4616_v60, %v4504_v15  ;;  %v14569_v48 = vadd.f32 %v4617_v0, %v4505_v30  ;;  %v3891_v58 = vpop.f32.mrf.mxu0  ;;  %5864 = vmatmul.mubr.bf16.gmra.mxu0 %v16374_v19  ;;  %v14574_v17 = vld [vmem:[#allocation7 + $0x3b0] sm:$0xff]  ;;  %v4507_v34 = vunpack.c.h.bf16 %v3976_v27  ;;  %v14587_v30 = vld [vmem:[#allocation7 + $0x168] sm:$0xff]  ;;  %v14591_v19 = vld [vmem:[#allocation10 + $0x120] sm:$0xff] }
 0x433   : > { %v4353_v5 = vpop.f32.mrf.mxu1  ;;  %6371 = vmatprep.subr.bf16.mxu1 %v11785_v62  ;;  %v11798_v21 = vcombine.low %v14539_v54, %v14541_v61  ;;  %5873 = vmatprep.mubr.bf16.mxu0 %v16297_v1  ;;  %v14577_v60 = vld [vmem:[#allocation7 + $0x3f0] sm:$0xff]  ;;  %v11781_v62 = vcombine.high %v14553_v57, %v14561_v44  ;;  %v11797_v54 = vcombine.high %v14563_v49, %v14565_v41  ;;  %v4634_v0 = vunpack.c.l.bf16 %v3977_v28 }
 0x434   : > { %16372 = vst [vmem:[#allocation49_spill] sm:$0xff] %v14567_v31  ;;  %16373 = vst [vmem:[#allocation50_spill] sm:$0xff] %v14569_v48  ;;  %v4522_v13 = vunpack.c.l.bf16 %v4426_v4  ;;  %v4523_v40 = vunpack.c.h.bf16 %v4426_v4  ;;  %6853 = vmatpush1.bf16.msra.mxu0 %v11800_v33  ;;  %v4427_v11 = vpack.c.bf16 %v4353_v5, %v4349_v35  ;;  %v3893_v22 = vpop.f32.mrf.mxu0  ;;  %v14585_v33 = vld [vmem:[#allocation7 + $0x128] sm:$0xff]  ;;  %v4635_v12 = vunpack.c.h.bf16 %v3977_v28 }
 0x435   : > { %v4357_v15 = vpop.f32.mrf.mxu1  ;;  %6185 = vmatmul.mubr.bf16.gmra.mxu1 %v16375_v51  ;;  %6854 = vmatprep.subr.bf16.mxu0 %v11799_v25 }
 0x436   : > { %v4538_v27 = vmul.f32 %v4522_v13, %v4506_v39  ;;  %v4539_v61 = vmul.f32 %v4523_v40, %v4507_v34  ;;  %6194 = vmatprep.mubr.bf16.mxu1 %v16297_v1  ;;  %6372 = vmatpush1.bf16.msra.mxu1 %v11784_v8  ;;  %v4650_v4 = vunpack.c.l.bf16 %v4427_v11  ;;  %v4651_v5 = vunpack.c.h.bf16 %v4427_v11  ;;  %v3895_v25 = vpop.f32.mrf.mxu0  ;;  %v14593_v39 = vld [vmem:[#allocation10 + $0x160] sm:$0xff] }
 0x437   : > { %v4359_v51 = vpop.f32.mrf.mxu1  ;;  %6373 = vmatprep.subr.bf16.mxu1 %v11783_v29  ;;  %v3978_v13 = vpack.c.bf16 %v3895_v25, %v3891_v58  ;;  %v11796_v40 = vcombine.low %v14563_v49, %v14565_v41  ;;  %v11795_v29 = vcombine.high %v14585_v33, %v14587_v30  ;;  %v14605_v58 = vld [vmem:[#allocation7 + $0xa8] sm:$0xff] }
 0x438   : > { %v4554_v8 = vadd.f32 %v4538_v27, %v14338_v3  ;;  %v4555_v34 = vadd.f32 %v4539_v61, %v14340_v2  ;;  %6855 = vmatpush1.bf16.msra.mxu0 %v11798_v21  ;;  %v4666_v35 = vmul.f32 %v4650_v4, %v4634_v0  ;;  %v4667_v28 = vmul.f32 %v4651_v5, %v4635_v12  ;;  %v3897_v48 = vpop.f32.mrf.mxu0  ;;  %v14607_v49 = vld [vmem:[#allocation7 + $0xe8] sm:$0xff]  ;;  %v16376_v61 = vld [vmem:[#allocation30_spill] sm:$0xff]  ;;  %v16377_v5 = vld [vmem:[#allocation31_spill] sm:$0xff] }
 0x439   : > { %v4361_v11 = vpop.f32.mrf.mxu1  ;;  %6856 = vmatprep.subr.bf16.mxu0 %v11797_v54  ;;  %v3979_v31 = vpack.c.bf16 %v3897_v48, %v3893_v22  ;;  %v11780_v3 = vcombine.low %v14553_v57, %v14561_v44  ;;  %v11779_v2 = vcombine.high %v14591_v19, %v14593_v39  ;;  %v14616_v48 = vld [vmem:[#allocation10 + $0xe0] sm:$0xff]  ;;  %v11794_v57 = vcombine.low %v14585_v33, %v14587_v30 }
 0x43a   : > { %v4428_v47 = vpack.c.bf16 %v4361_v11, %v4357_v15  ;;  %6374 = vmatpush1.bf16.msra.mxu1 %v11782_v56  ;;  %v14609_v41 = vadd.f32 %v4666_v35, %v4554_v8  ;;  %v14611_v21 = vadd.f32 %v4667_v28, %v4555_v34  ;;  %v3901_v54 = vpop.f32.mrf.mxu0  ;;  %5874 = vmatmul.mubr.bf16.gmra.mxu0 %v16376_v61  ;;  %v14614_v56 = vld [vmem:[#allocation10 + $0xa0] sm:$0xff]  ;;  %v4508_v44 = vunpack.c.l.bf16 %v3978_v13  ;;  %v14631_v8 = vld [vmem:[#allocation7 + $0x68] sm:$0xff] }
 0x43b   : > { %v4363_v27 = vpop.f32.mrf.mxu1  ;;  %6375 = vmatprep.subr.bf16.mxu1 %v11781_v62  ;;  %v4509_v22 = vunpack.c.h.bf16 %v3978_v13  ;;  %5883 = vmatprep.mubr.bf16.mxu0 %v16297_v1  ;;  %v11778_v62 = vcombine.low %v14591_v19, %v14593_v39  ;;  %v11793_v25 = vcombine.high %v14605_v58, %v14607_v49  ;;  %v4636_v34 = vunpack.c.l.bf16 %v3979_v31  ;;  %v14633_v11 = vld [vmem:[#allocation10 + $0x20] sm:$0xff] }
 0x43c   : > { %v4524_v15 = vunpack.c.l.bf16 %v4428_v47  ;;  %v4525_v0 = vunpack.c.h.bf16 %v4428_v47  ;;  %6857 = vmatpush1.bf16.msra.mxu0 %v11796_v40  ;;  %v4429_v35 = vpack.c.bf16 %v4363_v27, %v4359_v51  ;;  %v3903_v12 = vpop.f32.mrf.mxu0  ;;  %v11777_v47 = vcombine.high %v14614_v56, %v14616_v48  ;;  %v14629_v51 = vld [vmem:[#allocation7 + $0x28] sm:$0xff] }
 0x43d   : > { %v4367_v4 = vpop.f32.mrf.mxu1  ;;  %6195 = vmatmul.mubr.bf16.gmra.mxu1 %v16377_v5  ;;  %6858 = vmatprep.subr.bf16.mxu0 %v11795_v29  ;;  %v4637_v13 = vunpack.c.h.bf16 %v3979_v31  ;;  %v6272_v29 = vld [vmem:[#allocation10 + $0x60] sm:$0xff] }
 0x43e   : > { %v4540_v33 = vmul.f32 %v4524_v15, %v4508_v44  ;;  %v4541_v30 = vmul.f32 %v4525_v0, %v4509_v22  ;;  %6204 = vmatprep.mubr.bf16.mxu1 %v16297_v1  ;;  %6376 = vmatpush1.bf16.msra.mxu1 %v11780_v3  ;;  %v4652_v40 = vunpack.c.l.bf16 %v4429_v35  ;;  %v4653_v19 = vunpack.c.h.bf16 %v4429_v35  ;;  %v3905_v39 = vpop.f32.mrf.mxu0 }
 0x43f   : > { %v4369_v28 = vpop.f32.mrf.mxu1  ;;  %6377 = vmatprep.subr.bf16.mxu1 %v11779_v2  ;;  %v3980_v44 = vpack.c.bf16 %v3905_v39, %v3901_v54  ;;  %v11792_v22 = vcombine.low %v14605_v58, %v14607_v49  ;;  %v11791_v2 = vcombine.high %v14629_v51, %v14631_v8 }
 0x440   : > { %v4556_v27 = vadd.f32 %v4540_v33, %v14373_v23  ;;  %v4557_v3 = vadd.f32 %v4541_v30, %v14375_v7  ;;  %6859 = vmatpush1.bf16.msra.mxu0 %v11794_v57  ;;  %v4668_v15 = vmul.f32 %v4652_v40, %v4636_v34  ;;  %v4669_v0 = vmul.f32 %v4653_v19, %v4637_v13  ;;  %v3907_v31 = vpop.f32.mrf.mxu0  ;;  %v14651_v33 = vld [vmem:[#allocation8 + $0x3e8] sm:$0xff] }
 0x441   : > { %v4371_v5 = vpop.f32.mrf.mxu1  ;;  %6860 = vmatprep.subr.bf16.mxu0 %v11793_v25  ;;  %v3981_v35 = vpack.c.bf16 %v3907_v31, %v3903_v12  ;;  %v11776_v23 = vcombine.low %v14614_v56, %v14616_v48  ;;  %v11775_v7 = vcombine.high %v14633_v11, %v6272_v29  ;;  %v14649_v25 = vld [vmem:[#allocation8 + $0x3a8] sm:$0xff]  ;;  %v11790_v12 = vcombine.low %v14629_v51, %v14631_v8 }
 0x442   : > { %v4430_v61 = vpack.c.bf16 %v4371_v5, %v4367_v4  ;;  %6378 = vmatpush1.bf16.msra.mxu1 %v11778_v62  ;;  %v14644_v54 = vadd.f32 %v4668_v15, %v4556_v27  ;;  %v14646_v57 = vadd.f32 %v4669_v0, %v4557_v3  ;;  %v3911_v58 = vpop.f32.mrf.mxu0  ;;  %5884 = vmatmul.mubr.bf16.gmra.mxu0 %v13658_v10  ;;  %v4510_v4 = vunpack.c.l.bf16 %v3980_v44 }
 0x443   : > { %v4373_v49 = vpop.f32.mrf.mxu1  ;;  %6379 = vmatprep.subr.bf16.mxu1 %v11777_v47  ;;  %v4511_v56 = vunpack.c.h.bf16 %v3980_v44  ;;  %5893 = vmatprep.mubr.bf16.mxu0 %v16297_v1  ;;  %v11774_v47 = vcombine.low %v14633_v11, %v6272_v29  ;;  %v11853_v13 = vcombine.high %v14574_v17, %v14577_v60  ;;  %v4638_v8 = vunpack.c.l.bf16 %v3981_v35 }
 0x444   : > { %v4526_v48 = vunpack.c.l.bf16 %v4430_v61  ;;  %v4527_v5 = vunpack.c.h.bf16 %v4430_v61  ;;  %6861 = vmatpush1.bf16.msra.mxu0 %v11792_v22  ;;  %v4431_v62 = vpack.c.bf16 %v4373_v49, %v4369_v28  ;;  %v3913_v30 = vpop.f32.mrf.mxu0  ;;  %v11821_v61 = vcombine.high %v14649_v25, %v14651_v33 }
 0x445   : > { %v4377_v34 = vpop.f32.mrf.mxu1  ;;  %6205 = vmatmul.mubr.bf16.gmra.mxu1 %v13661_v52  ;;  %6862 = vmatprep.subr.bf16.mxu0 %v11791_v2  ;;  %v4639_v19 = vunpack.c.h.bf16 %v3981_v35 }
 0x446   : > { %v4542_v40 = vmul.f32 %v4526_v48, %v4510_v4  ;;  %v4543_v51 = vmul.f32 %v4527_v5, %v4511_v56  ;;  %6214 = vmatprep.mubr.bf16.mxu1 %v16297_v1  ;;  %6380 = vmatpush1.bf16.msra.mxu1 %v11776_v23  ;;  %v4654_v39 = vunpack.c.l.bf16 %v4431_v62  ;;  %v4655_v28 = vunpack.c.h.bf16 %v4431_v62  ;;  %v3915_v27 = vpop.f32.mrf.mxu0 }
 0x447   : > { %v4379_v3 = vpop.f32.mrf.mxu1  ;;  %6381 = vmatprep.subr.bf16.mxu1 %v11775_v7  ;;  %v3982_v44 = vpack.c.bf16 %v3915_v27, %v3911_v58 }
 0x448   : > { %v4558_v11 = vadd.f32 %v4542_v40, %v14394_v55  ;;  %v4559_v29 = vadd.f32 %v4543_v51, %v14396_v14  ;;  %6863 = vmatpush1.bf16.msra.mxu0 %v11790_v12  ;;  %v4670_v22 = vmul.f32 %v4654_v39, %v4638_v8  ;;  %v4671_v15 = vmul.f32 %v4655_v28, %v4639_v19  ;;  %v3917_v0 = vpop.f32.mrf.mxu0 }
 0x449   : > { %v4381_v31 = vpop.f32.mrf.mxu1  ;;  %7875 = vmatprep.subr.bf16.mxu0 %v11853_v13  ;;  %v3983_v2 = vpack.c.bf16 %v3917_v0, %v3913_v30  ;;  %v4512_v55 = vunpack.c.l.bf16 %v3982_v44  ;;  %v4513_v14 = vunpack.c.h.bf16 %v3982_v44 }
 0x44a   : > { %v4432_v23 = vpack.c.bf16 %v4381_v31, %v4377_v34  ;;  %6382 = vmatpush1.bf16.msra.mxu1 %v11774_v47  ;;  %v14665_v35 = vadd.f32 %v4670_v22, %v4558_v11  ;;  %v14667_v49 = vadd.f32 %v4671_v15, %v4559_v29  ;;  %v3921_v4 = vpop.f32.mrf.mxu0  ;;  %5894 = vmatmul.mubr.bf16.gmra.mxu0 %v13682_v37 }
 0x44b   : > { %v4383_v7 = vpop.f32.mrf.mxu1  ;;  %7169 = vmatprep.subr.bf16.mxu1 %v11821_v61  ;;  %5903 = vmatprep.mubr.bf16.mxu0 %v16297_v1  ;;  %v4640_v34 = vunpack.c.l.bf16 %v3983_v2  ;;  %v4641_v47 = vunpack.c.h.bf16 %v3983_v2 }
 0x44c   : > { %v4528_v58 = vunpack.c.l.bf16 %v4432_v23  ;;  %v4529_v12 = vunpack.c.h.bf16 %v4432_v23  ;;  %v4433_v56 = vpack.c.bf16 %v4383_v7, %v4379_v3  ;;  %v3923_v48 = vpop.f32.mrf.mxu0 }
 0x44d   : > { %v4387_v5 = vpop.f32.mrf.mxu1  ;;  %6215 = vmatmul.mubr.bf16.gmra.mxu1 %v13685_v26 }
 0x44e   : > { %v4544_v62 = vmul.f32 %v4528_v58, %v4512_v55  ;;  %v4545_v30 = vmul.f32 %v4529_v12, %v4513_v14  ;;  %6224 = vmatprep.mubr.bf16.mxu1 %v16297_v1  ;;  %v4656_v13 = vunpack.c.l.bf16 %v4433_v56  ;;  %v4657_v40 = vunpack.c.h.bf16 %v4433_v56  ;;  %v3925_v51 = vpop.f32.mrf.mxu0 }
 0x44f   : > { %v4389_v61 = vpop.f32.mrf.mxu1  ;;  %v3984_v39 = vpack.c.bf16 %v3925_v51, %v3921_v4 }
 0x450   : > { %v4560_v8 = vadd.f32 %v4544_v62, %v14404_v24  ;;  %v4561_v19 = vadd.f32 %v4545_v30, %v14406_v36  ;;  %v4672_v28 = vmul.f32 %v4656_v13, %v4640_v34  ;;  %v4673_v27 = vmul.f32 %v4657_v40, %v4641_v47  ;;  %v3927_v3 = vpop.f32.mrf.mxu0 }
 0x451   : > { %v4391_v11 = vpop.f32.mrf.mxu1  ;;  %v3985_v29 = vpack.c.bf16 %v3927_v3, %v3923_v48 }
 0x452   : > { %v4434_v44 = vpack.c.bf16 %v4391_v11, %v4387_v5  ;;  %v14675_v22 = vadd.f32 %v4672_v28, %v4560_v8  ;;  %v14677_v15 = vadd.f32 %v4673_v27, %v4561_v19  ;;  %v3931_v0 = vpop.f32.mrf.mxu0  ;;  %5904 = vmatmul.mubr.bf16.gmra.mxu0 %v13698_v20 }
 0x453   : > { %v4393_v31 = vpop.f32.mrf.mxu1  ;;  %5913 = vmatprep.mubr.bf16.mxu0 %v16297_v1 }
 0x454   : > { %v4435_v24 = vpack.c.bf16 %v4393_v31, %v4389_v61  ;;  %v3933_v2 = vpop.f32.mrf.mxu0  ;;  %12959 = vmac.bf16.f32.vacc3 %v4434_v44, %v3984_v39  ;;  %v7086_v31 = vld [vmem:[#allocation8 + $0x368] sm:$0xff] }
 0x455   : > { %v4397_v36 = vpop.f32.mrf.mxu1  ;;  %6225 = vmatmul.mubr.bf16.gmra.mxu1 %v13701_v9 }
 0x456   : > { %6234 = vmatprep.mubr.bf16.mxu1 %v16297_v1  ;;  %v3935_v23 = vpop.f32.mrf.mxu0  ;;  %12960 = vmac.bf16.f32.vacc3 %v4435_v24, %v3985_v29 }
 0x457   : > { %v4399_v4 = vpop.f32.mrf.mxu1  ;;  %v3986_v7 = vpack.c.bf16 %v3935_v23, %v3931_v0  ;;  %v7085_v0 = vld [vmem:[#allocation8 + $0x328] sm:$0xff] }
 0x458   : > { %v3937_v55 = vpop.f32.mrf.mxu0 }
 0x459   : > { %v4401_v14 = vpop.f32.mrf.mxu1  ;;  %v3987_v58 = vpack.c.bf16 %v3937_v55, %v3933_v2 }
 0x45a   : > { %v4436_v12 = vpack.c.bf16 %v4401_v14, %v4397_v36  ;;  %v3941_v56 = vpop.f32.mrf.mxu0  ;;  %5914 = vmatmul.mubr.bf16.gmra.mxu0 %v13714_v18  ;;  %v11819_v14 = vcombine.high %v7085_v0, %v7086_v31 }
 0x45b   : > { %v4403_v48 = vpop.f32.mrf.mxu1  ;;  %5923 = vmatprep.mubr.bf16.mxu0 %v16297_v1 }
 0x45c   : > { %v4437_v5 = vpack.c.bf16 %v4403_v48, %v4399_v4  ;;  %v3943_v62 = vpop.f32.mrf.mxu0  ;;  %12927 = vmac.bf16.f32.vacc2 %v4436_v12, %v3986_v7  ;;  %v11820_v4 = vcombine.low %v14649_v25, %v14651_v33  ;;  %v7084_v12 = vld [vmem:[#allocation8 + $0x2e8] sm:$0xff] }
 0x45d   : > { %v4407_v30 = vpop.f32.mrf.mxu1  ;;  %6235 = vmatmul.mubr.bf16.gmra.mxu1 %v13717_v63 }
 0x45e   : > { %6244 = vmatprep.mubr.bf16.mxu1 %v16297_v1  ;;  %v3945_v34 = vpop.f32.mrf.mxu0  ;;  %12928 = vmac.bf16.f32.vacc2 %v4437_v5, %v3987_v58  ;;  %v7083_v58 = vld [vmem:[#allocation8 + $0x2a8] sm:$0xff] }
 0x45f   : > { %v4409_v47 = vpop.f32.mrf.mxu1  ;;  %v3988_v13 = vpack.c.bf16 %v3945_v34, %v3941_v56  ;;  %v11817_v25 = vcombine.high %v7083_v58, %v7084_v12 }
 0x460   : > { %v3947_v40 = vpop.f32.mrf.mxu0 }
 0x461   : > { %v4411_v51 = vpop.f32.mrf.mxu1  ;;  %v3989_v61 = vpack.c.bf16 %v3947_v40, %v3943_v62  ;;  %v11818_v62 = vcombine.low %v7085_v0, %v7086_v31 }
 0x462   : > { %v4438_v8 = vpack.c.bf16 %v4411_v51, %v4407_v30  ;;  %v3951_v19 = vpop.f32.mrf.mxu0  ;;  %5924 = vmatmul.mubr.bf16.gmra.mxu0 %v13732_v32 }
 0x463   : > { %v4413_v39 = vpop.f32.mrf.mxu1  ;;  %5933 = vmatprep.mubr.bf16.mxu0 %v16297_v1 }
 0x464   : > { %v4439_v28 = vpack.c.bf16 %v4413_v39, %v4409_v47  ;;  %v3953_v27 = vpop.f32.mrf.mxu0  ;;  %12895 = vmac.bf16.f32.vacc1 %v4438_v8, %v3988_v13  ;;  %v7081_v47 = vld [vmem:[#allocation8 + $0x228] sm:$0xff] }
 0x465   : > { %v4417_v3 = vpop.f32.mrf.mxu1  ;;  %6245 = vmatmul.mubr.bf16.gmra.mxu1 %v13738_v43  ;;  %v7082_v13 = vld [vmem:[#allocation8 + $0x268] sm:$0xff] }
 0x466   : > { %6399 = vmatprep.mubr.bf16.mxu1 %v16297_v1  ;;  %v3955_v11 = vpop.f32.mrf.mxu0  ;;  %12896 = vmac.bf16.f32.vacc1 %v4439_v28, %v3989_v61 }
 0x467   : > { %v4419_v29 = vpop.f32.mrf.mxu1  ;;  %v3990_v44 = vpack.c.bf16 %v3955_v11, %v3951_v19  ;;  %v11816_v19 = vcombine.low %v7083_v58, %v7084_v12  ;;  %v7080_v11 = vld [vmem:[#allocation8 + $0x1e8] sm:$0xff] }
 0x468   : > { %v3957_v24 = vpop.f32.mrf.mxu0 }
 0x469   : > { %v4421_v2 = vpop.f32.mrf.mxu1  ;;  %v3991_v36 = vpack.c.bf16 %v3957_v24, %v3953_v27  ;;  %v11815_v27 = vcombine.high %v7081_v47, %v7082_v13 }
 0x46a   : > { %v4440_v23 = vpack.c.bf16 %v4421_v2, %v4417_v3  ;;  %v4828_v55 = vpop.f32.mrf.mxu0  ;;  %5934 = vmatmul.mubr.bf16.gmra.mxu0 %v16336_v38  ;;  %v7079_v3 = vld [vmem:[#allocation8 + $0x1a8] sm:$0xff] }
 0x46b   : > { %v4423_v7 = vpop.f32.mrf.mxu1  ;;  %5943 = vmatprep.mubr.bf16.mxu0 %v16297_v1 }
 0x46c   : > { %v4441_v56 = vpack.c.bf16 %v4423_v7, %v4419_v29  ;;  %v4830_v48 = vpop.f32.mrf.mxu0  ;;  %12863 = vmac.bf16.f32.vacc0 %v4440_v23, %v3990_v44 }
 0x46d   : > { %v5149_v5 = vpop.f32.mrf.mxu1  ;;  %6400 = vmatmul.mubr.bf16.vlgmr.msra.gmra.mxu1 %v16337_v42 }
 0x46e   : > { %7170 = vmatpush1.bf16.msra.mxu1 %v11820_v4  ;;  %6409 = vmatprep.mubr.bf16.mxu1 %v16297_v1  ;;  %v4832_v33 = vpop.f32.mrf.mxu0  ;;  %12864 = vmac.bf16.f32.vacc0 %v4441_v56, %v3991_v36  ;;  %v16378_v4 = vld [vmem:[#allocation35_spill] sm:$0xff]  ;;  %v11814_v36 = vcombine.low %v7081_v47, %v7082_v13  ;;  %v7078_v47 = vld [vmem:[#allocation8 + $0x168] sm:$0xff] }
 0x46f   : > { %v5151_v30 = vpop.f32.mrf.mxu1  ;;  %7171 = vmatprep.subr.bf16.mxu1 %v11819_v14  ;;  %v4987_v34 = vpack.c.bf16 %v4832_v33, %v4828_v55  ;;  %v11813_v14 = vcombine.high %v7079_v3, %v7080_v11 }
 0x470   : > { %v4834_v40 = vpop.f32.mrf.mxu0 }
 0x471   : > { %v5153_v51 = vpop.f32.mrf.mxu1  ;;  %v4988_v61 = vpack.c.bf16 %v4834_v40, %v4830_v48  ;;  %v5469_v29 = vunpack.c.l.bf16 %v4987_v34  ;;  %v5470_v44 = vunpack.c.h.bf16 %v4987_v34  ;;  %v7077_v34 = vld [vmem:[#allocation8 + $0x128] sm:$0xff] }
 0x472   : > { %v5228_v8 = vpack.c.bf16 %v5153_v51, %v5149_v5  ;;  %7172 = vmatpush1.bf16.msra.mxu1 %v11818_v62  ;;  %v4838_v39 = vpop.f32.mrf.mxu0  ;;  %5944 = vmatmul.mubr.bf16.gmra.mxu0 %v16338_v46 }
 0x473   : > { %v5155_v28 = vpop.f32.mrf.mxu1  ;;  %7173 = vmatprep.subr.bf16.mxu1 %v11817_v25  ;;  %5953 = vmatprep.mubr.bf16.mxu0 %v16297_v1  ;;  %v5597_v58 = vunpack.c.l.bf16 %v4988_v61  ;;  %v5598_v12 = vunpack.c.h.bf16 %v4988_v61  ;;  %v11812_v61 = vcombine.low %v7079_v3, %v7080_v11 }
 0x474   : > { %v5485_v0 = vunpack.c.l.bf16 %v5228_v8  ;;  %v5486_v31 = vunpack.c.h.bf16 %v5228_v8  ;;  %v5229_v24 = vpack.c.bf16 %v5155_v28, %v5151_v30  ;;  %v4840_v2 = vpop.f32.mrf.mxu0 }
 0x475   : > { %v5159_v23 = vpop.f32.mrf.mxu1  ;;  %6410 = vmatmul.mubr.bf16.gmra.mxu1 %v16378_v4 }
 0x476   : > { %v5501_v7 = vmul.f32 %v5485_v0, %v5469_v29  ;;  %v5502_v55 = vmul.f32 %v5486_v31, %v5470_v44  ;;  %6419 = vmatprep.mubr.bf16.mxu1 %v16297_v1  ;;  %7174 = vmatpush1.bf16.msra.mxu1 %v11816_v19  ;;  %v5613_v56 = vunpack.c.l.bf16 %v5229_v24  ;;  %v5614_v48 = vunpack.c.h.bf16 %v5229_v24  ;;  %v4842_v5 = vpop.f32.mrf.mxu0  ;;  %v7076_v31 = vld [vmem:[#allocation8 + $0xe8] sm:$0xff] }
 0x477   : > { %v5161_v62 = vpop.f32.mrf.mxu1  ;;  %7175 = vmatprep.subr.bf16.mxu1 %v11815_v27  ;;  %v4989_v30 = vpack.c.bf16 %v4842_v5, %v4838_v39  ;;  %v7075_v39 = vld [vmem:[#allocation8 + $0xa8] sm:$0xff] }
 0x478   : > { %v5517_v25 = vadd.f32 %v5501_v7, %v14432_v59  ;;  %v5518_v33 = vadd.f32 %v5502_v55, %v14434_v45  ;;  %v5629_v13 = vmul.f32 %v5613_v56, %v5597_v58  ;;  %v5630_v40 = vmul.f32 %v5614_v48, %v5598_v12  ;;  %v4844_v51 = vpop.f32.mrf.mxu0  ;;  %v16379_v59 = vld [vmem:[#allocation36_spill] sm:$0xff] }
 0x479   : > { %v5163_v8 = vpop.f32.mrf.mxu1  ;;  %v4990_v19 = vpack.c.bf16 %v4844_v51, %v4840_v2  ;;  %v11811_v45 = vcombine.high %v7077_v34, %v7078_v47  ;;  %v5471_v24 = vunpack.c.l.bf16 %v4989_v30  ;;  %v5472_v7 = vunpack.c.h.bf16 %v4989_v30 }
 0x47a   : > { %v5230_v28 = vpack.c.bf16 %v5163_v8, %v5159_v23  ;;  %7176 = vmatpush1.bf16.msra.mxu1 %v11814_v36  ;;  %v14703_v29 = vadd.f32 %v5629_v13, %v5517_v25  ;;  %v14705_v44 = vadd.f32 %v5630_v40, %v5518_v33  ;;  %v4848_v27 = vpop.f32.mrf.mxu0  ;;  %5954 = vmatmul.mubr.bf16.gmra.mxu0 %v16379_v59  ;;  %v16380_v23 = vld [vmem:[#allocation37_spill] sm:$0xff]  ;;  %v7073_v8 = vld [vmem:[#allocation8 + $0x28] sm:$0xff] }
 0x47b   : > { %v5165_v0 = vpop.f32.mrf.mxu1  ;;  %7177 = vmatprep.subr.bf16.mxu1 %v11813_v14  ;;  %5963 = vmatprep.mubr.bf16.mxu0 %v16297_v1  ;;  %v11810_v36 = vcombine.low %v7077_v34, %v7078_v47  ;;  %v11809_v14 = vcombine.high %v7075_v39, %v7076_v31  ;;  %v5599_v48 = vunpack.c.l.bf16 %v4990_v19  ;;  %v5600_v5 = vunpack.c.h.bf16 %v4990_v19  ;;  %v7074_v34 = vld [vmem:[#allocation8 + $0x68] sm:$0xff] }
 0x47c   : > { %v5487_v55 = vunpack.c.l.bf16 %v5230_v28  ;;  %v5488_v58 = vunpack.c.h.bf16 %v5230_v28  ;;  %v5231_v2 = vpack.c.bf16 %v5165_v0, %v5161_v62  ;;  %v4850_v3 = vpop.f32.mrf.mxu0  ;;  %v11808_v19 = vcombine.low %v7075_v39, %v7076_v31 }
 0x47d   : > { %v5169_v11 = vpop.f32.mrf.mxu1  ;;  %6420 = vmatmul.mubr.bf16.gmra.mxu1 %v16380_v23 }
 0x47e   : > { %v5503_v12 = vmul.f32 %v5487_v55, %v5471_v24  ;;  %v5504_v56 = vmul.f32 %v5488_v58, %v5472_v7  ;;  %6429 = vmatprep.mubr.bf16.mxu1 %v16297_v1  ;;  %7178 = vmatpush1.bf16.msra.mxu1 %v11812_v61  ;;  %v5615_v25 = vunpack.c.l.bf16 %v5231_v2  ;;  %v5616_v33 = vunpack.c.h.bf16 %v5231_v2  ;;  %v4852_v30 = vpop.f32.mrf.mxu0 }
 0x47f   : > { %v5171_v13 = vpop.f32.mrf.mxu1  ;;  %7179 = vmatprep.subr.bf16.mxu1 %v11811_v45  ;;  %v4991_v51 = vpack.c.bf16 %v4852_v30, %v4848_v27  ;;  %v14720_v27 = vld [vmem:[#allocation10 + $0x3e8] sm:$0xff] }
 0x480   : > { %v5519_v62 = vadd.f32 %v5503_v12, %v14442_v53  ;;  %v5520_v40 = vadd.f32 %v5504_v56, %v14444_v6  ;;  %v5631_v47 = vmul.f32 %v5615_v25, %v5599_v48  ;;  %v5632_v28 = vmul.f32 %v5616_v33, %v5600_v5  ;;  %v4854_v0 = vpop.f32.mrf.mxu0  ;;  %v14718_v6 = vld [vmem:[#allocation10 + $0x3a8] sm:$0xff] }
 0x481   : > { %v5173_v24 = vpop.f32.mrf.mxu1  ;;  %v4992_v61 = vpack.c.bf16 %v4854_v0, %v4850_v3  ;;  %v11807_v53 = vcombine.high %v7073_v8, %v7074_v34  ;;  %v5473_v12 = vunpack.c.l.bf16 %v4991_v51  ;;  %v5474_v56 = vunpack.c.h.bf16 %v4991_v51  ;;  %v16383_v0 = vld [vmem:[#allocation54_spill] sm:$0xff] }
 0x482   : > { %v5232_v7 = vpack.c.bf16 %v5173_v24, %v5169_v11  ;;  %7180 = vmatpush1.bf16.msra.mxu1 %v11810_v36  ;;  %v14713_v55 = vadd.f32 %v5631_v47, %v5519_v62  ;;  %v14715_v58 = vadd.f32 %v5632_v28, %v5520_v40  ;;  %v4858_v45 = vpop.f32.mrf.mxu0  ;;  %5964 = vmatmul.mubr.bf16.gmra.mxu0 %v13815_v50  ;;  %v14824_v50 = vld [vmem:[#allocation10 + $0x1a8] sm:$0xff] }
 0x483   : > { %v5175_v2 = vpop.f32.mrf.mxu1  ;;  %7181 = vmatprep.subr.bf16.mxu1 %v11809_v14  ;;  %5973 = vmatprep.mubr.bf16.mxu0 %v16297_v1  ;;  %v11806_v48 = vcombine.low %v7073_v8, %v7074_v34  ;;  %v11837_v14 = vcombine.high %v14718_v6, %v14720_v27  ;;  %v5601_v33 = vunpack.c.l.bf16 %v4992_v61  ;;  %v5602_v30 = vunpack.c.h.bf16 %v4992_v61 }
 0x484   : > { %16381 = vst [vmem:[#allocation51_spill] sm:$0xff] %v14715_v58  ;;  %v5489_v3 = vunpack.c.l.bf16 %v5232_v7  ;;  %v5490_v11 = vunpack.c.h.bf16 %v5232_v7  ;;  %v5233_v39 = vpack.c.bf16 %v5175_v2, %v5171_v13  ;;  %v4860_v31 = vpop.f32.mrf.mxu0  ;;  %v16382_v13 = vld [vmem:[#allocation53_spill] sm:$0xff] }
 0x485   : > { %v5179_v36 = vpop.f32.mrf.mxu1  ;;  %6430 = vmatmul.mubr.bf16.gmra.mxu1 %v13817_v16  ;;  %v16386_v16 = vld [vmem:[#allocation40_spill] sm:$0xff] }
 0x486   : > { %v5505_v5 = vmul.f32 %v5489_v3, %v5473_v12  ;;  %v5506_v25 = vmul.f32 %v5490_v11, %v5474_v56  ;;  %6439 = vmatprep.mubr.bf16.mxu1 %v16297_v1  ;;  %7182 = vmatpush1.bf16.msra.mxu1 %v11808_v19  ;;  %v5617_v62 = vunpack.c.l.bf16 %v5233_v39  ;;  %v5618_v40 = vunpack.c.h.bf16 %v5233_v39  ;;  %v4862_v51 = vpop.f32.mrf.mxu0 }
 0x487   : > { %v5181_v47 = vpop.f32.mrf.mxu1  ;;  %7183 = vmatprep.subr.bf16.mxu1 %v11807_v53  ;;  %v4993_v8 = vpack.c.bf16 %v4862_v51, %v4858_v45 }
 0x488   : > { %v5521_v28 = vadd.f32 %v5505_v5, %v16382_v13  ;;  %v5522_v24 = vadd.f32 %v5506_v25, %v16383_v0  ;;  %v5633_v34 = vmul.f32 %v5617_v62, %v5601_v33  ;;  %v5634_v7 = vmul.f32 %v5618_v40, %v5602_v30  ;;  %v4864_v2 = vpop.f32.mrf.mxu0 }
 0x489   : > { %v5183_v12 = vpop.f32.mrf.mxu1  ;;  %v4994_v19 = vpack.c.bf16 %v4864_v2, %v4860_v31  ;;  %v5475_v53 = vunpack.c.l.bf16 %v4993_v8  ;;  %v5476_v5 = vunpack.c.h.bf16 %v4993_v8 }
 0x48a   : > { %v5234_v56 = vpack.c.bf16 %v5183_v12, %v5179_v36  ;;  %7184 = vmatpush1.bf16.msra.mxu1 %v11806_v48  ;;  %v14729_v3 = vadd.f32 %v5633_v34, %v5521_v28  ;;  %v14731_v61 = vadd.f32 %v5634_v7, %v5522_v24  ;;  %v4868_v11 = vpop.f32.mrf.mxu0  ;;  %5974 = vmatmul.mubr.bf16.gmra.mxu0 %v16386_v16  ;;  %v16387_v36 = vld [vmem:[#allocation41_spill] sm:$0xff]  ;;  %v16388_v24 = vld [vmem:[#allocation32_spill] sm:$0xff] }
 0x48b   : > { %v5185_v39 = vpop.f32.mrf.mxu1  ;;  %7394 = vmatprep.subr.bf16.mxu1 %v11837_v14  ;;  %5983 = vmatprep.mubr.bf16.mxu0 %v16297_v1  ;;  %v5603_v40 = vunpack.c.l.bf16 %v4994_v19  ;;  %v5604_v51 = vunpack.c.h.bf16 %v4994_v19  ;;  %v16389_v34 = vld [vmem:[#allocation33_spill] sm:$0xff] }
 0x48c   : > { %16384 = vst [vmem:[#allocation52_spill] sm:$0xff] %v14729_v3  ;;  %16385 = vst [vmem:[#allocation59_spill] sm:$0xff] %v14731_v61  ;;  %v5491_v25 = vunpack.c.l.bf16 %v5234_v56  ;;  %v5492_v45 = vunpack.c.h.bf16 %v5234_v56  ;;  %v5235_v33 = vpack.c.bf16 %v5185_v39, %v5181_v47  ;;  %v4870_v30 = vpop.f32.mrf.mxu0 }
 0x48d   : > { %v5189_v31 = vpop.f32.mrf.mxu1  ;;  %6440 = vmatmul.mubr.bf16.gmra.mxu1 %v16387_v36 }
 0x48e   : > { %v5507_v48 = vmul.f32 %v5491_v25, %v5475_v53  ;;  %v5508_v62 = vmul.f32 %v5492_v45, %v5476_v5  ;;  %6449 = vmatprep.mubr.bf16.mxu1 %v16297_v1  ;;  %v5619_v13 = vunpack.c.l.bf16 %v5235_v33  ;;  %v5620_v28 = vunpack.c.h.bf16 %v5235_v33  ;;  %v4872_v14 = vpop.f32.mrf.mxu0  ;;  %v16392_v33 = vld [vmem:[#allocation42_spill] sm:$0xff] }
 0x48f   : > { %v5191_v0 = vpop.f32.mrf.mxu1  ;;  %v4995_v2 = vpack.c.bf16 %v4872_v14, %v4868_v11 }
 0x490   : > { %v5523_v8 = vadd.f32 %v5507_v48, %v16388_v24  ;;  %v5524_v7 = vadd.f32 %v5508_v62, %v16389_v34  ;;  %v5635_v47 = vmul.f32 %v5619_v13, %v5603_v40  ;;  %v5636_v12 = vmul.f32 %v5620_v28, %v5604_v51  ;;  %v4874_v56 = vpop.f32.mrf.mxu0  ;;  %v16393_v51 = vld [vmem:[#allocation43_spill] sm:$0xff] }
 0x491   : > { %v5193_v39 = vpop.f32.mrf.mxu1  ;;  %v4996_v36 = vpack.c.bf16 %v4874_v56, %v4870_v30  ;;  %v5477_v16 = vunpack.c.l.bf16 %v4995_v2  ;;  %v5478_v61 = vunpack.c.h.bf16 %v4995_v2  ;;  %v16394_v2 = vld [vmem:[#allocation34_spill] sm:$0xff] }
 0x492   : > { %v5236_v53 = vpack.c.bf16 %v5193_v39, %v5189_v31  ;;  %v14739_v5 = vadd.f32 %v5635_v47, %v5523_v8  ;;  %v14741_v25 = vadd.f32 %v5636_v12, %v5524_v7  ;;  %v4878_v19 = vpop.f32.mrf.mxu0  ;;  %5984 = vmatmul.mubr.bf16.gmra.mxu0 %v16392_v33  ;;  %v16395_v12 = vld [vmem:[#allocation55_spill] sm:$0xff] }
 0x493   : > { %v5195_v45 = vpop.f32.mrf.mxu1  ;;  %5993 = vmatprep.mubr.bf16.mxu0 %v16297_v1  ;;  %v5605_v13 = vunpack.c.l.bf16 %v4996_v36  ;;  %v5606_v28 = vunpack.c.h.bf16 %v4996_v36 }
 0x494   : > { %16390 = vst [vmem:[#allocation35_spill] sm:$0xff] %v14739_v5  ;;  %16391 = vst [vmem:[#allocation36_spill] sm:$0xff] %v14741_v25  ;;  %v5493_v48 = vunpack.c.l.bf16 %v5236_v53  ;;  %v5494_v24 = vunpack.c.h.bf16 %v5236_v53  ;;  %v5237_v11 = vpack.c.bf16 %v5195_v45, %v5191_v0  ;;  %v4880_v62 = vpop.f32.mrf.mxu0 }
 0x495   : > { %v5199_v40 = vpop.f32.mrf.mxu1  ;;  %6450 = vmatmul.mubr.bf16.gmra.mxu1 %v16393_v51 }
 0x496   : > { %v5509_v30 = vmul.f32 %v5493_v48, %v5477_v16  ;;  %v5510_v31 = vmul.f32 %v5494_v24, %v5478_v61  ;;  %6459 = vmatprep.mubr.bf16.mxu1 %v16297_v1  ;;  %v5621_v14 = vunpack.c.l.bf16 %v5237_v11  ;;  %v5622_v8 = vunpack.c.h.bf16 %v5237_v11  ;;  %v4882_v34 = vpop.f32.mrf.mxu0  ;;  %v16398_v11 = vld [vmem:[#allocation44_spill] sm:$0xff] }
 0x497   : > { %v5201_v7 = vpop.f32.mrf.mxu1  ;;  %v4997_v39 = vpack.c.bf16 %v4882_v34, %v4878_v19 }
 0x498   : > { %v5525_v47 = vadd.f32 %v5509_v30, %v16394_v2  ;;  %v5526_v56 = vadd.f32 %v5510_v31, %v16395_v12  ;;  %v5637_v0 = vmul.f32 %v5621_v14, %v5605_v13  ;;  %v5638_v53 = vmul.f32 %v5622_v8, %v5606_v28  ;;  %v4884_v45 = vpop.f32.mrf.mxu0  ;;  %v16399_v28 = vld [vmem:[#allocation45_spill] sm:$0xff] }
 0x499   : > { %v5203_v33 = vpop.f32.mrf.mxu1  ;;  %v4998_v51 = vpack.c.bf16 %v4884_v45, %v4880_v62  ;;  %v5479_v25 = vunpack.c.l.bf16 %v4997_v39  ;;  %v5480_v5 = vunpack.c.h.bf16 %v4997_v39 }
 0x49a   : > { %v5238_v16 = vpack.c.bf16 %v5203_v33, %v5199_v40  ;;  %v14749_v61 = vadd.f32 %v5637_v0, %v5525_v47  ;;  %v14751_v48 = vadd.f32 %v5638_v53, %v5526_v56  ;;  %v4888_v36 = vpop.f32.mrf.mxu0  ;;  %5994 = vmatmul.mubr.bf16.gmra.mxu0 %v16398_v11  ;;  %v16400_v56 = vld [vmem:[#allocation56_spill] sm:$0xff]  ;;  %v16401_v0 = vld [vmem:[#allocation57_spill] sm:$0xff] }
 0x49b   : > { %v5205_v24 = vpop.f32.mrf.mxu1  ;;  %6003 = vmatprep.mubr.bf16.mxu0 %v16297_v1  ;;  %v5607_v40 = vunpack.c.l.bf16 %v4998_v51  ;;  %v5608_v14 = vunpack.c.h.bf16 %v4998_v51 }
 0x49c   : > { %16396 = vst [vmem:[#allocation37_spill] sm:$0xff] %v14749_v61  ;;  %16397 = vst [vmem:[#allocation53_spill] sm:$0xff] %v14751_v48  ;;  %v5495_v30 = vunpack.c.l.bf16 %v5238_v16  ;;  %v5496_v2 = vunpack.c.h.bf16 %v5238_v16  ;;  %v5239_v19 = vpack.c.bf16 %v5205_v24, %v5201_v7  ;;  %v4890_v31 = vpop.f32.mrf.mxu0 }
 0x49d   : > { %v5209_v13 = vpop.f32.mrf.mxu1  ;;  %6460 = vmatmul.mubr.bf16.gmra.mxu1 %v16399_v28 }
 0x49e   : > { %v5511_v33 = vmul.f32 %v5495_v30, %v5479_v25  ;;  %v5512_v62 = vmul.f32 %v5496_v2, %v5480_v5  ;;  %6469 = vmatprep.mubr.bf16.mxu1 %v16297_v1  ;;  %v5623_v8 = vunpack.c.l.bf16 %v5239_v19  ;;  %v5624_v34 = vunpack.c.h.bf16 %v5239_v19  ;;  %v4892_v47 = vpop.f32.mrf.mxu0  ;;  %v16404_v19 = vld [vmem:[#allocation46_spill] sm:$0xff] }
 0x49f   : > { %v5211_v12 = vpop.f32.mrf.mxu1  ;;  %v4999_v45 = vpack.c.bf16 %v4892_v47, %v4888_v36 }
 0x4a0   : > { %v5527_v39 = vadd.f32 %v5511_v33, %v16400_v56  ;;  %v5528_v53 = vadd.f32 %v5512_v62, %v16401_v0  ;;  %v5639_v7 = vmul.f32 %v5623_v8, %v5607_v40  ;;  %v5640_v16 = vmul.f32 %v5624_v34, %v5608_v14  ;;  %v4894_v24 = vpop.f32.mrf.mxu0  ;;  %v16405_v14 = vld [vmem:[#allocation47_spill] sm:$0xff]  ;;  %v14769_v8 = vld [vmem:[#allocation7 + $0x370] sm:$0xff] }
 0x4a1   : > { %v5213_v11 = vpop.f32.mrf.mxu1  ;;  %v5000_v28 = vpack.c.bf16 %v4894_v24, %v4890_v31  ;;  %v5481_v48 = vunpack.c.l.bf16 %v4999_v45  ;;  %v5482_v61 = vunpack.c.h.bf16 %v4999_v45 }
 0x4a2   : > { %v5240_v25 = vpack.c.bf16 %v5213_v11, %v5209_v13  ;;  %v14759_v5 = vadd.f32 %v5639_v7, %v5527_v39  ;;  %v14761_v30 = vadd.f32 %v5640_v16, %v5528_v53  ;;  %v4898_v51 = vpop.f32.mrf.mxu0  ;;  %6004 = vmatmul.mubr.bf16.gmra.mxu0 %v16404_v19  ;;  %v14767_v13 = vld [vmem:[#allocation7 + $0x330] sm:$0xff]  ;;  %v16406_v7 = vld [vmem:[#allocation58_spill] sm:$0xff]  ;;  %v16407_v16 = vld [vmem:[#allocation48_spill] sm:$0xff] }
 0x4a3   : > { %v5215_v2 = vpop.f32.mrf.mxu1  ;;  %6880 = vmatprep.mubr.bf16.mxu0 %v16297_v1  ;;  %v5609_v34 = vunpack.c.l.bf16 %v5000_v28  ;;  %v5610_v47 = vunpack.c.h.bf16 %v5000_v28  ;;  %v11851_v28 = vcombine.high %v14767_v13, %v14769_v8 }
 0x4a4   : > { %16402 = vst [vmem:[#allocation54_spill] sm:$0xff] %v14759_v5  ;;  %16403 = vst [vmem:[#allocation32_spill] sm:$0xff] %v14761_v30  ;;  %v5497_v33 = vunpack.c.l.bf16 %v5240_v25  ;;  %v5498_v56 = vunpack.c.h.bf16 %v5240_v25  ;;  %v5241_v36 = vpack.c.bf16 %v5215_v2, %v5211_v12  ;;  %v4900_v62 = vpop.f32.mrf.mxu0  ;;  %v14773_v2 = vld [vmem:[#allocation10 + $0x328] sm:$0xff]  ;;  %v11836_v30 = vcombine.low %v14718_v6, %v14720_v27 }
 0x4a5   : > { %v5219_v40 = vpop.f32.mrf.mxu1  ;;  %6470 = vmatmul.mubr.bf16.gmra.mxu1 %v16405_v14  ;;  %v11850_v6 = vcombine.low %v14767_v13, %v14769_v8 }
 0x4a6   : > { %v5513_v11 = vmul.f32 %v5497_v33, %v5481_v48  ;;  %v5514_v31 = vmul.f32 %v5498_v56, %v5482_v61  ;;  %7201 = vmatprep.mubr.bf16.mxu1 %v16297_v1  ;;  %v5625_v39 = vunpack.c.l.bf16 %v5241_v36  ;;  %v5626_v0 = vunpack.c.h.bf16 %v5241_v36  ;;  %v4902_v53 = vpop.f32.mrf.mxu0  ;;  %v14775_v61 = vld [vmem:[#allocation10 + $0x368] sm:$0xff] }
 0x4a7   : > { %v5221_v45 = vpop.f32.mrf.mxu1  ;;  %v5001_v25 = vpack.c.bf16 %v4902_v53, %v4898_v51 }
 0x4a8   : > { %v5529_v12 = vadd.f32 %v5513_v11, %v16406_v7  ;;  %v5530_v24 = vadd.f32 %v5514_v31, %v16407_v16  ;;  %v5641_v48 = vmul.f32 %v5625_v39, %v5609_v34  ;;  %v5642_v33 = vmul.f32 %v5626_v0, %v5610_v47  ;;  %v4904_v56 = vpop.f32.mrf.mxu0  ;;  %v14781_v11 = vld [vmem:[#allocation7 + $0x2b0] sm:$0xff]  ;;  %v16410_v39 = vld [vmem:[#allocation26_spill] sm:$0xff] }
 0x4a9   : > { %v5223_v14 = vpop.f32.mrf.mxu1  ;;  %v5002_v19 = vpack.c.bf16 %v4904_v56, %v4900_v62  ;;  %v14783_v31 = vld [vmem:[#allocation7 + $0x2f0] sm:$0xff]  ;;  %v11835_v0 = vcombine.high %v14773_v2, %v14775_v61  ;;  %v14792_v62 = vld [vmem:[#allocation10 + $0x2a8] sm:$0xff]  ;;  %v5483_v27 = vunpack.c.l.bf16 %v5001_v25  ;;  %v16411_v16 = vcombine.low %v14574_v17, %v14577_v60  ;;  %v16412_v56 = vld [vmem:[#allocation27_spill] sm:$0xff] }
 0x4aa   : > { %v5242_v36 = vpack.c.bf16 %v5223_v14, %v5219_v40  ;;  %v14785_v51 = vadd.f32 %v5641_v48, %v5529_v12  ;;  %v14787_v53 = vadd.f32 %v5642_v33, %v5530_v24  ;;  %v4908_v34 = vpop.f32.mrf.mxu0  ;;  %6881 = vmatmul.mubr.bf16.vlgmr.msra.gmra.mxu0 %v16410_v39  ;;  %v14794_v40 = vld [vmem:[#allocation10 + $0x2e8] sm:$0xff]  ;;  %v5484_v14 = vunpack.c.h.bf16 %v5001_v25  ;;  %v14810_v60 = vld [vmem:[#allocation7 + $0x230] sm:$0xff] }
 0x4ab   : > { %v5225_v47 = vpop.f32.mrf.mxu1  ;;  %7876 = vmatpush1.bf16.msra.mxu0 %v16411_v16  ;;  %6890 = vmatprep.mubr.bf16.mxu0 %v16297_v1  ;;  %v11834_v39 = vcombine.low %v14773_v2, %v14775_v61  ;;  %v11849_v13 = vcombine.high %v14781_v11, %v14783_v31  ;;  %v11833_v17 = vcombine.high %v14792_v62, %v14794_v40 }
 0x4ac   : > { %16408 = vst [vmem:[#allocation33_spill] sm:$0xff] %v14785_v51  ;;  %16409 = vst [vmem:[#allocation34_spill] sm:$0xff] %v14787_v53  ;;  %v5499_v7 = vunpack.c.l.bf16 %v5242_v36  ;;  %v5500_v12 = vunpack.c.h.bf16 %v5242_v36  ;;  %v5243_v24 = vpack.c.bf16 %v5225_v47, %v5221_v45  ;;  %v4910_v48 = vpop.f32.mrf.mxu0  ;;  %7877 = vmatprep.subr.bf16.mxu0 %v11851_v28  ;;  %v14812_v45 = vld [vmem:[#allocation7 + $0x270] sm:$0xff]  ;;  %v5611_v36 = vunpack.c.l.bf16 %v5002_v19 }
 0x4ad   : > { %v5374_v33 = vpop.f32.mrf.mxu1  ;;  %7202 = vmatmul.mubr.bf16.vlgmr.msra.gmra.mxu1 %v16412_v56  ;;  %v5612_v47 = vunpack.c.h.bf16 %v5002_v19  ;;  %v14814_v56 = vld [vmem:[#allocation10 + $0x228] sm:$0xff]  ;;  %v11848_v51 = vcombine.low %v14781_v11, %v14783_v31 }
 0x4ae   : > { %v5515_v8 = vmul.f32 %v5499_v7, %v5483_v27  ;;  %v5516_v25 = vmul.f32 %v5500_v12, %v5484_v14  ;;  %7395 = vmatpush1.bf16.msra.mxu1 %v11836_v30  ;;  %7211 = vmatprep.mubr.bf16.mxu1 %v16297_v1  ;;  %v5627_v16 = vunpack.c.l.bf16 %v5243_v24  ;;  %v5628_v2 = vunpack.c.h.bf16 %v5243_v24  ;;  %v4912_v61 = vpop.f32.mrf.mxu0  ;;  %v14816_v27 = vld [vmem:[#allocation10 + $0x268] sm:$0xff]  ;;  %v16413_v30 = vld [vmem:[#allocation49_spill] sm:$0xff]  ;;  %v16414_v7 = vld [vmem:[#allocation50_spill] sm:$0xff] }
 0x4af   : > { %v5376_v28 = vpop.f32.mrf.mxu1  ;;  %7396 = vmatprep.subr.bf16.mxu1 %v11835_v0  ;;  %v5003_v53 = vpack.c.bf16 %v4912_v61, %v4908_v34  ;;  %7878 = vmatpush1.bf16.msra.mxu0 %v11850_v6  ;;  %v11832_v0 = vcombine.low %v14792_v62, %v14794_v40  ;;  %v11830_v34 = vcombine.low %v14814_v56, %v14816_v27  ;;  %v14832_v31 = vld [vmem:[#allocation10 + $0x1e8] sm:$0xff]  ;;  %v14834_v6 = vld [vmem:[#allocation7 + $0x1b0] sm:$0xff] }
 0x4b0   : > { %v5531_v14 = vadd.f32 %v5515_v8, %v16413_v30  ;;  %v5532_v12 = vadd.f32 %v5516_v25, %v16414_v7  ;;  %v5643_v5 = vmul.f32 %v5627_v16, %v5611_v36  ;;  %v5644_v19 = vmul.f32 %v5628_v2, %v5612_v47  ;;  %v4914_v3 = vpop.f32.mrf.mxu0  ;;  %7879 = vmatprep.subr.bf16.mxu0 %v11849_v13  ;;  %v14836_v62 = vld [vmem:[#allocation7 + $0x1f0] sm:$0xff] }
 0x4b1   : > { %v5378_v24 = vpop.f32.mrf.mxu1  ;;  %v11847_v8 = vcombine.high %v14810_v60, %v14812_v45  ;;  %v5004_v30 = vpack.c.bf16 %v4914_v3, %v4910_v48  ;;  %v11831_v11 = vcombine.high %v14814_v56, %v14816_v27  ;;  %v16417_v48 = vld [vmem:[#allocation28_spill] sm:$0xff]  ;;  %v5533_v56 = vunpack.c.l.bf16 %v5003_v53  ;;  %v16418_v7 = vld [vmem:[#allocation29_spill] sm:$0xff] }
 0x4b2   : > { %v5453_v25 = vpack.c.bf16 %v5378_v24, %v5374_v33  ;;  %7397 = vmatpush1.bf16.msra.mxu1 %v11834_v39  ;;  %v14838_v40 = vadd.f32 %v5643_v5, %v5531_v14  ;;  %v14840_v13 = vadd.f32 %v5644_v19, %v5532_v12  ;;  %v4918_v36 = vpop.f32.mrf.mxu0  ;;  %6891 = vmatmul.mubr.bf16.gmra.mxu0 %v16417_v48  ;;  %v14845_v33 = vld [vmem:[#allocation7 + $0x3b8] sm:$0xff]  ;;  %v5534_v47 = vunpack.c.h.bf16 %v5003_v53  ;;  %v14858_v12 = vld [vmem:[#allocation7 + $0x170] sm:$0xff]  ;;  %v14862_v48 = vld [vmem:[#allocation10 + $0x128] sm:$0xff] }
 0x4b3   : > { %v5380_v3 = vpop.f32.mrf.mxu1  ;;  %7398 = vmatprep.subr.bf16.mxu1 %v11833_v17  ;;  %v11846_v39 = vcombine.low %v14810_v60, %v14812_v45  ;;  %6900 = vmatprep.mubr.bf16.mxu0 %v16297_v1  ;;  %v14848_v5 = vld [vmem:[#allocation7 + $0x3f8] sm:$0xff]  ;;  %v11829_v17 = vcombine.high %v14824_v50, %v14832_v31  ;;  %v11845_v60 = vcombine.high %v14834_v6, %v14836_v62  ;;  %v5661_v19 = vunpack.c.l.bf16 %v5004_v30 }
 0x4b4   : > { %16415 = vst [vmem:[#allocation55_spill] sm:$0xff] %v14838_v40  ;;  %16416 = vst [vmem:[#allocation56_spill] sm:$0xff] %v14840_v13  ;;  %v5549_v16 = vunpack.c.l.bf16 %v5453_v25  ;;  %v5550_v2 = vunpack.c.h.bf16 %v5453_v25  ;;  %7880 = vmatpush1.bf16.msra.mxu0 %v11848_v51  ;;  %v5454_v61 = vpack.c.bf16 %v5380_v3, %v5376_v28  ;;  %v4920_v27 = vpop.f32.mrf.mxu0  ;;  %v14856_v51 = vld [vmem:[#allocation7 + $0x130] sm:$0xff]  ;;  %v5662_v24 = vunpack.c.h.bf16 %v5004_v30 }
 0x4b5   : > { %v5384_v14 = vpop.f32.mrf.mxu1  ;;  %7212 = vmatmul.mubr.bf16.gmra.mxu1 %v16418_v7  ;;  %7881 = vmatprep.subr.bf16.mxu0 %v11847_v8 }
 0x4b6   : > { %v5565_v53 = vmul.f32 %v5549_v16, %v5533_v56  ;;  %v5566_v45 = vmul.f32 %v5550_v2, %v5534_v47  ;;  %7221 = vmatprep.mubr.bf16.mxu1 %v16297_v1  ;;  %7399 = vmatpush1.bf16.msra.mxu1 %v11832_v0  ;;  %v5677_v25 = vunpack.c.l.bf16 %v5454_v61  ;;  %v5678_v3 = vunpack.c.h.bf16 %v5454_v61  ;;  %v4922_v8 = vpop.f32.mrf.mxu0  ;;  %v14864_v56 = vld [vmem:[#allocation10 + $0x168] sm:$0xff] }
 0x4b7   : > { %v5386_v7 = vpop.f32.mrf.mxu1  ;;  %7400 = vmatprep.subr.bf16.mxu1 %v11831_v11  ;;  %v5005_v16 = vpack.c.bf16 %v4922_v8, %v4918_v36  ;;  %v11844_v2 = vcombine.low %v14834_v6, %v14836_v62  ;;  %v11843_v11 = vcombine.high %v14856_v51, %v14858_v12  ;;  %v14876_v36 = vld [vmem:[#allocation7 + $0xb0] sm:$0xff] }
 0x4b8   : > { %v5581_v0 = vadd.f32 %v5565_v53, %v14609_v41  ;;  %v5582_v47 = vadd.f32 %v5566_v45, %v14611_v21  ;;  %7882 = vmatpush1.bf16.msra.mxu0 %v11846_v39  ;;  %v5693_v28 = vmul.f32 %v5677_v25, %v5661_v19  ;;  %v5694_v30 = vmul.f32 %v5678_v3, %v5662_v24  ;;  %v4924_v13 = vpop.f32.mrf.mxu0  ;;  %v14878_v6 = vld [vmem:[#allocation7 + $0xf0] sm:$0xff]  ;;  %v16419_v45 = vld [vmem:[#allocation30_spill] sm:$0xff]  ;;  %v16420_v3 = vld [vmem:[#allocation31_spill] sm:$0xff] }
 0x4b9   : > { %v5388_v61 = vpop.f32.mrf.mxu1  ;;  %7883 = vmatprep.subr.bf16.mxu0 %v11845_v60  ;;  %v5006_v40 = vpack.c.bf16 %v4924_v13, %v4920_v27  ;;  %v11828_v41 = vcombine.low %v14824_v50, %v14832_v31  ;;  %v11827_v21 = vcombine.high %v14862_v48, %v14864_v56  ;;  %v14887_v13 = vld [vmem:[#allocation10 + $0xe8] sm:$0xff]  ;;  %v11842_v50 = vcombine.low %v14856_v51, %v14858_v12 }
 0x4ba   : > { %v5455_v58 = vpack.c.bf16 %v5388_v61, %v5384_v14  ;;  %7401 = vmatpush1.bf16.msra.mxu1 %v11830_v34  ;;  %v14880_v62 = vadd.f32 %v5693_v28, %v5581_v0  ;;  %v14882_v39 = vadd.f32 %v5694_v30, %v5582_v47  ;;  %v4928_v60 = vpop.f32.mrf.mxu0  ;;  %6901 = vmatmul.mubr.bf16.gmra.mxu0 %v16419_v45  ;;  %v14885_v34 = vld [vmem:[#allocation10 + $0xa8] sm:$0xff]  ;;  %v5535_v31 = vunpack.c.l.bf16 %v5005_v16  ;;  %v14902_v0 = vld [vmem:[#allocation7 + $0x70] sm:$0xff] }
 0x4bb   : > { %v5390_v53 = vpop.f32.mrf.mxu1  ;;  %7402 = vmatprep.subr.bf16.mxu1 %v11829_v17  ;;  %v5536_v27 = vunpack.c.h.bf16 %v5005_v16  ;;  %6910 = vmatprep.mubr.bf16.mxu0 %v16297_v1  ;;  %v11826_v17 = vcombine.low %v14862_v48, %v14864_v56  ;;  %v11841_v8 = vcombine.high %v14876_v36, %v14878_v6  ;;  %v5663_v47 = vunpack.c.l.bf16 %v5006_v40  ;;  %v14904_v61 = vld [vmem:[#allocation10 + $0x28] sm:$0xff] }
 0x4bc   : > { %v5551_v14 = vunpack.c.l.bf16 %v5455_v58  ;;  %v5552_v19 = vunpack.c.h.bf16 %v5455_v58  ;;  %7884 = vmatpush1.bf16.msra.mxu0 %v11844_v2  ;;  %v5456_v28 = vpack.c.bf16 %v5390_v53, %v5386_v7  ;;  %v4930_v24 = vpop.f32.mrf.mxu0  ;;  %v11825_v58 = vcombine.high %v14885_v34, %v14887_v13  ;;  %v14900_v7 = vld [vmem:[#allocation7 + $0x30] sm:$0xff] }
 0x4bd   : > { %v5394_v25 = vpop.f32.mrf.mxu1  ;;  %7222 = vmatmul.mubr.bf16.gmra.mxu1 %v16420_v3  ;;  %7885 = vmatprep.subr.bf16.mxu0 %v11843_v11  ;;  %v5664_v16 = vunpack.c.h.bf16 %v5006_v40  ;;  %v7299_v11 = vld [vmem:[#allocation10 + $0x68] sm:$0xff] }
 0x4be   : > { %v5567_v51 = vmul.f32 %v5551_v14, %v5535_v31  ;;  %v5568_v12 = vmul.f32 %v5552_v19, %v5536_v27  ;;  %7231 = vmatprep.mubr.bf16.mxu1 %v16297_v1  ;;  %7403 = vmatpush1.bf16.msra.mxu1 %v11828_v41  ;;  %v5679_v2 = vunpack.c.l.bf16 %v5456_v28  ;;  %v5680_v48 = vunpack.c.h.bf16 %v5456_v28  ;;  %v4932_v56 = vpop.f32.mrf.mxu0 }
 0x4bf   : > { %v5396_v30 = vpop.f32.mrf.mxu1  ;;  %7404 = vmatprep.subr.bf16.mxu1 %v11827_v21  ;;  %v5007_v31 = vpack.c.bf16 %v4932_v56, %v4928_v60  ;;  %v11840_v27 = vcombine.low %v14876_v36, %v14878_v6  ;;  %v11839_v21 = vcombine.high %v14900_v7, %v14902_v0 }
 0x4c0   : > { %v5583_v53 = vadd.f32 %v5567_v51, %v14644_v54  ;;  %v5584_v41 = vadd.f32 %v5568_v12, %v14646_v57  ;;  %7886 = vmatpush1.bf16.msra.mxu0 %v11842_v50  ;;  %v5695_v14 = vmul.f32 %v5679_v2, %v5663_v47  ;;  %v5696_v19 = vmul.f32 %v5680_v48, %v5664_v16  ;;  %v4934_v40 = vpop.f32.mrf.mxu0  ;;  %v14922_v51 = vld [vmem:[#allocation8 + $0x3f0] sm:$0xff] }
 0x4c1   : > { %v5398_v3 = vpop.f32.mrf.mxu1  ;;  %7887 = vmatprep.subr.bf16.mxu0 %v11841_v8  ;;  %v5008_v28 = vpack.c.bf16 %v4934_v40, %v4930_v24  ;;  %v11824_v54 = vcombine.low %v14885_v34, %v14887_v13  ;;  %v11823_v57 = vcombine.high %v14904_v61, %v7299_v11  ;;  %v14920_v8 = vld [vmem:[#allocation8 + $0x3b0] sm:$0xff]  ;;  %v11838_v24 = vcombine.low %v14900_v7, %v14902_v0 }
 0x4c2   : > { %v5457_v45 = vpack.c.bf16 %v5398_v3, %v5394_v25  ;;  %7405 = vmatpush1.bf16.msra.mxu1 %v11826_v17  ;;  %v14915_v60 = vadd.f32 %v5695_v14, %v5583_v53  ;;  %v14917_v50 = vadd.f32 %v5696_v19, %v5584_v41  ;;  %v4938_v36 = vpop.f32.mrf.mxu0  ;;  %6911 = vmatmul.mubr.bf16.gmra.mxu0 %v13658_v10  ;;  %v5537_v25 = vunpack.c.l.bf16 %v5007_v31 }
 0x4c3   : > { %v5400_v6 = vpop.f32.mrf.mxu1  ;;  %7406 = vmatprep.subr.bf16.mxu1 %v11825_v58  ;;  %v5538_v34 = vunpack.c.h.bf16 %v5007_v31  ;;  %6920 = vmatprep.mubr.bf16.mxu0 %v16297_v1  ;;  %v11822_v58 = vcombine.low %v14904_v61, %v7299_v11  ;;  %v11901_v16 = vcombine.high %v14845_v33, %v14848_v5  ;;  %v5665_v0 = vunpack.c.l.bf16 %v5008_v28 }
 0x4c4   : > { %v5553_v13 = vunpack.c.l.bf16 %v5457_v45  ;;  %v5554_v3 = vunpack.c.h.bf16 %v5457_v45  ;;  %7888 = vmatpush1.bf16.msra.mxu0 %v11840_v27  ;;  %v5458_v17 = vpack.c.bf16 %v5400_v6, %v5396_v30  ;;  %v4940_v12 = vpop.f32.mrf.mxu0  ;;  %v11869_v45 = vcombine.high %v14920_v8, %v14922_v51 }
 0x4c5   : > { %v5404_v47 = vpop.f32.mrf.mxu1  ;;  %7232 = vmatmul.mubr.bf16.gmra.mxu1 %v13661_v52  ;;  %7889 = vmatprep.subr.bf16.mxu0 %v11839_v21  ;;  %v5666_v48 = vunpack.c.h.bf16 %v5008_v28 }
 0x4c6   : > { %v5569_v2 = vmul.f32 %v5553_v13, %v5537_v25  ;;  %v5570_v7 = vmul.f32 %v5554_v3, %v5538_v34  ;;  %7241 = vmatprep.mubr.bf16.mxu1 %v16297_v1  ;;  %7407 = vmatpush1.bf16.msra.mxu1 %v11824_v54  ;;  %v5681_v56 = vunpack.c.l.bf16 %v5458_v17  ;;  %v5682_v30 = vunpack.c.h.bf16 %v5458_v17  ;;  %v4942_v53 = vpop.f32.mrf.mxu0 }
 0x4c7   : > { %v5406_v41 = vpop.f32.mrf.mxu1  ;;  %7408 = vmatprep.subr.bf16.mxu1 %v11823_v57  ;;  %v5009_v31 = vpack.c.bf16 %v4942_v53, %v4938_v36 }
 0x4c8   : > { %v5585_v61 = vadd.f32 %v5569_v2, %v14665_v35  ;;  %v5586_v11 = vadd.f32 %v5570_v7, %v14667_v49  ;;  %7890 = vmatpush1.bf16.msra.mxu0 %v11838_v24  ;;  %v5697_v27 = vmul.f32 %v5681_v56, %v5665_v0  ;;  %v5698_v14 = vmul.f32 %v5682_v30, %v5666_v48  ;;  %v4944_v19 = vpop.f32.mrf.mxu0 }
 0x4c9   : > { %v5408_v40 = vpop.f32.mrf.mxu1  ;;  %8902 = vmatprep.subr.bf16.mxu0 %v11901_v16  ;;  %v5010_v21 = vpack.c.bf16 %v4944_v19, %v4940_v12  ;;  %v5539_v35 = vunpack.c.l.bf16 %v5009_v31  ;;  %v5540_v49 = vunpack.c.h.bf16 %v5009_v31 }
 0x4ca   : > { %v5459_v54 = vpack.c.bf16 %v5408_v40, %v5404_v47  ;;  %7409 = vmatpush1.bf16.msra.mxu1 %v11822_v58  ;;  %v14936_v28 = vadd.f32 %v5697_v27, %v5585_v61  ;;  %v14938_v6 = vadd.f32 %v5698_v14, %v5586_v11  ;;  %v4948_v25 = vpop.f32.mrf.mxu0  ;;  %6921 = vmatmul.mubr.bf16.gmra.mxu0 %v13682_v37 }
 0x4cb   : > { %v5410_v57 = vpop.f32.mrf.mxu1  ;;  %8196 = vmatprep.subr.bf16.mxu1 %v11869_v45  ;;  %6930 = vmatprep.mubr.bf16.mxu0 %v16297_v1  ;;  %v5667_v47 = vunpack.c.l.bf16 %v5010_v21  ;;  %v5668_v58 = vunpack.c.h.bf16 %v5010_v21 }
 0x4cc   : > { %v5555_v36 = vunpack.c.l.bf16 %v5459_v54  ;;  %v5556_v24 = vunpack.c.h.bf16 %v5459_v54  ;;  %v5460_v34 = vpack.c.bf16 %v5410_v57, %v5406_v41  ;;  %v4950_v13 = vpop.f32.mrf.mxu0 }
 0x4cd   : > { %v5414_v3 = vpop.f32.mrf.mxu1  ;;  %7242 = vmatmul.mubr.bf16.gmra.mxu1 %v13685_v26 }
 0x4ce   : > { %v5571_v17 = vmul.f32 %v5555_v36, %v5539_v35  ;;  %v5572_v12 = vmul.f32 %v5556_v24, %v5540_v49  ;;  %7251 = vmatprep.mubr.bf16.mxu1 %v16297_v1  ;;  %v5683_v16 = vunpack.c.l.bf16 %v5460_v34  ;;  %v5684_v2 = vunpack.c.h.bf16 %v5460_v34  ;;  %v4952_v7 = vpop.f32.mrf.mxu0 }
 0x4cf   : > { %v5416_v45 = vpop.f32.mrf.mxu1  ;;  %v5011_v56 = vpack.c.bf16 %v4952_v7, %v4948_v25 }
 0x4d0   : > { %v5587_v0 = vadd.f32 %v5571_v17, %v14675_v22  ;;  %v5588_v48 = vadd.f32 %v5572_v12, %v14677_v15  ;;  %v5699_v30 = vmul.f32 %v5683_v16, %v5667_v47  ;;  %v5700_v53 = vmul.f32 %v5684_v2, %v5668_v58  ;;  %v4954_v41 = vpop.f32.mrf.mxu0 }
 0x4d1   : > { %v5418_v61 = vpop.f32.mrf.mxu1  ;;  %v5012_v11 = vpack.c.bf16 %v4954_v41, %v4950_v13 }
 0x4d2   : > { %v5461_v31 = vpack.c.bf16 %v5418_v61, %v5414_v3  ;;  %v14946_v27 = vadd.f32 %v5699_v30, %v5587_v0  ;;  %v14948_v14 = vadd.f32 %v5700_v53, %v5588_v48  ;;  %v4958_v19 = vpop.f32.mrf.mxu0  ;;  %6931 = vmatmul.mubr.bf16.gmra.mxu0 %v13698_v20 }
 0x4d3   : > { %v5420_v40 = vpop.f32.mrf.mxu1  ;;  %6940 = vmatprep.mubr.bf16.mxu0 %v16297_v1 }
 0x4d4   : > { %v5462_v22 = vpack.c.bf16 %v5420_v40, %v5416_v45  ;;  %v4960_v21 = vpop.f32.mrf.mxu0  ;;  %12961 = vmac.bf16.f32.vacc3 %v5461_v31, %v5011_v56  ;;  %v8113_v40 = vld [vmem:[#allocation8 + $0x370] sm:$0xff] }
 0x4d5   : > { %v5424_v15 = vpop.f32.mrf.mxu1  ;;  %7252 = vmatmul.mubr.bf16.gmra.mxu1 %v13701_v9 }
 0x4d6   : > { %7261 = vmatprep.mubr.bf16.mxu1 %v16297_v1  ;;  %v4962_v54 = vpop.f32.mrf.mxu0  ;;  %12962 = vmac.bf16.f32.vacc3 %v5462_v22, %v5012_v11 }
 0x4d7   : > { %v5426_v25 = vpop.f32.mrf.mxu1  ;;  %v5013_v57 = vpack.c.bf16 %v4962_v54, %v4958_v19  ;;  %v8112_v19 = vld [vmem:[#allocation8 + $0x330] sm:$0xff] }
 0x4d8   : > { %v4964_v35 = vpop.f32.mrf.mxu0 }
 0x4d9   : > { %v5428_v49 = vpop.f32.mrf.mxu1  ;;  %v5014_v36 = vpack.c.bf16 %v4964_v35, %v4960_v21 }
 0x4da   : > { %v5463_v24 = vpack.c.bf16 %v5428_v49, %v5424_v15  ;;  %v4968_v34 = vpop.f32.mrf.mxu0  ;;  %6941 = vmatmul.mubr.bf16.gmra.mxu0 %v13714_v18  ;;  %v11867_v49 = vcombine.high %v8112_v19, %v8113_v40 }
 0x4db   : > { %v5430_v13 = vpop.f32.mrf.mxu1  ;;  %6950 = vmatprep.mubr.bf16.mxu0 %v16297_v1 }
 0x4dc   : > { %v5464_v3 = vpack.c.bf16 %v5430_v13, %v5426_v25  ;;  %v4970_v17 = vpop.f32.mrf.mxu0  ;;  %12929 = vmac.bf16.f32.vacc2 %v5463_v24, %v5013_v57  ;;  %v11868_v25 = vcombine.low %v14920_v8, %v14922_v51  ;;  %v8111_v24 = vld [vmem:[#allocation8 + $0x2f0] sm:$0xff] }
 0x4dd   : > { %v5434_v12 = vpop.f32.mrf.mxu1  ;;  %7262 = vmatmul.mubr.bf16.gmra.mxu1 %v13717_v63 }
 0x4de   : > { %7271 = vmatprep.mubr.bf16.mxu1 %v16297_v1  ;;  %v4972_v47 = vpop.f32.mrf.mxu0  ;;  %12930 = vmac.bf16.f32.vacc2 %v5464_v3, %v5014_v36  ;;  %v8110_v36 = vld [vmem:[#allocation8 + $0x2b0] sm:$0xff] }
 0x4df   : > { %v5436_v58 = vpop.f32.mrf.mxu1  ;;  %v5015_v16 = vpack.c.bf16 %v4972_v47, %v4968_v34  ;;  %v11865_v8 = vcombine.high %v8110_v36, %v8111_v24 }
 0x4e0   : > { %v4974_v2 = vpop.f32.mrf.mxu0 }
 0x4e1   : > { %v5438_v7 = vpop.f32.mrf.mxu1  ;;  %v5016_v45 = vpack.c.bf16 %v4974_v2, %v4970_v17  ;;  %v11866_v17 = vcombine.low %v8112_v19, %v8113_v40 }
 0x4e2   : > { %v5465_v0 = vpack.c.bf16 %v5438_v7, %v5434_v12  ;;  %v4978_v48 = vpop.f32.mrf.mxu0  ;;  %6951 = vmatmul.mubr.bf16.gmra.mxu0 %v13732_v32 }
 0x4e3   : > { %v5440_v56 = vpop.f32.mrf.mxu1  ;;  %6960 = vmatprep.mubr.bf16.mxu0 %v16297_v1 }
 0x4e4   : > { %v5466_v30 = vpack.c.bf16 %v5440_v56, %v5436_v58  ;;  %v4980_v53 = vpop.f32.mrf.mxu0  ;;  %12897 = vmac.bf16.f32.vacc1 %v5465_v0, %v5015_v16  ;;  %v8108_v58 = vld [vmem:[#allocation8 + $0x230] sm:$0xff] }
 0x4e5   : > { %v5444_v41 = vpop.f32.mrf.mxu1  ;;  %7272 = vmatmul.mubr.bf16.gmra.mxu1 %v13738_v43  ;;  %v8109_v16 = vld [vmem:[#allocation8 + $0x270] sm:$0xff] }
 0x4e6   : > { %7426 = vmatprep.mubr.bf16.mxu1 %v16297_v1  ;;  %v4982_v61 = vpop.f32.mrf.mxu0  ;;  %12898 = vmac.bf16.f32.vacc1 %v5466_v30, %v5016_v45 }
 0x4e7   : > { %v5446_v11 = vpop.f32.mrf.mxu1  ;;  %v5017_v31 = vpack.c.bf16 %v4982_v61, %v4978_v48  ;;  %v11864_v48 = vcombine.low %v8110_v36, %v8111_v24  ;;  %v8107_v61 = vld [vmem:[#allocation8 + $0x1f0] sm:$0xff] }
 0x4e8   : > { %v4984_v22 = vpop.f32.mrf.mxu0 }
 0x4e9   : > { %v5448_v21 = vpop.f32.mrf.mxu1  ;;  %v5018_v15 = vpack.c.bf16 %v4984_v22, %v4980_v53  ;;  %v11863_v53 = vcombine.high %v8108_v58, %v8109_v16 }
 0x4ea   : > { %v5467_v54 = vpack.c.bf16 %v5448_v21, %v5444_v41  ;;  %v5855_v35 = vpop.f32.mrf.mxu0  ;;  %6961 = vmatmul.mubr.bf16.gmra.mxu0 %v16336_v38  ;;  %v8106_v41 = vld [vmem:[#allocation8 + $0x1b0] sm:$0xff] }
 0x4eb   : > { %v5450_v57 = vpop.f32.mrf.mxu1  ;;  %6970 = vmatprep.mubr.bf16.mxu0 %v16297_v1 }
 0x4ec   : > { %v5468_v34 = vpack.c.bf16 %v5450_v57, %v5446_v11  ;;  %v5857_v13 = vpop.f32.mrf.mxu0  ;;  %12865 = vmac.bf16.f32.vacc0 %v5467_v54, %v5017_v31 }
 0x4ed   : > { %v6176_v3 = vpop.f32.mrf.mxu1  ;;  %7427 = vmatmul.mubr.bf16.vlgmr.msra.gmra.mxu1 %v16337_v42 }
 0x4ee   : > { %8197 = vmatpush1.bf16.msra.mxu1 %v11868_v25  ;;  %7436 = vmatprep.mubr.bf16.mxu1 %v16297_v1  ;;  %v5859_v51 = vpop.f32.mrf.mxu0  ;;  %12866 = vmac.bf16.f32.vacc0 %v5468_v34, %v5018_v15  ;;  %v11862_v15 = vcombine.low %v8108_v58, %v8109_v16 }
 0x4ef   : > { %v6178_v12 = vpop.f32.mrf.mxu1  ;;  %8198 = vmatprep.subr.bf16.mxu1 %v11867_v49  ;;  %v6014_v47 = vpack.c.bf16 %v5859_v51, %v5855_v35  ;;  %v11861_v35 = vcombine.high %v8106_v41, %v8107_v61 }
 0x4f0   : > { %v5861_v2 = vpop.f32.mrf.mxu0 }
 0x4f1   : > { %v6180_v7 = vpop.f32.mrf.mxu1  ;;  %v6015_v45 = vpack.c.bf16 %v5861_v2, %v5857_v13  ;;  %v6496_v11 = vunpack.c.l.bf16 %v6014_v47  ;;  %v6497_v31 = vunpack.c.h.bf16 %v6014_v47  ;;  %v8105_v47 = vld [vmem:[#allocation8 + $0x170] sm:$0xff] }
 0x4f2   : > { %v6255_v0 = vpack.c.bf16 %v6180_v7, %v6176_v3  ;;  %8199 = vmatpush1.bf16.msra.mxu1 %v11866_v17  ;;  %v5865_v56 = vpop.f32.mrf.mxu0  ;;  %6971 = vmatmul.mubr.bf16.gmra.mxu0 %v16338_v46 }
 0x4f3   : > { %v6182_v30 = vpop.f32.mrf.mxu1  ;;  %8200 = vmatprep.subr.bf16.mxu1 %v11865_v8  ;;  %6980 = vmatprep.mubr.bf16.mxu0 %v16297_v1  ;;  %v6624_v49 = vunpack.c.l.bf16 %v6015_v45  ;;  %v6625_v36 = vunpack.c.h.bf16 %v6015_v45  ;;  %v11860_v45 = vcombine.low %v8106_v41, %v8107_v61 }
 0x4f4   : > { %v6512_v19 = vunpack.c.l.bf16 %v6255_v0  ;;  %v6513_v40 = vunpack.c.h.bf16 %v6255_v0  ;;  %v6256_v22 = vpack.c.bf16 %v6182_v30, %v6178_v12  ;;  %v5867_v21 = vpop.f32.mrf.mxu0  ;;  %v8104_v12 = vld [vmem:[#allocation8 + $0x130] sm:$0xff] }
 0x4f5   : > { %v6186_v54 = vpop.f32.mrf.mxu1  ;;  %7437 = vmatmul.mubr.bf16.gmra.mxu1 %v16378_v4 }
 0x4f6   : > { %v6528_v25 = vmul.f32 %v6512_v19, %v6496_v11  ;;  %v6529_v57 = vmul.f32 %v6513_v40, %v6497_v31  ;;  %7446 = vmatprep.mubr.bf16.mxu1 %v16297_v1  ;;  %8201 = vmatpush1.bf16.msra.mxu1 %v11864_v48  ;;  %v6640_v24 = vunpack.c.l.bf16 %v6256_v22  ;;  %v6641_v34 = vunpack.c.h.bf16 %v6256_v22  ;;  %v5869_v13 = vpop.f32.mrf.mxu0 }
 0x4f7   : > { %v6188_v3 = vpop.f32.mrf.mxu1  ;;  %8202 = vmatprep.subr.bf16.mxu1 %v11863_v53  ;;  %v6016_v51 = vpack.c.bf16 %v5869_v13, %v5865_v56  ;;  %v8103_v56 = vld [vmem:[#allocation8 + $0xf0] sm:$0xff] }
 0x4f8   : > { %v6544_v17 = vadd.f32 %v6528_v25, %v14703_v29  ;;  %v6545_v8 = vadd.f32 %v6529_v57, %v14705_v44  ;;  %v6656_v58 = vmul.f32 %v6640_v24, %v6624_v49  ;;  %v6657_v16 = vmul.f32 %v6641_v34, %v6625_v36  ;;  %v5871_v2 = vpop.f32.mrf.mxu0  ;;  %v8102_v44 = vld [vmem:[#allocation8 + $0xb0] sm:$0xff] }
 0x4f9   : > { %v6190_v7 = vpop.f32.mrf.mxu1  ;;  %v6017_v0 = vpack.c.bf16 %v5871_v2, %v5867_v21  ;;  %v11859_v29 = vcombine.high %v8104_v12, %v8105_v47  ;;  %v6498_v19 = vunpack.c.l.bf16 %v6016_v51  ;;  %v6499_v40 = vunpack.c.h.bf16 %v6016_v51 }
 0x4fa   : > { %v6257_v48 = vpack.c.bf16 %v6190_v7, %v6186_v54  ;;  %8203 = vmatpush1.bf16.msra.mxu1 %v11862_v15  ;;  %v14974_v30 = vadd.f32 %v6656_v58, %v6544_v17  ;;  %v14976_v11 = vadd.f32 %v6657_v16, %v6545_v8  ;;  %v5875_v53 = vpop.f32.mrf.mxu0  ;;  %6981 = vmatmul.mubr.bf16.gmra.mxu0 %v16379_v59  ;;  %v16421_v8 = vld [vmem:[#allocation51_spill] sm:$0xff]  ;;  %v8100_v16 = vld [vmem:[#allocation8 + $0x30] sm:$0xff] }
 0x4fb   : > { %v6192_v31 = vpop.f32.mrf.mxu1  ;;  %8204 = vmatprep.subr.bf16.mxu1 %v11861_v35  ;;  %6990 = vmatprep.mubr.bf16.mxu0 %v16297_v1  ;;  %v11858_v54 = vcombine.low %v8104_v12, %v8105_v47  ;;  %v11857_v35 = vcombine.high %v8102_v44, %v8103_v56  ;;  %v6626_v49 = vunpack.c.l.bf16 %v6017_v0  ;;  %v6627_v36 = vunpack.c.h.bf16 %v6017_v0  ;;  %v8101_v12 = vld [vmem:[#allocation8 + $0x70] sm:$0xff] }
 0x4fc   : > { %v6514_v22 = vunpack.c.l.bf16 %v6257_v48  ;;  %v6515_v25 = vunpack.c.h.bf16 %v6257_v48  ;;  %v6258_v21 = vpack.c.bf16 %v6192_v31, %v6188_v3  ;;  %v5877_v41 = vpop.f32.mrf.mxu0  ;;  %v11856_v0 = vcombine.low %v8102_v44, %v8103_v56 }
 0x4fd   : > { %v6196_v61 = vpop.f32.mrf.mxu1  ;;  %7447 = vmatmul.mubr.bf16.gmra.mxu1 %v16380_v23 }
 0x4fe   : > { %v6530_v15 = vmul.f32 %v6514_v22, %v6498_v19  ;;  %v6531_v57 = vmul.f32 %v6515_v25, %v6499_v40  ;;  %7456 = vmatprep.mubr.bf16.mxu1 %v16297_v1  ;;  %8205 = vmatpush1.bf16.msra.mxu1 %v11860_v45  ;;  %v6642_v24 = vunpack.c.l.bf16 %v6258_v21  ;;  %v6643_v34 = vunpack.c.h.bf16 %v6258_v21  ;;  %v5879_v13 = vpop.f32.mrf.mxu0  ;;  %v14989_v25 = vld [vmem:[#allocation10 + $0x3b0] sm:$0xff] }
 0x4ff   : > { %v6198_v17 = vpop.f32.mrf.mxu1  ;;  %8206 = vmatprep.subr.bf16.mxu1 %v11859_v29  ;;  %v6018_v58 = vpack.c.bf16 %v5879_v13, %v5875_v53  ;;  %v11855_v53 = vcombine.high %v8100_v16, %v8101_v12  ;;  %v14991_v21 = vld [vmem:[#allocation10 + $0x3f0] sm:$0xff] }
 0x500   : > { %v6546_v3 = vadd.f32 %v6530_v15, %v14713_v55  ;;  %v6547_v51 = vadd.f32 %v6531_v57, %v16421_v8  ;;  %v6658_v47 = vmul.f32 %v6642_v24, %v6626_v49  ;;  %v6659_v2 = vmul.f32 %v6643_v34, %v6627_v36  ;;  %v5881_v7 = vpop.f32.mrf.mxu0  ;;  %v16423_v55 = vld [vmem:[#allocation38_spill] sm:$0xff]  ;;  %v16424_v49 = vld [vmem:[#allocation39_spill] sm:$0xff] }
 0x501   : > { %v6200_v48 = vpop.f32.mrf.mxu1  ;;  %v6019_v45 = vpack.c.bf16 %v5881_v7, %v5877_v41  ;;  %v6500_v15 = vunpack.c.l.bf16 %v6018_v58  ;;  %v6501_v57 = vunpack.c.h.bf16 %v6018_v58  ;;  %v11854_v36 = vcombine.low %v8100_v16, %v8101_v12  ;;  %v16426_v7 = vld [vmem:[#allocation59_spill] sm:$0xff] }
 0x502   : > { %v6259_v31 = vpack.c.bf16 %v6200_v48, %v6196_v61  ;;  %8207 = vmatpush1.bf16.msra.mxu1 %v11858_v54  ;;  %v14984_v19 = vadd.f32 %v6658_v47, %v6546_v3  ;;  %v14986_v40 = vadd.f32 %v6659_v2, %v6547_v51  ;;  %v5885_v29 = vpop.f32.mrf.mxu0  ;;  %6991 = vmatmul.mubr.bf16.gmra.mxu0 %v16423_v55 }
 0x503   : > { %v6202_v22 = vpop.f32.mrf.mxu1  ;;  %8208 = vmatprep.subr.bf16.mxu1 %v11857_v35  ;;  %7000 = vmatprep.mubr.bf16.mxu0 %v16297_v1  ;;  %v11885_v35 = vcombine.high %v14989_v25, %v14991_v21  ;;  %v6628_v13 = vunpack.c.l.bf16 %v6019_v45  ;;  %v6629_v3 = vunpack.c.h.bf16 %v6019_v45 }
 0x504   : > { %16422 = vst [vmem:[#allocation57_spill] sm:$0xff] %v14986_v40  ;;  %v6516_v41 = vunpack.c.l.bf16 %v6259_v31  ;;  %v6517_v61 = vunpack.c.h.bf16 %v6259_v31  ;;  %v6260_v44 = vpack.c.bf16 %v6202_v22, %v6198_v17  ;;  %v5887_v56 = vpop.f32.mrf.mxu0  ;;  %v16425_v17 = vld [vmem:[#allocation52_spill] sm:$0xff] }
 0x505   : > { %v6206_v54 = vpop.f32.mrf.mxu1  ;;  %7457 = vmatmul.mubr.bf16.gmra.mxu1 %v16424_v49  ;;  %v16429_v49 = vld [vmem:[#allocation40_spill] sm:$0xff] }
 0x506   : > { %v6532_v24 = vmul.f32 %v6516_v41, %v6500_v15  ;;  %v6533_v34 = vmul.f32 %v6517_v61, %v6501_v57  ;;  %7466 = vmatprep.mubr.bf16.mxu1 %v16297_v1  ;;  %8209 = vmatpush1.bf16.msra.mxu1 %v11856_v0  ;;  %v6644_v8 = vunpack.c.l.bf16 %v6260_v44  ;;  %v6645_v51 = vunpack.c.h.bf16 %v6260_v44  ;;  %v5889_v58 = vpop.f32.mrf.mxu0 }
 0x507   : > { %v6208_v47 = vpop.f32.mrf.mxu1  ;;  %8210 = vmatprep.subr.bf16.mxu1 %v11855_v53  ;;  %v6020_v16 = vpack.c.bf16 %v5889_v58, %v5885_v29 }
 0x508   : > { %v6548_v2 = vadd.f32 %v6532_v24, %v16425_v17  ;;  %v6549_v48 = vadd.f32 %v6533_v34, %v16426_v7  ;;  %v6660_v12 = vmul.f32 %v6644_v8, %v6628_v13  ;;  %v6661_v31 = vmul.f32 %v6645_v51, %v6629_v3  ;;  %v5891_v22 = vpop.f32.mrf.mxu0 }
 0x509   : > { %v6210_v15 = vpop.f32.mrf.mxu1  ;;  %v6021_v0 = vpack.c.bf16 %v5891_v22, %v5887_v56  ;;  %v6502_v53 = vunpack.c.l.bf16 %v6020_v16  ;;  %v6503_v24 = vunpack.c.h.bf16 %v6020_v16 }
 0x50a   : > { %v6261_v57 = vpack.c.bf16 %v6210_v15, %v6206_v54  ;;  %8211 = vmatpush1.bf16.msra.mxu1 %v11854_v36  ;;  %v15000_v41 = vadd.f32 %v6660_v12, %v6548_v2  ;;  %v15002_v45 = vadd.f32 %v6661_v31, %v6549_v48  ;;  %v5895_v61 = vpop.f32.mrf.mxu0  ;;  %7001 = vmatmul.mubr.bf16.gmra.mxu0 %v16429_v49  ;;  %v16430_v54 = vld [vmem:[#allocation41_spill] sm:$0xff]  ;;  %v16431_v48 = vld [vmem:[#allocation35_spill] sm:$0xff]  ;;  %v16432_v12 = vld [vmem:[#allocation36_spill] sm:$0xff] }
 0x50b   : > { %v6212_v44 = vpop.f32.mrf.mxu1  ;;  %8421 = vmatprep.subr.bf16.mxu1 %v11885_v35  ;;  %7010 = vmatprep.mubr.bf16.mxu0 %v16297_v1  ;;  %v6630_v51 = vunpack.c.l.bf16 %v6021_v0  ;;  %v6631_v58 = vunpack.c.h.bf16 %v6021_v0 }
 0x50c   : > { %16427 = vst [vmem:[#allocation58_spill] sm:$0xff] %v15000_v41  ;;  %16428 = vst [vmem:[#allocation48_spill] sm:$0xff] %v15002_v45  ;;  %v6518_v34 = vunpack.c.l.bf16 %v6261_v57  ;;  %v6519_v29 = vunpack.c.h.bf16 %v6261_v57  ;;  %v6262_v13 = vpack.c.bf16 %v6212_v44, %v6208_v47  ;;  %v5897_v3 = vpop.f32.mrf.mxu0 }
 0x50d   : > { %v6216_v56 = vpop.f32.mrf.mxu1  ;;  %7467 = vmatmul.mubr.bf16.gmra.mxu1 %v16430_v54 }
 0x50e   : > { %v6534_v36 = vmul.f32 %v6518_v34, %v6502_v53  ;;  %v6535_v8 = vmul.f32 %v6519_v29, %v6503_v24  ;;  %7476 = vmatprep.mubr.bf16.mxu1 %v16297_v1  ;;  %v6646_v17 = vunpack.c.l.bf16 %v6262_v13  ;;  %v6647_v2 = vunpack.c.h.bf16 %v6262_v13  ;;  %v5899_v35 = vpop.f32.mrf.mxu0  ;;  %v16435_v13 = vld [vmem:[#allocation42_spill] sm:$0xff] }
 0x50f   : > { %v6218_v7 = vpop.f32.mrf.mxu1  ;;  %v6022_v22 = vpack.c.bf16 %v5899_v35, %v5895_v61 }
 0x510   : > { %v6550_v16 = vadd.f32 %v6534_v36, %v16431_v48  ;;  %v6551_v31 = vadd.f32 %v6535_v8, %v16432_v12  ;;  %v6662_v47 = vmul.f32 %v6646_v17, %v6630_v51  ;;  %v6663_v15 = vmul.f32 %v6647_v2, %v6631_v58  ;;  %v5901_v57 = vpop.f32.mrf.mxu0  ;;  %v16436_v58 = vld [vmem:[#allocation43_spill] sm:$0xff] }
 0x511   : > { %v6220_v44 = vpop.f32.mrf.mxu1  ;;  %v6023_v54 = vpack.c.bf16 %v5901_v57, %v5897_v3  ;;  %v6504_v49 = vunpack.c.l.bf16 %v6022_v22  ;;  %v6505_v45 = vunpack.c.h.bf16 %v6022_v22  ;;  %v16437_v22 = vld [vmem:[#allocation37_spill] sm:$0xff] }
 0x512   : > { %v6263_v53 = vpack.c.bf16 %v6220_v44, %v6216_v56  ;;  %v15010_v24 = vadd.f32 %v6662_v47, %v6550_v16  ;;  %v15012_v34 = vadd.f32 %v6663_v15, %v6551_v31  ;;  %v5905_v0 = vpop.f32.mrf.mxu0  ;;  %7011 = vmatmul.mubr.bf16.gmra.mxu0 %v16435_v13  ;;  %v16438_v15 = vld [vmem:[#allocation53_spill] sm:$0xff] }
 0x513   : > { %v6222_v29 = vpop.f32.mrf.mxu1  ;;  %7020 = vmatprep.mubr.bf16.mxu0 %v16297_v1  ;;  %v6632_v17 = vunpack.c.l.bf16 %v6023_v54  ;;  %v6633_v2 = vunpack.c.h.bf16 %v6023_v54 }
 0x514   : > { %16433 = vst [vmem:[#allocation49_spill] sm:$0xff] %v15010_v24  ;;  %16434 = vst [vmem:[#allocation50_spill] sm:$0xff] %v15012_v34  ;;  %v6520_v36 = vunpack.c.l.bf16 %v6263_v53  ;;  %v6521_v48 = vunpack.c.h.bf16 %v6263_v53  ;;  %v6264_v61 = vpack.c.bf16 %v6222_v29, %v6218_v7  ;;  %v5907_v8 = vpop.f32.mrf.mxu0 }
 0x515   : > { %v6226_v51 = vpop.f32.mrf.mxu1  ;;  %7477 = vmatmul.mubr.bf16.gmra.mxu1 %v16436_v58 }
 0x516   : > { %v6536_v3 = vmul.f32 %v6520_v36, %v6504_v49  ;;  %v6537_v56 = vmul.f32 %v6521_v48, %v6505_v45  ;;  %7486 = vmatprep.mubr.bf16.mxu1 %v16297_v1  ;;  %v6648_v35 = vunpack.c.l.bf16 %v6264_v61  ;;  %v6649_v16 = vunpack.c.h.bf16 %v6264_v61  ;;  %v5909_v12 = vpop.f32.mrf.mxu0  ;;  %v16441_v61 = vld [vmem:[#allocation44_spill] sm:$0xff] }
 0x517   : > { %v6228_v31 = vpop.f32.mrf.mxu1  ;;  %v6024_v44 = vpack.c.bf16 %v5909_v12, %v5905_v0 }
 0x518   : > { %v6552_v47 = vadd.f32 %v6536_v3, %v16437_v22  ;;  %v6553_v57 = vadd.f32 %v6537_v56, %v16438_v15  ;;  %v6664_v7 = vmul.f32 %v6648_v35, %v6632_v17  ;;  %v6665_v53 = vmul.f32 %v6649_v16, %v6633_v2  ;;  %v5911_v29 = vpop.f32.mrf.mxu0  ;;  %v16442_v2 = vld [vmem:[#allocation45_spill] sm:$0xff] }
 0x519   : > { %v6230_v13 = vpop.f32.mrf.mxu1  ;;  %v6025_v58 = vpack.c.bf16 %v5911_v29, %v5907_v8  ;;  %v6506_v34 = vunpack.c.l.bf16 %v6024_v44  ;;  %v6507_v24 = vunpack.c.h.bf16 %v6024_v44 }
 0x51a   : > { %v6265_v49 = vpack.c.bf16 %v6230_v13, %v6226_v51  ;;  %v15020_v45 = vadd.f32 %v6664_v7, %v6552_v47  ;;  %v15022_v36 = vadd.f32 %v6665_v53, %v6553_v57  ;;  %v5915_v54 = vpop.f32.mrf.mxu0  ;;  %7021 = vmatmul.mubr.bf16.gmra.mxu0 %v16441_v61  ;;  %v16443_v57 = vld [vmem:[#allocation54_spill] sm:$0xff]  ;;  %v16444_v7 = vld [vmem:[#allocation32_spill] sm:$0xff] }
 0x51b   : > { %v6232_v48 = vpop.f32.mrf.mxu1  ;;  %7030 = vmatprep.mubr.bf16.mxu0 %v16297_v1  ;;  %v6634_v51 = vunpack.c.l.bf16 %v6025_v58  ;;  %v6635_v35 = vunpack.c.h.bf16 %v6025_v58 }
 0x51c   : > { %16439 = vst [vmem:[#allocation51_spill] sm:$0xff] %v15020_v45  ;;  %16440 = vst [vmem:[#allocation52_spill] sm:$0xff] %v15022_v36  ;;  %v6522_v3 = vunpack.c.l.bf16 %v6265_v49  ;;  %v6523_v22 = vunpack.c.h.bf16 %v6265_v49  ;;  %v6266_v0 = vpack.c.bf16 %v6232_v48, %v6228_v31  ;;  %v5917_v56 = vpop.f32.mrf.mxu0 }
 0x51d   : > { %v6236_v17 = vpop.f32.mrf.mxu1  ;;  %7487 = vmatmul.mubr.bf16.gmra.mxu1 %v16442_v2 }
 0x51e   : > { %v6538_v13 = vmul.f32 %v6522_v3, %v6506_v34  ;;  %v6539_v8 = vmul.f32 %v6523_v22, %v6507_v24  ;;  %7496 = vmatprep.mubr.bf16.mxu1 %v16297_v1  ;;  %v6650_v16 = vunpack.c.l.bf16 %v6266_v0  ;;  %v6651_v12 = vunpack.c.h.bf16 %v6266_v0  ;;  %v5919_v47 = vpop.f32.mrf.mxu0  ;;  %v16447_v0 = vld [vmem:[#allocation46_spill] sm:$0xff] }
 0x51f   : > { %v6238_v15 = vpop.f32.mrf.mxu1  ;;  %v6026_v29 = vpack.c.bf16 %v5919_v47, %v5915_v54 }
 0x520   : > { %v6554_v44 = vadd.f32 %v6538_v13, %v16443_v57  ;;  %v6555_v53 = vadd.f32 %v6539_v8, %v16444_v7  ;;  %v6666_v31 = vmul.f32 %v6650_v16, %v6634_v51  ;;  %v6667_v49 = vmul.f32 %v6651_v12, %v6635_v35  ;;  %v5921_v48 = vpop.f32.mrf.mxu0  ;;  %v16448_v35 = vld [vmem:[#allocation47_spill] sm:$0xff]  ;;  %v15040_v16 = vld [vmem:[#allocation7 + $0x378] sm:$0xff] }
 0x521   : > { %v6240_v61 = vpop.f32.mrf.mxu1  ;;  %v6027_v2 = vpack.c.bf16 %v5921_v48, %v5917_v56  ;;  %v6508_v36 = vunpack.c.l.bf16 %v6026_v29  ;;  %v6509_v45 = vunpack.c.h.bf16 %v6026_v29 }
 0x522   : > { %v6267_v34 = vpack.c.bf16 %v6240_v61, %v6236_v17  ;;  %v15030_v24 = vadd.f32 %v6666_v31, %v6554_v44  ;;  %v15032_v3 = vadd.f32 %v6667_v49, %v6555_v53  ;;  %v5925_v58 = vpop.f32.mrf.mxu0  ;;  %7031 = vmatmul.mubr.bf16.gmra.mxu0 %v16447_v0  ;;  %v15038_v17 = vld [vmem:[#allocation7 + $0x338] sm:$0xff]  ;;  %v16449_v31 = vld [vmem:[#allocation33_spill] sm:$0xff] }
 0x523   : > { %v6242_v22 = vpop.f32.mrf.mxu1  ;;  %7907 = vmatprep.mubr.bf16.mxu0 %v16297_v1  ;;  %v6636_v12 = vunpack.c.l.bf16 %v6027_v2  ;;  %v6637_v47 = vunpack.c.h.bf16 %v6027_v2  ;;  %v16450_v49 = vld [vmem:[#allocation34_spill] sm:$0xff]  ;;  %v11899_v0 = vcombine.high %v15038_v17, %v15040_v16 }
 0x524   : > { %16445 = vst [vmem:[#allocation59_spill] sm:$0xff] %v15030_v24  ;;  %16446 = vst [vmem:[#allocation35_spill] sm:$0xff] %v15032_v3  ;;  %v6524_v13 = vunpack.c.l.bf16 %v6267_v34  ;;  %v6525_v57 = vunpack.c.h.bf16 %v6267_v34  ;;  %v6268_v54 = vpack.c.bf16 %v6242_v22, %v6238_v15  ;;  %v5927_v8 = vpop.f32.mrf.mxu0  ;;  %v15044_v22 = vld [vmem:[#allocation10 + $0x330] sm:$0xff]  ;;  %v15050_v24 = vld [vmem:[#allocation7 + $0x2b8] sm:$0xff] }
 0x525   : > { %v6246_v51 = vpop.f32.mrf.mxu1  ;;  %7497 = vmatmul.mubr.bf16.gmra.mxu1 %v16448_v35 }
 0x526   : > { %v6540_v61 = vmul.f32 %v6524_v13, %v6508_v36  ;;  %v6541_v56 = vmul.f32 %v6525_v57, %v6509_v45  ;;  %8228 = vmatprep.mubr.bf16.mxu1 %v16297_v1  ;;  %v6652_v44 = vunpack.c.l.bf16 %v6268_v54  ;;  %v6653_v7 = vunpack.c.h.bf16 %v6268_v54  ;;  %v5929_v53 = vpop.f32.mrf.mxu0  ;;  %v8338_v45 = vld [vmem:[#allocation10 + $0x370] sm:$0xff] }
 0x527   : > { %v6248_v29 = vpop.f32.mrf.mxu1  ;;  %v6028_v34 = vpack.c.bf16 %v5929_v53, %v5925_v58  ;;  %v11884_v54 = vcombine.low %v14989_v25, %v14991_v21  ;;  %v15060_v53 = vld [vmem:[#allocation10 + $0x2b0] sm:$0xff]  ;;  %v11898_v25 = vcombine.low %v15038_v17, %v15040_v16 }
 0x528   : > { %v6556_v15 = vadd.f32 %v6540_v61, %v16449_v31  ;;  %v6557_v48 = vadd.f32 %v6541_v56, %v16450_v49  ;;  %v6668_v36 = vmul.f32 %v6652_v44, %v6636_v12  ;;  %v6669_v13 = vmul.f32 %v6653_v7, %v6637_v47  ;;  %v5931_v57 = vpop.f32.mrf.mxu0  ;;  %v15052_v61 = vld [vmem:[#allocation7 + $0x2f8] sm:$0xff] }
 0x529   : > { %v6250_v35 = vpop.f32.mrf.mxu1  ;;  %v6029_v2 = vpack.c.bf16 %v5931_v57, %v5927_v8  ;;  %v16453_v44 = vld [vmem:[#allocation26_spill] sm:$0xff]  ;;  %v11883_v7 = vcombine.high %v15044_v22, %v8338_v45  ;;  %v15062_v8 = vld [vmem:[#allocation10 + $0x2f0] sm:$0xff]  ;;  %v6510_v21 = vunpack.c.l.bf16 %v6028_v34  ;;  %v11882_v57 = vcombine.low %v15044_v22, %v8338_v45 }
 0x52a   : > { %v6269_v3 = vpack.c.bf16 %v6250_v35, %v6246_v51  ;;  %v15054_v58 = vadd.f32 %v6668_v36, %v6556_v15  ;;  %v15056_v56 = vadd.f32 %v6669_v13, %v6557_v48  ;;  %v5935_v12 = vpop.f32.mrf.mxu0  ;;  %7908 = vmatmul.mubr.bf16.vlgmr.msra.gmra.mxu0 %v16453_v44  ;;  %v6511_v51 = vunpack.c.h.bf16 %v6028_v34  ;;  %v16455_v13 = vld [vmem:[#allocation27_spill] sm:$0xff] }
 0x52b   : > { %v6252_v47 = vpop.f32.mrf.mxu1  ;;  %v16454_v15 = vcombine.low %v14845_v33, %v14848_v5  ;;  %7917 = vmatprep.mubr.bf16.mxu0 %v16297_v1  ;;  %v11897_v17 = vcombine.high %v15050_v24, %v15052_v61  ;;  %v11881_v33 = vcombine.high %v15060_v53, %v15062_v8  ;;  %v15077_v5 = vld [vmem:[#allocation7 + $0x238] sm:$0xff] }
 0x52c   : > { %16451 = vst [vmem:[#allocation36_spill] sm:$0xff] %v15054_v58  ;;  %16452 = vst [vmem:[#allocation37_spill] sm:$0xff] %v15056_v56  ;;  %v6526_v35 = vunpack.c.l.bf16 %v6269_v3  ;;  %v6527_v31 = vunpack.c.h.bf16 %v6269_v3  ;;  %v6270_v49 = vpack.c.bf16 %v6252_v47, %v6248_v29  ;;  %v5937_v48 = vpop.f32.mrf.mxu0  ;;  %v15079_v3 = vld [vmem:[#allocation7 + $0x278] sm:$0xff]  ;;  %v6638_v29 = vunpack.c.l.bf16 %v6029_v2 }
 0x52d   : > { %8903 = vmatpush1.bf16.msra.mxu0 %v16454_v15  ;;  %v6401_v36 = vpop.f32.mrf.mxu1  ;;  %8229 = vmatmul.mubr.bf16.vlgmr.msra.gmra.mxu1 %v16455_v13  ;;  %v6639_v47 = vunpack.c.h.bf16 %v6029_v2  ;;  %v15081_v13 = vld [vmem:[#allocation10 + $0x230] sm:$0xff]  ;;  %v11896_v56 = vcombine.low %v15050_v24, %v15052_v61  ;;  %v15097_v24 = vld [vmem:[#allocation7 + $0x1f8] sm:$0xff] }
 0x52e   : > { %8904 = vmatprep.subr.bf16.mxu0 %v11899_v0  ;;  %v6542_v16 = vmul.f32 %v6526_v35, %v6510_v21  ;;  %v6543_v34 = vmul.f32 %v6527_v31, %v6511_v51  ;;  %8422 = vmatpush1.bf16.msra.mxu1 %v11884_v54  ;;  %v6654_v15 = vunpack.c.l.bf16 %v6270_v49  ;;  %v6655_v22 = vunpack.c.h.bf16 %v6270_v49  ;;  %v5939_v0 = vpop.f32.mrf.mxu0  ;;  %v15083_v21 = vld [vmem:[#allocation10 + $0x270] sm:$0xff]  ;;  %v16456_v54 = vld [vmem:[#allocation55_spill] sm:$0xff]  ;;  %v16457_v35 = vld [vmem:[#allocation56_spill] sm:$0xff] }
 0x52f   : > { %8238 = vmatprep.mubr.bf16.mxu1 %v16297_v1  ;;  %v6403_v45 = vpop.f32.mrf.mxu1  ;;  %8423 = vmatprep.subr.bf16.mxu1 %v11883_v7  ;;  %v6030_v44 = vpack.c.bf16 %v5939_v0, %v5935_v12  ;;  %v11895_v7 = vcombine.high %v15077_v5, %v15079_v3  ;;  %v11879_v12 = vcombine.high %v15081_v13, %v15083_v21 }
 0x530   : > { %v6558_v51 = vadd.f32 %v6542_v16, %v16456_v54  ;;  %v6559_v31 = vadd.f32 %v6543_v34, %v16457_v35  ;;  %v6670_v58 = vmul.f32 %v6654_v15, %v6638_v29  ;;  %v6671_v2 = vmul.f32 %v6655_v22, %v6639_v47  ;;  %v5941_v41 = vpop.f32.mrf.mxu0  ;;  %v16458_v47 = vld [vmem:[#allocation28_spill] sm:$0xff]  ;;  %v16459_v54 = vld [vmem:[#allocation29_spill] sm:$0xff] }
 0x531   : > { %8905 = vmatpush1.bf16.msra.mxu0 %v11898_v25  ;;  %v6405_v49 = vpop.f32.mrf.mxu1  ;;  %v6031_v55 = vpack.c.bf16 %v5941_v41, %v5937_v48  ;;  %v11880_v16 = vcombine.low %v15060_v53, %v15062_v8  ;;  %v15095_v25 = vld [vmem:[#allocation7 + $0x1b8] sm:$0xff]  ;;  %v15104_v41 = vld [vmem:[#allocation10 + $0x1b0] sm:$0xff]  ;;  %v11894_v53 = vcombine.low %v15077_v5, %v15079_v3  ;;  %v6560_v8 = vunpack.c.l.bf16 %v6030_v44 }
 0x532   : > { %8906 = vmatprep.subr.bf16.mxu0 %v11897_v17  ;;  %v6480_v40 = vpack.c.bf16 %v6405_v49, %v6401_v36  ;;  %8424 = vmatpush1.bf16.msra.mxu1 %v11882_v57  ;;  %v15099_v61 = vadd.f32 %v6670_v58, %v6558_v51  ;;  %v15101_v34 = vadd.f32 %v6671_v2, %v6559_v31  ;;  %v5945_v17 = vpop.f32.mrf.mxu0  ;;  %v15106_v48 = vld [vmem:[#allocation10 + $0x1f0] sm:$0xff]  ;;  %v6561_v36 = vunpack.c.h.bf16 %v6030_v44  ;;  %v15121_v44 = vld [vmem:[#allocation7 + $0x178] sm:$0xff] }
 0x533   : > { %v6407_v29 = vpop.f32.mrf.mxu1  ;;  %7918 = vmatmul.mubr.bf16.gmra.mxu0 %v16458_v47  ;;  %8425 = vmatprep.subr.bf16.mxu1 %v11881_v33  ;;  %v11878_v33 = vcombine.low %v15081_v13, %v15083_v21  ;;  %v11893_v51 = vcombine.high %v15095_v25, %v15097_v24  ;;  %v6689_v35 = vunpack.c.h.bf16 %v6031_v55  ;;  %v15123_v49 = vld [vmem:[#allocation10 + $0x130] sm:$0xff] }
 0x534   : > { %v6576_v57 = vunpack.c.l.bf16 %v6480_v40  ;;  %v6577_v15 = vunpack.c.h.bf16 %v6480_v40  ;;  %7927 = vmatprep.mubr.bf16.mxu0 %v16297_v1  ;;  %v6481_v58 = vpack.c.bf16 %v6407_v29, %v6403_v45  ;;  %v5947_v22 = vpop.f32.mrf.mxu0  ;;  %v11877_v40 = vcombine.high %v15104_v41, %v15106_v48 }
 0x535   : > { %8907 = vmatpush1.bf16.msra.mxu0 %v11896_v56  ;;  %v6411_v0 = vpop.f32.mrf.mxu1  ;;  %8239 = vmatmul.mubr.bf16.gmra.mxu1 %v16459_v54  ;;  %v15119_v56 = vld [vmem:[#allocation7 + $0x138] sm:$0xff]  ;;  %v6688_v45 = vunpack.c.l.bf16 %v6031_v55 }
 0x536   : > { %8908 = vmatprep.subr.bf16.mxu0 %v11895_v7  ;;  %v6592_v5 = vmul.f32 %v6576_v57, %v6560_v8  ;;  %v6593_v3 = vmul.f32 %v6577_v15, %v6561_v36  ;;  %8248 = vmatprep.mubr.bf16.mxu1 %v16297_v1  ;;  %v6704_v31 = vunpack.c.l.bf16 %v6481_v58  ;;  %v6705_v13 = vunpack.c.h.bf16 %v6481_v58  ;;  %v5949_v21 = vpop.f32.mrf.mxu0  ;;  %v15125_v7 = vld [vmem:[#allocation10 + $0x170] sm:$0xff] }
 0x537   : > { %8426 = vmatpush1.bf16.msra.mxu1 %v11880_v16  ;;  %v6413_v2 = vpop.f32.mrf.mxu1  ;;  %v6032_v8 = vpack.c.bf16 %v5949_v21, %v5945_v17  ;;  %v11892_v36 = vcombine.low %v15095_v25, %v15097_v24  ;;  %v15137_v17 = vld [vmem:[#allocation7 + $0xb8] sm:$0xff] }
 0x538   : > { %8427 = vmatprep.subr.bf16.mxu1 %v11879_v12  ;;  %v6608_v16 = vadd.f32 %v6592_v5, %v14880_v62  ;;  %v6609_v29 = vadd.f32 %v6593_v3, %v14882_v39  ;;  %v6720_v57 = vmul.f32 %v6704_v31, %v6688_v45  ;;  %v6721_v55 = vmul.f32 %v6705_v13, %v6689_v35  ;;  %v5951_v15 = vpop.f32.mrf.mxu0  ;;  %v15139_v25 = vld [vmem:[#allocation7 + $0xf8] sm:$0xff] }
 0x539   : > { %8909 = vmatpush1.bf16.msra.mxu0 %v11894_v53  ;;  %v6415_v58 = vpop.f32.mrf.mxu1  ;;  %v11891_v12 = vcombine.high %v15119_v56, %v15121_v44  ;;  %v6033_v54 = vpack.c.bf16 %v5951_v15, %v5947_v22  ;;  %v11876_v62 = vcombine.low %v15104_v41, %v15106_v48  ;;  %v11875_v39 = vcombine.high %v15123_v49, %v15125_v7  ;;  %v16460_v3 = vld [vmem:[#allocation30_spill] sm:$0xff]  ;;  %v15146_v22 = vld [vmem:[#allocation10 + $0xb0] sm:$0xff] }
 0x53a   : > { %8910 = vmatprep.subr.bf16.mxu0 %v11893_v51  ;;  %v6482_v47 = vpack.c.bf16 %v6415_v58, %v6411_v0  ;;  %v15141_v24 = vadd.f32 %v6720_v57, %v6608_v16  ;;  %v15143_v53 = vadd.f32 %v6721_v55, %v6609_v29  ;;  %v5955_v51 = vpop.f32.mrf.mxu0  ;;  %v15148_v0 = vld [vmem:[#allocation10 + $0xf0] sm:$0xff]  ;;  %v11890_v41 = vcombine.low %v15119_v56, %v15121_v44  ;;  %v16461_v16 = vld [vmem:[#allocation31_spill] sm:$0xff] }
 0x53b   : > { %8428 = vmatpush1.bf16.msra.mxu1 %v11878_v33  ;;  %v6417_v5 = vpop.f32.mrf.mxu1  ;;  %7928 = vmatmul.mubr.bf16.gmra.mxu0 %v16460_v3  ;;  %v6562_v48 = vunpack.c.l.bf16 %v6032_v8  ;;  %v6563_v33 = vunpack.c.h.bf16 %v6032_v8  ;;  %v11889_v29 = vcombine.high %v15137_v17, %v15139_v25  ;;  %v8807_v8 = vld [vmem:[#allocation7 + $0x78] sm:$0xff]  ;;  %v6691_v57 = vunpack.c.h.bf16 %v6033_v54  ;;  %v8325_v58 = vld [vmem:[#allocation10 + $0x30] sm:$0xff] }
 0x53c   : > { %8429 = vmatprep.subr.bf16.mxu1 %v11877_v40  ;;  %v6578_v45 = vunpack.c.l.bf16 %v6482_v47  ;;  %v6579_v35 = vunpack.c.h.bf16 %v6482_v47  ;;  %7937 = vmatprep.mubr.bf16.mxu0 %v16297_v1  ;;  %v6483_v31 = vpack.c.bf16 %v6417_v5, %v6413_v2  ;;  %v5957_v13 = vpop.f32.mrf.mxu0  ;;  %v11874_v40 = vcombine.low %v15123_v49, %v15125_v7  ;;  %v15161_v2 = vld [vmem:[#allocation7 + $0x38] sm:$0xff] }
 0x53d   : > { %8911 = vmatpush1.bf16.msra.mxu0 %v11892_v36  ;;  %v6421_v21 = vpop.f32.mrf.mxu1  ;;  %8249 = vmatmul.mubr.bf16.gmra.mxu1 %v16461_v16  ;;  %v11873_v47 = vcombine.high %v15146_v22, %v15148_v0  ;;  %v6690_v36 = vunpack.c.l.bf16 %v6033_v54 }
 0x53e   : > { %8912 = vmatprep.subr.bf16.mxu0 %v11891_v12  ;;  %v6594_v56 = vmul.f32 %v6578_v45, %v6562_v48  ;;  %v6595_v44 = vmul.f32 %v6579_v35, %v6563_v33  ;;  %8258 = vmatprep.mubr.bf16.mxu1 %v16297_v1  ;;  %v6706_v55 = vunpack.c.l.bf16 %v6483_v31  ;;  %v6707_v15 = vunpack.c.h.bf16 %v6483_v31  ;;  %v5959_v49 = vpop.f32.mrf.mxu0  ;;  %v8326_v12 = vld [vmem:[#allocation10 + $0x70] sm:$0xff] }
 0x53f   : > { %8430 = vmatpush1.bf16.msra.mxu1 %v11876_v62  ;;  %v6423_v7 = vpop.f32.mrf.mxu1  ;;  %v6034_v62 = vpack.c.bf16 %v5959_v49, %v5955_v51  ;;  %v11888_v33 = vcombine.low %v15137_v17, %v15139_v25  ;;  %v11887_v31 = vcombine.high %v15161_v2, %v8807_v8  ;;  %v15175_v25 = vld [vmem:[#allocation8 + $0x3b8] sm:$0xff] }
 0x540   : > { %8431 = vmatprep.subr.bf16.mxu1 %v11875_v39  ;;  %v6610_v5 = vadd.f32 %v6594_v56, %v14915_v60  ;;  %v6611_v48 = vadd.f32 %v6595_v44, %v14917_v50  ;;  %v6722_v45 = vmul.f32 %v6706_v55, %v6690_v36  ;;  %v6723_v35 = vmul.f32 %v6707_v15, %v6691_v57  ;;  %v5961_v16 = vpop.f32.mrf.mxu0 }
 0x541   : > { %8913 = vmatpush1.bf16.msra.mxu0 %v11890_v41  ;;  %v6425_v54 = vpop.f32.mrf.mxu1  ;;  %v6035_v3 = vpack.c.bf16 %v5961_v16, %v5957_v13  ;;  %v11872_v60 = vcombine.low %v15146_v22, %v15148_v0  ;;  %v11871_v56 = vcombine.high %v8325_v58, %v8326_v12  ;;  %v11886_v13 = vcombine.low %v15161_v2, %v8807_v8 }
 0x542   : > { %8914 = vmatprep.subr.bf16.mxu0 %v11889_v29  ;;  %v6484_v39 = vpack.c.bf16 %v6425_v54, %v6421_v21  ;;  %v15170_v50 = vadd.f32 %v6722_v45, %v6610_v5  ;;  %v15172_v51 = vadd.f32 %v6723_v35, %v6611_v48  ;;  %v5965_v41 = vpop.f32.mrf.mxu0  ;;  %v15177_v29 = vld [vmem:[#allocation8 + $0x3f8] sm:$0xff]  ;;  %v6564_v21 = vunpack.c.l.bf16 %v6034_v62 }
 0x543   : > { %8432 = vmatpush1.bf16.msra.mxu1 %v11874_v40  ;;  %v6427_v17 = vpop.f32.mrf.mxu1  ;;  %7938 = vmatmul.mubr.bf16.gmra.mxu0 %v13658_v10  ;;  %v6565_v16 = vunpack.c.h.bf16 %v6034_v62  ;;  %v11870_v57 = vcombine.low %v8325_v58, %v8326_v12  ;;  %v11917_v2 = vcombine.high %v15175_v25, %v15177_v29  ;;  %v6692_v8 = vunpack.c.l.bf16 %v6035_v3 }
 0x544   : > { %8433 = vmatprep.subr.bf16.mxu1 %v11873_v47  ;;  %v6580_v40 = vunpack.c.l.bf16 %v6484_v39  ;;  %v6581_v22 = vunpack.c.h.bf16 %v6484_v39  ;;  %7947 = vmatprep.mubr.bf16.mxu0 %v16297_v1  ;;  %v6485_v0 = vpack.c.bf16 %v6427_v17, %v6423_v7  ;;  %v5967_v44 = vpop.f32.mrf.mxu0  ;;  %v6693_v15 = vunpack.c.h.bf16 %v6035_v3 }
 0x545   : > { %8915 = vmatpush1.bf16.msra.mxu0 %v11888_v33  ;;  %v6431_v36 = vpop.f32.mrf.mxu1  ;;  %8259 = vmatmul.mubr.bf16.gmra.mxu1 %v13661_v52 }
 0x546   : > { %8916 = vmatprep.subr.bf16.mxu0 %v11887_v31  ;;  %v6596_v47 = vmul.f32 %v6580_v40, %v6564_v21  ;;  %v6597_v55 = vmul.f32 %v6581_v22, %v6565_v16  ;;  %8268 = vmatprep.mubr.bf16.mxu1 %v16297_v1  ;;  %v6708_v49 = vunpack.c.l.bf16 %v6485_v0  ;;  %v6709_v5 = vunpack.c.h.bf16 %v6485_v0  ;;  %v5969_v48 = vpop.f32.mrf.mxu0 }
 0x547   : > { %8434 = vmatpush1.bf16.msra.mxu1 %v11872_v60  ;;  %v6433_v7 = vpop.f32.mrf.mxu1  ;;  %v6036_v12 = vpack.c.bf16 %v5969_v48, %v5965_v41 }
 0x548   : > { %8435 = vmatprep.subr.bf16.mxu1 %v11871_v56  ;;  %v6612_v62 = vadd.f32 %v6596_v47, %v14936_v28  ;;  %v6613_v58 = vadd.f32 %v6597_v55, %v14938_v6  ;;  %v6724_v33 = vmul.f32 %v6708_v49, %v6692_v8  ;;  %v6725_v45 = vmul.f32 %v6709_v5, %v6693_v15  ;;  %v5971_v35 = vpop.f32.mrf.mxu0 }
 0x549   : > { %8917 = vmatpush1.bf16.msra.mxu0 %v11886_v13  ;;  %v6435_v54 = vpop.f32.mrf.mxu1  ;;  %v6037_v31 = vpack.c.bf16 %v5971_v35, %v5967_v44  ;;  %v6566_v28 = vunpack.c.l.bf16 %v6036_v12  ;;  %v6567_v6 = vunpack.c.h.bf16 %v6036_v12 }
 0x54a   : > { %v6486_v39 = vpack.c.bf16 %v6435_v54, %v6431_v36  ;;  %v15187_v60 = vadd.f32 %v6724_v33, %v6612_v62  ;;  %v15189_v3 = vadd.f32 %v6725_v45, %v6613_v58  ;;  %v5975_v17 = vpop.f32.mrf.mxu0 }
 0x54b   : > { %8436 = vmatpush1.bf16.msra.mxu1 %v11870_v57  ;;  %v6437_v21 = vpop.f32.mrf.mxu1  ;;  %7948 = vmatmul.mubr.bf16.gmra.mxu0 %v13682_v37  ;;  %v6694_v44 = vunpack.c.l.bf16 %v6037_v31  ;;  %v6695_v36 = vunpack.c.h.bf16 %v6037_v31 }
 0x54c   : > { %9223 = vmatprep.subr.bf16.mxu1 %v11917_v2  ;;  %v6582_v56 = vunpack.c.l.bf16 %v6486_v39  ;;  %v6583_v41 = vunpack.c.h.bf16 %v6486_v39  ;;  %7957 = vmatprep.mubr.bf16.mxu0 %v16297_v1  ;;  %v6487_v13 = vpack.c.bf16 %v6437_v21, %v6433_v7  ;;  %v5977_v16 = vpop.f32.mrf.mxu0 }
 0x54d   : > { %v6441_v40 = vpop.f32.mrf.mxu1  ;;  %8269 = vmatmul.mubr.bf16.gmra.mxu1 %v13685_v26 }
 0x54e   : > { %v6598_v22 = vmul.f32 %v6582_v56, %v6566_v28  ;;  %v6599_v0 = vmul.f32 %v6583_v41, %v6567_v6  ;;  %8278 = vmatprep.mubr.bf16.mxu1 %v16297_v1  ;;  %v6710_v57 = vunpack.c.l.bf16 %v6487_v13  ;;  %v6711_v47 = vunpack.c.h.bf16 %v6487_v13  ;;  %v5979_v55 = vpop.f32.mrf.mxu0 }
 0x54f   : > { %v6443_v2 = vpop.f32.mrf.mxu1  ;;  %v6038_v49 = vpack.c.bf16 %v5979_v55, %v5975_v17 }
 0x550   : > { %v6614_v8 = vadd.f32 %v6598_v22, %v14946_v27  ;;  %v6615_v15 = vadd.f32 %v6599_v0, %v14948_v14  ;;  %v6726_v5 = vmul.f32 %v6710_v57, %v6694_v44  ;;  %v6727_v48 = vmul.f32 %v6711_v47, %v6695_v36  ;;  %v5981_v7 = vpop.f32.mrf.mxu0 }
 0x551   : > { %v6445_v62 = vpop.f32.mrf.mxu1  ;;  %v6039_v58 = vpack.c.bf16 %v5981_v7, %v5977_v16 }
 0x552   : > { %v6488_v12 = vpack.c.bf16 %v6445_v62, %v6441_v40  ;;  %v15197_v33 = vadd.f32 %v6726_v5, %v6614_v8  ;;  %v15199_v45 = vadd.f32 %v6727_v48, %v6615_v15  ;;  %v5985_v35 = vpop.f32.mrf.mxu0 }
 0x553   : > { %v6447_v54 = vpop.f32.mrf.mxu1  ;;  %7958 = vmatmul.mubr.bf16.gmra.mxu0 %v13698_v20 }
 0x554   : > { %7967 = vmatprep.mubr.bf16.mxu0 %v16297_v1  ;;  %v6489_v27 = vpack.c.bf16 %v6447_v54, %v6443_v2  ;;  %v5987_v31 = vpop.f32.mrf.mxu0  ;;  %12963 = vmac.bf16.f32.vacc3 %v6488_v12, %v6038_v49  ;;  %v9140_v54 = vld [vmem:[#allocation8 + $0x378] sm:$0xff] }
 0x555   : > { %v6451_v14 = vpop.f32.mrf.mxu1  ;;  %8279 = vmatmul.mubr.bf16.gmra.mxu1 %v13701_v9 }
 0x556   : > { %8288 = vmatprep.mubr.bf16.mxu1 %v16297_v1  ;;  %v5989_v39 = vpop.f32.mrf.mxu0  ;;  %12964 = vmac.bf16.f32.vacc3 %v6489_v27, %v6039_v58 }
 0x557   : > { %v6453_v17 = vpop.f32.mrf.mxu1  ;;  %v6040_v21 = vpack.c.bf16 %v5989_v39, %v5985_v35  ;;  %v9139_v35 = vld [vmem:[#allocation8 + $0x338] sm:$0xff] }
 0x558   : > { %v5991_v28 = vpop.f32.mrf.mxu0 }
 0x559   : > { %v6455_v6 = vpop.f32.mrf.mxu1  ;;  %v6041_v56 = vpack.c.bf16 %v5991_v28, %v5987_v31 }
 0x55a   : > { %v6490_v41 = vpack.c.bf16 %v6455_v6, %v6451_v14  ;;  %v5995_v13 = vpop.f32.mrf.mxu0  ;;  %v11915_v6 = vcombine.high %v9139_v35, %v9140_v54 }
 0x55b   : > { %v6457_v16 = vpop.f32.mrf.mxu1  ;;  %7968 = vmatmul.mubr.bf16.gmra.mxu0 %v13714_v18 }
 0x55c   : > { %7977 = vmatprep.mubr.bf16.mxu0 %v16297_v1  ;;  %v6491_v40 = vpack.c.bf16 %v6457_v16, %v6453_v17  ;;  %v5997_v22 = vpop.f32.mrf.mxu0  ;;  %12931 = vmac.bf16.f32.vacc2 %v6490_v41, %v6040_v21  ;;  %v11916_v17 = vcombine.low %v15175_v25, %v15177_v29  ;;  %v9138_v41 = vld [vmem:[#allocation8 + $0x2f8] sm:$0xff] }
 0x55d   : > { %v6461_v0 = vpop.f32.mrf.mxu1  ;;  %8289 = vmatmul.mubr.bf16.gmra.mxu1 %v13717_v63 }
 0x55e   : > { %8298 = vmatprep.mubr.bf16.mxu1 %v16297_v1  ;;  %v5999_v44 = vpop.f32.mrf.mxu0  ;;  %12932 = vmac.bf16.f32.vacc2 %v6491_v40, %v6041_v56  ;;  %v9137_v56 = vld [vmem:[#allocation8 + $0x2b8] sm:$0xff] }
 0x55f   : > { %v6463_v36 = vpop.f32.mrf.mxu1  ;;  %v6042_v57 = vpack.c.bf16 %v5999_v44, %v5995_v13  ;;  %v11913_v25 = vcombine.high %v9137_v56, %v9138_v41 }
 0x560   : > { %v6001_v47 = vpop.f32.mrf.mxu0 }
 0x561   : > { %v6465_v55 = vpop.f32.mrf.mxu1  ;;  %v6043_v2 = vpack.c.bf16 %v6001_v47, %v5997_v22  ;;  %v11914_v22 = vcombine.low %v9139_v35, %v9140_v54 }
 0x562   : > { %v6492_v8 = vpack.c.bf16 %v6465_v55, %v6461_v0  ;;  %v6005_v15 = vpop.f32.mrf.mxu0 }
 0x563   : > { %v6467_v49 = vpop.f32.mrf.mxu1  ;;  %7978 = vmatmul.mubr.bf16.gmra.mxu0 %v13732_v32 }
 0x564   : > { %7987 = vmatprep.mubr.bf16.mxu0 %v16297_v1  ;;  %v6493_v5 = vpack.c.bf16 %v6467_v49, %v6463_v36  ;;  %v6007_v48 = vpop.f32.mrf.mxu0  ;;  %12899 = vmac.bf16.f32.vacc1 %v6492_v8, %v6042_v57  ;;  %v9135_v36 = vld [vmem:[#allocation8 + $0x238] sm:$0xff] }
 0x565   : > { %v6471_v7 = vpop.f32.mrf.mxu1  ;;  %8299 = vmatmul.mubr.bf16.gmra.mxu1 %v13738_v43  ;;  %v9136_v57 = vld [vmem:[#allocation8 + $0x278] sm:$0xff] }
 0x566   : > { %8453 = vmatprep.mubr.bf16.mxu1 %v16297_v1  ;;  %v6009_v62 = vpop.f32.mrf.mxu0  ;;  %12900 = vmac.bf16.f32.vacc1 %v6493_v5, %v6043_v2 }
 0x567   : > { %v6473_v58 = vpop.f32.mrf.mxu1  ;;  %v6044_v12 = vpack.c.bf16 %v6009_v62, %v6005_v15  ;;  %v11912_v15 = vcombine.low %v9137_v56, %v9138_v41  ;;  %v9134_v62 = vld [vmem:[#allocation8 + $0x1f8] sm:$0xff] }
 0x568   : > { %v6011_v27 = vpop.f32.mrf.mxu0 }
 0x569   : > { %v6475_v31 = vpop.f32.mrf.mxu1  ;;  %v6045_v14 = vpack.c.bf16 %v6011_v27, %v6007_v48  ;;  %v11911_v48 = vcombine.high %v9135_v36, %v9136_v57 }
 0x56a   : > { %v6494_v39 = vpack.c.bf16 %v6475_v31, %v6471_v7  ;;  %v6882_v28 = vpop.f32.mrf.mxu0  ;;  %v9133_v7 = vld [vmem:[#allocation8 + $0x1b8] sm:$0xff] }
 0x56b   : > { %v6477_v21 = vpop.f32.mrf.mxu1  ;;  %7988 = vmatmul.mubr.bf16.gmra.mxu0 %v16336_v38 }
 0x56c   : > { %7997 = vmatprep.mubr.bf16.mxu0 %v16297_v1  ;;  %v6495_v13 = vpack.c.bf16 %v6477_v21, %v6473_v58  ;;  %v6884_v16 = vpop.f32.mrf.mxu0  ;;  %12867 = vmac.bf16.f32.vacc0 %v6494_v39, %v6044_v12 }
 0x56d   : > { %v7203_v40 = vpop.f32.mrf.mxu1  ;;  %8454 = vmatmul.mubr.bf16.vlgmr.msra.gmra.mxu1 %v16337_v42 }
 0x56e   : > { %9224 = vmatpush1.bf16.msra.mxu1 %v11916_v17  ;;  %8463 = vmatprep.mubr.bf16.mxu1 %v16297_v1  ;;  %v6886_v29 = vpop.f32.mrf.mxu0  ;;  %12868 = vmac.bf16.f32.vacc0 %v6495_v13, %v6045_v14  ;;  %v11910_v14 = vcombine.low %v9135_v36, %v9136_v57 }
 0x56f   : > { %v7205_v0 = vpop.f32.mrf.mxu1  ;;  %9225 = vmatprep.subr.bf16.mxu1 %v11915_v6  ;;  %v7041_v44 = vpack.c.bf16 %v6886_v29, %v6882_v28  ;;  %v11909_v28 = vcombine.high %v9133_v7, %v9134_v62 }
 0x570   : > { %v6888_v47 = vpop.f32.mrf.mxu0 }
 0x571   : > { %v7207_v55 = vpop.f32.mrf.mxu1  ;;  %v7042_v2 = vpack.c.bf16 %v6888_v47, %v6884_v16  ;;  %v7523_v58 = vunpack.c.l.bf16 %v7041_v44  ;;  %v7524_v12 = vunpack.c.h.bf16 %v7041_v44  ;;  %v9132_v44 = vld [vmem:[#allocation8 + $0x178] sm:$0xff] }
 0x572   : > { %v7282_v8 = vpack.c.bf16 %v7207_v55, %v7203_v40  ;;  %9226 = vmatpush1.bf16.msra.mxu1 %v11914_v22  ;;  %v6892_v49 = vpop.f32.mrf.mxu0 }
 0x573   : > { %v7209_v5 = vpop.f32.mrf.mxu1  ;;  %7998 = vmatmul.mubr.bf16.gmra.mxu0 %v16338_v46  ;;  %9227 = vmatprep.subr.bf16.mxu1 %v11913_v25  ;;  %v7651_v6 = vunpack.c.l.bf16 %v7042_v2  ;;  %v7652_v56 = vunpack.c.h.bf16 %v7042_v2  ;;  %v11908_v2 = vcombine.low %v9133_v7, %v9134_v62 }
 0x574   : > { %v7539_v35 = vunpack.c.l.bf16 %v7282_v8  ;;  %v7540_v54 = vunpack.c.h.bf16 %v7282_v8  ;;  %8007 = vmatprep.mubr.bf16.mxu0 %v16297_v1  ;;  %v7283_v27 = vpack.c.bf16 %v7209_v5, %v7205_v0  ;;  %v6894_v31 = vpop.f32.mrf.mxu0  ;;  %v9131_v0 = vld [vmem:[#allocation8 + $0x138] sm:$0xff] }
 0x575   : > { %v7213_v39 = vpop.f32.mrf.mxu1  ;;  %8464 = vmatmul.mubr.bf16.gmra.mxu1 %v16378_v4 }
 0x576   : > { %v7555_v17 = vmul.f32 %v7539_v35, %v7523_v58  ;;  %v7556_v21 = vmul.f32 %v7540_v54, %v7524_v12  ;;  %8473 = vmatprep.mubr.bf16.mxu1 %v16297_v1  ;;  %9228 = vmatpush1.bf16.msra.mxu1 %v11912_v15  ;;  %v7667_v41 = vunpack.c.l.bf16 %v7283_v27  ;;  %v7668_v13 = vunpack.c.h.bf16 %v7283_v27  ;;  %v6896_v16 = vpop.f32.mrf.mxu0 }
 0x577   : > { %v7215_v40 = vpop.f32.mrf.mxu1  ;;  %9229 = vmatprep.subr.bf16.mxu1 %v11911_v48  ;;  %v7043_v29 = vpack.c.bf16 %v6896_v16, %v6892_v49  ;;  %v9130_v49 = vld [vmem:[#allocation8 + $0xf8] sm:$0xff] }
 0x578   : > { %v7571_v22 = vadd.f32 %v7555_v17, %v14974_v30  ;;  %v7572_v25 = vadd.f32 %v7556_v21, %v14976_v11  ;;  %v7683_v36 = vmul.f32 %v7667_v41, %v7651_v6  ;;  %v7684_v57 = vmul.f32 %v7668_v13, %v7652_v56  ;;  %v6898_v47 = vpop.f32.mrf.mxu0  ;;  %v9129_v11 = vld [vmem:[#allocation8 + $0xb8] sm:$0xff] }
 0x579   : > { %v7217_v55 = vpop.f32.mrf.mxu1  ;;  %v7044_v8 = vpack.c.bf16 %v6898_v47, %v6894_v31  ;;  %v11907_v30 = vcombine.high %v9131_v0, %v9132_v44  ;;  %v7525_v35 = vunpack.c.l.bf16 %v7043_v29  ;;  %v7526_v54 = vunpack.c.h.bf16 %v7043_v29 }
 0x57a   : > { %v7284_v15 = vpack.c.bf16 %v7217_v55, %v7213_v39  ;;  %9230 = vmatpush1.bf16.msra.mxu1 %v11910_v14  ;;  %v15225_v5 = vadd.f32 %v7683_v36, %v7571_v22  ;;  %v15227_v58 = vadd.f32 %v7684_v57, %v7572_v25  ;;  %v6902_v48 = vpop.f32.mrf.mxu0  ;;  %v11906_v39 = vcombine.low %v9131_v0, %v9132_v44  ;;  %v16462_v25 = vld [vmem:[#allocation57_spill] sm:$0xff]  ;;  %v9127_v57 = vld [vmem:[#allocation8 + $0x38] sm:$0xff] }
 0x57b   : > { %v7219_v12 = vpop.f32.mrf.mxu1  ;;  %8008 = vmatmul.mubr.bf16.gmra.mxu0 %v16379_v59  ;;  %9231 = vmatprep.subr.bf16.mxu1 %v11909_v28  ;;  %v11905_v28 = vcombine.high %v9129_v11, %v9130_v49  ;;  %v7653_v6 = vunpack.c.l.bf16 %v7044_v8  ;;  %v7654_v56 = vunpack.c.h.bf16 %v7044_v8  ;;  %v9128_v0 = vld [vmem:[#allocation8 + $0x78] sm:$0xff]  ;;  %v11904_v8 = vcombine.low %v9129_v11, %v9130_v49 }
 0x57c   : > { %v7541_v27 = vunpack.c.l.bf16 %v7284_v15  ;;  %v7542_v17 = vunpack.c.h.bf16 %v7284_v15  ;;  %8017 = vmatprep.mubr.bf16.mxu0 %v16297_v1  ;;  %v7285_v31 = vpack.c.bf16 %v7219_v12, %v7215_v40  ;;  %v6904_v7 = vpop.f32.mrf.mxu0 }
 0x57d   : > { %v7223_v62 = vpop.f32.mrf.mxu1  ;;  %8474 = vmatmul.mubr.bf16.gmra.mxu1 %v16380_v23 }
 0x57e   : > { %v7557_v14 = vmul.f32 %v7541_v27, %v7525_v35  ;;  %v7558_v21 = vmul.f32 %v7542_v17, %v7526_v54  ;;  %8483 = vmatprep.mubr.bf16.mxu1 %v16297_v1  ;;  %9232 = vmatpush1.bf16.msra.mxu1 %v11908_v2  ;;  %v7669_v41 = vunpack.c.l.bf16 %v7285_v31  ;;  %v7670_v13 = vunpack.c.h.bf16 %v7285_v31  ;;  %v6906_v16 = vpop.f32.mrf.mxu0  ;;  %v15240_v17 = vld [vmem:[#allocation10 + $0x3b8] sm:$0xff] }
 0x57f   : > { %v7225_v22 = vpop.f32.mrf.mxu1  ;;  %9233 = vmatprep.subr.bf16.mxu1 %v11907_v30  ;;  %v7045_v36 = vpack.c.bf16 %v6906_v16, %v6902_v48  ;;  %v11903_v48 = vcombine.high %v9127_v57, %v9128_v0  ;;  %v15242_v31 = vld [vmem:[#allocation10 + $0x3f8] sm:$0xff] }
 0x580   : > { %v7573_v40 = vadd.f32 %v7557_v14, %v14984_v19  ;;  %v7574_v29 = vadd.f32 %v7558_v21, %v16462_v25  ;;  %v7685_v44 = vmul.f32 %v7669_v41, %v7653_v6  ;;  %v7686_v47 = vmul.f32 %v7670_v13, %v7654_v56  ;;  %v6908_v55 = vpop.f32.mrf.mxu0  ;;  %v16463_v19 = vld [vmem:[#allocation38_spill] sm:$0xff]  ;;  %v16464_v6 = vld [vmem:[#allocation39_spill] sm:$0xff] }
 0x581   : > { %v7227_v15 = vpop.f32.mrf.mxu1  ;;  %v7046_v2 = vpack.c.bf16 %v6908_v55, %v6904_v7  ;;  %v7527_v14 = vunpack.c.l.bf16 %v7045_v36  ;;  %v7528_v21 = vunpack.c.h.bf16 %v7045_v36  ;;  %v11902_v56 = vcombine.low %v9127_v57, %v9128_v0  ;;  %v16466_v55 = vld [vmem:[#allocation48_spill] sm:$0xff] }
 0x582   : > { %v7286_v12 = vpack.c.bf16 %v7227_v15, %v7223_v62  ;;  %9234 = vmatpush1.bf16.msra.mxu1 %v11906_v39  ;;  %v15235_v35 = vadd.f32 %v7685_v44, %v7573_v40  ;;  %v15237_v54 = vadd.f32 %v7686_v47, %v7574_v29  ;;  %v6912_v30 = vpop.f32.mrf.mxu0 }
 0x583   : > { %v7229_v27 = vpop.f32.mrf.mxu1  ;;  %8018 = vmatmul.mubr.bf16.gmra.mxu0 %v16463_v19  ;;  %9235 = vmatprep.subr.bf16.mxu1 %v11905_v28  ;;  %v11933_v28 = vcombine.high %v15240_v17, %v15242_v31  ;;  %v7655_v16 = vunpack.c.l.bf16 %v7046_v2  ;;  %v7656_v40 = vunpack.c.h.bf16 %v7046_v2 }
 0x584   : > { %v7543_v7 = vunpack.c.l.bf16 %v7286_v12  ;;  %v7544_v62 = vunpack.c.h.bf16 %v7286_v12  ;;  %8027 = vmatprep.mubr.bf16.mxu0 %v16297_v1  ;;  %v7287_v11 = vpack.c.bf16 %v7229_v27, %v7225_v22  ;;  %v6914_v49 = vpop.f32.mrf.mxu0  ;;  %v16465_v22 = vld [vmem:[#allocation58_spill] sm:$0xff] }
 0x585   : > { %v7233_v39 = vpop.f32.mrf.mxu1  ;;  %8484 = vmatmul.mubr.bf16.gmra.mxu1 %v16464_v6  ;;  %v16467_v6 = vld [vmem:[#allocation40_spill] sm:$0xff] }
 0x586   : > { %v7559_v41 = vmul.f32 %v7543_v7, %v7527_v14  ;;  %v7560_v13 = vmul.f32 %v7544_v62, %v7528_v21  ;;  %8493 = vmatprep.mubr.bf16.mxu1 %v16297_v1  ;;  %9236 = vmatpush1.bf16.msra.mxu1 %v11904_v8  ;;  %v7671_v25 = vunpack.c.l.bf16 %v7287_v11  ;;  %v7672_v29 = vunpack.c.h.bf16 %v7287_v11  ;;  %v6916_v36 = vpop.f32.mrf.mxu0 }
 0x587   : > { %v7235_v44 = vpop.f32.mrf.mxu1  ;;  %9237 = vmatprep.subr.bf16.mxu1 %v11903_v48  ;;  %v7047_v57 = vpack.c.bf16 %v6916_v36, %v6912_v30 }
 0x588   : > { %v7575_v47 = vadd.f32 %v7559_v41, %v16465_v22  ;;  %v7576_v15 = vadd.f32 %v7560_v13, %v16466_v55  ;;  %v7687_v0 = vmul.f32 %v7671_v25, %v7655_v16  ;;  %v7688_v12 = vmul.f32 %v7672_v29, %v7656_v40  ;;  %v6918_v27 = vpop.f32.mrf.mxu0 }
 0x589   : > { %v7237_v14 = vpop.f32.mrf.mxu1  ;;  %v7048_v8 = vpack.c.bf16 %v6918_v27, %v6914_v49  ;;  %v7529_v48 = vunpack.c.l.bf16 %v7047_v57  ;;  %v7530_v41 = vunpack.c.h.bf16 %v7047_v57 }
 0x58a   : > { %v7288_v21 = vpack.c.bf16 %v7237_v14, %v7233_v39  ;;  %9238 = vmatpush1.bf16.msra.mxu1 %v11902_v56  ;;  %v15251_v7 = vadd.f32 %v7687_v0, %v7575_v47  ;;  %v15253_v2 = vadd.f32 %v7688_v12, %v7576_v15  ;;  %v6922_v62 = vpop.f32.mrf.mxu0  ;;  %v16468_v39 = vld [vmem:[#allocation41_spill] sm:$0xff]  ;;  %v16470_v0 = vld [vmem:[#allocation50_spill] sm:$0xff] }
 0x58b   : > { %v7239_v11 = vpop.f32.mrf.mxu1  ;;  %8028 = vmatmul.mubr.bf16.gmra.mxu0 %v16467_v6  ;;  %9448 = vmatprep.subr.bf16.mxu1 %v11933_v28  ;;  %v7657_v29 = vunpack.c.l.bf16 %v7048_v8  ;;  %v7658_v36 = vunpack.c.h.bf16 %v7048_v8  ;;  %v16469_v15 = vld [vmem:[#allocation49_spill] sm:$0xff]  ;;  %v16479_v6 = vld [vmem:[#allocation44_spill] sm:$0xff] }
 0x58c   : > { %v7545_v13 = vunpack.c.l.bf16 %v7288_v21  ;;  %v7546_v30 = vunpack.c.h.bf16 %v7288_v21  ;;  %8037 = vmatprep.mubr.bf16.mxu0 %v16297_v1  ;;  %v7289_v16 = vpack.c.bf16 %v7239_v11, %v7235_v44  ;;  %v6924_v40 = vpop.f32.mrf.mxu0 }
 0x58d   : > { %v7243_v49 = vpop.f32.mrf.mxu1  ;;  %8494 = vmatmul.mubr.bf16.gmra.mxu1 %v16468_v39  ;;  %v16473_v39 = vld [vmem:[#allocation42_spill] sm:$0xff] }
 0x58e   : > { %v7561_v56 = vmul.f32 %v7545_v13, %v7529_v48  ;;  %v7562_v25 = vmul.f32 %v7546_v30, %v7530_v41  ;;  %8503 = vmatprep.mubr.bf16.mxu1 %v16297_v1  ;;  %v7673_v22 = vunpack.c.l.bf16 %v7289_v16  ;;  %v7674_v28 = vunpack.c.h.bf16 %v7289_v16  ;;  %v6926_v47 = vpop.f32.mrf.mxu0 }
 0x58f   : > { %v7245_v55 = vpop.f32.mrf.mxu1  ;;  %v7049_v44 = vpack.c.bf16 %v6926_v47, %v6922_v62 }
 0x590   : > { %v7577_v57 = vadd.f32 %v7561_v56, %v16469_v15  ;;  %v7578_v12 = vadd.f32 %v7562_v25, %v16470_v0  ;;  %v7689_v27 = vmul.f32 %v7673_v22, %v7657_v29  ;;  %v7690_v14 = vmul.f32 %v7674_v28, %v7658_v36  ;;  %v6928_v21 = vpop.f32.mrf.mxu0 }
 0x591   : > { %v7247_v11 = vpop.f32.mrf.mxu1  ;;  %v7050_v48 = vpack.c.bf16 %v6928_v21, %v6924_v40  ;;  %v7531_v56 = vunpack.c.l.bf16 %v7049_v44  ;;  %v7532_v15 = vunpack.c.h.bf16 %v7049_v44  ;;  %v16476_v21 = vld [vmem:[#allocation52_spill] sm:$0xff] }
 0x592   : > { %v7290_v41 = vpack.c.bf16 %v7247_v11, %v7243_v49  ;;  %v15262_v13 = vadd.f32 %v7689_v27, %v7577_v57  ;;  %v15264_v8 = vadd.f32 %v7690_v14, %v7578_v12  ;;  %v6932_v30 = vpop.f32.mrf.mxu0  ;;  %v16474_v49 = vld [vmem:[#allocation43_spill] sm:$0xff] }
 0x593   : > { %v7249_v16 = vpop.f32.mrf.mxu1  ;;  %8038 = vmatmul.mubr.bf16.gmra.mxu0 %v16473_v39  ;;  %v7659_v47 = vunpack.c.l.bf16 %v7050_v48  ;;  %v7660_v57 = vunpack.c.h.bf16 %v7050_v48 }
 0x594   : > { %16471 = vst [vmem:[#allocation53_spill] sm:$0xff] %v15262_v13  ;;  %16472 = vst [vmem:[#allocation54_spill] sm:$0xff] %v15264_v8  ;;  %v7547_v25 = vunpack.c.l.bf16 %v7290_v41  ;;  %v7548_v62 = vunpack.c.h.bf16 %v7290_v41  ;;  %8047 = vmatprep.mubr.bf16.mxu0 %v16297_v1  ;;  %v7291_v29 = vpack.c.bf16 %v7249_v16, %v7245_v55  ;;  %v6934_v36 = vpop.f32.mrf.mxu0  ;;  %v16475_v55 = vld [vmem:[#allocation51_spill] sm:$0xff]  ;;  %v674_v16 = vld [vmem:[%s15273_s29 + $0x8] sm:$0xff] }
 0x595   : > { %v7253_v40 = vpop.f32.mrf.mxu1  ;;  %8504 = vmatmul.mubr.bf16.gmra.mxu1 %v16474_v49  ;;  %9840 = vperm.xlu1 %12232, %v674_v16  }
 0x596   : > { %v7563_v22 = vmul.f32 %v7547_v25, %v7531_v56  ;;  %v7564_v28 = vmul.f32 %v7548_v62, %v7532_v15  ;;  %8513 = vmatprep.mubr.bf16.mxu1 %v16297_v1  ;;  %v7675_v0 = vunpack.c.l.bf16 %v7291_v29  ;;  %v7676_v12 = vunpack.c.h.bf16 %v7291_v29  ;;  %v6936_v44 = vpop.f32.mrf.mxu0 }
 0x597   : > { %v7255_v27 = vpop.f32.mrf.mxu1  ;;  %v7051_v41 = vpack.c.bf16 %v6936_v44, %v6932_v30 }
 0x598   : > { %v7579_v14 = vadd.f32 %v7563_v22, %v16475_v55  ;;  %v7580_v11 = vadd.f32 %v7564_v28, %v16476_v21  ;;  %v7691_v56 = vmul.f32 %v7675_v0, %v7659_v47  ;;  %v7692_v15 = vmul.f32 %v7676_v12, %v7660_v57  ;;  %v6938_v48 = vpop.f32.mrf.mxu0  ;;  %v675_v47 = vld [vmem:[%s15273_s29 + $0x10] sm:$0xff] }
 0x599   : > { %v7257_v25 = vpop.f32.mrf.mxu1  ;;  %v7052_v62 = vpack.c.bf16 %v6938_v48, %v6934_v36  ;;  %v7533_v22 = vunpack.c.l.bf16 %v7051_v41  ;;  %v7534_v28 = vunpack.c.h.bf16 %v7051_v41  ;;  %9845 = vperm.xlu1 %12232, %v675_v47  }
 0x59a   : > { %v7292_v29 = vpack.c.bf16 %v7257_v25, %v7253_v40  ;;  %v15278_v49 = vadd.f32 %v7691_v56, %v7579_v14  ;;  %v15280_v39 = vadd.f32 %v7692_v15, %v7580_v11  ;;  %v6942_v8 = vpop.f32.mrf.mxu0  ;;  %v16480_v40 = vld [vmem:[#allocation45_spill] sm:$0xff]  ;;  %v16481_v15 = vld [vmem:[#allocation59_spill] sm:$0xff] }
 0x59b   : > { %v7259_v13 = vpop.f32.mrf.mxu1  ;;  %8048 = vmatmul.mubr.bf16.gmra.mxu0 %v16479_v6  ;;  %v7661_v14 = vunpack.c.l.bf16 %v7052_v62  ;;  %v7662_v21 = vunpack.c.h.bf16 %v7052_v62  ;;  %v16482_v25 = vld [vmem:[#allocation35_spill] sm:$0xff] }
 0x59c   : > { %16477 = vst [vmem:[#allocation32_spill] sm:$0xff] %v15278_v49  ;;  %16478 = vst [vmem:[#allocation33_spill] sm:$0xff] %v15280_v39  ;;  %v7549_v30 = vunpack.c.l.bf16 %v7292_v29  ;;  %v7550_v44 = vunpack.c.h.bf16 %v7292_v29  ;;  %8057 = vmatprep.mubr.bf16.mxu0 %v16297_v1  ;;  %v7293_v57 = vpack.c.bf16 %v7259_v13, %v7255_v27  ;;  %v6944_v0 = vpop.f32.mrf.mxu0  ;;  %v676_v29 = vld [vmem:[%s15273_s29 + $0x18] sm:$0xff] }
 0x59d   : > { %v7263_v36 = vpop.f32.mrf.mxu1  ;;  %8514 = vmatmul.mubr.bf16.gmra.mxu1 %v16480_v40  ;;  %9850 = vperm.xlu1 %12232, %v676_v29   ;;  %v16484_v49 = vld [vmem:[#allocation46_spill] sm:$0xff]  ;;  %v16486_v29 = vld [vmem:[#allocation36_spill] sm:$0xff] }
 0x59e   : > { %v7565_v12 = vmul.f32 %v7549_v30, %v7533_v22  ;;  %v7566_v55 = vmul.f32 %v7550_v44, %v7534_v28  ;;  %8523 = vmatprep.mubr.bf16.mxu1 %v16297_v1  ;;  %v7677_v11 = vunpack.c.l.bf16 %v7293_v57  ;;  %v7678_v41 = vunpack.c.h.bf16 %v7293_v57  ;;  %v6946_v16 = vpop.f32.mrf.mxu0 }
 0x59f   : > { %v7265_v56 = vpop.f32.mrf.mxu1  ;;  %v7053_v27 = vpack.c.bf16 %v6946_v16, %v6942_v8 }
 0x5a0   : > { %v7581_v48 = vadd.f32 %v7565_v12, %v16481_v15  ;;  %v7582_v13 = vadd.f32 %v7566_v55, %v16482_v25  ;;  %v7693_v6 = vmul.f32 %v7677_v11, %v7661_v14  ;;  %v7694_v39 = vmul.f32 %v7678_v41, %v7662_v21  ;;  %v6948_v47 = vpop.f32.mrf.mxu0  ;;  %v677_v14 = vld [vmem:[%s15273_s29 + $0x20] sm:$0xff] }
 0x5a1   : > { %v7267_v22 = vpop.f32.mrf.mxu1  ;;  %v7054_v28 = vpack.c.bf16 %v6948_v47, %v6944_v0  ;;  %v7535_v12 = vunpack.c.l.bf16 %v7053_v27  ;;  %v7536_v55 = vunpack.c.h.bf16 %v7053_v27  ;;  %v16485_v0 = vld [vmem:[#allocation47_spill] sm:$0xff]  ;;  %9855 = vperm.xlu1 %12232, %v677_v14  }
 0x5a2   : > { %v7294_v30 = vpack.c.bf16 %v7267_v22, %v7263_v36  ;;  %v15290_v44 = vadd.f32 %v7693_v6, %v7581_v48  ;;  %v15292_v62 = vadd.f32 %v7694_v39, %v7582_v13  ;;  %v6952_v57 = vpop.f32.mrf.mxu0  ;;  %v16487_v22 = vld [vmem:[#allocation37_spill] sm:$0xff] }
 0x5a3   : > { %v7269_v40 = vpop.f32.mrf.mxu1  ;;  %8058 = vmatmul.mubr.bf16.gmra.mxu0 %v16484_v49  ;;  %v7663_v36 = vunpack.c.l.bf16 %v7054_v28  ;;  %v7664_v15 = vunpack.c.h.bf16 %v7054_v28  ;;  %v9365_v49 = vld [vmem:[#allocation10 + $0x378] sm:$0xff] }
 0x5a4   : > { %16483 = vst [vmem:[#allocation34_spill] sm:$0xff] %v15292_v62  ;;  %v7551_v8 = vunpack.c.l.bf16 %v7294_v30  ;;  %v7552_v16 = vunpack.c.h.bf16 %v7294_v30  ;;  %8934 = vmatprep.mubr.bf16.mxu0 %v16297_v1  ;;  %v7295_v21 = vpack.c.bf16 %v7269_v40, %v7265_v56  ;;  %v6954_v11 = vpop.f32.mrf.mxu0  ;;  %v9364_v30 = vld [vmem:[#allocation10 + $0x338] sm:$0xff] }
 0x5a5   : > { %v7273_v41 = vpop.f32.mrf.mxu1  ;;  %8524 = vmatmul.mubr.bf16.gmra.mxu1 %v16485_v0  ;;  %v678_v0 = vld [vmem:[%s15273_s29 + $0x28] sm:$0xff] }
 0x5a6   : > { %v7567_v6 = vmul.f32 %v7551_v8, %v7535_v12  ;;  %v7568_v39 = vmul.f32 %v7552_v16, %v7536_v55  ;;  %9255 = vmatprep.mubr.bf16.mxu1 %v16297_v1  ;;  %v7679_v48 = vunpack.c.l.bf16 %v7295_v21  ;;  %v7680_v25 = vunpack.c.h.bf16 %v7295_v21  ;;  %v6956_v13 = vpop.f32.mrf.mxu0  ;;  %9860 = vperm.xlu1 %12232, %v678_v0  }
 0x5a7   : > { %v7275_v27 = vpop.f32.mrf.mxu1  ;;  %v7055_v56 = vpack.c.bf16 %v6956_v13, %v6952_v57  ;;  %v11932_v16 = vcombine.low %v15240_v17, %v15242_v31  ;;  %v16490_v13 = vld [vmem:[#allocation26_spill] sm:$0xff]  ;;  %v679_v17 = vld [vmem:[%s15273_s29 + $0x30] sm:$0xff] }
 0x5a8   : > { %v7583_v47 = vadd.f32 %v7567_v6, %v16486_v29  ;;  %v7584_v40 = vadd.f32 %v7568_v39, %v16487_v22  ;;  %v7695_v62 = vmul.f32 %v7679_v48, %v7663_v36  ;;  %v7696_v14 = vmul.f32 %v7680_v25, %v7664_v15  ;;  %v6958_v12 = vpop.f32.mrf.mxu0  ;;  %v15309_v36 = vld [vmem:[#allocation10 + $0x2b8] sm:$0xff] }
 0x5a9   : > { %v7277_v55 = vpop.f32.mrf.mxu1  ;;  %v7056_v8 = vpack.c.bf16 %v6958_v12, %v6954_v11  ;;  %v11931_v29 = vcombine.high %v9364_v30, %v9365_v49  ;;  %v15311_v15 = vld [vmem:[#allocation10 + $0x2f8] sm:$0xff]  ;;  %v7537_v0 = vunpack.c.l.bf16 %v7055_v56  ;;  %v7538_v11 = vunpack.c.h.bf16 %v7055_v56 }
 0x5aa   : > { %v7296_v28 = vpack.c.bf16 %v7277_v55, %v7273_v41  ;;  %v15304_v21 = vadd.f32 %v7695_v62, %v7583_v47  ;;  %v15306_v6 = vadd.f32 %v7696_v14, %v7584_v40  ;;  %v6962_v39 = vpop.f32.mrf.mxu0  ;;  %v16491_v47 = vld [vmem:[#allocation27_spill] sm:$0xff]  ;;  %v11930_v22 = vcombine.low %v9364_v30, %v9365_v49  ;;  %9865 = vperm.xlu1 %12232, %v679_v17  }
 0x5ab   : > { %v7279_v57 = vpop.f32.mrf.mxu1  ;;  %8935 = vmatmul.mubr.bf16.vlgmr.msra.gmra.mxu0 %v16490_v13  ;;  %v11929_v56 = vcombine.high %v15309_v36, %v15311_v15  ;;  %v7665_v12 = vunpack.c.l.bf16 %v7056_v8  ;;  %v7666_v55 = vunpack.c.h.bf16 %v7056_v8 }
 0x5ac   : > { %16488 = vst [vmem:[#allocation55_spill] sm:$0xff] %v15304_v21  ;;  %16489 = vst [vmem:[#allocation56_spill] sm:$0xff] %v15306_v6  ;;  %v7553_v48 = vunpack.c.l.bf16 %v7296_v28  ;;  %v7554_v41 = vunpack.c.h.bf16 %v7296_v28  ;;  %8944 = vmatprep.mubr.bf16.mxu0 %v16297_v1  ;;  %v7297_v31 = vpack.c.bf16 %v7279_v57, %v7275_v27  ;;  %v6964_v62 = vpop.f32.mrf.mxu0 }
 0x5ad   : > { %v7428_v25 = vpop.f32.mrf.mxu1  ;;  %9256 = vmatmul.mubr.bf16.vlgmr.msra.gmra.mxu1 %v16491_v47  ;;  %v15319_v47 = vld [vmem:[#allocation10 + $0x238] sm:$0xff] }
 0x5ae   : > { %v7569_v40 = vmul.f32 %v7553_v48, %v7537_v0  ;;  %v7570_v14 = vmul.f32 %v7554_v41, %v7538_v11  ;;  %9449 = vmatpush1.bf16.msra.mxu1 %v11932_v16  ;;  %9265 = vmatprep.mubr.bf16.mxu1 %v16297_v1  ;;  %v7681_v28 = vunpack.c.l.bf16 %v7297_v31  ;;  %v7682_v27 = vunpack.c.h.bf16 %v7297_v31  ;;  %v6966_v57 = vpop.f32.mrf.mxu0  ;;  %v9361_v0 = vld [vmem:[#allocation10 + $0x278] sm:$0xff]  ;;  %v673_v48 = vld [vmem:[%s15273_s29] sm:$0xff] }
 0x5af   : > { %v7430_v13 = vpop.f32.mrf.mxu1  ;;  %9450 = vmatprep.subr.bf16.mxu1 %v11931_v29  ;;  %v7057_v16 = vpack.c.bf16 %v6966_v57, %v6962_v39  ;;  %v680_v11 = vld [vmem:[%s15273_s29 + $0x38] sm:$0xff]  ;;  %9835 = vperm.xlu0 %12231, %v673_v48   ;;  %v11928_v29 = vcombine.low %v15309_v36, %v15311_v15  ;;  %v681_v15 = vld [vmem:[%s15273_s29 + $0x40] sm:$0xff] }
 0x5b0   : > { %v7585_v49 = vadd.f32 %v7569_v40, %v15099_v61  ;;  %v7586_v30 = vadd.f32 %v7570_v14, %v15101_v34  ;;  %v7697_v41 = vmul.f32 %v7681_v28, %v7665_v12  ;;  %v7698_v17 = vmul.f32 %v7682_v27, %v7666_v55  ;;  %v6968_v6 = vpop.f32.mrf.mxu0  ;;  %9870 = vperm.xlu1 %12232, %v680_v11   ;;  %v16493_v14 = vld [vmem:[#allocation28_spill] sm:$0xff]  ;;  %v15333_v55 = vld [vmem:[#allocation10 + $0x1b8] sm:$0xff] }
 0x5b1   : > { %v7432_v21 = vpop.f32.mrf.mxu1  ;;  %v7058_v8 = vpack.c.bf16 %v6968_v6, %v6964_v62  ;;  %v11927_v12 = vcombine.high %v15319_v47, %v9361_v0  ;;  %v7587_v6 = vunpack.c.l.bf16 %v7057_v16  ;;  %v7588_v62 = vunpack.c.h.bf16 %v7057_v16 }
 0x5b2   : > { %v7507_v31 = vpack.c.bf16 %v7432_v21, %v7428_v25  ;;  %9451 = vmatpush1.bf16.msra.mxu1 %v11930_v22  ;;  %v15327_v61 = vadd.f32 %v7697_v41, %v7585_v49  ;;  %v15329_v34 = vadd.f32 %v7698_v17, %v7586_v30  ;;  %v6972_v39 = vpop.f32.mrf.mxu0  ;;  %v15335_v21 = vld [vmem:[#allocation10 + $0x1f8] sm:$0xff]  ;;  %v682_v22 = vld [vmem:[%s15273_s29 + $0x48] sm:$0xff]  ;;  %v16494_v49 = vld [vmem:[#allocation29_spill] sm:$0xff] }
 0x5b3   : > { %v7434_v40 = vpop.f32.mrf.mxu1  ;;  %8945 = vmatmul.mubr.bf16.gmra.mxu0 %v16493_v14  ;;  %9452 = vmatprep.subr.bf16.mxu1 %v11929_v56  ;;  %v11926_v56 = vcombine.low %v15319_v47, %v9361_v0  ;;  %v11925_v16 = vcombine.high %v15333_v55, %v15335_v21  ;;  %v7715_v48 = vunpack.c.l.bf16 %v7058_v8  ;;  %v7716_v41 = vunpack.c.h.bf16 %v7058_v8 }
 0x5b4   : > { %16492 = vst [vmem:[#allocation57_spill] sm:$0xff] %v15329_v34  ;;  %v7603_v25 = vunpack.c.l.bf16 %v7507_v31  ;;  %v7604_v36 = vunpack.c.h.bf16 %v7507_v31  ;;  %8954 = vmatprep.mubr.bf16.mxu0 %v16297_v1  ;;  %v7508_v28 = vpack.c.bf16 %v7434_v40, %v7430_v13  ;;  %v6974_v27 = vpop.f32.mrf.mxu0  ;;  %9875 = vperm.xlu1 %12232, %v681_v15  }
 0x5b5   : > { %v7438_v57 = vpop.f32.mrf.mxu1  ;;  %9266 = vmatmul.mubr.bf16.gmra.mxu1 %v16494_v49  ;;  %9880 = vperm.xlu0 %12231, %v682_v22  }
 0x5b6   : > { %v7619_v30 = vmul.f32 %v7603_v25, %v7587_v6  ;;  %v7620_v11 = vmul.f32 %v7604_v36, %v7588_v62  ;;  %9275 = vmatprep.mubr.bf16.mxu1 %v16297_v1  ;;  %9453 = vmatpush1.bf16.msra.mxu1 %v11928_v29  ;;  %v7731_v17 = vunpack.c.l.bf16 %v7508_v28  ;;  %v7732_v13 = vunpack.c.h.bf16 %v7508_v28  ;;  %v6976_v31 = vpop.f32.mrf.mxu0  ;;  %v15347_v6 = vld [vmem:[#allocation10 + $0x138] sm:$0xff]  ;;  %v683_v62 = vld [vmem:[%s15273_s29 + $0x50] sm:$0xff] }
 0x5b7   : > { %v7440_v40 = vpop.f32.mrf.mxu1  ;;  %9454 = vmatprep.subr.bf16.mxu1 %v11927_v12  ;;  %v7059_v14 = vpack.c.bf16 %v6976_v31, %v6972_v39  ;;  %v9357_v29 = vld [vmem:[#allocation10 + $0x178] sm:$0xff]  ;;  %v11924_v12 = vcombine.low %v15333_v55, %v15335_v21 }
 0x5b8   : > { %v7635_v47 = vadd.f32 %v7619_v30, %v15141_v24  ;;  %v7636_v0 = vadd.f32 %v7620_v11, %v15143_v53  ;;  %v7747_v25 = vmul.f32 %v7731_v17, %v7715_v48  ;;  %v7748_v36 = vmul.f32 %v7732_v13, %v7716_v41  ;;  %v6978_v15 = vpop.f32.mrf.mxu0  ;;  %9885 = vperm.xlu1 %12232, %v683_v62   ;;  %v684_v28 = vld [vmem:[%s15273_s29 + $0x58] sm:$0xff]  ;;  %v685_v41 = vld [vmem:[%s15273_s29 + $0x60] sm:$0xff] }
 0x5b9   : > { %v7442_v8 = vpop.f32.mrf.mxu1  ;;  %v7060_v49 = vpack.c.bf16 %v6978_v15, %v6974_v27  ;;  %v16495_v30 = vld [vmem:[#allocation30_spill] sm:$0xff]  ;;  %v11923_v11 = vcombine.high %v15347_v6, %v9357_v29  ;;  %9890 = vperm.xlu0 %12231, %v684_v28  }
 0x5ba   : > { %v7509_v34 = vpack.c.bf16 %v7442_v8, %v7438_v57  ;;  %9455 = vmatpush1.bf16.msra.mxu1 %v11926_v56  ;;  %v15353_v24 = vadd.f32 %v7747_v25, %v7635_v47  ;;  %v15355_v53 = vadd.f32 %v7748_v36, %v7636_v0  ;;  %v6982_v39 = vpop.f32.mrf.mxu0  ;;  %v15359_v48 = vld [vmem:[#allocation10 + $0xb8] sm:$0xff]  ;;  %v7589_v57 = vunpack.c.l.bf16 %v7059_v14  ;;  %v16496_v47 = vld [vmem:[#allocation31_spill] sm:$0xff]  ;;  %v686_v0 = vld [vmem:[%s15273_s29 + $0x68] sm:$0xff] }
 0x5bb   : > { %v7444_v22 = vpop.f32.mrf.mxu1  ;;  %8955 = vmatmul.mubr.bf16.gmra.mxu0 %v16495_v30  ;;  %9456 = vmatprep.subr.bf16.mxu1 %v11925_v16  ;;  %v15361_v27 = vld [vmem:[#allocation10 + $0xf8] sm:$0xff]  ;;  %v7590_v56 = vunpack.c.h.bf16 %v7059_v14  ;;  %v11922_v16 = vcombine.low %v15347_v6, %v9357_v29  ;;  %v7717_v14 = vunpack.c.l.bf16 %v7060_v49  ;;  %v7718_v36 = vunpack.c.h.bf16 %v7060_v49 }
 0x5bc   : > { %v7605_v55 = vunpack.c.l.bf16 %v7509_v34  ;;  %v7606_v21 = vunpack.c.h.bf16 %v7509_v34  ;;  %8964 = vmatprep.mubr.bf16.mxu0 %v16297_v1  ;;  %v7510_v17 = vpack.c.bf16 %v7444_v22, %v7440_v40  ;;  %v6984_v13 = vpop.f32.mrf.mxu0  ;;  %9895 = vperm.xlu1 %12232, %v685_v41   ;;  %v11921_v34 = vcombine.high %v15359_v48, %v15361_v27  ;;  %v9352_v30 = vld [vmem:[#allocation10 + $0x38] sm:$0xff] }
 0x5bd   : > { %v7448_v31 = vpop.f32.mrf.mxu1  ;;  %9276 = vmatmul.mubr.bf16.gmra.mxu1 %v16496_v47  ;;  %9900 = vperm.xlu0 %12231, %v686_v0   ;;  %v688_v49 = vld [vmem:[%s15273_s29 + $0x78] sm:$0xff] }
 0x5be   : > { %v7621_v62 = vmul.f32 %v7605_v55, %v7589_v57  ;;  %v7622_v25 = vmul.f32 %v7606_v21, %v7590_v56  ;;  %9285 = vmatprep.mubr.bf16.mxu1 %v16297_v1  ;;  %9457 = vmatpush1.bf16.msra.mxu1 %v11924_v12  ;;  %v7733_v40 = vunpack.c.l.bf16 %v7510_v17  ;;  %v7734_v15 = vunpack.c.h.bf16 %v7510_v17  ;;  %v6986_v8 = vpop.f32.mrf.mxu0  ;;  %v9353_v57 = vld [vmem:[#allocation10 + $0x78] sm:$0xff]  ;;  %v687_v12 = vld [vmem:[%s15273_s29 + $0x70] sm:$0xff]  ;;  %s11308_s29 = sshll.u32 %s16010_s9, 4  ;;  %s16109_s29 = int_to_ptr.vmem [resolvable:$true] %s11308_s29 }
 0x5bf   : > { %v7450_v28 = vpop.f32.mrf.mxu1  ;;  %9458 = vmatprep.subr.bf16.mxu1 %v11923_v11  ;;  %v7061_v22 = vpack.c.bf16 %v6986_v8, %v6982_v39  ;;  %v11920_v11 = vcombine.low %v15359_v48, %v15361_v27  ;;  %v11919_v0 = vcombine.high %v9352_v30, %v9353_v57  ;;  %s12793_s25 = scalar_lea.vmem %s16109_s29, 4096 }
 0x5c0   : > { %v7637_v6 = vadd.f32 %v7621_v62, %v15170_v50  ;;  %v7638_v29 = vadd.f32 %v7622_v25, %v15172_v51  ;;  %v7749_v56 = vmul.f32 %v7733_v40, %v7717_v14  ;;  %v7750_v55 = vmul.f32 %v7734_v15, %v7718_v36  ;;  %v6988_v21 = vpop.f32.mrf.mxu0  ;;  %9905 = vperm.xlu1 %12232, %v687_v12   ;;  %v12329_v25 = vld [vmem:[%s16162_s7 + $0x70] ss:$8 sps:$4 sm:$0xff]   ;;  %p12794_p2 = scmp.ne.s32.totalorder %s16109_s29, %s12793_s25 }
 0x5c1   : > { %v7452_v41 = vpop.f32.mrf.mxu1  ;;  %v7062_v17 = vpack.c.bf16 %v6988_v21, %v6984_v13  ;;  %v12331_v13 = vld [vmem:[%s16162_s7 + $0x74] ss:$8 sps:$4 sm:$0xff]   ;;  %v7592_v48 = vunpack.c.h.bf16 %v7061_v22  ;;  %9910 = vperm.xlu0 %12231, %v688_v49   ;;  %v11918_v15 = vcombine.low %v9352_v30, %v9353_v57 }
 0x5c2   : > { %v7511_v47 = vpack.c.bf16 %v7452_v41, %v7448_v31  ;;  %9459 = vmatpush1.bf16.msra.mxu1 %v11922_v16  ;;  %v15377_v50 = vadd.f32 %v7749_v56, %v7637_v6  ;;  %v15379_v51 = vadd.f32 %v7750_v55, %v7638_v29  ;;  %v6992_v39 = vpop.f32.mrf.mxu0  ;;  %v7591_v31 = vunpack.c.l.bf16 %v7061_v22  ;;  %10149 = vmatprep.subr.bf16.mxu0 %v12331_v13  ;;  %p12795_p10 = pnand %p12794_p2, %p16522_p7 }
 0x5c3   : > { %v7454_v62 = vpop.f32.mrf.mxu1  ;;  %8965 = vmatmul.mubr.bf16.gmra.mxu0 %v13658_v10  ;;  %9460 = vmatprep.subr.bf16.mxu1 %v11921_v34  ;;  %v7719_v8 = vunpack.c.l.bf16 %v7062_v17  ;;  %v7720_v6 = vunpack.c.h.bf16 %v7062_v17 }
 0x5c4   : > { %v7607_v27 = vunpack.c.l.bf16 %v7511_v47  ;;  %v7608_v16 = vunpack.c.h.bf16 %v7511_v47  ;;  %8974 = vmatprep.mubr.bf16.mxu0 %v16297_v1  ;;  %v7512_v14 = vpack.c.bf16 %v7454_v62, %v7450_v28  ;;  %v6994_v36 = vpop.f32.mrf.mxu0  ;;  %10150 = vmatpush1.bf16.msra.mxu0 %v12329_v25  ;;  %p12796_p1 = pneg %p12795_p10 }
 0x5c5   : > { %v7458_v10 = vpop.f32.mrf.mxu1  ;;  %9286 = vmatmul.mubr.bf16.gmra.mxu1 %v13661_v52 }
 0x5c6   : > { %v7623_v34 = vmul.f32 %v7607_v27, %v7591_v31  ;;  %v7624_v40 = vmul.f32 %v7608_v16, %v7592_v48  ;;  %9295 = vmatprep.mubr.bf16.mxu1 %v16297_v1  ;;  %9461 = vmatpush1.bf16.msra.mxu1 %v11920_v11  ;;  %v7735_v29 = vunpack.c.l.bf16 %v7512_v14  ;;  %v7736_v22 = vunpack.c.h.bf16 %v7512_v14  ;;  %v6996_v12 = vpop.f32.mrf.mxu0 }
 0x5c7   : > { %v7460_v56 = vpop.f32.mrf.mxu1  ;;  %9462 = vmatprep.subr.bf16.mxu1 %v11919_v0  ;;  %v7063_v52 = vpack.c.bf16 %v6996_v12, %v6992_v39 }
 0x5c8   : > { %v7639_v28 = vadd.f32 %v7623_v34, %v15187_v60  ;;  %v7640_v55 = vadd.f32 %v7624_v40, %v15189_v3  ;;  %v7751_v21 = vmul.f32 %v7735_v29, %v7719_v8  ;;  %v7752_v41 = vmul.f32 %v7736_v22, %v7720_v6  ;;  %v6998_v49 = vpop.f32.mrf.mxu0  ;;  %v12332_v60 = vld [vmem:[%s16162_s7 + $0x60] ss:$8 sps:$4 sm:$0xff]   ;;  %v12334_v3 = vld [vmem:[%s16162_s7 + $0x64] ss:$8 sps:$4 sm:$0xff]  }
 0x5c9   : > { %v7462_v47 = vpop.f32.mrf.mxu1  ;;  %v7064_v62 = vpack.c.bf16 %v6998_v49, %v6994_v36  ;;  %v7593_v39 = vunpack.c.l.bf16 %v7063_v52  ;;  %v7594_v0 = vunpack.c.h.bf16 %v7063_v52  ;;  %10151 = vmatprep.subr.bf16.mxu0 %v12334_v3 }
 0x5ca   : > { %v7513_v11 = vpack.c.bf16 %v7462_v47, %v7458_v10  ;;  %9463 = vmatpush1.bf16.msra.mxu1 %v11918_v15  ;;  %v15393_v30 = vadd.f32 %v7751_v21, %v7639_v28  ;;  %v15395_v57 = vadd.f32 %v7752_v41, %v7640_v55  ;;  %v7002_v17 = vpop.f32.mrf.mxu0  ;;  %10152 = vmatpush1.bf16.msra.mxu0 %v12332_v60 }
 0x5cb   : > { %v7464_v13 = vpop.f32.mrf.mxu1  ;;  %8975 = vmatmul.mubr.bf16.gmra.mxu0 %v13682_v37  ;;  %v7721_v36 = vunpack.c.l.bf16 %v7064_v62  ;;  %v7722_v10 = vunpack.c.h.bf16 %v7064_v62 }
 0x5cc   : > { %v7609_v25 = vunpack.c.l.bf16 %v7513_v11  ;;  %v7610_v31 = vunpack.c.h.bf16 %v7513_v11  ;;  %8984 = vmatprep.mubr.bf16.mxu0 %v16297_v1  ;;  %v7514_v48 = vpack.c.bf16 %v7464_v13, %v7460_v56  ;;  %v7004_v27 = vpop.f32.mrf.mxu0 }
 0x5cd   : > { %v7468_v16 = vpop.f32.mrf.mxu1  ;;  %9296 = vmatmul.mubr.bf16.gmra.mxu1 %v13685_v26 }
 0x5ce   : > { %v7625_v37 = vmul.f32 %v7609_v25, %v7593_v39  ;;  %v7626_v14 = vmul.f32 %v7610_v31, %v7594_v0  ;;  %9305 = vmatprep.mubr.bf16.mxu1 %v16297_v1  ;;  %v7737_v34 = vunpack.c.l.bf16 %v7514_v48  ;;  %v7738_v40 = vunpack.c.h.bf16 %v7514_v48  ;;  %v7006_v15 = vpop.f32.mrf.mxu0 }
 0x5cf   : > { %v7470_v8 = vpop.f32.mrf.mxu1  ;;  %v7065_v22 = vpack.c.bf16 %v7006_v15, %v7002_v17 }
 0x5d0   : > { %v7641_v6 = vadd.f32 %v7625_v37, %v15197_v33  ;;  %v7642_v29 = vadd.f32 %v7626_v14, %v15199_v45  ;;  %v7753_v12 = vmul.f32 %v7737_v34, %v7721_v36  ;;  %v7754_v56 = vmul.f32 %v7738_v40, %v7722_v10  ;;  %v7008_v26 = vpop.f32.mrf.mxu0  ;;  %v12335_v33 = vld [vmem:[%s16162_s7 + $0x50] ss:$8 sps:$4 sm:$0xff]   ;;  %v12337_v45 = vld [vmem:[%s16162_s7 + $0x54] ss:$8 sps:$4 sm:$0xff]  }
 0x5d1   : > { %v7472_v28 = vpop.f32.mrf.mxu1  ;;  %v7066_v55 = vpack.c.bf16 %v7008_v26, %v7004_v27  ;;  %10153 = vmatprep.subr.bf16.mxu0 %v12337_v45  ;;  %v12340_v27 = vld [vmem:[%s16162_s7 + $0x44] ss:$8 sps:$4 sm:$0xff]  }
 0x5d2   : > { %v7515_v52 = vpack.c.bf16 %v7472_v28, %v7468_v16  ;;  %v15409_v21 = vadd.f32 %v7753_v12, %v7641_v6  ;;  %v15411_v41 = vadd.f32 %v7754_v56, %v7642_v29  ;;  %v7012_v49 = vpop.f32.mrf.mxu0  ;;  %10154 = vmatpush1.bf16.msra.mxu0 %v12335_v33 }
 0x5d3   : > { %v7474_v47 = vpop.f32.mrf.mxu1  ;;  %8985 = vmatmul.mubr.bf16.gmra.mxu0 %v13698_v20  ;;  %10155 = vmatprep.subr.bf16.mxu0 %v12340_v27  ;;  %v12349_v27 = vld [vmem:[%s16162_s7 + $0x14] ss:$8 sps:$4 sm:$0xff]  }
 0x5d4   : > { %8994 = vmatprep.mubr.bf16.mxu0 %v16297_v1  ;;  %v7516_v62 = vpack.c.bf16 %v7474_v47, %v7470_v8  ;;  %v7014_v11 = vpop.f32.mrf.mxu0  ;;  %12965 = vmac.bf16.f32.vacc3 %v7515_v52, %v7065_v22  ;;  %v12343_v22 = vld [vmem:[%s16162_s7 + $0x34] ss:$8 sps:$4 sm:$0xff]  }
 0x5d5   : > { %v7478_v17 = vpop.f32.mrf.mxu1  ;;  %9306 = vmatmul.mubr.bf16.gmra.mxu1 %v13701_v9  ;;  %v12338_v9 = vld [vmem:[%s16162_s7 + $0x40] ss:$8 sps:$4 sm:$0xff]  }
 0x5d6   : > { %9315 = vmatprep.mubr.bf16.mxu1 %v16297_v1  ;;  %v7016_v20 = vpop.f32.mrf.mxu0  ;;  %12966 = vmac.bf16.f32.vacc3 %v7516_v62, %v7066_v55  ;;  %10156 = vmatpush1.bf16.msra.mxu0 %v12338_v9 }
 0x5d7   : > { %v7480_v13 = vpop.f32.mrf.mxu1  ;;  %v7067_v60 = vpack.c.bf16 %v7016_v20, %v7012_v49  ;;  %10157 = vmatprep.subr.bf16.mxu0 %v12343_v22 }
 0x5d8   : > { %v7018_v3 = vpop.f32.mrf.mxu0 }
 0x5d9   : > { %v7482_v39 = vpop.f32.mrf.mxu1  ;;  %v7068_v0 = vpack.c.bf16 %v7018_v3, %v7014_v11  ;;  %v12346_v11 = vld [vmem:[%s16162_s7 + $0x24] ss:$8 sps:$4 sm:$0xff]  }
 0x5da   : > { %v7517_v25 = vpack.c.bf16 %v7482_v39, %v7478_v17  ;;  %v7022_v31 = vpop.f32.mrf.mxu0 }
 0x5db   : > { %v7484_v48 = vpop.f32.mrf.mxu1  ;;  %8995 = vmatmul.mubr.bf16.gmra.mxu0 %v13714_v18 }
 0x5dc   : > { %9004 = vmatprep.mubr.bf16.mxu0 %v16297_v1  ;;  %v7518_v16 = vpack.c.bf16 %v7484_v48, %v7480_v13  ;;  %v7024_v37 = vpop.f32.mrf.mxu0  ;;  %12933 = vmac.bf16.f32.vacc2 %v7517_v25, %v7067_v60 }
 0x5dd   : > { %v7488_v14 = vpop.f32.mrf.mxu1  ;;  %9316 = vmatmul.mubr.bf16.gmra.mxu1 %v13717_v63  ;;  %v12341_v63 = vld [vmem:[%s16162_s7 + $0x30] ss:$8 sps:$4 sm:$0xff]  }
 0x5de   : > { %9325 = vmatprep.mubr.bf16.mxu1 %v16297_v1  ;;  %v7026_v18 = vpop.f32.mrf.mxu0  ;;  %12934 = vmac.bf16.f32.vacc2 %v7518_v16, %v7068_v0  ;;  %10158 = vmatpush1.bf16.msra.mxu0 %v12341_v63 }
 0x5df   : > { %v7490_v36 = vpop.f32.mrf.mxu1  ;;  %v7069_v10 = vpack.c.bf16 %v7026_v18, %v7022_v31  ;;  %10159 = vmatprep.subr.bf16.mxu0 %v12346_v11 }
 0x5e0   : > { %v7028_v34 = vpop.f32.mrf.mxu0 }
 0x5e1   : > { %v7492_v40 = vpop.f32.mrf.mxu1  ;;  %v7070_v15 = vpack.c.bf16 %v7028_v34, %v7024_v37 }
 0x5e2   : > { %v7519_v8 = vpack.c.bf16 %v7492_v40, %v7488_v14  ;;  %v7032_v6 = vpop.f32.mrf.mxu0 }
 0x5e3   : > { %v7494_v29 = vpop.f32.mrf.mxu1  ;;  %9005 = vmatmul.mubr.bf16.gmra.mxu0 %v13732_v32 }
 0x5e4   : > { %9014 = vmatprep.mubr.bf16.mxu0 %v16297_v1  ;;  %v7520_v12 = vpack.c.bf16 %v7494_v29, %v7490_v36  ;;  %v7034_v56 = vpop.f32.mrf.mxu0  ;;  %12901 = vmac.bf16.f32.vacc1 %v7519_v8, %v7069_v10 }
 0x5e5   : > { %v7498_v26 = vpop.f32.mrf.mxu1  ;;  %9326 = vmatmul.mubr.bf16.gmra.mxu1 %v13738_v43  ;;  %v12344_v43 = vld [vmem:[%s16162_s7 + $0x20] ss:$8 sps:$4 sm:$0xff]  }
 0x5e6   : > { %9480 = vmatprep.mubr.bf16.mxu1 %v16297_v1  ;;  %v7036_v32 = vpop.f32.mrf.mxu0  ;;  %12902 = vmac.bf16.f32.vacc1 %v7520_v12, %v7070_v15  ;;  %10160 = vmatpush1.bf16.msra.mxu0 %v12344_v43 }
 0x5e7   : > { %v7500_v28 = vpop.f32.mrf.mxu1  ;;  %v7071_v55 = vpack.c.bf16 %v7036_v32, %v7032_v6  ;;  %10161 = vmatprep.subr.bf16.mxu0 %v12349_v27 }
 0x5e8   : > { %v7038_v52 = vpop.f32.mrf.mxu0 }
 0x5e9   : > { %v7502_v49 = vpop.f32.mrf.mxu1  ;;  %v7072_v47 = vpack.c.bf16 %v7038_v52, %v7034_v56 }
 0x5ea   : > { %v7521_v33 = vpack.c.bf16 %v7502_v49, %v7498_v26  ;;  %v7909_v62 = vpop.f32.mrf.mxu0 }
 0x5eb   : > { %v7504_v45 = vpop.f32.mrf.mxu1  ;;  %9015 = vmatmul.mubr.bf16.gmra.mxu0 %v16336_v38 }
 0x5ec   : > { %9024 = vmatprep.mubr.bf16.mxu0 %v16297_v1  ;;  %v7522_v17 = vpack.c.bf16 %v7504_v45, %v7500_v28  ;;  %v7911_v20 = vpop.f32.mrf.mxu0  ;;  %12869 = vmac.bf16.f32.vacc0 %v7521_v33, %v7071_v55 }
 0x5ed   : > { %v8230_v13 = vpop.f32.mrf.mxu1  ;;  %9481 = vmatmul.mubr.bf16.vlgmr.msra.gmra.mxu1 %v16337_v42  ;;  %v12347_v42 = vld [vmem:[%s16162_s7 + $0x10] ss:$8 sps:$4 sm:$0xff]  }
 0x5ee   : > { %9490 = vmatprep.mubr.bf16.mxu1 %v16297_v1  ;;  %v7913_v38 = vpop.f32.mrf.mxu0  ;;  %12870 = vmac.bf16.f32.vacc0 %v7522_v17, %v7072_v47  ;;  %10162 = vmatpush1.bf16.msra.mxu0 %v12347_v42 }
 0x5ef   : > { %v8232_v60 = vpop.f32.mrf.mxu1  ;;  %v8068_v3 = vpack.c.bf16 %v7913_v38, %v7909_v62  ;;  %v12350_v38 = vld [vmem:[%s16162_s7] ss:$8 sps:$4 sm:$0xff]  }
 0x5f0   : > { %v7915_v39 = vpop.f32.mrf.mxu0 }
 0x5f1   : > { %v8234_v0 = vpop.f32.mrf.mxu1  ;;  %v8069_v25 = vpack.c.bf16 %v7915_v39, %v7911_v20  ;;  %v8550_v16 = vunpack.c.l.bf16 %v8068_v3  ;;  %v8551_v37 = vunpack.c.h.bf16 %v8068_v3 }
 0x5f2   : > { %v8309_v31 = vpack.c.bf16 %v8234_v0, %v8230_v13 }
 0x5f3   : > { %v7919_v48 = vpop.f32.mrf.mxu0  ;;  %v8236_v9 = vpop.f32.mrf.mxu1  ;;  %9025 = vmatmul.mubr.bf16.gmra.mxu0 %v16338_v46  ;;  %v8678_v15 = vunpack.c.l.bf16 %v8069_v25  ;;  %v8679_v8 = vunpack.c.h.bf16 %v8069_v25 }
 0x5f4   : > { %v8566_v14 = vunpack.c.l.bf16 %v8309_v31  ;;  %v8567_v18 = vunpack.c.h.bf16 %v8309_v31  ;;  %9034 = vmatprep.mubr.bf16.mxu0 %v16297_v1  ;;  %v8310_v36 = vpack.c.bf16 %v8236_v9, %v8232_v60  ;;  %v12352_v60 = vld [vmem:[%s16162_s7 + $0x4] ss:$8 sps:$4 sm:$0xff]  }
 0x5f5   : > { %v7921_v10 = vpop.f32.mrf.mxu0  ;;  %v8240_v34 = vpop.f32.mrf.mxu1  ;;  %9491 = vmatmul.mubr.bf16.gmra.mxu1 %v16378_v4  ;;  %10163 = vmatprep.subr.bf16.mxu0 %v12352_v60 }
 0x5f6   : > { %v8582_v46 = vmul.f32 %v8566_v14, %v8550_v16  ;;  %v8583_v40 = vmul.f32 %v8567_v18, %v8551_v37  ;;  %9500 = vmatprep.mubr.bf16.mxu1 %v16297_v1  ;;  %v8694_v6 = vunpack.c.l.bf16 %v8310_v36  ;;  %v8695_v29 = vunpack.c.h.bf16 %v8310_v36  ;;  %10164 = vmatpush1.bf16.msra.mxu0 %v12350_v38 }
 0x5f7   : > { %v7923_v63 = vpop.f32.mrf.mxu0  ;;  %v8242_v22 = vpop.f32.mrf.mxu1 }
 0x5f8   : > { %v8598_v12 = vadd.f32 %v8582_v46, %v15225_v5  ;;  %v8599_v56 = vadd.f32 %v8583_v40, %v15227_v58  ;;  %v8070_v26 = vpack.c.bf16 %v7923_v63, %v7919_v48  ;;  %v8710_v32 = vmul.f32 %v8694_v6, %v8678_v15 }
 0x5f9   : > { %v8711_v28 = vmul.f32 %v8695_v29, %v8679_v8  ;;  %v7925_v4 = vpop.f32.mrf.mxu0  ;;  %v8244_v55 = vpop.f32.mrf.mxu1 }
 0x5fa   : > { %v8071_v52 = vpack.c.bf16 %v7925_v4, %v7921_v10  ;;  %v8311_v49 = vpack.c.bf16 %v8244_v55, %v8240_v34  ;;  %v15465_v47 = vadd.f32 %v8710_v32, %v8598_v12  ;;  %v8552_v43 = vunpack.c.l.bf16 %v8070_v26 }
 0x5fb   : > { %v15467_v33 = vadd.f32 %v8711_v28, %v8599_v56  ;;  %v7929_v45 = vpop.f32.mrf.mxu0  ;;  %v8246_v62 = vpop.f32.mrf.mxu1  ;;  %9035 = vmatmul.mubr.bf16.gmra.mxu0 %v16379_v59  ;;  %v8553_v11 = vunpack.c.h.bf16 %v8070_v26  ;;  %v16497_v26 = vld [vmem:[#allocation39_spill] sm:$0xff] }
 0x5fc   : > { %v8568_v5 = vunpack.c.l.bf16 %v8311_v49  ;;  %v8569_v17 = vunpack.c.h.bf16 %v8311_v49  ;;  %9044 = vmatprep.mubr.bf16.mxu0 %v16297_v1  ;;  %v8312_v58 = vpack.c.bf16 %v8246_v62, %v8242_v22  ;;  %v8680_v39 = vunpack.c.l.bf16 %v8071_v52 }
 0x5fd   : > { %v7931_v20 = vpop.f32.mrf.mxu0  ;;  %v8250_v13 = vpop.f32.mrf.mxu1  ;;  %9501 = vmatmul.mubr.bf16.gmra.mxu1 %v16380_v23  ;;  %v8681_v0 = vunpack.c.h.bf16 %v8071_v52 }
 0x5fe   : > { %v8584_v59 = vmul.f32 %v8568_v5, %v8552_v43  ;;  %v8585_v3 = vmul.f32 %v8569_v17, %v8553_v11  ;;  %9510 = vmatprep.mubr.bf16.mxu1 %v16297_v1  ;;  %v8696_v25 = vunpack.c.l.bf16 %v8312_v58  ;;  %v8697_v31 = vunpack.c.h.bf16 %v8312_v58 }
 0x5ff   : > { %v7933_v48 = vpop.f32.mrf.mxu0  ;;  %v8252_v9 = vpop.f32.mrf.mxu1 }
 0x600   : > { %v8600_v23 = vadd.f32 %v8584_v59, %v15235_v35  ;;  %v8601_v42 = vadd.f32 %v8585_v3, %v15237_v54  ;;  %v8072_v27 = vpack.c.bf16 %v7933_v48, %v7929_v45  ;;  %v8712_v16 = vmul.f32 %v8696_v25, %v8680_v39  ;;  %v12353_v35 = vld [vmem:[%s16162_s7 + $0xf0] ss:$8 sps:$4 sm:$0xff]   ;;  %v12355_v54 = vld [vmem:[%s16162_s7 + $0xf4] ss:$8 sps:$4 sm:$0xff]  }
 0x601   : > { %v8713_v37 = vmul.f32 %v8697_v31, %v8681_v0  ;;  %v7935_v14 = vpop.f32.mrf.mxu0  ;;  %v8254_v18 = vpop.f32.mrf.mxu1  ;;  %10165 = vmatprep.subr.bf16.mxu0 %v12355_v54  ;;  %v16498_v0 = vld [vmem:[#allocation40_spill] sm:$0xff]  ;;  %v16500_v54 = vld [vmem:[#allocation53_spill] sm:$0xff] }
 0x602   : > { %v8073_v36 = vpack.c.bf16 %v7935_v14, %v7931_v20  ;;  %v8313_v10 = vpack.c.bf16 %v8254_v18, %v8250_v13  ;;  %v15481_v34 = vadd.f32 %v8712_v16, %v8600_v23  ;;  %v8554_v8 = vunpack.c.l.bf16 %v8072_v27  ;;  %10166 = vmatpush2.bf16.msra.mxu0 %v12353_v35  ;;  %v16499_v16 = vld [vmem:[#allocation41_spill] sm:$0xff] }
 0x603   : > { %v15483_v46 = vadd.f32 %v8713_v37, %v8601_v42  ;;  %v7939_v40 = vpop.f32.mrf.mxu0  ;;  %v8256_v15 = vpop.f32.mrf.mxu1  ;;  %9045 = vmatmul.mubr.bf16.gmra.mxu0 %v16463_v19  ;;  %v8555_v6 = vunpack.c.h.bf16 %v8072_v27 }
 0x604   : > { %v8570_v29 = vunpack.c.l.bf16 %v8313_v10  ;;  %v8571_v63 = vunpack.c.h.bf16 %v8313_v10  ;;  %9054 = vmatprep.mubr.bf16.mxu0 %v16297_v1  ;;  %v8314_v22 = vpack.c.bf16 %v8256_v15, %v8252_v9  ;;  %v8682_v28 = vunpack.c.l.bf16 %v8073_v36 }
 0x605   : > { %v7941_v12 = vpop.f32.mrf.mxu0  ;;  %v8260_v56 = vpop.f32.mrf.mxu1  ;;  %9511 = vmatmul.mubr.bf16.gmra.mxu1 %v16497_v26  ;;  %v8683_v4 = vunpack.c.h.bf16 %v8073_v36 }
 0x606   : > { %v8586_v19 = vmul.f32 %v8570_v29, %v8554_v8  ;;  %v8587_v32 = vmul.f32 %v8571_v63, %v8555_v6  ;;  %9520 = vmatprep.mubr.bf16.mxu1 %v16297_v1  ;;  %v8698_v55 = vunpack.c.l.bf16 %v8314_v22  ;;  %v8699_v52 = vunpack.c.h.bf16 %v8314_v22  ;;  %v16501_v6 = vld [vmem:[#allocation54_spill] sm:$0xff] }
 0x607   : > { %v7943_v49 = vpop.f32.mrf.mxu0  ;;  %v8262_v45 = vpop.f32.mrf.mxu1 }
 0x608   : > { %v8602_v62 = vadd.f32 %v8586_v19, %v15251_v7  ;;  %v8603_v43 = vadd.f32 %v8587_v32, %v15253_v2  ;;  %v8074_v11 = vpack.c.bf16 %v7943_v49, %v7939_v40  ;;  %v8714_v5 = vmul.f32 %v8698_v55, %v8682_v28  ;;  %v12356_v7 = vld [vmem:[%s16162_s7 + $0xe0] ss:$8 sps:$4 sm:$0xff]   ;;  %v12358_v2 = vld [vmem:[%s16162_s7 + $0xe4] ss:$8 sps:$4 sm:$0xff]   ;;  %v16502_v49 = vld [vmem:[#allocation42_spill] sm:$0xff] }
 0x609   : > { %v8715_v17 = vmul.f32 %v8699_v52, %v8683_v4  ;;  %v7945_v58 = vpop.f32.mrf.mxu0  ;;  %v8264_v20 = vpop.f32.mrf.mxu1  ;;  %10167 = vmatprep.subr.bf16.mxu0 %v12358_v2 }
 0x60a   : > { %v8075_v13 = vpack.c.bf16 %v7945_v58, %v7941_v12  ;;  %v8315_v38 = vpack.c.bf16 %v8264_v20, %v8260_v56  ;;  %v15497_v60 = vadd.f32 %v8714_v5, %v8602_v62  ;;  %v8556_v25 = vunpack.c.l.bf16 %v8074_v11  ;;  %10168 = vmatpush2.bf16.msra.mxu0 %v12356_v7  ;;  %v12361_v62 = vld [vmem:[%s16162_s7 + $0xd4] ss:$8 sps:$4 sm:$0xff]  }
 0x60b   : > { %v15499_v59 = vadd.f32 %v8715_v17, %v8603_v43  ;;  %v7949_v3 = vpop.f32.mrf.mxu0  ;;  %v8266_v39 = vpop.f32.mrf.mxu1  ;;  %9055 = vmatmul.mubr.bf16.gmra.mxu0 %v16498_v0  ;;  %v8557_v31 = vunpack.c.h.bf16 %v8074_v11  ;;  %10169 = vmatprep.subr.bf16.mxu0 %v12361_v62 }
 0x60c   : > { %v8572_v48 = vunpack.c.l.bf16 %v8315_v38  ;;  %v8573_v9 = vunpack.c.h.bf16 %v8315_v38  ;;  %9064 = vmatprep.mubr.bf16.mxu0 %v16297_v1  ;;  %v8316_v23 = vpack.c.bf16 %v8266_v39, %v8262_v45  ;;  %v8684_v18 = vunpack.c.l.bf16 %v8075_v13  ;;  %v12359_v45 = vld [vmem:[%s16162_s7 + $0xd0] ss:$8 sps:$4 sm:$0xff]   ;;  %v16503_v38 = vld [vmem:[#allocation43_spill] sm:$0xff] }
 0x60d   : > { %v7951_v42 = vpop.f32.mrf.mxu0  ;;  %v8270_v27 = vpop.f32.mrf.mxu1  ;;  %9521 = vmatmul.mubr.bf16.gmra.mxu1 %v16499_v16  ;;  %v8685_v36 = vunpack.c.h.bf16 %v8075_v13 }
 0x60e   : > { %v8588_v37 = vmul.f32 %v8572_v48, %v8556_v25  ;;  %v8589_v14 = vmul.f32 %v8573_v9, %v8557_v31  ;;  %9530 = vmatprep.mubr.bf16.mxu1 %v16297_v1  ;;  %v8700_v10 = vunpack.c.l.bf16 %v8316_v23  ;;  %v8701_v40 = vunpack.c.h.bf16 %v8316_v23  ;;  %10170 = vmatpush2.bf16.msra.mxu0 %v12359_v45  ;;  %v16504_v9 = vld [vmem:[#allocation32_spill] sm:$0xff] }
 0x60f   : > { %v7953_v15 = vpop.f32.mrf.mxu0  ;;  %v8272_v35 = vpop.f32.mrf.mxu1 }
 0x610   : > { %v8604_v8 = vadd.f32 %v8588_v37, %v16500_v54  ;;  %v8605_v29 = vadd.f32 %v8589_v14, %v16501_v6  ;;  %v8076_v63 = vpack.c.bf16 %v7953_v15, %v7949_v3  ;;  %v8716_v22 = vmul.f32 %v8700_v10, %v8684_v18  ;;  %v16506_v6 = vld [vmem:[#allocation44_spill] sm:$0xff] }
 0x611   : > { %v8717_v12 = vmul.f32 %v8701_v40, %v8685_v36  ;;  %v7955_v56 = vpop.f32.mrf.mxu0  ;;  %v8274_v26 = vpop.f32.mrf.mxu1 }
 0x612   : > { %v8317_v19 = vpack.c.bf16 %v8274_v26, %v8270_v27  ;;  %v15513_v32 = vadd.f32 %v8716_v22, %v8604_v8  ;;  %v8077_v4 = vpack.c.bf16 %v7955_v56, %v7951_v42  ;;  %v8558_v43 = vunpack.c.l.bf16 %v8076_v63  ;;  %v16505_v42 = vld [vmem:[#allocation33_spill] sm:$0xff] }
 0x613   : > { %v15515_v28 = vadd.f32 %v8717_v12, %v8605_v29  ;;  %v7959_v55 = vpop.f32.mrf.mxu0  ;;  %v8276_v52 = vpop.f32.mrf.mxu1  ;;  %9065 = vmatmul.mubr.bf16.gmra.mxu0 %v16502_v49  ;;  %v8559_v11 = vunpack.c.h.bf16 %v8076_v63  ;;  %v12362_v29 = vld [vmem:[%s16162_s7 + $0xc0] ss:$8 sps:$4 sm:$0xff]   ;;  %v12364_v63 = vld [vmem:[%s16162_s7 + $0xc4] ss:$8 sps:$4 sm:$0xff]  }
 0x614   : > { %v8574_v5 = vunpack.c.l.bf16 %v8317_v19  ;;  %v8575_v17 = vunpack.c.h.bf16 %v8317_v19  ;;  %9074 = vmatprep.mubr.bf16.mxu0 %v16297_v1  ;;  %v8318_v58 = vpack.c.bf16 %v8276_v52, %v8272_v35  ;;  %v8686_v0 = vunpack.c.l.bf16 %v8077_v4  ;;  %v16507_v52 = vld [vmem:[#allocation45_spill] sm:$0xff]  ;;  %10171 = vmatprep.subr.bf16.mxu0 %v12364_v63 }
 0x615   : > { %v7961_v20 = vpop.f32.mrf.mxu0  ;;  %v8280_v13 = vpop.f32.mrf.mxu1  ;;  %9531 = vmatmul.mubr.bf16.gmra.mxu1 %v16503_v38  ;;  %v8687_v7 = vunpack.c.h.bf16 %v8077_v4  ;;  %10172 = vmatpush2.bf16.msra.mxu0 %v12362_v29 }
 0x616   : > { %v8590_v3 = vmul.f32 %v8574_v5, %v8558_v43  ;;  %v8591_v39 = vmul.f32 %v8575_v17, %v8559_v11  ;;  %9540 = vmatprep.mubr.bf16.mxu1 %v16297_v1  ;;  %v8702_v2 = vunpack.c.l.bf16 %v8318_v58  ;;  %v8703_v25 = vunpack.c.h.bf16 %v8318_v58 }
 0x617   : > { %v7963_v31 = vpop.f32.mrf.mxu0  ;;  %v8282_v48 = vpop.f32.mrf.mxu1 }
 0x618   : > { %v8606_v23 = vadd.f32 %v8590_v3, %v16504_v9  ;;  %v8607_v27 = vadd.f32 %v8591_v39, %v16505_v42  ;;  %v8078_v16 = vpack.c.bf16 %v7963_v31, %v7959_v55  ;;  %v8718_v37 = vmul.f32 %v8702_v2, %v8686_v0 }
 0x619   : > { %v8719_v14 = vmul.f32 %v8703_v25, %v8687_v7  ;;  %v7965_v18 = vpop.f32.mrf.mxu0  ;;  %v8284_v36 = vpop.f32.mrf.mxu1 }
 0x61a   : > { %v8319_v10 = vpack.c.bf16 %v8284_v36, %v8280_v13  ;;  %v15529_v40 = vadd.f32 %v8718_v37, %v8606_v23  ;;  %v8079_v35 = vpack.c.bf16 %v7965_v18, %v7961_v20  ;;  %v8560_v22 = vunpack.c.l.bf16 %v8078_v16  ;;  %v16508_v13 = vld [vmem:[#allocation34_spill] sm:$0xff] }
 0x61b   : > { %v15531_v15 = vadd.f32 %v8719_v14, %v8607_v27  ;;  %v7969_v54 = vpop.f32.mrf.mxu0  ;;  %v8286_v8 = vpop.f32.mrf.mxu1  ;;  %9075 = vmatmul.mubr.bf16.gmra.mxu0 %v16506_v6  ;;  %v8561_v12 = vunpack.c.h.bf16 %v8078_v16  ;;  %v16509_v27 = vld [vmem:[#allocation46_spill] sm:$0xff] }
 0x61c   : > { %v8576_v56 = vunpack.c.l.bf16 %v8319_v10  ;;  %v8577_v26 = vunpack.c.h.bf16 %v8319_v10  ;;  %9084 = vmatprep.mubr.bf16.mxu0 %v16297_v1  ;;  %v8320_v19 = vpack.c.bf16 %v8286_v8, %v8282_v48  ;;  %v8688_v62 = vunpack.c.l.bf16 %v8079_v35  ;;  %v12367_v16 = vld [vmem:[%s16162_s7 + $0xb4] ss:$8 sps:$4 sm:$0xff]   ;;  %v16510_v8 = vld [vmem:[#allocation47_spill] sm:$0xff] }
 0x61d   : > { %v7971_v4 = vpop.f32.mrf.mxu0  ;;  %v8290_v55 = vpop.f32.mrf.mxu1  ;;  %9541 = vmatmul.mubr.bf16.gmra.mxu1 %v16507_v52  ;;  %v8689_v43 = vunpack.c.h.bf16 %v8079_v35  ;;  %10173 = vmatprep.subr.bf16.mxu0 %v12367_v16  ;;  %v16512_v52 = vld [vmem:[#allocation56_spill] sm:$0xff] }
 0x61e   : > { %v8592_v49 = vmul.f32 %v8576_v56, %v8560_v22  ;;  %v8593_v45 = vmul.f32 %v8577_v26, %v8561_v12  ;;  %9550 = vmatprep.mubr.bf16.mxu1 %v16297_v1  ;;  %v8704_v11 = vunpack.c.l.bf16 %v8320_v19  ;;  %v8705_v5 = vunpack.c.h.bf16 %v8320_v19 }
 0x61f   : > { %v7973_v17 = vpop.f32.mrf.mxu0  ;;  %v8292_v58 = vpop.f32.mrf.mxu1 }
 0x620   : > { %v8608_v20 = vadd.f32 %v8592_v49, %v15290_v44  ;;  %v8609_v38 = vadd.f32 %v8593_v45, %v16508_v13  ;;  %v8080_v3 = vpack.c.bf16 %v7973_v17, %v7969_v54  ;;  %v8720_v39 = vmul.f32 %v8704_v11, %v8688_v62  ;;  %v12365_v44 = vld [vmem:[%s16162_s7 + $0xb0] ss:$8 sps:$4 sm:$0xff]  }
 0x621   : > { %v8721_v0 = vmul.f32 %v8705_v5, %v8689_v43  ;;  %v7975_v7 = vpop.f32.mrf.mxu0  ;;  %v8294_v2 = vpop.f32.mrf.mxu1  ;;  %10174 = vmatpush2.bf16.msra.mxu0 %v12365_v44 }
 0x622   : > { %v8321_v25 = vpack.c.bf16 %v8294_v2, %v8290_v55  ;;  %v15545_v31 = vadd.f32 %v8720_v39, %v8608_v20  ;;  %v8081_v9 = vpack.c.bf16 %v7975_v7, %v7971_v4  ;;  %v8562_v37 = vunpack.c.l.bf16 %v8080_v3  ;;  %v16511_v4 = vld [vmem:[#allocation55_spill] sm:$0xff] }
 0x623   : > { %v15547_v48 = vadd.f32 %v8721_v0, %v8609_v38  ;;  %v7979_v23 = vpop.f32.mrf.mxu0  ;;  %v8296_v42 = vpop.f32.mrf.mxu1  ;;  %9085 = vmatmul.mubr.bf16.gmra.mxu0 %v16509_v27  ;;  %v8563_v14 = vunpack.c.h.bf16 %v8080_v3  ;;  %v12368_v39 = vld [vmem:[%s16162_s7 + $0xa0] ss:$8 sps:$4 sm:$0xff]   ;;  %v12370_v0 = vld [vmem:[%s16162_s7 + $0xa4] ss:$8 sps:$4 sm:$0xff]  }
 0x624   : > { %v8578_v18 = vunpack.c.l.bf16 %v8321_v25  ;;  %v8579_v36 = vunpack.c.h.bf16 %v8321_v25  ;;  %v8322_v10 = vpack.c.bf16 %v8296_v42, %v8292_v58  ;;  %v8690_v63 = vunpack.c.l.bf16 %v8081_v9  ;;  %10175 = vmatprep.subr.bf16.mxu0 %v12370_v0 }
 0x625   : > { %v7981_v35 = vpop.f32.mrf.mxu0  ;;  %v8300_v54 = vpop.f32.mrf.mxu1  ;;  %9551 = vmatmul.mubr.bf16.gmra.mxu1 %v16510_v8  ;;  %v8691_v22 = vunpack.c.h.bf16 %v8081_v9  ;;  %10176 = vmatpush2.bf16.msra.mxu0 %v12368_v39  ;;  %v16513_v8 = vld [vmem:[#allocation57_spill] sm:$0xff] }
 0x626   : > { %v8594_v6 = vmul.f32 %v8578_v18, %v8562_v37  ;;  %v8595_v29 = vmul.f32 %v8579_v36, %v8563_v14  ;;  %v8706_v12 = vunpack.c.l.bf16 %v8322_v10  ;;  %v8707_v56 = vunpack.c.h.bf16 %v8322_v10 }
 0x627   : > { %v7983_v26 = vpop.f32.mrf.mxu0  ;;  %v8302_v19 = vpop.f32.mrf.mxu1 }
 0x628   : > { %v8610_v55 = vadd.f32 %v8594_v6, %v16511_v4  ;;  %v8611_v49 = vadd.f32 %v8595_v29, %v16512_v52  ;;  %v8082_v45 = vpack.c.bf16 %v7983_v26, %v7979_v23  ;;  %v8722_v62 = vmul.f32 %v8706_v12, %v8690_v63 }
 0x629   : > { %v8723_v43 = vmul.f32 %v8707_v56, %v8691_v22  ;;  %v7985_v11 = vpop.f32.mrf.mxu0  ;;  %v8304_v5 = vpop.f32.mrf.mxu1 }
 0x62a   : > { %v8323_v17 = vpack.c.bf16 %v8304_v5, %v8300_v54  ;;  %v15559_v58 = vadd.f32 %v8722_v62, %v8610_v55  ;;  %v8083_v13 = vpack.c.bf16 %v7985_v11, %v7981_v35  ;;  %v8564_v7 = vunpack.c.l.bf16 %v8082_v45 }
 0x62b   : > { %v15561_v20 = vadd.f32 %v8723_v43, %v8611_v49  ;;  %v7989_v38 = vpop.f32.mrf.mxu0  ;;  %v8306_v3 = vpop.f32.mrf.mxu1  ;;  %v8565_v2 = vunpack.c.h.bf16 %v8082_v45  ;;  %v12371_v45 = vld [vmem:[%s16162_s7 + $0x90] ss:$8 sps:$4 sm:$0xff]  }
 0x62c   : > { %v8580_v25 = vunpack.c.l.bf16 %v8323_v17  ;;  %v8581_v9 = vunpack.c.h.bf16 %v8323_v17  ;;  %v8324_v23 = vpack.c.bf16 %v8306_v3, %v8302_v19  ;;  %v8692_v37 = vunpack.c.l.bf16 %v8083_v13 }
 0x62d   : > { %v7991_v42 = vpop.f32.mrf.mxu0  ;;  %v8455_v27 = vpop.f32.mrf.mxu1  ;;  %v8693_v14 = vunpack.c.h.bf16 %v8083_v13 }
 0x62e   : > { %v8596_v44 = vmul.f32 %v8580_v25, %v8564_v7  ;;  %v8597_v16 = vmul.f32 %v8581_v9, %v8565_v2  ;;  %v8708_v18 = vunpack.c.l.bf16 %v8324_v23  ;;  %v8709_v36 = vunpack.c.h.bf16 %v8324_v23 }
 0x62f   : > { %v7993_v10 = vpop.f32.mrf.mxu0  ;;  %v8457_v35 = vpop.f32.mrf.mxu1 }
 0x630   : > { %v8612_v54 = vadd.f32 %v8596_v44, %v15327_v61  ;;  %v8613_v6 = vadd.f32 %v8597_v16, %v16513_v8  ;;  %v8084_v29 = vpack.c.bf16 %v7993_v10, %v7989_v38  ;;  %v8724_v63 = vmul.f32 %v8708_v18, %v8692_v37  ;;  %v12373_v61 = vld [vmem:[%s16162_s7 + $0x94] ss:$8 sps:$4 sm:$0xff]  }
 0x631   : > { %v8725_v22 = vmul.f32 %v8709_v36, %v8693_v14  ;;  %v7995_v12 = vpop.f32.mrf.mxu0  ;;  %v8459_v56 = vpop.f32.mrf.mxu1  ;;  %10177 = vmatprep.subr.bf16.mxu0 %v12373_v61 }
 0x632   : > { %v8534_v26 = vpack.c.bf16 %v8459_v56, %v8455_v27  ;;  %v15571_v19 = vadd.f32 %v8724_v63, %v8612_v54  ;;  %v8085_v55 = vpack.c.bf16 %v7995_v12, %v7991_v42  ;;  %v8614_v62 = vunpack.c.l.bf16 %v8084_v29  ;;  %10178 = vmatpush2.bf16.msra.mxu0 %v12371_v45 }
 0x633   : > { %v15573_v4 = vadd.f32 %v8725_v22, %v8613_v6  ;;  %v7999_v52 = vpop.f32.mrf.mxu0  ;;  %v8461_v49 = vpop.f32.mrf.mxu1  ;;  %v8615_v43 = vunpack.c.h.bf16 %v8084_v29  ;;  %v12374_v29 = vld [vmem:[%s16162_s7 + $0x80] ss:$8 sps:$4 sm:$0xff]  }
 0x634   : > { %v8630_v11 = vunpack.c.l.bf16 %v8534_v26  ;;  %v8631_v5 = vunpack.c.h.bf16 %v8534_v26  ;;  %v8535_v17 = vpack.c.bf16 %v8461_v49, %v8457_v35  ;;  %v8742_v0 = vunpack.c.l.bf16 %v8085_v55 }
 0x635   : > { %v8001_v13 = vpop.f32.mrf.mxu0  ;;  %v8465_v38 = vpop.f32.mrf.mxu1  ;;  %v8743_v7 = vunpack.c.h.bf16 %v8085_v55 }
 0x636   : > { %v8646_v3 = vmul.f32 %v8630_v11, %v8614_v62  ;;  %v8647_v39 = vmul.f32 %v8631_v5, %v8615_v43  ;;  %v8758_v2 = vunpack.c.l.bf16 %v8535_v17  ;;  %v8759_v25 = vunpack.c.h.bf16 %v8535_v17 }
 0x637   : > { %v8003_v9 = vpop.f32.mrf.mxu0  ;;  %v8467_v23 = vpop.f32.mrf.mxu1 }
 0x638   : > { %v8662_v42 = vadd.f32 %v8646_v3, %v15353_v24  ;;  %v8663_v27 = vadd.f32 %v8647_v39, %v15355_v53  ;;  %v8086_v44 = vpack.c.bf16 %v8003_v9, %v7999_v52  ;;  %v8774_v16 = vmul.f32 %v8758_v2, %v8742_v0  ;;  %v12376_v24 = vld [vmem:[%s16162_s7 + $0x84] ss:$8 sps:$4 sm:$0xff]  }
 0x639   : > { %v8775_v37 = vmul.f32 %v8759_v25, %v8743_v7  ;;  %v8005_v14 = vpop.f32.mrf.mxu0  ;;  %v8469_v18 = vpop.f32.mrf.mxu1  ;;  %10179 = vmatprep.subr.bf16.mxu0 %v12376_v24 }
 0x63a   : > { %v8536_v36 = vpack.c.bf16 %v8469_v18, %v8465_v38  ;;  %v15583_v10 = vadd.f32 %v8774_v16, %v8662_v42  ;;  %v8087_v54 = vpack.c.bf16 %v8005_v14, %v8001_v13  ;;  %v8616_v53 = vunpack.c.l.bf16 %v8086_v44  ;;  %10180 = vmatpush2.bf16.msra.mxu0 %v12374_v29 }
 0x63b   : > { %v15585_v35 = vadd.f32 %v8775_v37, %v8663_v27  ;;  %v8009_v8 = vpop.f32.mrf.mxu0  ;;  %v8471_v6 = vpop.f32.mrf.mxu1  ;;  %v8617_v63 = vunpack.c.h.bf16 %v8086_v44 }
 0x63c   : > { %v8632_v22 = vunpack.c.l.bf16 %v8536_v36  ;;  %v8633_v12 = vunpack.c.h.bf16 %v8536_v36  ;;  %v8537_v56 = vpack.c.bf16 %v8471_v6, %v8467_v23  ;;  %v8744_v45 = vunpack.c.l.bf16 %v8087_v54 }
 0x63d   : > { %v8011_v26 = vpop.f32.mrf.mxu0  ;;  %v8475_v55 = vpop.f32.mrf.mxu1  ;;  %v8745_v61 = vunpack.c.h.bf16 %v8087_v54 }
 0x63e   : > { %v8648_v52 = vmul.f32 %v8632_v22, %v8616_v53  ;;  %v8649_v49 = vmul.f32 %v8633_v12, %v8617_v63  ;;  %v8760_v62 = vunpack.c.l.bf16 %v8537_v56  ;;  %v8761_v43 = vunpack.c.h.bf16 %v8537_v56 }
 0x63f   : > { %v8013_v11 = vpop.f32.mrf.mxu0  ;;  %v8477_v5 = vpop.f32.mrf.mxu1 }
 0x640   : > { %v8664_v17 = vadd.f32 %v8648_v52, %v15377_v50  ;;  %v8665_v13 = vadd.f32 %v8649_v49, %v15379_v51  ;;  %v8088_v38 = vpack.c.bf16 %v8013_v11, %v8009_v8  ;;  %v8776_v3 = vmul.f32 %v8760_v62, %v8744_v45 }
 0x641   : > { %v8777_v39 = vmul.f32 %v8761_v43, %v8745_v61  ;;  %v8015_v0 = vpop.f32.mrf.mxu0  ;;  %v8479_v7 = vpop.f32.mrf.mxu1 }
 0x642   : > { %v8538_v2 = vpack.c.bf16 %v8479_v7, %v8475_v55  ;;  %v15595_v25 = vadd.f32 %v8776_v3, %v8664_v17  ;;  %v8089_v23 = vpack.c.bf16 %v8015_v0, %v8011_v26  ;;  %v8618_v44 = vunpack.c.l.bf16 %v8088_v38 }
 0x643   : > { %v15597_v9 = vadd.f32 %v8777_v39, %v8665_v13  ;;  %v8019_v42 = vpop.f32.mrf.mxu0  ;;  %v8481_v27 = vpop.f32.mrf.mxu1  ;;  %v8619_v16 = vunpack.c.h.bf16 %v8088_v38 }
 0x644   : > { %v8634_v37 = vunpack.c.l.bf16 %v8538_v2  ;;  %v8635_v14 = vunpack.c.h.bf16 %v8538_v2  ;;  %v8539_v50 = vpack.c.bf16 %v8481_v27, %v8477_v5  ;;  %v8746_v8 = vunpack.c.l.bf16 %v8089_v23 }
 0x645   : > { %v8021_v18 = vpop.f32.mrf.mxu0  ;;  %v8485_v51 = vpop.f32.mrf.mxu1  ;;  %v8747_v6 = vunpack.c.h.bf16 %v8089_v23 }
 0x646   : > { %v8650_v36 = vmul.f32 %v8634_v37, %v8618_v44  ;;  %v8651_v54 = vmul.f32 %v8635_v14, %v8619_v16  ;;  %v8762_v29 = vunpack.c.l.bf16 %v8539_v50  ;;  %v8763_v24 = vunpack.c.h.bf16 %v8539_v50 }
 0x647   : > { %v8023_v53 = vpop.f32.mrf.mxu0  ;;  %v8487_v63 = vpop.f32.mrf.mxu1 }
 0x648   : > { %v8666_v22 = vadd.f32 %v8650_v36, %v15393_v30  ;;  %v8667_v12 = vadd.f32 %v8651_v54, %v15395_v57  ;;  %v8090_v56 = vpack.c.bf16 %v8023_v53, %v8019_v42  ;;  %v8778_v26 = vmul.f32 %v8762_v29, %v8746_v8 }
 0x649   : > { %v8779_v55 = vmul.f32 %v8763_v24, %v8747_v6  ;;  %v8025_v52 = vpop.f32.mrf.mxu0  ;;  %v8489_v49 = vpop.f32.mrf.mxu1 }
 0x64a   : > { %v8540_v45 = vpack.c.bf16 %v8489_v49, %v8485_v51  ;;  %v15601_v61 = vadd.f32 %v8778_v26, %v8666_v22  ;;  %v8091_v43 = vpack.c.bf16 %v8025_v52, %v8021_v18  ;;  %v8620_v17 = vunpack.c.l.bf16 %v8090_v56 }
 0x64b   : > { %v15603_v62 = vadd.f32 %v8779_v55, %v8667_v12  ;;  %v8029_v11 = vpop.f32.mrf.mxu0  ;;  %v8491_v5 = vpop.f32.mrf.mxu1  ;;  %v8621_v13 = vunpack.c.h.bf16 %v8090_v56 }
 0x64c   : > { %v8636_v38 = vunpack.c.l.bf16 %v8540_v45  ;;  %v8637_v3 = vunpack.c.h.bf16 %v8540_v45  ;;  %v8541_v30 = vpack.c.bf16 %v8491_v5, %v8487_v63  ;;  %v8748_v2 = vunpack.c.l.bf16 %v8091_v43 }
 0x64d   : > { %v8031_v39 = vpop.f32.mrf.mxu0  ;;  %v8495_v57 = vpop.f32.mrf.mxu1  ;;  %v8749_v23 = vunpack.c.h.bf16 %v8091_v43 }
 0x64e   : > { %v8652_v0 = vmul.f32 %v8636_v38, %v8620_v17  ;;  %v8653_v7 = vmul.f32 %v8637_v3, %v8621_v13  ;;  %v8764_v42 = vunpack.c.l.bf16 %v8541_v30  ;;  %v8765_v27 = vunpack.c.h.bf16 %v8541_v30 }
 0x64f   : > { %v8033_v44 = vpop.f32.mrf.mxu0  ;;  %v8497_v16 = vpop.f32.mrf.mxu1 }
 0x650   : > { %v8668_v37 = vadd.f32 %v8652_v0, %v15409_v21  ;;  %v8669_v14 = vadd.f32 %v8653_v7, %v15411_v41  ;;  %v8092_v50 = vpack.c.bf16 %v8033_v44, %v8029_v11  ;;  %v8780_v18 = vmul.f32 %v8764_v42, %v8748_v2 }
 0x651   : > { %v8781_v51 = vmul.f32 %v8765_v27, %v8749_v23  ;;  %v8035_v36 = vpop.f32.mrf.mxu0  ;;  %v8499_v54 = vpop.f32.mrf.mxu1 }
 0x652   : > { %v8542_v8 = vpack.c.bf16 %v8499_v54, %v8495_v57  ;;  %v15607_v6 = vadd.f32 %v8780_v18, %v8668_v37  ;;  %v8093_v24 = vpack.c.bf16 %v8035_v36, %v8031_v39 }
 0x653   : > { %v15609_v29 = vadd.f32 %v8781_v51, %v8669_v14  ;;  %v8039_v53 = vpop.f32.mrf.mxu0  ;;  %v8501_v63 = vpop.f32.mrf.mxu1 }
 0x654   : > { %v8543_v22 = vpack.c.bf16 %v8501_v63, %v8497_v16  ;;  %12967 = vmac.bf16.f32.vacc3 %v8542_v8, %v8092_v50 }
 0x655   : > { %v8041_v12 = vpop.f32.mrf.mxu0  ;;  %v8505_v56 = vpop.f32.mrf.mxu1 }
 0x656   : > { %12968 = vmac.bf16.f32.vacc3 %v8543_v22, %v8093_v24 }
 0x657   : > { %v8043_v26 = vpop.f32.mrf.mxu0  ;;  %v8507_v21 = vpop.f32.mrf.mxu1 }
 0x658   : > { %v8094_v41 = vpack.c.bf16 %v8043_v26, %v8039_v53 }
 0x659   : > { %v8045_v55 = vpop.f32.mrf.mxu0  ;;  %v8509_v52 = vpop.f32.mrf.mxu1 }
 0x65a   : > { %v8544_v49 = vpack.c.bf16 %v8509_v52, %v8505_v56  ;;  %v8095_v45 = vpack.c.bf16 %v8045_v55, %v8041_v12 }
 0x65b   : > { %v8049_v43 = vpop.f32.mrf.mxu0  ;;  %v8511_v11 = vpop.f32.mrf.mxu1 }
 0x65c   : > { %v8545_v5 = vpack.c.bf16 %v8511_v11, %v8507_v21  ;;  %12935 = vmac.bf16.f32.vacc2 %v8544_v49, %v8094_v41 }
 0x65d   : > { %v8051_v17 = vpop.f32.mrf.mxu0  ;;  %v8515_v13 = vpop.f32.mrf.mxu1 }
 0x65e   : > { %12936 = vmac.bf16.f32.vacc2 %v8545_v5, %v8095_v45 }
 0x65f   : > { %v8053_v38 = vpop.f32.mrf.mxu0  ;;  %v8517_v3 = vpop.f32.mrf.mxu1 }
 0x660   : > { %v8096_v30 = vpack.c.bf16 %v8053_v38, %v8049_v43 }
 0x661   : > { %v8055_v39 = vpop.f32.mrf.mxu0  ;;  %v8519_v57 = vpop.f32.mrf.mxu1 }
 0x662   : > { %v8546_v0 = vpack.c.bf16 %v8519_v57, %v8515_v13  ;;  %v8097_v7 = vpack.c.bf16 %v8055_v39, %v8051_v17 }
 0x663   : > { %v8059_v2 = vpop.f32.mrf.mxu0  ;;  %v8521_v23 = vpop.f32.mrf.mxu1 }
 0x664   : > { %v8547_v42 = vpack.c.bf16 %v8521_v23, %v8517_v3  ;;  %12903 = vmac.bf16.f32.vacc1 %v8546_v0, %v8096_v30 }
 0x665   : > { %v8061_v27 = vpop.f32.mrf.mxu0  ;;  %v8525_v44 = vpop.f32.mrf.mxu1 }
 0x666   : > { %12904 = vmac.bf16.f32.vacc1 %v8547_v42, %v8097_v7 }
 0x667   : > { %v8063_v16 = vpop.f32.mrf.mxu0  ;;  %v8527_v37 = vpop.f32.mrf.mxu1 }
 0x668   : > { %v8098_v14 = vpack.c.bf16 %v8063_v16, %v8059_v2 }
 0x669   : > { %v8065_v50 = vpop.f32.mrf.mxu0  ;;  %v8529_v18 = vpop.f32.mrf.mxu1 }
 0x66a   : > { %v8548_v51 = vpack.c.bf16 %v8529_v18, %v8525_v44  ;;  %v8099_v36 = vpack.c.bf16 %v8065_v50, %v8061_v27 }
 0x66b   : > { %v8531_v54 = vpop.f32.mrf.mxu1  ;;  %v8936_v8 = vpop.f32.mrf.mxu0 }
 0x66c   : > { %v8549_v24 = vpack.c.bf16 %v8531_v54, %v8527_v37  ;;  %12871 = vmac.bf16.f32.vacc0 %v8548_v51, %v8098_v14  ;;  %v12377_v51 = vld [vmem:[#allocation11 + $0x78] sm:$0xff]   ;;  %v12379_v54 = vld [vmem:[#allocation11 + $0x70] sm:$0xff]  }
 0x66d   : > { %v8938_v53 = vpop.f32.mrf.mxu0  ;;  %v9257_v63 = vpop.f32.mrf.mxu1  ;;  %12040 = vmatprep.subr.bf16.mxu1 %v12377_v51 }
 0x66e   : > { %12872 = vmac.bf16.f32.vacc0 %v8549_v24, %v8099_v36  ;;  %v12378_v36 = vld [vmem:[#allocation11 + $0x38] sm:$0xff]  }
 0x66f   : > { %v8940_v22 = vpop.f32.mrf.mxu0  ;;  %v9259_v12 = vpop.f32.mrf.mxu1  ;;  %12041 = vmatpush3.bf16.msra.mxu1 %v12378_v36 }
 0x670   : > { %v9095_v56 = vpack.c.bf16 %v8940_v22, %v8936_v8  ;;  %12042 = vmatprep.subr.bf16.mxu1 %v12379_v54 }
 0x671   : > { %v8942_v26 = vpop.f32.mrf.mxu0  ;;  %v9261_v21 = vpop.f32.mrf.mxu1 }
 0x672   : > { %v9336_v41 = vpack.c.bf16 %v9261_v21, %v9257_v63  ;;  %v9096_v55 = vpack.c.bf16 %v8942_v26, %v8938_v53  ;;  %v9577_v45 = vunpack.c.l.bf16 %v9095_v56  ;;  %v9578_v43 = vunpack.c.h.bf16 %v9095_v56 }
 0x673   : > { %v8946_v52 = vpop.f32.mrf.mxu0  ;;  %v9263_v49 = vpop.f32.mrf.mxu1 }
 0x674   : > { %v9593_v11 = vunpack.c.l.bf16 %v9336_v41  ;;  %v9594_v5 = vunpack.c.h.bf16 %v9336_v41  ;;  %v9337_v17 = vpack.c.bf16 %v9263_v49, %v9259_v12  ;;  %v9705_v39 = vunpack.c.l.bf16 %v9096_v55 }
 0x675   : > { %v8948_v13 = vpop.f32.mrf.mxu0  ;;  %v9267_v38 = vpop.f32.mrf.mxu1  ;;  %v9706_v57 = vunpack.c.h.bf16 %v9096_v55 }
 0x676   : > { %v9609_v3 = vmul.f32 %v9593_v11, %v9577_v45  ;;  %v9610_v30 = vmul.f32 %v9594_v5, %v9578_v43  ;;  %v9721_v0 = vunpack.c.l.bf16 %v9337_v17  ;;  %v9722_v7 = vunpack.c.h.bf16 %v9337_v17  ;;  %v12381_v43 = vld [vmem:[#allocation11 + $0x68] sm:$0xff]  }
 0x677   : > { %v8950_v2 = vpop.f32.mrf.mxu0  ;;  %v9269_v23 = vpop.f32.mrf.mxu1 }
 0x678   : > { %v9625_v42 = vadd.f32 %v9609_v3, %v15465_v47  ;;  %v9626_v27 = vadd.f32 %v9610_v30, %v15467_v33  ;;  %v9097_v44 = vpack.c.bf16 %v8950_v2, %v8946_v52  ;;  %v9737_v16 = vmul.f32 %v9721_v0, %v9705_v39  ;;  %v12380_v52 = vld [vmem:[#allocation11 + $0x30] sm:$0xff]  }
 0x679   : > { %v9738_v37 = vmul.f32 %v9722_v7, %v9706_v57  ;;  %v8952_v14 = vpop.f32.mrf.mxu0  ;;  %v9271_v50 = vpop.f32.mrf.mxu1  ;;  %12043 = vmatpush3.bf16.msra.mxu1 %v12380_v52 }
 0x67a   : > { %v9338_v18 = vpack.c.bf16 %v9271_v50, %v9267_v38  ;;  %v15613_v8 = vadd.f32 %v9737_v16, %v9625_v42  ;;  %v9098_v53 = vpack.c.bf16 %v8952_v14, %v8948_v13  ;;  %v9579_v12 = vunpack.c.l.bf16 %v9097_v44  ;;  %v12382_v42 = vld [vmem:[#allocation11 + $0x28] sm:$0xff]   ;;  %12044 = vmatprep.subr.bf16.mxu1 %v12381_v43 }
 0x67b   : > { %v15615_v24 = vadd.f32 %v9738_v37, %v9626_v27  ;;  %v8956_v63 = vpop.f32.mrf.mxu0  ;;  %v9273_v22 = vpop.f32.mrf.mxu1  ;;  %v9580_v47 = vunpack.c.h.bf16 %v9097_v44  ;;  %v12383_v44 = vld [vmem:[#allocation11 + $0x60] sm:$0xff]  }
 0x67c   : > { %v9595_v56 = vunpack.c.l.bf16 %v9338_v18  ;;  %v9596_v33 = vunpack.c.h.bf16 %v9338_v18  ;;  %v9339_v21 = vpack.c.bf16 %v9273_v22, %v9269_v23  ;;  %v9707_v11 = vunpack.c.l.bf16 %v9098_v53 }
 0x67d   : > { %v9929_v26 = vpack.c.bf16 %v15615_v24, %v15613_v8  ;;  %v8958_v41 = vpop.f32.mrf.mxu0  ;;  %v9277_v55 = vpop.f32.mrf.mxu1  ;;  %v9708_v5 = vunpack.c.h.bf16 %v9098_v53  ;;  %12045 = vmatpush3.bf16.msra.mxu1 %v12382_v42 }
 0x67e   : > { %v9611_v49 = vmul.f32 %v9595_v56, %v9579_v12  ;;  %v9612_v45 = vmul.f32 %v9596_v33, %v9580_v47  ;;  %v9723_v17 = vunpack.c.l.bf16 %v9339_v21  ;;  %v9724_v13 = vunpack.c.h.bf16 %v9339_v21  ;;  %v12384_v12 = vld [vmem:[#allocation11 + $0x20] sm:$0xff]   ;;  %12046 = vmatprep.subr.bf16.mxu1 %v12383_v44  ;;  %v12385_v33 = vld [vmem:[#allocation11 + $0x58] sm:$0xff]  }
 0x67f   : > { %v8960_v38 = vpop.f32.mrf.mxu0  ;;  %v9279_v3 = vpop.f32.mrf.mxu1 }
 0x680   : > { %v9627_v30 = vadd.f32 %v9611_v49, %v15481_v34  ;;  %v9628_v39 = vadd.f32 %v9612_v45, %v15483_v46  ;;  %v9099_v57 = vpack.c.bf16 %v8960_v38, %v8956_v63  ;;  %v9739_v0 = vmul.f32 %v9723_v17, %v9707_v11 }
 0x681   : > { %v9740_v7 = vmul.f32 %v9724_v13, %v9708_v5  ;;  %v8962_v2 = vpop.f32.mrf.mxu0  ;;  %v9281_v23 = vpop.f32.mrf.mxu1  ;;  %12047 = vmatpush3.bf16.msra.mxu1 %v12384_v12 }
 0x682   : > { %v9340_v27 = vpack.c.bf16 %v9281_v23, %v9277_v55  ;;  %v15621_v16 = vadd.f32 %v9739_v0, %v9627_v30  ;;  %v9100_v14 = vpack.c.bf16 %v8962_v2, %v8958_v41  ;;  %v9581_v34 = vunpack.c.l.bf16 %v9099_v57  ;;  %v12386_v30 = vld [vmem:[#allocation11 + $0x18] sm:$0xff]   ;;  %12048 = vmatprep.subr.bf16.mxu1 %v12385_v33 }
 0x683   : > { %v15623_v37 = vadd.f32 %v9740_v7, %v9628_v39  ;;  %v8966_v50 = vpop.f32.mrf.mxu0  ;;  %v9283_v18 = vpop.f32.mrf.mxu1  ;;  %v9582_v51 = vunpack.c.h.bf16 %v9099_v57  ;;  %v12387_v57 = vld [vmem:[#allocation11 + $0x50] sm:$0xff]  }
 0x684   : > { %v9597_v46 = vunpack.c.l.bf16 %v9340_v27  ;;  %v9598_v36 = vunpack.c.h.bf16 %v9340_v27  ;;  %v9341_v54 = vpack.c.bf16 %v9283_v18, %v9279_v3  ;;  %v9709_v21 = vunpack.c.l.bf16 %v9100_v14 }
 0x685   : > { %v8968_v53 = vpop.f32.mrf.mxu0  ;;  %v9287_v63 = vpop.f32.mrf.mxu1  ;;  %v9931_v22 = vpack.c.bf16 %v15623_v37, %v15621_v16  ;;  %v9710_v41 = vunpack.c.h.bf16 %v9100_v14  ;;  %12049 = vmatpush3.bf16.msra.mxu1 %v12386_v30 }
 0x686   : > { %v9613_v47 = vmul.f32 %v9597_v46, %v9581_v34  ;;  %v9614_v56 = vmul.f32 %v9598_v36, %v9582_v51  ;;  %v9725_v55 = vunpack.c.l.bf16 %v9341_v54  ;;  %v9726_v52 = vunpack.c.h.bf16 %v9341_v54  ;;  %v12388_v51 = vld [vmem:[#allocation11 + $0x10] sm:$0xff]   ;;  %12050 = vmatprep.subr.bf16.mxu1 %v12387_v57  ;;  %v12389_v54 = vld [vmem:[#allocation11 + $0x48] sm:$0xff]  }
 0x687   : > { %v8970_v49 = vpop.f32.mrf.mxu0  ;;  %v9289_v45 = vpop.f32.mrf.mxu1 }
 0x688   : > { %v9629_v43 = vadd.f32 %v9613_v47, %v15497_v60  ;;  %v9630_v11 = vadd.f32 %v9614_v56, %v15499_v59  ;;  %v9101_v5 = vpack.c.bf16 %v8970_v49, %v8966_v50  ;;  %v9741_v17 = vmul.f32 %v9725_v55, %v9709_v21 }
 0x689   : > { %v9742_v13 = vmul.f32 %v9726_v52, %v9710_v41  ;;  %v8972_v38 = vpop.f32.mrf.mxu0  ;;  %v9291_v3 = vpop.f32.mrf.mxu1  ;;  %12051 = vmatpush3.bf16.msra.mxu1 %v12388_v51 }
 0x68a   : > { %v9342_v39 = vpack.c.bf16 %v9291_v3, %v9287_v63  ;;  %v15629_v0 = vadd.f32 %v9741_v17, %v9629_v43  ;;  %v9102_v2 = vpack.c.bf16 %v8972_v38, %v8968_v53  ;;  %v9583_v60 = vunpack.c.l.bf16 %v9101_v5  ;;  %12052 = vmatprep.subr.bf16.mxu1 %v12389_v54 }
 0x68b   : > { %v15631_v7 = vadd.f32 %v9742_v13, %v9630_v11  ;;  %v8976_v23 = vpop.f32.mrf.mxu0  ;;  %v9293_v42 = vpop.f32.mrf.mxu1  ;;  %v9584_v27 = vunpack.c.h.bf16 %v9101_v5  ;;  %v12390_v11 = vld [vmem:[#allocation11 + $0x8] sm:$0xff]  }
 0x68c   : > { %v9599_v59 = vunpack.c.l.bf16 %v9342_v39  ;;  %v9600_v44 = vunpack.c.h.bf16 %v9342_v39  ;;  %v9343_v14 = vpack.c.bf16 %v9293_v42, %v9289_v45  ;;  %v9711_v63 = vunpack.c.l.bf16 %v9102_v2 }
 0x68d   : > { %v8978_v50 = vpop.f32.mrf.mxu0  ;;  %v9297_v18 = vpop.f32.mrf.mxu1  ;;  %v9933_v34 = vpack.c.bf16 %v15631_v7, %v15629_v0  ;;  %v9712_v53 = vunpack.c.h.bf16 %v9102_v2  ;;  %12053 = vmatpush3.bf16.msra.mxu1 %v12390_v11 }
 0x68e   : > { %v9615_v46 = vmul.f32 %v9599_v59, %v9583_v60  ;;  %v9616_v36 = vmul.f32 %v9600_v44, %v9584_v27  ;;  %v9727_v12 = vunpack.c.l.bf16 %v9343_v14  ;;  %v9728_v47 = vunpack.c.h.bf16 %v9343_v14 }
 0x68f   : > { %v8980_v56 = vpop.f32.mrf.mxu0  ;;  %v9299_v33 = vpop.f32.mrf.mxu1 }
 0x690   : > { %v9631_v21 = vadd.f32 %v9615_v46, %v15513_v32  ;;  %v9632_v41 = vadd.f32 %v9616_v36, %v15515_v28  ;;  %v9103_v55 = vpack.c.bf16 %v8980_v56, %v8976_v23  ;;  %v9743_v52 = vmul.f32 %v9727_v12, %v9711_v63 }
 0x691   : > { %v9744_v49 = vmul.f32 %v9728_v47, %v9712_v53  ;;  %v8982_v45 = vpop.f32.mrf.mxu0  ;;  %v9301_v43 = vpop.f32.mrf.mxu1 }
 0x692   : > { %v9104_v5 = vpack.c.bf16 %v8982_v45, %v8978_v50  ;;  %v9344_v17 = vpack.c.bf16 %v9301_v43, %v9297_v18  ;;  %v15637_v13 = vadd.f32 %v9743_v52, %v9631_v21  ;;  %v9585_v39 = vunpack.c.l.bf16 %v9103_v55 }
 0x693   : > { %v15639_v38 = vadd.f32 %v9744_v49, %v9632_v41  ;;  %v8986_v3 = vpop.f32.mrf.mxu0  ;;  %v9303_v30 = vpop.f32.mrf.mxu1  ;;  %v9586_v32 = vunpack.c.h.bf16 %v9103_v55 }
 0x694   : > { %v9601_v57 = vunpack.c.l.bf16 %v9344_v17  ;;  %v9602_v28 = vunpack.c.h.bf16 %v9344_v17  ;;  %v9345_v2 = vpack.c.bf16 %v9303_v30, %v9299_v33  ;;  %v9713_v44 = vunpack.c.l.bf16 %v9104_v5 }
 0x695   : > { %v8988_v23 = vpop.f32.mrf.mxu0  ;;  %v9307_v42 = vpop.f32.mrf.mxu1  ;;  %v9935_v60 = vpack.c.bf16 %v15639_v38, %v15637_v13  ;;  %v9714_v14 = vunpack.c.h.bf16 %v9104_v5 }
 0x696   : > { %v9617_v27 = vmul.f32 %v9601_v57, %v9585_v39  ;;  %v9618_v59 = vmul.f32 %v9602_v28, %v9586_v32  ;;  %v9729_v50 = vunpack.c.l.bf16 %v9345_v2  ;;  %v9730_v18 = vunpack.c.h.bf16 %v9345_v2 }
 0x697   : > { %v8990_v51 = vpop.f32.mrf.mxu0  ;;  %v9309_v46 = vpop.f32.mrf.mxu1 }
 0x698   : > { %v9633_v36 = vadd.f32 %v9617_v27, %v15529_v40  ;;  %v9634_v54 = vadd.f32 %v9618_v59, %v15531_v15  ;;  %v9105_v63 = vpack.c.bf16 %v8990_v51, %v8986_v3  ;;  %v9745_v53 = vmul.f32 %v9729_v50, %v9713_v44 }
 0x699   : > { %v9746_v12 = vmul.f32 %v9730_v18, %v9714_v14  ;;  %v8992_v47 = vpop.f32.mrf.mxu0  ;;  %v9311_v56 = vpop.f32.mrf.mxu1 }
 0x69a   : > { %v9106_v33 = vpack.c.bf16 %v8992_v47, %v8988_v23  ;;  %v9346_v21 = vpack.c.bf16 %v9311_v56, %v9307_v42  ;;  %v15645_v41 = vadd.f32 %v9745_v53, %v9633_v36  ;;  %v9587_v45 = vunpack.c.l.bf16 %v9105_v63 }
 0x69b   : > { %v15647_v55 = vadd.f32 %v9746_v12, %v9634_v54  ;;  %v8996_v52 = vpop.f32.mrf.mxu0  ;;  %v9313_v49 = vpop.f32.mrf.mxu1  ;;  %v9588_v43 = vunpack.c.h.bf16 %v9105_v63 }
 0x69c   : > { %v9603_v11 = vunpack.c.l.bf16 %v9346_v21  ;;  %v9604_v5 = vunpack.c.h.bf16 %v9346_v21  ;;  %v9347_v40 = vpack.c.bf16 %v9313_v49, %v9309_v46  ;;  %v9715_v32 = vunpack.c.l.bf16 %v9106_v33 }
 0x69d   : > { %v8998_v17 = vpop.f32.mrf.mxu0  ;;  %v9317_v15 = vpop.f32.mrf.mxu1  ;;  %v9937_v3 = vpack.c.bf16 %v15647_v55, %v15645_v41  ;;  %v9716_v57 = vunpack.c.h.bf16 %v9106_v33 }
 0x69e   : > { %v9619_v30 = vmul.f32 %v9603_v11, %v9587_v45  ;;  %v9620_v39 = vmul.f32 %v9604_v5, %v9588_v43  ;;  %v9731_v28 = vunpack.c.l.bf16 %v9347_v40  ;;  %v9732_v2 = vunpack.c.h.bf16 %v9347_v40 }
 0x69f   : > { %v9000_v23 = vpop.f32.mrf.mxu0  ;;  %v9319_v42 = vpop.f32.mrf.mxu1 }
 0x6a0   : > { %v9635_v27 = vadd.f32 %v9619_v30, %v15545_v31  ;;  %v9636_v59 = vadd.f32 %v9620_v39, %v15547_v48  ;;  %v9107_v44 = vpack.c.bf16 %v9000_v23, %v8996_v52  ;;  %v9747_v14 = vmul.f32 %v9731_v28, %v9715_v32 }
 0x6a1   : > { %v9748_v50 = vmul.f32 %v9732_v2, %v9716_v57  ;;  %v9002_v18 = vpop.f32.mrf.mxu0  ;;  %v9321_v51 = vpop.f32.mrf.mxu1 }
 0x6a2   : > { %v9108_v46 = vpack.c.bf16 %v9002_v18, %v8998_v17  ;;  %v9348_v36 = vpack.c.bf16 %v9321_v51, %v9317_v15  ;;  %v15653_v54 = vadd.f32 %v9747_v14, %v9635_v27  ;;  %v9589_v47 = vunpack.c.l.bf16 %v9107_v44 }
 0x6a3   : > { %v15655_v63 = vadd.f32 %v9748_v50, %v9636_v59  ;;  %v9006_v53 = vpop.f32.mrf.mxu0  ;;  %v9323_v12 = vpop.f32.mrf.mxu1  ;;  %v9590_v56 = vunpack.c.h.bf16 %v9107_v44 }
 0x6a4   : > { %v9605_v33 = vunpack.c.l.bf16 %v9348_v36  ;;  %v9606_v21 = vunpack.c.h.bf16 %v9348_v36  ;;  %v9349_v31 = vpack.c.bf16 %v9323_v12, %v9319_v42  ;;  %v9717_v11 = vunpack.c.l.bf16 %v9108_v46 }
 0x6a5   : > { %v9008_v49 = vpop.f32.mrf.mxu0  ;;  %v9327_v48 = vpop.f32.mrf.mxu1  ;;  %v9939_v52 = vpack.c.bf16 %v15655_v63, %v15653_v54  ;;  %v9718_v5 = vunpack.c.h.bf16 %v9108_v46 }
 0x6a6   : > { %v9621_v45 = vmul.f32 %v9605_v33, %v9589_v47  ;;  %v9622_v43 = vmul.f32 %v9606_v21, %v9590_v56  ;;  %v9733_v40 = vunpack.c.l.bf16 %v9349_v31  ;;  %v9734_v17 = vunpack.c.h.bf16 %v9349_v31 }
 0x6a7   : > { %v9010_v15 = vpop.f32.mrf.mxu0  ;;  %v9329_v30 = vpop.f32.mrf.mxu1 }
 0x6a8   : > { %v9637_v39 = vadd.f32 %v9621_v45, %v15559_v58  ;;  %v9638_v32 = vadd.f32 %v9622_v43, %v15561_v20  ;;  %v9109_v57 = vpack.c.bf16 %v9010_v15, %v9006_v53  ;;  %v9749_v28 = vmul.f32 %v9733_v40, %v9717_v11  ;;  %v9841_v11 = vpop.permute.xlu1 %9840 }
 0x6a9   : > { %v9750_v2 = vmul.f32 %v9734_v17, %v9718_v5  ;;  %v9012_v23 = vpop.f32.mrf.mxu0  ;;  %v9331_v42 = vpop.f32.mrf.mxu1 }
 0x6aa   : > { %v9110_v27 = vpack.c.bf16 %v9012_v23, %v9008_v49  ;;  %v9350_v59 = vpack.c.bf16 %v9331_v42, %v9327_v48  ;;  %v15661_v44 = vadd.f32 %v9749_v28, %v9637_v39  ;;  %v9591_v51 = vunpack.c.l.bf16 %v9109_v57 }
 0x6ab   : > { %v15663_v14 = vadd.f32 %v9750_v2, %v9638_v32  ;;  %v9016_v50 = vpop.f32.mrf.mxu0  ;;  %v9333_v18 = vpop.f32.mrf.mxu1  ;;  %v9592_v46 = vunpack.c.h.bf16 %v9109_v57 }
 0x6ac   : > { %v9607_v36 = vunpack.c.l.bf16 %v9350_v59  ;;  %v9608_v12 = vunpack.c.h.bf16 %v9350_v59  ;;  %v9351_v58 = vpack.c.bf16 %v9333_v18, %v9329_v30  ;;  %v9719_v21 = vunpack.c.l.bf16 %v9110_v27 }
 0x6ad   : > { %v9018_v47 = vpop.f32.mrf.mxu0  ;;  %v9482_v20 = vpop.f32.mrf.mxu1  ;;  %v9941_v53 = vpack.c.bf16 %v15663_v14, %v15661_v44  ;;  %v9720_v31 = vunpack.c.h.bf16 %v9110_v27  ;;  %v12391_v44 = vld [vmem:[#allocation11 + $0x40] sm:$0xff]  }
 0x6ae   : > { %v9623_v56 = vmul.f32 %v9607_v36, %v9591_v51  ;;  %v9624_v33 = vmul.f32 %v9608_v12, %v9592_v46  ;;  %v9735_v49 = vunpack.c.l.bf16 %v9351_v58  ;;  %v9736_v48 = vunpack.c.h.bf16 %v9351_v58  ;;  %v15675_v12 = vpop.permute.xlu1 %9845  ;;  %12054 = vmatprep.subr.bf16.mxu1 %v12391_v44  ;;  %v12392_v14 = vld [vmem:[#allocation11] sm:$0xff]  }
 0x6af   : > { %v9020_v45 = vpop.f32.mrf.mxu0  ;;  %v9484_v43 = vpop.f32.mrf.mxu1  ;;  %12055 = vmatpush3.bf16.msra.mxu1 %v12392_v14 }
 0x6b0   : > { %v9639_v5 = vadd.f32 %v9623_v56, %v15571_v19  ;;  %v9640_v40 = vadd.f32 %v9624_v33, %v15573_v4  ;;  %v9111_v17 = vpack.c.bf16 %v9020_v45, %v9016_v50  ;;  %v9751_v15 = vmul.f32 %v9735_v49, %v9719_v21 }
 0x6b1   : > { %v9752_v30 = vmul.f32 %v9736_v48, %v9720_v31  ;;  %v9022_v39 = vpop.f32.mrf.mxu0  ;;  %v9486_v32 = vpop.f32.mrf.mxu1 }
 0x6b2   : > { %v9561_v57 = vpack.c.bf16 %v9486_v32, %v9482_v20  ;;  %v15669_v28 = vadd.f32 %v9751_v15, %v9639_v5  ;;  %v9112_v23 = vpack.c.bf16 %v9022_v39, %v9018_v47  ;;  %v9641_v59 = vunpack.c.l.bf16 %v9111_v17 }
 0x6b3   : > { %v15671_v2 = vadd.f32 %v9752_v30, %v9640_v40  ;;  %v9026_v42 = vpop.f32.mrf.mxu0  ;;  %v9488_v27 = vpop.f32.mrf.mxu1  ;;  %v9642_v18 = vunpack.c.h.bf16 %v9111_v17 }
 0x6b4   : > { %v9657_v51 = vunpack.c.l.bf16 %v9561_v57  ;;  %v9658_v46 = vunpack.c.h.bf16 %v9561_v57  ;;  %v9562_v19 = vpack.c.bf16 %v9488_v27, %v9484_v43  ;;  %v9769_v56 = vunpack.c.l.bf16 %v9112_v23 }
 0x6b5   : > { %v9028_v36 = vpop.f32.mrf.mxu0  ;;  %v9492_v4 = vpop.f32.mrf.mxu1  ;;  %v9770_v33 = vunpack.c.h.bf16 %v9112_v23 }
 0x6b6   : > { %v9673_v58 = vmul.f32 %v9657_v51, %v9641_v59  ;;  %v9674_v20 = vmul.f32 %v9658_v46, %v9642_v18  ;;  %v9785_v21 = vunpack.c.l.bf16 %v9562_v19  ;;  %v9786_v47 = vunpack.c.h.bf16 %v9562_v19  ;;  %v9851_v23 = vpop.permute.xlu1 %9850  ;;  %v9836_v18 = vpop.permute.xlu0 %9835 }
 0x6b7   : > { %v9030_v31 = vpop.f32.mrf.mxu0  ;;  %v9494_v49 = vpop.f32.mrf.mxu1 }
 0x6b8   : > { %v9689_v48 = vadd.f32 %v9673_v58, %v15583_v10  ;;  %v9690_v45 = vadd.f32 %v9674_v20, %v15585_v35  ;;  %v9113_v43 = vpack.c.bf16 %v9030_v31, %v9026_v42  ;;  %v9801_v5 = vmul.f32 %v9785_v21, %v9769_v56 }
 0x6b9   : > { %v9802_v40 = vmul.f32 %v9786_v47, %v9770_v33  ;;  %v9032_v17 = vpop.f32.mrf.mxu0  ;;  %v9496_v15 = vpop.f32.mrf.mxu1 }
 0x6ba   : > { %v9114_v30 = vpack.c.bf16 %v9032_v17, %v9028_v36  ;;  %v9563_v39 = vpack.c.bf16 %v9496_v15, %v9492_v4  ;;  %v9817_v32 = vadd.f32 %v9801_v5, %v9689_v48  ;;  %v9643_v51 = vunpack.c.l.bf16 %v9113_v43  ;;  %v9881_v13 = vpop.permute.xlu0 %9880 }
 0x6bb   : > { %v9818_v57 = vadd.f32 %v9802_v40, %v9690_v45  ;;  %v9036_v27 = vpop.f32.mrf.mxu0  ;;  %v9498_v59 = vpop.f32.mrf.mxu1  ;;  %v9644_v46 = vunpack.c.h.bf16 %v9113_v43 }
 0x6bc   : > { %v9659_v19 = vunpack.c.l.bf16 %v9563_v39  ;;  %v9660_v50 = vunpack.c.h.bf16 %v9563_v39  ;;  %v9564_v10 = vpack.c.bf16 %v9498_v59, %v9494_v49  ;;  %v9913_v42 = vmul.f32 %v9836_v18, %v9817_v32 }
 0x6bd   : > { %v9038_v58 = vpop.f32.mrf.mxu0  ;;  %v9502_v35 = vpop.f32.mrf.mxu1  ;;  %v9914_v20 = vmul.f32 %v9841_v11, %v9818_v57  ;;  %v9771_v56 = vunpack.c.l.bf16 %v9114_v30  ;;  %v9772_v36 = vunpack.c.h.bf16 %v9114_v30 }
 0x6be   : > { %v9675_v33 = vmul.f32 %v9659_v19, %v9643_v51  ;;  %v9676_v21 = vmul.f32 %v9660_v50, %v9644_v46  ;;  %v9787_v4 = vunpack.c.l.bf16 %v9564_v10  ;;  %v9788_v47 = vunpack.c.h.bf16 %v9564_v10  ;;  %v9856_v11 = vpop.permute.xlu1 %9855 }
 0x6bf   : > { %v9040_v31 = vpop.f32.mrf.mxu0  ;;  %v9504_v48 = vpop.f32.mrf.mxu1  ;;  %v9930_v45 = vpack.c.bf16 %v9914_v20, %v9913_v42 }
 0x6c0   : > { %v9691_v5 = vadd.f32 %v9675_v33, %v15595_v25  ;;  %v9692_v43 = vadd.f32 %v9676_v21, %v15597_v9  ;;  %v9115_v40 = vpack.c.bf16 %v9040_v31, %v9036_v27  ;;  %v9803_v17 = vmul.f32 %v9787_v4, %v9771_v56 }
 0x6c1   : > { %v9804_v49 = vmul.f32 %v9788_v47, %v9772_v36  ;;  %10181 = vmatprep.mubr.bf16.mxu0 %v9930_v45  ;;  %v9042_v15 = vpop.f32.mrf.mxu0  ;;  %v9506_v39 = vpop.f32.mrf.mxu1 }
 0x6c2   : > { %v9116_v32 = vpack.c.bf16 %v9042_v15, %v9038_v58  ;;  %v9565_v57 = vpack.c.bf16 %v9506_v39, %v9502_v35  ;;  %10182 = vmatmul.mubr.bf16.vlgmr.msra.gmra.mxu0 %v9929_v26  ;;  %v9819_v50 = vadd.f32 %v9803_v17, %v9691_v5  ;;  %v9645_v25 = vunpack.c.l.bf16 %v9115_v40  ;;  %v9861_v4 = vpop.permute.xlu1 %9860 }
 0x6c3   : > { %v9820_v30 = vadd.f32 %v9804_v49, %v9692_v43  ;;  %v9046_v59 = vpop.f32.mrf.mxu0  ;;  %v9508_v18 = vpop.f32.mrf.mxu1  ;;  %v9646_v51 = vunpack.c.h.bf16 %v9115_v40 }
 0x6c4   : > { %v9661_v9 = vunpack.c.l.bf16 %v9565_v57  ;;  %v9662_v27 = vunpack.c.h.bf16 %v9565_v57  ;;  %v9566_v46 = vpack.c.bf16 %v9508_v18, %v9504_v48  ;;  %v9915_v42 = vmul.f32 %v15675_v12, %v9819_v50 }
 0x6c5   : > { %v9048_v19 = vpop.f32.mrf.mxu0  ;;  %v9512_v10 = vpop.f32.mrf.mxu1  ;;  %v9916_v20 = vmul.f32 %v9851_v23, %v9820_v30  ;;  %v9773_v58 = vunpack.c.l.bf16 %v9116_v32  ;;  %v9774_v33 = vunpack.c.h.bf16 %v9116_v32 }
 0x6c6   : > { %v9677_v35 = vmul.f32 %v9661_v9, %v9645_v25  ;;  %v9678_v56 = vmul.f32 %v9662_v27, %v9646_v51  ;;  %v9789_v8 = vunpack.c.l.bf16 %v9566_v46  ;;  %v9790_v24 = vunpack.c.h.bf16 %v9566_v46  ;;  %v9866_v51 = vpop.permute.xlu1 %9865 }
 0x6c7   : > { %v9050_v26 = vpop.f32.mrf.mxu0  ;;  %v9514_v21 = vpop.f32.mrf.mxu1  ;;  %v9932_v36 = vpack.c.bf16 %v9916_v20, %v9915_v42 }
 0x6c8   : > { %v9693_v47 = vadd.f32 %v9677_v35, %v15601_v61  ;;  %v9694_v31 = vadd.f32 %v9678_v56, %v15603_v62  ;;  %v9117_v48 = vpack.c.bf16 %v9050_v26, %v9046_v59  ;;  %v9805_v45 = vmul.f32 %v9789_v8, %v9773_v58 }
 0x6c9   : > { %v9806_v5 = vmul.f32 %v9790_v24, %v9774_v33  ;;  %10191 = vmatprep.mubr.bf16.mxu0 %v9932_v36  ;;  %v9052_v12 = vpop.f32.mrf.mxu0  ;;  %v9516_v23 = vpop.f32.mrf.mxu1 }
 0x6ca   : > { %v9118_v43 = vpack.c.bf16 %v9052_v12, %v9048_v19  ;;  %v9567_v40 = vpack.c.bf16 %v9516_v23, %v9512_v10  ;;  %10192 = vmatmul.mubr.bf16.gmra.mxu0 %v9931_v22  ;;  %v9821_v17 = vadd.f32 %v9805_v45, %v9693_v47  ;;  %v9647_v32 = vunpack.c.l.bf16 %v9117_v48 }
 0x6cb   : > { %v9822_v49 = vadd.f32 %v9806_v5, %v9694_v31  ;;  %v9056_v15 = vpop.f32.mrf.mxu0  ;;  %v9518_v39 = vpop.f32.mrf.mxu1  ;;  %v9648_v61 = vunpack.c.h.bf16 %v9117_v48 }
 0x6cc   : > { %v9663_v57 = vunpack.c.l.bf16 %v9567_v40  ;;  %v9664_v62 = vunpack.c.h.bf16 %v9567_v40  ;;  %v9568_v50 = vpack.c.bf16 %v9518_v39, %v9514_v21  ;;  %v9917_v18 = vmul.f32 %v9856_v11, %v9821_v17  ;;  %v9871_v31 = vpop.permute.xlu1 %9870 }
 0x6cd   : > { %v9058_v30 = vpop.f32.mrf.mxu0  ;;  %v9522_v59 = vpop.f32.mrf.mxu1  ;;  %v9918_v25 = vmul.f32 %v9861_v4, %v9822_v49  ;;  %v9775_v9 = vunpack.c.l.bf16 %v9118_v43  ;;  %v9776_v19 = vunpack.c.h.bf16 %v9118_v43 }
 0x6ce   : > { %v9679_v27 = vmul.f32 %v9663_v57, %v9647_v32  ;;  %v9680_v46 = vmul.f32 %v9664_v62, %v9648_v61  ;;  %v9791_v16 = vunpack.c.l.bf16 %v9568_v50  ;;  %v9792_v37 = vunpack.c.h.bf16 %v9568_v50  ;;  %v16514_v50 = vld [vmem:[#allocation23_spill] sm:$0xff] }
 0x6cf   : > { %v9060_v22 = vpop.f32.mrf.mxu0  ;;  %v9524_v10 = vpop.f32.mrf.mxu1  ;;  %v9934_v42 = vpack.c.bf16 %v9918_v25, %v9917_v18  ;;  %v13019_v61 = vmov 1935823168  }
 0x6d0   : > { %v9695_v20 = vadd.f32 %v9679_v27, %v15607_v6  ;;  %v9696_v58 = vadd.f32 %v9680_v46, %v15609_v29  ;;  %v9119_v35 = vpack.c.bf16 %v9060_v22, %v9056_v15  ;;  %v9807_v56 = vmul.f32 %v9791_v16, %v9775_v9  ;;  %v9876_v9 = vpop.permute.xlu1 %9875 }
 0x6d1   : > { %v9808_v33 = vmul.f32 %v9792_v37, %v9776_v19  ;;  %10201 = vmatprep.mubr.bf16.mxu0 %v9934_v42  ;;  %v9062_v11 = vpop.f32.mrf.mxu0  ;;  %v9526_v8 = vpop.f32.mrf.mxu1  ;;  %v12975_v57 = vunpack.c.l.s4 %v13019_v61 }
 0x6d2   : > { %v9120_v24 = vpack.c.bf16 %v9062_v11, %v9058_v30  ;;  %v9569_v26 = vpack.c.bf16 %v9526_v8, %v9522_v59  ;;  %10202 = vmatmul.mubr.bf16.gmra.mxu0 %v9933_v34  ;;  %v9823_v21 = vadd.f32 %v9807_v56, %v9695_v20 }
 0x6d3   : > { %v9824_v36 = vadd.f32 %v9808_v33, %v9696_v58  ;;  %v9066_v4 = vpop.f32.mrf.mxu0  ;;  %v9528_v47 = vpop.f32.mrf.mxu1  ;;  %v12976_v62 = vunpack.c.0.s8 %v12975_v57 }
 0x6d4   : > { %v9570_v6 = vpack.c.bf16 %v9528_v47, %v9524_v10  ;;  %v9919_v45 = vmul.f32 %v9866_v51, %v9823_v21  ;;  %12969 = vmac.bf16.f32.vacc3 %v9569_v26, %v9119_v35  ;;  %v9891_v47 = vpop.permute.xlu0 %9890 }
 0x6d5   : > { %v9068_v48 = vpop.f32.mrf.mxu0  ;;  %v9532_v29 = vpop.f32.mrf.mxu1  ;;  %v9920_v5 = vmul.f32 %v9871_v31, %v9824_v36  ;;  %v15699_v30 = vsub.s32 %v12976_v62, %v16514_v50 }
 0x6d6   : > { %12970 = vmac.bf16.f32.vacc3 %v9570_v6, %v9120_v24 }
 0x6d7   : > { %v9070_v12 = vpop.f32.mrf.mxu0  ;;  %v9534_v23 = vpop.f32.mrf.mxu1  ;;  %v9936_v43 = vpack.c.bf16 %v9920_v5, %v9919_v45 }
 0x6d8   : > { %v9121_v40 = vpack.c.bf16 %v9070_v12, %v9066_v4  ;;  %v12971_v34 = vmovacc.add.low.vacc3  ;;  %v9886_v4 = vpop.permute.xlu1 %9885  ;;  %v9901_v61 = vpop.permute.xlu0 %9900 }
 0x6d9   : > { %10211 = vmatprep.mubr.bf16.mxu0 %v9936_v43  ;;  %v9072_v17 = vpop.f32.mrf.mxu0  ;;  %v9536_v49 = vpop.f32.mrf.mxu1  ;;  %v12972_v15 = vmovacc.add.high.vacc3 }
 0x6da   : > { %v9122_v0 = vpack.c.bf16 %v9072_v17, %v9068_v48  ;;  %v9571_v7 = vpack.c.bf16 %v9536_v49, %v9532_v29  ;;  %10212 = vmatmul.mubr.bf16.gmra.mxu0 %v9935_v60 }
 0x6db   : > { %v12973_v39 = vcombine.low %v12971_v34, %v12972_v15  ;;  %v12974_v32 = vcombine.high %v12971_v34, %v12972_v15  ;;  %v9076_v25 = vpop.f32.mrf.mxu0  ;;  %v9538_v51 = vpop.f32.mrf.mxu1 }
 0x6dc   : > { %v9572_v38 = vpack.c.bf16 %v9538_v51, %v9534_v23  ;;  %12937 = vmac.bf16.f32.vacc2 %v9571_v7, %v9121_v40 }
 0x6dd   : > { %v12980_v59 = vrot.slane %v12973_v39, %v15699_v30  ;;  %v12986_v18 = vrot.slane %v12974_v32, %v15699_v30  ;;  %v9078_v60 = vpop.f32.mrf.mxu0  ;;  %v9542_v27 = vpop.f32.mrf.mxu1 }
 0x6de   : > { %12938 = vmac.bf16.f32.vacc2 %v9572_v38, %v9122_v0  ;;  %v9896_v32 = vpop.permute.xlu1 %9895 }
 0x6df   : > { %v9921_v46 = vmul.f32 %v12980_v59, %v9876_v9  ;;  %v9922_v19 = vmul.f32 %v12986_v18, %v9881_v13  ;;  %v9080_v16 = vpop.f32.mrf.mxu0  ;;  %v9544_v37 = vpop.f32.mrf.mxu1 }
 0x6e0   : > { %v9123_v10 = vpack.c.bf16 %v9080_v16, %v9076_v25  ;;  %v12939_v56 = vmovacc.add.low.vacc2  ;;  %v9911_v13 = vpop.permute.xlu0 %9910  ;;  %v12398_v16 = vld [vmem:[#allocation13 + $0x64] ss:$8 sps:$4 sm:$0xff]  }
 0x6e1   : > { %v9938_v22 = vpack.c.bf16 %v9922_v19, %v9921_v46  ;;  %v9082_v42 = vpop.f32.mrf.mxu0  ;;  %v9546_v20 = vpop.f32.mrf.mxu1  ;;  %v12940_v33 = vmovacc.add.high.vacc2  ;;  %v16515_v46 = vpack.c.bf16 %v15671_v2, %v15669_v28  ;;  %v12395_v19 = vld [vmem:[#allocation13 + $0x74] ss:$8 sps:$4 sm:$0xff]   ;;  %v12402_v28 = vld [vmem:[#allocation13 + $0x40] ss:$8 sps:$4 sm:$0xff]  }
 0x6e2   : > { %v9124_v58 = vpack.c.bf16 %v9082_v42, %v9078_v60  ;;  %v9573_v35 = vpack.c.bf16 %v9546_v20, %v9542_v27  ;;  %v9906_v9 = vpop.permute.xlu1 %9905  ;;  %10751 = vmatprep.subr.bf16.mxu0 %v12395_v19  ;;  %v9977_v42 = vld [vmem:[%s16516_s16] sm:$0x3]  ;;  %s12797_s16 = sshll.u32 %s13020_s27, 4  ;;  %s12798_s16 = int_to_ptr.vmem [resolvable:$false] %s12797_s16 }
 0x6e3   : > { %10221 = vmatprep.mubr.bf16.mxu0 %v9938_v22  ;;  %v12941_v11 = vcombine.low %v12939_v56, %v12940_v33  ;;  %v12942_v8 = vcombine.high %v12939_v56, %v12940_v33  ;;  %v9086_v21 = vpop.f32.mrf.mxu0  ;;  %v9548_v36 = vpop.f32.mrf.mxu1  ;;  %v12399_v22 = vld [vmem:[#allocation13 + $0x50] ss:$8 sps:$4 sm:$0xff]   ;;  %v16518_v56 = vld [vmem:[#allocation24_spill] sm:$0xff]  ;;  %s12799_s17 = scalar_lea.vmem %s12798_s16, 8192  ;;  %p12800_p3 = scmp.lt.s32.totalorder %s16109_s29, %s12798_s16 }
 0x6e4   : > { %10222 = vmatmul.mubr.bf16.gmra.mxu0 %v9937_v3  ;;  %v9574_v31 = vpack.c.bf16 %v9548_v36, %v9544_v37  ;;  %12905 = vmac.bf16.f32.vacc1 %v9573_v35, %v9123_v10  ;;  %v12401_v37 = vld [vmem:[#allocation13 + $0x54] ss:$8 sps:$4 sm:$0xff]   ;;  %v12404_v10 = vld [vmem:[#allocation13 + $0x44] ss:$8 sps:$4 sm:$0xff]   ;;  %v15729_v33 = vrot.slane %v9977_v42, %v16518_v56  ;;  %p12801_p6 = scmp.lt.s32.totalorder %s12799_s17, %s12793_s25 }
 0x6e5   : > { %v12948_v24 = vrot.slane %v12941_v11, %v15699_v30  ;;  %v12954_v26 = vrot.slane %v12942_v8, %v15699_v30  ;;  %v9088_v6 = vpop.f32.mrf.mxu0  ;;  %v9552_v48 = vpop.f32.mrf.mxu1 }
 0x6e6   : > { %12906 = vmac.bf16.f32.vacc1 %v9574_v31, %v9124_v58  ;;  %v16517_v58 = vld [vmem:[#allocation25_spill] sm:$0xff]  ;;  %p12802_p5 = por %p12801_p6, %p12800_p3 }
 0x6e7   : > { %v9923_v29 = vmul.f32 %v12948_v24, %v9886_v4  ;;  %v9924_v45 = vmul.f32 %v12954_v26, %v9891_v47  ;;  %v9090_v41 = vpop.f32.mrf.mxu0  ;;  %v9554_v55 = vpop.f32.mrf.mxu1  ;;  %v15726_v35 = vrot.slane %v9977_v42, %v16517_v58 }
 0x6e8   : > { %v9125_v5 = vpack.c.bf16 %v9090_v41, %v9086_v21  ;;  %v12907_v17 = vmovacc.add.low.vacc1  ;;  %p12803_p4 = pnand %p12802_p5, %p12796_p1 }
 0x6e9   : > { %v9940_v3 = vpack.c.bf16 %v9924_v45, %v9923_v29  ;;  %v9092_v12 = vpop.f32.mrf.mxu0  ;;  %v9556_v23 = vpop.f32.mrf.mxu1  ;;  %v12908_v49 = vmovacc.add.high.vacc1 }
 0x6ea   : > { %v9126_v43 = vpack.c.bf16 %v9092_v12, %v9088_v6  ;;  %v9575_v40 = vpack.c.bf16 %v9556_v23, %v9552_v48 }
 0x6eb   : > { %10231 = vmatprep.mubr.bf16.mxu0 %v9940_v3  ;;  %v12909_v0 = vcombine.low %v12907_v17, %v12908_v49  ;;  %v12910_v7 = vcombine.high %v12907_v17, %v12908_v49  ;;  %v9558_v39 = vpop.f32.mrf.mxu1 }
 0x6ec   : > { %10232 = vmatmul.mubr.bf16.gmra.mxu0 %v9939_v52  ;;  %v9576_v57 = vpack.c.bf16 %v9558_v39, %v9554_v55  ;;  %12873 = vmac.bf16.f32.vacc0 %v9575_v40, %v9125_v5 }
 0x6ed   : > { %v12916_v34 = vrot.slane %v12909_v0, %v15699_v30  ;;  %v12922_v15 = vrot.slane %v12910_v7, %v15699_v30 }
 0x6ee   : > { %12874 = vmac.bf16.f32.vacc0 %v9576_v57, %v9126_v43 }
 0x6ef   : > { %v9925_v62 = vmul.f32 %v12916_v34, %v9896_v32  ;;  %v9926_v50 = vmul.f32 %v12922_v15, %v9901_v61 }
 0x6f0   : > { %v12875_v54 = vmovacc.add.low.vacc0 }
 0x6f1   : > { %v9942_v59 = vpack.c.bf16 %v9926_v50, %v9925_v62  ;;  %v12876_v63 = vmovacc.add.high.vacc0 }
 0x6f3   : > { %10241 = vmatprep.mubr.bf16.mxu0 %v9942_v59  ;;  %v12877_v52 = vcombine.low %v12875_v54, %v12876_v63  ;;  %v12878_v18 = vcombine.high %v12875_v54, %v12876_v63 }
 0x6f4   : > { %10242 = vmatmul.mubr.bf16.gmra.mxu0 %v9941_v53  ;;  %v12393_v53 = vld [vmem:[#allocation13 + $0x70] ss:$8 sps:$4 sm:$0xff]  }
 0x6f5   : > { %v12884_v25 = vrot.slane %v12877_v52, %v15699_v30  ;;  %v12890_v51 = vrot.slane %v12878_v18, %v15699_v30  ;;  %10752 = vmatpush1.bf16.msra.mxu0 %v12393_v53  ;;  %v12396_v30 = vld [vmem:[#allocation13 + $0x60] ss:$8 sps:$4 sm:$0xff]  }
 0x6f6   : > { %10753 = vmatprep.subr.bf16.mxu0 %v12398_v16 }
 0x6f7   : > { %v9927_v38 = vmul.f32 %v12884_v25, %v9906_v9  ;;  %v9928_v60 = vmul.f32 %v12890_v51, %v9911_v13 }
 0x6f9   : > { %v9944_v27 = vpack.c.bf16 %v9928_v60, %v9927_v38  ;;  %10754 = vmatpush1.bf16.msra.mxu0 %v12396_v30 }
 0x6fa   : > { %10755 = vmatprep.subr.bf16.mxu0 %v12401_v37 }
 0x6fb   : > { %10251 = vmatprep.mubr.bf16.mxu0 %v9944_v27 }
 0x6fc   : > { %10252 = vmatmul.mubr.bf16.gmra.mxu0 %v16515_v46 }
 0x6fd   : > { %10783 = vmatprep.mubr.bf16.mxu0 %v16297_v1  ;;  %10756 = vmatpush1.bf16.msra.mxu0 %v12399_v22 }
 0x6fe   : > { %10757 = vmatprep.subr.bf16.mxu0 %v12404_v10 }
 0x701   : > { %10758 = vmatpush1.bf16.msra.mxu0 %v12402_v28 }
 0x782   : > { %v10183_v2 = vpop.f32.mrf.mxu0 }
 0x783   : > { %v15741_v36 = vadd.f32 %v10183_v2, %v15729_v33 }
 0x784   : > { %v10185_v20 = vpop.f32.mrf.mxu0 }
 0x785   : > { %v15735_v26 = vadd.f32 %v10185_v20, %v15726_v35 }
 0x786   : > { %v10187_v11 = vpop.f32.mrf.mxu0 }
 0x787   : > { %v15732_v8 = vadd.f32 %v10187_v11, %v15729_v33 }
 0x788   : > { %v10189_v24 = vpop.f32.mrf.mxu0 }
 0x789   : > { %v15738_v21 = vadd.f32 %v10189_v24, %v15726_v35  ;;  %v10262_v31 = vpack.c.bf16 %v15732_v8, %v15741_v36 }
 0x78a   : > { %v10193_v4 = vpop.f32.mrf.mxu0 }
 0x78b   : > { %v10263_v47 = vpack.c.bf16 %v15738_v21, %v15735_v26  ;;  %v15757_v3 = vadd.f32 %v10193_v4, %v15729_v33 }
 0x78c   : > { %v10195_v6 = vpop.f32.mrf.mxu0 }
 0x78d   : > { %10438 = vmatprep.mubr.bf16.mxu1 %v10263_v47  ;;  %v15751_v41 = vadd.f32 %v10195_v6, %v15726_v35 }
 0x78e   : > { %v10197_v48 = vpop.f32.mrf.mxu0  ;;  %10439 = vmatmul.mubr.bf16.vlgmr.msra.gmra.mxu1 %v10262_v31 }
 0x78f   : > { %v15748_v29 = vadd.f32 %v10197_v48, %v15729_v33 }
 0x790   : > { %v10199_v45 = vpop.f32.mrf.mxu0 }
 0x791   : > { %v15754_v55 = vadd.f32 %v10199_v45, %v15726_v35  ;;  %v10264_v23 = vpack.c.bf16 %v15748_v29, %v15757_v3 }
 0x792   : > { %v10203_v5 = vpop.f32.mrf.mxu0 }
 0x793   : > { %v10265_v12 = vpack.c.bf16 %v15754_v55, %v15751_v41  ;;  %v15773_v34 = vadd.f32 %v10203_v5, %v15729_v33 }
 0x794   : > { %v10205_v43 = vpop.f32.mrf.mxu0 }
 0x795   : > { %10446 = vmatprep.mubr.bf16.mxu1 %v10265_v12  ;;  %v15767_v0 = vadd.f32 %v10205_v43, %v15726_v35 }
 0x796   : > { %v10207_v40 = vpop.f32.mrf.mxu0  ;;  %10447 = vmatmul.mubr.bf16.gmra.mxu1 %v10264_v23 }
 0x797   : > { %v15764_v17 = vadd.f32 %v10207_v40, %v15729_v33 }
 0x798   : > { %v10209_v49 = vpop.f32.mrf.mxu0 }
 0x799   : > { %v15770_v7 = vadd.f32 %v10209_v49, %v15726_v35  ;;  %v10266_v32 = vpack.c.bf16 %v15764_v17, %v15773_v34 }
 0x79a   : > { %v10213_v15 = vpop.f32.mrf.mxu0 }
 0x79b   : > { %v10267_v39 = vpack.c.bf16 %v15770_v7, %v15767_v0  ;;  %v15789_v63 = vadd.f32 %v10213_v15, %v15729_v33 }
 0x79c   : > { %v10215_v61 = vpop.f32.mrf.mxu0 }
 0x79d   : > { %10454 = vmatprep.mubr.bf16.mxu1 %v10267_v39  ;;  %v15783_v59 = vadd.f32 %v10215_v61, %v15726_v35 }
 0x79e   : > { %v10217_v57 = vpop.f32.mrf.mxu0  ;;  %10455 = vmatmul.mubr.bf16.gmra.mxu1 %v10266_v32 }
 0x79f   : > { %v15780_v62 = vadd.f32 %v10217_v57, %v15729_v33 }
 0x7a0   : > { %v10219_v50 = vpop.f32.mrf.mxu0 }
 0x7a1   : > { %v15786_v54 = vadd.f32 %v10219_v50, %v15726_v35  ;;  %v10268_v25 = vpack.c.bf16 %v15780_v62, %v15789_v63  ;;  %v12407_v50 = vld [vmem:[#allocation13 + $0x34] ss:$8 sps:$4 sm:$0xff]  }
 0x7a2   : > { %10759 = vmatprep.subr.bf16.mxu0 %v12407_v50 }
 0x7a3   : > { %v10269_v18 = vpack.c.bf16 %v15786_v54, %v15783_v59 }
 0x7a4   : > { %v10223_v52 = vpop.f32.mrf.mxu0 }
 0x7a5   : > { %10462 = vmatprep.mubr.bf16.mxu1 %v10269_v18  ;;  %v15805_v46 = vadd.f32 %v10223_v52, %v15729_v33  ;;  %v12405_v52 = vld [vmem:[#allocation13 + $0x30] ss:$8 sps:$4 sm:$0xff]   ;;  %v12410_v18 = vld [vmem:[#allocation13 + $0x24] ss:$8 sps:$4 sm:$0xff]  }
 0x7a6   : > { %v10225_v51 = vpop.f32.mrf.mxu0  ;;  %10463 = vmatmul.mubr.bf16.gmra.mxu1 %v10268_v25  ;;  %10760 = vmatpush1.bf16.msra.mxu0 %v12405_v52  ;;  %v12408_v25 = vld [vmem:[#allocation13 + $0x20] ss:$8 sps:$4 sm:$0xff]  }
 0x7a7   : > { %v15799_v60 = vadd.f32 %v10225_v51, %v15726_v35  ;;  %10761 = vmatprep.subr.bf16.mxu0 %v12410_v18  ;;  %v12411_v51 = vld [vmem:[#allocation13 + $0x10] ss:$8 sps:$4 sm:$0xff]   ;;  %v12444_v52 = vld [vmem:[#allocation14 + $0xe0] ss:$8 sps:$4 sm:$0xff]  }
 0x7a8   : > { %v10227_v9 = vpop.f32.mrf.mxu0 }
 0x7a9   : > { %v15796_v13 = vadd.f32 %v10227_v9, %v15729_v33  ;;  %v12414_v9 = vld [vmem:[#allocation13] ss:$8 sps:$4 sm:$0xff]  }
 0x7aa   : > { %v10229_v38 = vpop.f32.mrf.mxu0  ;;  %10762 = vmatpush1.bf16.msra.mxu0 %v12408_v25  ;;  %v12449_v25 = vld [vmem:[#allocation14 + $0xd4] ss:$8 sps:$4 sm:$0xff]  }
 0x7ab   : > { %v15802_v27 = vadd.f32 %v10229_v38, %v15726_v35  ;;  %v10270_v53 = vpack.c.bf16 %v15796_v13, %v15805_v46  ;;  %v12417_v38 = vld [vmem:[#allocation14 + $0x70] ss:$8 sps:$4 sm:$0xff]  }
 0x7ac   : > { %v10233_v44 = vpop.f32.mrf.mxu0 }
 0x7ad   : > { %v10271_v14 = vpack.c.bf16 %v15802_v27, %v15799_v60  ;;  %v15821_v28 = vadd.f32 %v10233_v44, %v15729_v33  ;;  %v12419_v44 = vld [vmem:[#allocation14 + $0x74] ss:$8 sps:$4 sm:$0xff]  }
 0x7ae   : > { %v10235_v19 = vpop.f32.mrf.mxu0  ;;  %11116 = vmatprep.subr.bf16.mxu1 %v12419_v44 }
 0x7af   : > { %10470 = vmatprep.mubr.bf16.mxu1 %v10271_v14  ;;  %v15815_v22 = vadd.f32 %v10235_v19, %v15726_v35  ;;  %v12422_v14 = vld [vmem:[#allocation14 + $0x64] ss:$8 sps:$4 sm:$0xff]   ;;  %11117 = vmatpush1.bf16.msra.mxu1 %v12417_v38  ;;  %v12425_v19 = vld [vmem:[#allocation14 + $0x54] ss:$8 sps:$4 sm:$0xff]   ;;  %v12447_v38 = vld [vmem:[#allocation14 + $0xd0] ss:$8 sps:$4 sm:$0xff]  }
 0x7b0   : > { %v10237_v16 = vpop.f32.mrf.mxu0  ;;  %10471 = vmatmul.mubr.bf16.gmra.mxu1 %v10270_v53  ;;  %v12420_v53 = vld [vmem:[#allocation14 + $0x60] ss:$8 sps:$4 sm:$0xff]   ;;  %11118 = vmatprep.subr.bf16.mxu1 %v12422_v14  ;;  %v12452_v14 = vld [vmem:[#allocation14 + $0xc4] ss:$8 sps:$4 sm:$0xff]  }
 0x7b1   : > { %v15812_v30 = vadd.f32 %v10237_v16, %v15729_v33  ;;  %v12423_v16 = vld [vmem:[#allocation14 + $0x50] ss:$8 sps:$4 sm:$0xff]  }
 0x7b2   : > { %v10239_v37 = vpop.f32.mrf.mxu0 }
 0x7b3   : > { %v15818_v10 = vadd.f32 %v10239_v37, %v15726_v35  ;;  %v10272_v20 = vpack.c.bf16 %v15812_v30, %v15821_v28  ;;  %11119 = vmatpush1.bf16.msra.mxu1 %v12420_v53  ;;  %v12428_v37 = vld [vmem:[#allocation14 + $0x44] ss:$8 sps:$4 sm:$0xff]  }
 0x7b4   : > { %v10243_v2 = vpop.f32.mrf.mxu0  ;;  %11120 = vmatprep.subr.bf16.mxu1 %v12425_v19 }
 0x7b5   : > { %v10273_v42 = vpack.c.bf16 %v15818_v10, %v15815_v22  ;;  %v15837_v48 = vadd.f32 %v10243_v2, %v15729_v33  ;;  %v12426_v2 = vld [vmem:[#allocation14 + $0x40] ss:$8 sps:$4 sm:$0xff]  }
 0x7b6   : > { %v10245_v11 = vpop.f32.mrf.mxu0 }
 0x7b7   : > { %10478 = vmatprep.mubr.bf16.mxu1 %v10273_v42  ;;  %v15831_v31 = vadd.f32 %v10245_v11, %v15726_v35  ;;  %11121 = vmatpush1.bf16.msra.mxu1 %v12423_v16  ;;  %v12431_v42 = vld [vmem:[#allocation14 + $0x34] ss:$8 sps:$4 sm:$0xff]   ;;  %v12434_v11 = vld [vmem:[#allocation14 + $0x24] ss:$8 sps:$4 sm:$0xff]  }
 0x7b8   : > { %v10247_v24 = vpop.f32.mrf.mxu0  ;;  %10479 = vmatmul.mubr.bf16.gmra.mxu1 %v10272_v20  ;;  %11122 = vmatprep.subr.bf16.mxu1 %v12428_v37  ;;  %v12429_v20 = vld [vmem:[#allocation14 + $0x30] ss:$8 sps:$4 sm:$0xff]  }
 0x7b9   : > { %v15828_v4 = vadd.f32 %v10247_v24, %v15729_v33  ;;  %v12432_v24 = vld [vmem:[#allocation14 + $0x20] ss:$8 sps:$4 sm:$0xff]  }
 0x7ba   : > { %v10249_v47 = vpop.f32.mrf.mxu0 }
 0x7bb   : > { %v15834_v6 = vadd.f32 %v10249_v47, %v15726_v35  ;;  %v10274_v12 = vpack.c.bf16 %v15828_v4, %v15837_v48  ;;  %11123 = vmatpush1.bf16.msra.mxu1 %v12426_v2  ;;  %v12437_v47 = vld [vmem:[#allocation14 + $0x14] ss:$8 sps:$4 sm:$0xff]  }
 0x7bc   : > { %v10253_v45 = vpop.f32.mrf.mxu0  ;;  %11124 = vmatprep.subr.bf16.mxu1 %v12431_v42 }
 0x7bd   : > { %v10275_v5 = vpack.c.bf16 %v15834_v6, %v15831_v31  ;;  %v15853_v32 = vadd.f32 %v10253_v45, %v15729_v33  ;;  %v12435_v45 = vld [vmem:[#allocation14 + $0x10] ss:$8 sps:$4 sm:$0xff]  }
 0x7be   : > { %v10255_v23 = vpop.f32.mrf.mxu0 }
 0x7bf   : > { %10486 = vmatprep.mubr.bf16.mxu1 %v10275_v5  ;;  %v15847_v15 = vadd.f32 %v10255_v23, %v15726_v35  ;;  %11125 = vmatpush1.bf16.msra.mxu1 %v12429_v20  ;;  %v12440_v5 = vld [vmem:[#allocation14 + $0x4] ss:$8 sps:$4 sm:$0xff]   ;;  %v12443_v23 = vld [vmem:[#allocation14 + $0xf4] ss:$8 sps:$4 sm:$0xff]   ;;  %v12450_v20 = vld [vmem:[#allocation14 + $0xc0] ss:$8 sps:$4 sm:$0xff]  }
 0x7c0   : > { %v10257_v43 = vpop.f32.mrf.mxu0  ;;  %10487 = vmatmul.mubr.bf16.gmra.mxu1 %v10274_v12  ;;  %11126 = vmatprep.subr.bf16.mxu1 %v12434_v11  ;;  %v12438_v12 = vld [vmem:[#allocation14] ss:$8 sps:$4 sm:$0xff]  }
 0x7c1   : > { %v15844_v40 = vadd.f32 %v10257_v43, %v15729_v33  ;;  %v12416_v33 = vld [vmem:[#allocation13 + $0x4] ss:$8 sps:$4 sm:$0xff]   ;;  %v12441_v43 = vld [vmem:[#allocation14 + $0xf0] ss:$8 sps:$4 sm:$0xff]  }
 0x7c2   : > { %v10259_v49 = vpop.f32.mrf.mxu0 }
 0x7c3   : > { %v15850_v39 = vadd.f32 %v10259_v49, %v15726_v35  ;;  %v10276_v57 = vpack.c.bf16 %v15844_v40, %v15853_v32  ;;  %v12413_v35 = vld [vmem:[#allocation13 + $0x14] ss:$8 sps:$4 sm:$0xff]   ;;  %11127 = vmatpush1.bf16.msra.mxu1 %v12432_v24 }
 0x7c4   : > { %10763 = vmatprep.subr.bf16.mxu0 %v12413_v35  ;;  %11128 = vmatprep.subr.bf16.mxu1 %v12437_v47  ;;  %v12455_v24 = vld [vmem:[#allocation14 + $0xb4] ss:$8 sps:$4 sm:$0xff]  }
 0x7c5   : > { %v10277_v61 = vpack.c.bf16 %v15850_v39, %v15847_v15  ;;  %10764 = vmatpush1.bf16.msra.mxu0 %v12411_v51 }
 0x7c6   : > { %10765 = vmatprep.subr.bf16.mxu0 %v12416_v33 }
 0x7c7   : > { %10494 = vmatprep.mubr.bf16.mxu1 %v10277_v61  ;;  %11129 = vmatpush1.bf16.msra.mxu1 %v12435_v45  ;;  %v12446_v61 = vld [vmem:[#allocation14 + $0xe4] ss:$8 sps:$4 sm:$0xff]  }
 0x7c8   : > { %10495 = vmatmul.mubr.bf16.gmra.mxu1 %v10276_v57  ;;  %11130 = vmatprep.subr.bf16.mxu1 %v12440_v5 }
 0x7c9   : > { %10766 = vmatpush1.bf16.msra.mxu0 %v12414_v9 }
 0x7cb   : > { %11131 = vmatpush1.bf16.msra.mxu1 %v12438_v12 }
 0x7cc   : > { %11132 = vmatprep.subr.bf16.mxu1 %v12443_v23 }
 0x7cf   : > { %11133 = vmatpush2.bf16.msra.mxu1 %v12441_v43 }
 0x7d0   : > { %11134 = vmatprep.subr.bf16.mxu1 %v12446_v61  ;;  %v12453_v61 = vld [vmem:[#allocation14 + $0xb0] ss:$8 sps:$4 sm:$0xff]  }
 0x7d3   : > { %11135 = vmatpush2.bf16.msra.mxu1 %v12444_v52  ;;  %v12458_v52 = vld [vmem:[#allocation14 + $0xa4] ss:$8 sps:$4 sm:$0xff]  }
 0x7d4   : > { %11136 = vmatprep.subr.bf16.mxu1 %v12449_v25 }
 0x7d7   : > { %11137 = vmatpush2.bf16.msra.mxu1 %v12447_v38 }
 0x7d8   : > { %11138 = vmatprep.subr.bf16.mxu1 %v12452_v14  ;;  %v12456_v14 = vld [vmem:[#allocation14 + $0xa0] ss:$8 sps:$4 sm:$0xff]  }
 0x7db   : > { %11139 = vmatpush2.bf16.msra.mxu1 %v12450_v20 }
 0x7dc   : > { %11140 = vmatprep.subr.bf16.mxu1 %v12455_v24 }
 0x7df   : > { %11141 = vmatpush2.bf16.msra.mxu1 %v12453_v61 }
 0x7e0   : > { %11142 = vmatprep.subr.bf16.mxu1 %v12458_v52 }
 0x7e3   : > { %11143 = vmatpush2.bf16.msra.mxu1 %v12456_v14 }
 0x84e   : > { %v12056_v49 = vpop.f32.mrf.mxu1 }
 0x850   : > { %v12057_v57 = vpop.f32.mrf.mxu1 }
 0x851   : > { %v15859_v50 = vadd.f32 %v12057_v57, %v12056_v49 }
 0x852   : > { %v12059_v18 = vpop.f32.mrf.mxu1 }
 0x853   : > { %v10519_v35 = vmul.f32 0.044715, %v15859_v50 }
 0x854   : > { %v12060_v51 = vpop.f32.mrf.mxu1 }
 0x855   : > { %v10535_v33 = vmul.f32 %v15859_v50, %v10519_v35  ;;  %v15863_v9 = vadd.f32 %v12060_v51, %v12059_v18 }
 0x856   : > { %v12062_v44 = vpop.f32.mrf.mxu1 }
 0x857   : > { %v10551_v53 = vmul.f32 %v15859_v50, %v10535_v33  ;;  %v10520_v19 = vmul.f32 0.044715, %v15863_v9 }
 0x858   : > { %v12063_v16 = vpop.f32.mrf.mxu1 }
 0x859   : > { %v10567_v37 = vadd.f32 %v15859_v50, %v10551_v53  ;;  %v10536_v2 = vmul.f32 %v15863_v9, %v10520_v19  ;;  %v15869_v42 = vadd.f32 %v12063_v16, %v12062_v44 }
 0x85a   : > { %v12065_v11 = vpop.f32.mrf.mxu1 }
 0x85b   : > { %v10583_v47 = vmul.f32 0.7978846, %v10567_v37  ;;  %v10552_v45 = vmul.f32 %v15863_v9, %v10536_v2  ;;  %v10521_v5 = vmul.f32 0.044715, %v15869_v42 }
 0x85c   : > { %v12066_v12 = vpop.f32.mrf.mxu1 }
 0x85d   : > { %12497 = vtanh.f32 %v10583_v47  ;;  %v10568_v23 = vadd.f32 %v15863_v9, %v10552_v45  ;;  %v10537_v43 = vmul.f32 %v15869_v42, %v10521_v5  ;;  %v15875_v49 = vadd.f32 %v12066_v12, %v12065_v11 }
 0x85e   : > { %v12068_v57 = vpop.f32.mrf.mxu1 }
 0x85f   : > { %v10584_v18 = vmul.f32 0.7978846, %v10568_v23  ;;  %v10553_v25 = vmul.f32 %v15869_v42, %v10537_v43  ;;  %v10522_v35 = vmul.f32 0.044715, %v15875_v49 }
 0x860   : > { %v12069_v51 = vpop.f32.mrf.mxu1 }
 0x861   : > { %12499 = vtanh.f32 %v10584_v18  ;;  %v10569_v33 = vadd.f32 %v15869_v42, %v10553_v25  ;;  %v10538_v38 = vmul.f32 %v15875_v49, %v10522_v35  ;;  %v15881_v44 = vadd.f32 %v12069_v51, %v12068_v57 }
 0x862   : > { %v12071_v53 = vpop.f32.mrf.mxu1 }
 0x863   : > { %v10585_v19 = vmul.f32 0.7978846, %v10569_v33  ;;  %v10554_v16 = vmul.f32 %v15875_v49, %v10538_v38  ;;  %v10523_v37 = vmul.f32 0.044715, %v15881_v44 }
 0x864   : > { %v12072_v2 = vpop.f32.mrf.mxu1 }
 0x865   : > { %12501 = vtanh.f32 %v10585_v19  ;;  %v10570_v20 = vadd.f32 %v15875_v49, %v10554_v16  ;;  %v10539_v11 = vmul.f32 %v15881_v44, %v10523_v37  ;;  %v15887_v24 = vadd.f32 %v12072_v2, %v12071_v53 }
 0x866   : > { %v12074_v47 = vpop.f32.mrf.mxu1  ;;  %v10503_v16 = vmul.f32 0.5, %v15859_v50 }
 0x867   : > { %v10586_v45 = vmul.f32 0.7978846, %v10570_v20  ;;  %v10555_v5 = vmul.f32 %v15881_v44, %v10539_v11  ;;  %v10524_v12 = vmul.f32 0.044715, %v15887_v24  ;;  %v10504_v20 = vmul.f32 0.5, %v15863_v9 }
 0x868   : > { %v12075_v23 = vpop.f32.mrf.mxu1 }
 0x869   : > { %12503 = vtanh.f32 %v10586_v45  ;;  %v10571_v43 = vadd.f32 %v15881_v44, %v10555_v5  ;;  %v10540_v61 = vmul.f32 %v15887_v24, %v10524_v12  ;;  %v15893_v57 = vadd.f32 %v12075_v23, %v12074_v47 }
 0x86a   : > { %v12498_v52 = vpop.eup %12497  ;;  %v12077_v18 = vpop.f32.mrf.mxu1 }
 0x86b   : > { %v10587_v25 = vmul.f32 0.7978846, %v10571_v43  ;;  %v10556_v35 = vmul.f32 %v15887_v24, %v10540_v61  ;;  %v10525_v51 = vmul.f32 0.044715, %v15893_v57  ;;  %v10615_v33 = vadd.f32 1.0, %v12498_v52 }
 0x86c   : > { %v12078_v38 = vpop.f32.mrf.mxu1 }
 0x86d   : > { %v10572_v14 = vadd.f32 %v15887_v24, %v10556_v35  ;;  %v10541_v53 = vmul.f32 %v15893_v57, %v10525_v51  ;;  %12505 = vtanh.f32 %v10587_v25  ;;  %v15900_v37 = vadd.f32 %v12078_v38, %v12077_v18 }
 0x86e   : > { %v12500_v19 = vpop.eup %12499  ;;  %v10631_v5 = vmul.f32 %v10615_v33, %v10503_v16 }
 0x86f   : > { %v10616_v11 = vadd.f32 1.0, %v12500_v19  ;;  %v10588_v47 = vmul.f32 0.7978846, %v10572_v14  ;;  %v10557_v45 = vmul.f32 %v15893_v57, %v10541_v53  ;;  %v10526_v12 = vmul.f32 0.044715, %v15900_v37 }
 0x870   : > { %v12080_v2 = vpop.f32.mrf.mxu1 }
 0x871   : > { %v10632_v43 = vmul.f32 %v10616_v11, %v10504_v20  ;;  %12507 = vtanh.f32 %v10588_v47  ;;  %v10573_v61 = vadd.f32 %v15893_v57, %v10557_v45  ;;  %v10542_v18 = vmul.f32 %v15900_v37, %v10526_v12 }
 0x872   : > { %v12081_v23 = vpop.f32.mrf.mxu1  ;;  %v12502_v50 = vpop.eup %12501  ;;  %v10505_v11 = vmul.f32 0.5, %v15869_v42 }
 0x873   : > { %v15906_v52 = vadd.f32 %v12081_v23, %v12080_v2  ;;  %v10647_v35 = vpack.c.bf16 %v10632_v43, %v10631_v5  ;;  %v10589_v9 = vmul.f32 0.7978846, %v10573_v61  ;;  %v10558_v38 = vmul.f32 %v15900_v37, %v10542_v18 }
 0x874   : > { %v12083_v25 = vpop.f32.mrf.mxu1  ;;  %v10617_v14 = vadd.f32 1.0, %v12502_v50  ;;  %v10506_v5 = vmul.f32 0.5, %v15875_v49 }
 0x875   : > { %v10527_v51 = vmul.f32 0.044715, %v15906_v52  ;;  %10784 = vmatmul.mubr.bf16.vlgmr.msra.gmra.mxu0 %v10647_v35  ;;  %12509 = vtanh.f32 %v10589_v9  ;;  %v10574_v2 = vadd.f32 %v15900_v37, %v10558_v38 }
 0x876   : > { %v12084_v33 = vpop.f32.mrf.mxu1  ;;  %v12504_v16 = vpop.eup %12503  ;;  %10793 = vmatprep.mubr.bf16.mxu0 %v16297_v1  ;;  %v10633_v61 = vmul.f32 %v10617_v14, %v10505_v11 }
 0x877   : > { %v10543_v53 = vmul.f32 %v15906_v52, %v10527_v51  ;;  %v15912_v19 = vadd.f32 %v12084_v33, %v12083_v25  ;;  %v10618_v12 = vadd.f32 1.0, %v12504_v16  ;;  %v10590_v23 = vmul.f32 0.7978846, %v10574_v2 }
 0x878   : > { %v12086_v20 = vpop.f32.mrf.mxu1 }
 0x879   : > { %v10559_v47 = vmul.f32 %v15906_v52, %v10543_v53  ;;  %v10528_v45 = vmul.f32 0.044715, %v15912_v19  ;;  %v10634_v35 = vmul.f32 %v10618_v12, %v10506_v5  ;;  %12511 = vtanh.f32 %v10590_v23 }
 0x87a   : > { %v12087_v43 = vpop.f32.mrf.mxu1  ;;  %v12506_v42 = vpop.eup %12505 }
 0x87b   : > { %v10575_v50 = vadd.f32 %v15906_v52, %v10559_v47  ;;  %v10544_v18 = vmul.f32 %v15912_v19, %v10528_v45  ;;  %v15922_v25 = vadd.f32 %v12087_v43, %v12086_v20  ;;  %v10648_v49 = vpack.c.bf16 %v10634_v35, %v10633_v61 }
 0x87c   : > { %v12089_v9 = vpop.f32.mrf.mxu1  ;;  %v10619_v47 = vadd.f32 1.0, %v12506_v42  ;;  %v10507_v61 = vmul.f32 0.5, %v15881_v44 }
 0x87d   : > { %v10591_v51 = vmul.f32 0.7978846, %v10575_v50  ;;  %v10560_v38 = vmul.f32 %v15912_v19, %v10544_v18  ;;  %v10529_v33 = vmul.f32 0.044715, %v15922_v25  ;;  %10794 = vmatmul.mubr.bf16.gmra.mxu0 %v10648_v49  ;;  %v10508_v50 = vmul.f32 0.5, %v15887_v24 }
 0x87e   : > { %v12090_v53 = vpop.f32.mrf.mxu1  ;;  %v12508_v20 = vpop.eup %12507  ;;  %10803 = vmatprep.mubr.bf16.mxu0 %v16297_v1  ;;  %v10635_v42 = vmul.f32 %v10619_v47, %v10507_v61 }
 0x87f   : > { %12513 = vtanh.f32 %v10591_v51  ;;  %v10576_v14 = vadd.f32 %v15912_v19, %v10560_v38  ;;  %v10545_v16 = vmul.f32 %v15922_v25, %v10529_v33  ;;  %v15928_v2 = vadd.f32 %v12090_v53, %v12089_v9 }
 0x880   : > { %v12092_v11 = vpop.f32.mrf.mxu1  ;;  %v10620_v23 = vadd.f32 1.0, %v12508_v20 }
 0x881   : > { %v10592_v45 = vmul.f32 0.7978846, %v10576_v14  ;;  %v10561_v5 = vmul.f32 %v15922_v25, %v10545_v16  ;;  %v10530_v12 = vmul.f32 0.044715, %v15928_v2 }
 0x882   : > { %v12093_v43 = vpop.f32.mrf.mxu1  ;;  %v10636_v38 = vmul.f32 %v10620_v23, %v10508_v50  ;;  %v12510_v33 = vpop.eup %12509  ;;  %v10509_v50 = vmul.f32 0.5, %v15893_v57 }
 0x883   : > { %12515 = vtanh.f32 %v10592_v45  ;;  %v10577_v18 = vadd.f32 %v15922_v25, %v10561_v5  ;;  %v10546_v35 = vmul.f32 %v15928_v2, %v10530_v12  ;;  %v15937_v9 = vadd.f32 %v12093_v43, %v12092_v11 }
 0x884   : > { %v12095_v51 = vpop.f32.mrf.mxu1  ;;  %v10649_v44 = vpack.c.bf16 %v10636_v38, %v10635_v42  ;;  %v10621_v5 = vadd.f32 1.0, %v12510_v33 }
 0x885   : > { %v10593_v49 = vmul.f32 0.7978846, %v10577_v18  ;;  %v10562_v53 = vmul.f32 %v15928_v2, %v10546_v35  ;;  %v10531_v14 = vmul.f32 0.044715, %v15937_v9  ;;  %v10510_v18 = vmul.f32 0.5, %v15900_v37 }
 0x886   : > { %v12096_v16 = vpop.f32.mrf.mxu1  ;;  %10804 = vmatmul.mubr.bf16.gmra.mxu0 %v10649_v44  ;;  %v12512_v47 = vpop.eup %12511 }
 0x887   : > { %12517 = vtanh.f32 %v10593_v49  ;;  %v10578_v24 = vadd.f32 %v15928_v2, %v10562_v53  ;;  %v10547_v20 = vmul.f32 %v15937_v9, %v10531_v14  ;;  %v15943_v45 = vadd.f32 %v12096_v16, %v12095_v51  ;;  %10813 = vmatprep.mubr.bf16.mxu0 %v16297_v1 }
 0x888   : > { %v12098_v11 = vpop.f32.mrf.mxu1  ;;  %v10622_v35 = vadd.f32 1.0, %v12512_v47  ;;  %v10637_v53 = vmul.f32 %v10621_v5, %v10509_v50 }
 0x889   : > { %v10594_v12 = vmul.f32 0.7978846, %v10578_v24  ;;  %v10563_v23 = vmul.f32 %v15937_v9, %v10547_v20  ;;  %v10532_v43 = vmul.f32 0.044715, %v15943_v45 }
 0x88a   : > { %v12099_v61 = vpop.f32.mrf.mxu1  ;;  %v10638_v14 = vmul.f32 %v10622_v35, %v10510_v18 }
 0x88b   : > { %12519 = vtanh.f32 %v10594_v12  ;;  %v10579_v51 = vadd.f32 %v15937_v9, %v10563_v23  ;;  %v10548_v42 = vmul.f32 %v15943_v45, %v10532_v43  ;;  %v12100_v38 = vadd.f32 %v12099_v61, %v12098_v11 }
 0x88c   : > { %v12514_v33 = vpop.eup %12513  ;;  %v12101_v49 = vpop.f32.mrf.mxu1  ;;  %v10650_v58 = vpack.c.bf16 %v10638_v14, %v10637_v53  ;;  %v10511_v11 = vmul.f32 0.5, %v15906_v52  ;;  %v10512_v43 = vmul.f32 0.5, %v15912_v19 }
 0x88d   : > { %v10595_v16 = vmul.f32 0.7978846, %v10579_v51  ;;  %v10564_v44 = vmul.f32 %v15943_v45, %v10548_v42  ;;  %v10533_v24 = vmul.f32 0.044715, %v12100_v38  ;;  %v10623_v57 = vadd.f32 1.0, %v12514_v33 }
 0x88e   : > { %v12102_v20 = vpop.f32.mrf.mxu1  ;;  %10814 = vmatmul.mubr.bf16.gmra.mxu0 %v10650_v58 }
 0x88f   : > { %12521 = vtanh.f32 %v10595_v16  ;;  %v10580_v37 = vadd.f32 %v15943_v45, %v10564_v44  ;;  %v10549_v47 = vmul.f32 %v12100_v38, %v10533_v24  ;;  %v12103_v12 = vadd.f32 %v12102_v20, %v12101_v49  ;;  %10823 = vmatprep.mubr.bf16.mxu0 %v16297_v1 }
 0x890   : > { %v12516_v23 = vpop.eup %12515  ;;  %v10639_v35 = vmul.f32 %v10623_v57, %v10511_v11  ;;  %v10513_v24 = vmul.f32 0.5, %v15922_v25  ;;  %v10514_v20 = vmul.f32 0.5, %v15928_v2 }
 0x891   : > { %v10596_v5 = vmul.f32 0.7978846, %v10580_v37  ;;  %v10565_v61 = vmul.f32 %v12100_v38, %v10549_v47  ;;  %v10534_v50 = vmul.f32 0.044715, %v12103_v12  ;;  %v10624_v18 = vadd.f32 1.0, %v12516_v23 }
 0x893   : > { %12523 = vtanh.f32 %v10596_v5  ;;  %v10581_v51 = vadd.f32 %v12100_v38, %v10565_v61  ;;  %v10550_v42 = vmul.f32 %v12103_v12, %v10534_v50  ;;  %v10640_v33 = vmul.f32 %v10624_v18, %v10512_v43 }
 0x894   : > { %v12518_v53 = vpop.eup %12517  ;;  %v10515_v61 = vmul.f32 0.5, %v15937_v9  ;;  %v10516_v50 = vmul.f32 0.5, %v15943_v45  ;;  %v12459_v9 = vld [vmem:[#allocation14 + $0x90] ss:$8 sps:$4 sm:$0xff]   ;;  %v12464_v45 = vld [vmem:[#allocation14 + $0x84] ss:$8 sps:$4 sm:$0xff]  }
 0x895   : > { %v10597_v14 = vmul.f32 0.7978846, %v10581_v51  ;;  %v10566_v49 = vmul.f32 %v12103_v12, %v10550_v42  ;;  %v10651_v16 = vpack.c.bf16 %v10640_v33, %v10639_v35  ;;  %v10625_v52 = vadd.f32 1.0, %v12518_v53 }
 0x896   : > { %v10517_v53 = vmul.f32 0.5, %v12100_v38 }
 0x897   : > { %12525 = vtanh.f32 %v10597_v14  ;;  %v10582_v58 = vadd.f32 %v12103_v12, %v10566_v49  ;;  %10824 = vmatmul.mubr.bf16.gmra.mxu0 %v10651_v16  ;;  %v10641_v37 = vmul.f32 %v10625_v52, %v10513_v24  ;;  %v10518_v14 = vmul.f32 0.5, %v12103_v12 }
 0x898   : > { %v12520_v44 = vpop.eup %12519  ;;  %10833 = vmatprep.mubr.bf16.mxu0 %v16297_v1 }
 0x899   : > { %v10598_v19 = vmul.f32 0.7978846, %v10582_v58  ;;  %v10626_v57 = vadd.f32 1.0, %v12520_v44  ;;  %v12461_v44 = vld [vmem:[#allocation14 + $0x94] ss:$8 sps:$4 sm:$0xff]  }
 0x89a   : > { %11144 = vmatprep.subr.bf16.mxu1 %v12461_v44 }
 0x89b   : > { %12527 = vtanh.f32 %v10598_v19  ;;  %v10642_v47 = vmul.f32 %v10626_v57, %v10514_v20  ;;  %11145 = vmatpush2.bf16.msra.mxu1 %v12459_v9  ;;  %v12462_v19 = vld [vmem:[#allocation14 + $0x80] ss:$8 sps:$4 sm:$0xff]  }
 0x89c   : > { %v12522_v23 = vpop.eup %12521  ;;  %11146 = vmatprep.subr.bf16.mxu1 %v12464_v45 }
 0x89d   : > { %v10652_v11 = vpack.c.bf16 %v10642_v47, %v10641_v37  ;;  %v10627_v43 = vadd.f32 1.0, %v12522_v23 }
 0x89f   : > { %10834 = vmatmul.mubr.bf16.gmra.mxu0 %v10652_v11  ;;  %v10643_v35 = vmul.f32 %v10627_v43, %v10515_v61  ;;  %11147 = vmatpush2.bf16.msra.mxu1 %v12462_v19 }
 0x8a0   : > { %v12524_v5 = vpop.eup %12523  ;;  %10843 = vmatprep.mubr.bf16.mxu0 %v16297_v1 }
 0x8a1   : > { %v10628_v18 = vadd.f32 1.0, %v12524_v5 }
 0x8a3   : > { %v10644_v25 = vmul.f32 %v10628_v18, %v10516_v50 }
 0x8a4   : > { %v12526_v51 = vpop.eup %12525 }
 0x8a5   : > { %v10653_v2 = vpack.c.bf16 %v10644_v25, %v10643_v35  ;;  %v10629_v42 = vadd.f32 1.0, %v12526_v51 }
 0x8a7   : > { %10844 = vmatmul.mubr.bf16.gmra.mxu0 %v10653_v2  ;;  %v10645_v16 = vmul.f32 %v10629_v42, %v10517_v53 }
 0x8a8   : > { %v12528_v33 = vpop.eup %12527  ;;  %10853 = vmatprep.mubr.bf16.mxu0 %v16297_v1 }
 0x8a9   : > { %v10630_v49 = vadd.f32 1.0, %v12528_v33 }
 0x8ab   : > { %v10646_v58 = vmul.f32 %v10630_v49, %v10518_v14 }
 0x8ad   : > { %v10654_v52 = vpack.c.bf16 %v10646_v58, %v10645_v16 }
 0x8af   : > { %10854 = vmatmul.mubr.bf16.gmra.mxu0 %v10654_v52 }
 0x935   : > { %v10785_v24 = vpop.f32.mrf.mxu0 }
 0x936   : > { %v10864_v47 = vmul.f32 %v10785_v24, %v15741_v36 }
 0x937   : > { %v10787_v20 = vpop.f32.mrf.mxu0 }
 0x938   : > { %v10865_v12 = vmul.f32 %v10787_v20, %v15735_v26 }
 0x939   : > { %v10789_v57 = vpop.f32.mrf.mxu0 }
 0x93a   : > { %v10866_v1 = vmul.f32 %v10789_v57, %v15732_v8 }
 0x93b   : > { %v10791_v38 = vpop.f32.mrf.mxu0 }
 0x93c   : > { %v10867_v37 = vmul.f32 %v10791_v38, %v15738_v21  ;;  %v10896_v43 = vpack.c.bf16 %v10866_v1, %v10864_v47 }
 0x93d   : > { %v10795_v23 = vpop.f32.mrf.mxu0 }
 0x93e   : > { %v10897_v11 = vpack.c.bf16 %v10867_v37, %v10865_v12  ;;  %v10868_v26 = vmul.f32 %v10795_v23, %v15757_v3 }
 0x93f   : > { %v10797_v5 = vpop.f32.mrf.mxu0 }
 0x940   : > { %11148 = vmatprep.mubr.bf16.mxu1 %v10897_v11  ;;  %v10869_v35 = vmul.f32 %v10797_v5, %v15751_v41 }
 0x941   : > { %v10799_v61 = vpop.f32.mrf.mxu0  ;;  %11149 = vmatmul.mubr.bf16.vlgmr.msra.gmra.mxu1 %v10896_v43 }
 0x942   : > { %v10870_v50 = vmul.f32 %v10799_v61, %v15748_v29 }
 0x943   : > { %v10801_v18 = vpop.f32.mrf.mxu0 }
 0x944   : > { %v10871_v8 = vmul.f32 %v10801_v18, %v15754_v55  ;;  %v10898_v51 = vpack.c.bf16 %v10870_v50, %v10868_v26 }
 0x946   : > { %v10899_v25 = vpack.c.bf16 %v10871_v8, %v10869_v35  ;;  %v10805_v21 = vpop.f32.mrf.mxu0 }
 0x947   : > { %v10872_v41 = vmul.f32 %v10805_v21, %v15773_v34 }
 0x948   : > { %v10807_v36 = vpop.f32.mrf.mxu0  ;;  %11158 = vmatprep.mubr.bf16.mxu1 %v10899_v25 }
 0x949   : > { %11159 = vmatmul.mubr.bf16.gmra.mxu1 %v10898_v51  ;;  %v10873_v53 = vmul.f32 %v10807_v36, %v15767_v0  ;;  %v10944_v36 = vld [vmem:[%s16519_s22] sm:$0x3] }
 0x94a   : > { %v10809_v2 = vpop.f32.mrf.mxu0 }
 0x94b   : > { %v10874_v42 = vmul.f32 %v10809_v2, %v15764_v17  ;;  %v16000_v2 = vrot.slane %v10944_v36, %v16518_v56  ;;  %v12552_v56 = vld [vmem:[%s13304_s5 + $0x8] sm:$0xff] }
 0x94c   : > { %v10811_v33 = vpop.f32.mrf.mxu0 }
 0x94d   : > { %v10875_v29 = vmul.f32 %v10811_v33, %v15770_v7  ;;  %v10900_v49 = vpack.c.bf16 %v10874_v42, %v10872_v41  ;;  %v12551_v33 = vld [vmem:[%s13304_s5] sm:$0xff] }
 0x94e   : > { %v10815_v14 = vpop.f32.mrf.mxu0 }
 0x94f   : > { %v10901_v55 = vpack.c.bf16 %v10875_v29, %v10873_v53  ;;  %v10876_v0 = vmul.f32 %v10815_v14, %v15789_v63 }
 0x950   : > { %v10817_v3 = vpop.f32.mrf.mxu0 }
 0x951   : > { %11168 = vmatprep.mubr.bf16.mxu1 %v10901_v55  ;;  %v10877_v9 = vmul.f32 %v10817_v3, %v15783_v59  ;;  %v12553_v3 = vld [vmem:[%s13304_s5 + $0x10] sm:$0xff] }
 0x952   : > { %v10819_v16 = vpop.f32.mrf.mxu0  ;;  %11169 = vmatmul.mubr.bf16.gmra.mxu1 %v10900_v49 }
 0x953   : > { %v10878_v58 = vmul.f32 %v10819_v16, %v15780_v62 }
 0x954   : > { %v10821_v52 = vpop.f32.mrf.mxu0 }
 0x955   : > { %v10879_v17 = vmul.f32 %v10821_v52, %v15786_v54  ;;  %v10902_v45 = vpack.c.bf16 %v10878_v58, %v10876_v0 }
 0x957   : > { %v10825_v44 = vpop.f32.mrf.mxu0  ;;  %v10903_v7 = vpack.c.bf16 %v10879_v17, %v10877_v9  ;;  %v12554_v9 = vld [vmem:[%s13304_s5 + $0x18] sm:$0xff] }
 0x958   : > { %v10880_v59 = vmul.f32 %v10825_v44, %v15805_v46 }
 0x959   : > { %v10827_v34 = vpop.f32.mrf.mxu0  ;;  %11178 = vmatprep.mubr.bf16.mxu1 %v10903_v7  ;;  %v12555_v7 = vld [vmem:[%s13304_s5 + $0x20] sm:$0xff] }
 0x95a   : > { %11179 = vmatmul.mubr.bf16.gmra.mxu1 %v10902_v45  ;;  %v10881_v57 = vmul.f32 %v10827_v34, %v15799_v60 }
 0x95b   : > { %v10829_v19 = vpop.f32.mrf.mxu0 }
 0x95c   : > { %v10882_v24 = vmul.f32 %v10829_v19, %v15796_v13 }
 0x95d   : > { %v10831_v20 = vpop.f32.mrf.mxu0 }
 0x95e   : > { %v10883_v62 = vmul.f32 %v10831_v20, %v15802_v27  ;;  %v10904_v38 = vpack.c.bf16 %v10882_v24, %v10880_v59  ;;  %v12556_v24 = vld [vmem:[%s13304_s5 + $0x28] sm:$0xff]  ;;  %v12557_v59 = vld [vmem:[%s13304_s5 + $0x30] sm:$0xff] }
 0x95f   : > { %v10835_v1 = vpop.f32.mrf.mxu0 }
 0x960   : > { %v10905_v54 = vpack.c.bf16 %v10883_v62, %v10881_v57  ;;  %v10884_v60 = vmul.f32 %v10835_v1, %v15821_v28 }
 0x961   : > { %v10837_v63 = vpop.f32.mrf.mxu0 }
 0x962   : > { %11188 = vmatprep.mubr.bf16.mxu1 %v10905_v54  ;;  %v10885_v23 = vmul.f32 %v10837_v63, %v15815_v22 }
 0x963   : > { %v10839_v12 = vpop.f32.mrf.mxu0  ;;  %11189 = vmatmul.mubr.bf16.gmra.mxu1 %v10904_v38  ;;  %v12558_v38 = vld [vmem:[%s13304_s5 + $0x38] sm:$0xff] }
 0x964   : > { %v10886_v37 = vmul.f32 %v10839_v12, %v15812_v30 }
 0x965   : > { %v10841_v47 = vpop.f32.mrf.mxu0 }
 0x966   : > { %v10887_v13 = vmul.f32 %v10841_v47, %v15818_v10  ;;  %v10906_v43 = vpack.c.bf16 %v10886_v37, %v10884_v60 }
 0x967   : > { %v10845_v11 = vpop.f32.mrf.mxu0 }
 0x968   : > { %v10907_v27 = vpack.c.bf16 %v10887_v13, %v10885_v23  ;;  %v10888_v22 = vmul.f32 %v10845_v11, %v15837_v48  ;;  %v12559_v23 = vld [vmem:[%s13304_s5 + $0x40] sm:$0xff] }
 0x969   : > { %v10847_v46 = vpop.f32.mrf.mxu0 }
 0x96a   : > { %11198 = vmatprep.mubr.bf16.mxu1 %v10907_v27  ;;  %v10889_v18 = vmul.f32 %v10847_v46, %v15831_v31  ;;  %v12560_v27 = vld [vmem:[%s13304_s5 + $0x48] sm:$0xff] }
 0x96b   : > { %v10849_v5 = vpop.f32.mrf.mxu0  ;;  %11199 = vmatmul.mubr.bf16.gmra.mxu1 %v10906_v43 }
 0x96c   : > { %v10890_v61 = vmul.f32 %v10849_v5, %v15828_v4 }
 0x96d   : > { %v10851_v50 = vpop.f32.mrf.mxu0 }
 0x96e   : > { %v10891_v30 = vmul.f32 %v10851_v50, %v15834_v6  ;;  %v10908_v8 = vpack.c.bf16 %v10890_v61, %v10888_v22  ;;  %v12561_v61 = vld [vmem:[%s13304_s5 + $0x50] sm:$0xff]  ;;  %v12562_v22 = vld [vmem:[%s13304_s5 + $0x58] sm:$0xff] }
 0x96f   : > { %v10855_v35 = vpop.f32.mrf.mxu0 }
 0x970   : > { %v10909_v10 = vpack.c.bf16 %v10891_v30, %v10889_v18  ;;  %v10892_v31 = vmul.f32 %v10855_v35, %v15853_v32 }
 0x971   : > { %v10857_v28 = vpop.f32.mrf.mxu0 }
 0x972   : > { %11208 = vmatprep.mubr.bf16.mxu1 %v10909_v10  ;;  %v10893_v4 = vmul.f32 %v10857_v28, %v15847_v15  ;;  %v12563_v28 = vld [vmem:[%s13304_s5 + $0x60] sm:$0xff] }
 0x973   : > { %v10859_v26 = vpop.f32.mrf.mxu0  ;;  %11209 = vmatmul.mubr.bf16.gmra.mxu1 %v10908_v8 }
 0x974   : > { %v10894_v25 = vmul.f32 %v10859_v26, %v15844_v40  ;;  %v16520_v40 = vld [vmem:[#allocation25_spill] sm:$0xff] }
 0x975   : > { %v10861_v21 = vpop.f32.mrf.mxu0  ;;  %v16003_v15 = vrot.slane %v10944_v36, %v16520_v40 }
 0x976   : > { %v10895_v51 = vmul.f32 %v10861_v21, %v15850_v39  ;;  %v10910_v48 = vpack.c.bf16 %v10894_v25, %v10892_v31 }
 0x978   : > { %v10911_v6 = vpack.c.bf16 %v10895_v51, %v10893_v4  ;;  %v12564_v4 = vld [vmem:[%s13304_s5 + $0x68] sm:$0xff] }
 0x97a   : > { %11218 = vmatprep.mubr.bf16.mxu1 %v10911_v6 }
 0x97b   : > { %11219 = vmatmul.mubr.bf16.gmra.mxu1 %v10910_v48  ;;  %v12565_v48 = vld [vmem:[%s13304_s5 + $0x70] sm:$0xff] }
 0xa01   : > { %v11150_v39 = vpop.f32.mrf.mxu1 }
 0xa02   : > { %v11151_v42 = vadd.f32 %v11150_v39, %v16000_v2 }
 0xa03   : > { %v11152_v32 = vpop.f32.mrf.mxu1 }
 0xa04   : > { %v11229_v53 = vadd.f32 %v12551_v33, %v11151_v42  ;;  %v11153_v29 = vadd.f32 %v11152_v32, %v16003_v15  ;;  %v12566_v42 = vld [vmem:[%s13304_s5 + $0x78] sm:$0xff] }
 0xa05   : > { %v11154_v41 = vpop.f32.mrf.mxu1 }
 0xa06   : > { %11261 = vst [vmem:[%s16010_s9] sm:$0xff] %v11229_v53  ;;  %v11230_v14 = vadd.f32 %v12552_v56, %v11153_v29  ;;  %v11155_v55 = vadd.f32 %v11154_v41, %v16000_v2  ;;  %v12567_v29 = vld [vmem:[%s13304_s5 + $0x80] sm:$0xff] }
 0xa07   : > { %v11156_v49 = vpop.f32.mrf.mxu1 }
 0xa08   : > { %11262 = vst [vmem:[%s16010_s9 + $0x8] sm:$0xff] %v11230_v14  ;;  %v11231_v16 = vadd.f32 %v12553_v3, %v11155_v55  ;;  %v11157_v58 = vadd.f32 %v11156_v49, %v16003_v15  ;;  %v12568_v55 = vld [vmem:[%s13304_s5 + $0x88] sm:$0xff] }
 0xa09   : > { %v11160_v52 = vpop.f32.mrf.mxu1 }
 0xa0a   : > { %11263 = vst [vmem:[%s16010_s9 + $0x10] sm:$0xff] %v11231_v16  ;;  %v11232_v17 = vadd.f32 %v12554_v9, %v11157_v58  ;;  %v11161_v0 = vadd.f32 %v11160_v52, %v16000_v2  ;;  %v12569_v58 = vld [vmem:[%s13304_s5 + $0x90] sm:$0xff] }
 0xa0b   : > { %v11162_v44 = vpop.f32.mrf.mxu1 }
 0xa0c   : > { %11264 = vst [vmem:[%s16010_s9 + $0x18] sm:$0xff] %v11232_v17  ;;  %v11233_v45 = vadd.f32 %v12555_v7, %v11161_v0  ;;  %v11163_v34 = vadd.f32 %v11162_v44, %v16003_v15  ;;  %v12570_v0 = vld [vmem:[%s13304_s5 + $0x98] sm:$0xff] }
 0xa0d   : > { %v11164_v19 = vpop.f32.mrf.mxu1 }
 0xa0e   : > { %11265 = vst [vmem:[%s16010_s9 + $0x20] sm:$0xff] %v11233_v45  ;;  %v11234_v20 = vadd.f32 %v12556_v24, %v11163_v34  ;;  %v11165_v57 = vadd.f32 %v11164_v19, %v16000_v2  ;;  %v12571_v34 = vld [vmem:[%s13304_s5 + $0xa0] sm:$0xff] }
 0xa0f   : > { %v11166_v62 = vpop.f32.mrf.mxu1 }
 0xa10   : > { %11266 = vst [vmem:[%s16010_s9 + $0x28] sm:$0xff] %v11234_v20  ;;  %v11235_v1 = vadd.f32 %v12557_v59, %v11165_v57  ;;  %v11167_v54 = vadd.f32 %v11166_v62, %v16003_v15  ;;  %v12572_v57 = vld [vmem:[%s13304_s5 + $0xa8] sm:$0xff] }
 0xa12   : > { %11267 = vst [vmem:[%s16010_s9 + $0x30] sm:$0xff] %v11235_v1  ;;  %v11236_v63 = vadd.f32 %v12558_v38, %v11167_v54  ;;  %v11170_v12 = vpop.f32.mrf.mxu1  ;;  %v12573_v54 = vld [vmem:[%s13304_s5 + $0xb0] sm:$0xff] }
 0xa13   : > { %v11171_v37 = vadd.f32 %v11170_v12, %v16000_v2 }
 0xa14   : > { %11268 = vst [vmem:[%s16010_s9 + $0x38] sm:$0xff] %v11236_v63  ;;  %v11172_v47 = vpop.f32.mrf.mxu1 }
 0xa15   : > { %v11237_v13 = vadd.f32 %v12559_v23, %v11171_v37  ;;  %v11173_v60 = vadd.f32 %v11172_v47, %v16003_v15  ;;  %v12574_v37 = vld [vmem:[%s13304_s5 + $0xb8] sm:$0xff] }
 0xa16   : > { %v11174_v11 = vpop.f32.mrf.mxu1 }
 0xa17   : > { %11269 = vst [vmem:[%s16010_s9 + $0x40] sm:$0xff] %v11237_v13  ;;  %v11238_v43 = vadd.f32 %v12560_v27, %v11173_v60  ;;  %v11175_v46 = vadd.f32 %v11174_v11, %v16000_v2  ;;  %v12575_v60 = vld [vmem:[%s13304_s5 + $0xc0] sm:$0xff] }
 0xa18   : > { %v11176_v5 = vpop.f32.mrf.mxu1 }
 0xa19   : > { %11270 = vst [vmem:[%s16010_s9 + $0x48] sm:$0xff] %v11238_v43  ;;  %v11239_v50 = vadd.f32 %v12561_v61, %v11175_v46  ;;  %v11177_v18 = vadd.f32 %v11176_v5, %v16003_v15  ;;  %v12576_v46 = vld [vmem:[%s13304_s5 + $0xc8] sm:$0xff] }
 0xa1a   : > { %v11180_v30 = vpop.f32.mrf.mxu1 }
 0xa1b   : > { %11271 = vst [vmem:[%s16010_s9 + $0x50] sm:$0xff] %v11239_v50  ;;  %v11240_v35 = vadd.f32 %v12562_v22, %v11177_v18  ;;  %v11181_v10 = vadd.f32 %v11180_v30, %v16000_v2  ;;  %v12577_v18 = vld [vmem:[%s13304_s5 + $0xd0] sm:$0xff] }
 0xa1c   : > { %v11182_v8 = vpop.f32.mrf.mxu1 }
 0xa1d   : > { %11272 = vst [vmem:[%s16010_s9 + $0x58] sm:$0xff] %v11240_v35  ;;  %v11241_v26 = vadd.f32 %v12563_v28, %v11181_v10  ;;  %v11183_v25 = vadd.f32 %v11182_v8, %v16003_v15  ;;  %v12578_v10 = vld [vmem:[%s13304_s5 + $0xd8] sm:$0xff] }
 0xa1e   : > { %v11184_v21 = vpop.f32.mrf.mxu1 }
 0xa1f   : > { %11273 = vst [vmem:[%s16010_s9 + $0x60] sm:$0xff] %v11241_v26  ;;  %v11242_v51 = vadd.f32 %v12564_v4, %v11183_v25  ;;  %v11185_v31 = vadd.f32 %v11184_v21, %v16000_v2  ;;  %v12579_v25 = vld [vmem:[%s13304_s5 + $0xe0] sm:$0xff] }
 0xa20   : > { %v11186_v6 = vpop.f32.mrf.mxu1 }
 0xa21   : > { %11274 = vst [vmem:[%s16010_s9 + $0x68] sm:$0xff] %v11242_v51  ;;  %v11243_v36 = vadd.f32 %v12565_v48, %v11185_v31  ;;  %v11187_v40 = vadd.f32 %v11186_v6, %v16003_v15  ;;  %v12580_v31 = vld [vmem:[%s13304_s5 + $0xe8] sm:$0xff] }
 0xa23   : > { %v11190_v39 = vpop.f32.mrf.mxu1  ;;  %11275 = vst [vmem:[%s16010_s9 + $0x70] sm:$0xff] %v11243_v36  ;;  %v11244_v32 = vadd.f32 %v12566_v42, %v11187_v40  ;;  %v12581_v40 = vld [vmem:[%s13304_s5 + $0xf0] sm:$0xff] }
 0xa24   : > { %v11191_v33 = vadd.f32 %v11190_v39, %v16000_v2 }
 0xa25   : > { %v11192_v53 = vpop.f32.mrf.mxu1  ;;  %11276 = vst [vmem:[%s16010_s9 + $0x78] sm:$0xff] %v11244_v32 }
 0xa26   : > { %v11245_v41 = vadd.f32 %v12567_v29, %v11191_v33  ;;  %v11193_v56 = vadd.f32 %v11192_v53, %v16003_v15 }
 0xa27   : > { %v11194_v14 = vpop.f32.mrf.mxu1 }
 0xa28   : > { %11277 = vst [vmem:[%s16010_s9 + $0x80] sm:$0xff] %v11245_v41  ;;  %v11246_v49 = vadd.f32 %v12568_v55, %v11193_v56  ;;  %v11195_v3 = vadd.f32 %v11194_v14, %v16000_v2 }
 0xa29   : > { %v11196_v16 = vpop.f32.mrf.mxu1 }
 0xa2a   : > { %11278 = vst [vmem:[%s16010_s9 + $0x88] sm:$0xff] %v11246_v49  ;;  %v11247_v52 = vadd.f32 %v12569_v58, %v11195_v3  ;;  %v11197_v9 = vadd.f32 %v11196_v16, %v16003_v15 }
 0xa2b   : > { %v11200_v17 = vpop.f32.mrf.mxu1 }
 0xa2c   : > { %11279 = vst [vmem:[%s16010_s9 + $0x90] sm:$0xff] %v11247_v52  ;;  %v11248_v44 = vadd.f32 %v12570_v0, %v11197_v9  ;;  %v11201_v7 = vadd.f32 %v11200_v17, %v16000_v2 }
 0xa2d   : > { %v11202_v45 = vpop.f32.mrf.mxu1 }
 0xa2e   : > { %11280 = vst [vmem:[%s16010_s9 + $0x98] sm:$0xff] %v11248_v44  ;;  %v11249_v19 = vadd.f32 %v12571_v34, %v11201_v7  ;;  %v11203_v24 = vadd.f32 %v11202_v45, %v16003_v15 }
 0xa2f   : > { %v11204_v20 = vpop.f32.mrf.mxu1 }
 0xa30   : > { %11281 = vst [vmem:[%s16010_s9 + $0xa0] sm:$0xff] %v11249_v19  ;;  %v11250_v62 = vadd.f32 %v12572_v57, %v11203_v24  ;;  %v11205_v59 = vadd.f32 %v11204_v20, %v16000_v2 }
 0xa31   : > { %v11206_v1 = vpop.f32.mrf.mxu1 }
 0xa32   : > { %11282 = vst [vmem:[%s16010_s9 + $0xa8] sm:$0xff] %v11250_v62  ;;  %v11251_v38 = vadd.f32 %v12573_v54, %v11205_v59  ;;  %v11207_v63 = vadd.f32 %v11206_v1, %v16003_v15 }
 0xa33   : > { %v11210_v12 = vpop.f32.mrf.mxu1 }
 0xa34   : > { %11283 = vst [vmem:[%s16010_s9 + $0xb0] sm:$0xff] %v11251_v38  ;;  %v11252_v47 = vadd.f32 %v12574_v37, %v11207_v63  ;;  %v11211_v23 = vadd.f32 %v11210_v12, %v16000_v2 }
 0xa35   : > { %v11212_v13 = vpop.f32.mrf.mxu1 }
 0xa36   : > { %11284 = vst [vmem:[%s16010_s9 + $0xb8] sm:$0xff] %v11252_v47  ;;  %v11253_v11 = vadd.f32 %v12575_v60, %v11211_v23  ;;  %v11213_v27 = vadd.f32 %v11212_v13, %v16003_v15 }
 0xa37   : > { %v11214_v43 = vpop.f32.mrf.mxu1 }
 0xa38   : > { %11285 = vst [vmem:[%s16010_s9 + $0xc0] sm:$0xff] %v11253_v11  ;;  %v11254_v5 = vadd.f32 %v12576_v46, %v11213_v27  ;;  %v11215_v61 = vadd.f32 %v11214_v43, %v16000_v2 }
 0xa39   : > { %v11216_v50 = vpop.f32.mrf.mxu1 }
 0xa3a   : > { %11286 = vst [vmem:[%s16010_s9 + $0xc8] sm:$0xff] %v11254_v5  ;;  %v11255_v30 = vadd.f32 %v12577_v18, %v11215_v61  ;;  %v11217_v22 = vadd.f32 %v11216_v50, %v16003_v15 }
 0xa3b   : > { %v11220_v35 = vpop.f32.mrf.mxu1 }
 0xa3c   : > { %11287 = vst [vmem:[%s16010_s9 + $0xd0] sm:$0xff] %v11255_v30  ;;  %v11256_v8 = vadd.f32 %v12578_v10, %v11217_v22  ;;  %v11221_v28 = vadd.f32 %v11220_v35, %v16000_v2 }
 0xa3d   : > { %v11222_v26 = vpop.f32.mrf.mxu1 }
 0xa3e   : > { %11288 = vst [vmem:[%s16010_s9 + $0xd8] sm:$0xff] %v11256_v8  ;;  %v11257_v21 = vadd.f32 %v12579_v25, %v11221_v28  ;;  %v11223_v4 = vadd.f32 %v11222_v26, %v16003_v15 }
 0xa3f   : > { %v11224_v51 = vpop.f32.mrf.mxu1 }
 0xa40   : > { %11289 = vst [vmem:[%s16010_s9 + $0xe0] sm:$0xff] %v11257_v21  ;;  %v11258_v6 = vadd.f32 %v12580_v31, %v11223_v4  ;;  %v11225_v48 = vadd.f32 %v11224_v51, %v16000_v2  ;;  %v12582_v2 = vld [vmem:[%s13304_s5 + $0xf8] sm:$0xff] }
 0xa41   : > { %v11226_v36 = vpop.f32.mrf.mxu1 }
 0xa42   : > { %11290 = vst [vmem:[%s16010_s9 + $0xe8] sm:$0xff] %v11258_v6  ;;  %v11259_v39 = vadd.f32 %v12581_v40, %v11225_v48  ;;  %v11227_v42 = vadd.f32 %v11226_v36, %v16003_v15 }
 0xa44   : > { %11291 = vst [vmem:[%s16010_s9 + $0xf0] sm:$0xff] %v11259_v39  ;;  %v11260_v32 = vadd.f32 %v12582_v2, %v11227_v42 }
 0xa46   : > { %11292 = vst [vmem:[%s16010_s9 + $0xf8] sm:$0xff] %v11260_v32 }
 0xa47   : > { %12806 = shalt.err (!%p12803_p4)
}
 0xa48   : > { %s12807_s5 = scalar_lea.hbm %s16107_s6, 4096  ;;  %s12811_s9 = scalar_lea.hbm %s16521_s4, 8192 }
 0xa49   : > { %p12808_p8 = scmp.ne.s32.totalorder %s16107_s6, %s12807_s5  ;;  %p12812_p12 = scmp.lt.s32.totalorder %s16107_s6, %s16521_s4 }
 0xa4a   : > { %p12813_p0 = scmp.lt.s32.totalorder %s12811_s9, %s12807_s5 }
 0xa4b   : > { %p12809_p9 = pnand %p12808_p8, %p16522_p7 }
 0xa4c   : > { %p12814_p13 = por %p12813_p0, %p12812_p12 }
 0xa4d   : > { %p12810_p11 = pneg %p12809_p9 }
 0xa4f   : > { %p12815_p2 = pnand %p12814_p13, %p12810_p11 }
 0xa51   : > { %12818 = shalt.err (!%p12815_p2)
}
 0xa52   : > { %s13021_s2 = smov 256   ;;  %s13022_s25 = smov 16  }
 0xa53   : > { %12134 = dma.vmem_to_hbm [thread:$0]  (%p16522_p7), %s16109_s29, 4096, %s16107_s6, %s11294_s24, %s13021_s2, %s13021_s2, %s13022_s25  }
 0xa54 PF: > { %s11323_s27 = sand.u32 1, %s12989_s18   ;;  %p16523_p10 = scmp.ne.s32.totalorder %s16253_s23, 0 }
 0xa55   : > { %p16524_p1 = scmp.ge.s32.totalorder %s13001_s21, 2  ;;  %s11324_s16 = scalar_lea.sflag [#allocation4], %s11323_s27 }
 0xa57   : > { %p12163_p3 = pnand %p16524_p1, %p16523_p10 }
 0xa59   : > { %p12164_p6 = pneg %p12163_p3 }
 0xa5b   : > { %12856 = dma.done.wait (%p12164_p6), %s11324_s16, 4096  }
 0xa5c   : > { %12858 = vsyncadd (%p12164_p6), %s11324_s16, 4294963200  ;;  %p32_p5 = scmp.ge.s32.totalorder %s13223_s26, 4   ;;  %s16525_s18 = smov %s12993_s19 }
 0xa5d   : > { %s16526_s19 = smov %s12997_s20  ;;  %s16527_s20 = smov %s13234_s8 }
 0xa5e   : > { %s16528_s21 = smov %s13223_s26  ;;  %34 = sbr.rel (!%p32_p5) target bundleno = 19 (0x13), region = 156 }
 0xa63   :  { %11329 = vsyncpa [#allocation3], 1 }
 0xa64   :  { %11331 = vsyncpa [#allocation3 + $0x1], 1 }
 0xa65   :  { %11332 = vsyncpa [#allocation6], 1 }
 0xa66   :  { %11333 = vsyncpa [#allocation9], 1 }
 0xa67   :  { %11334 = vsyncpa [#allocation12], 1 }
 0xa68   :  { %11335 = vsyncpa [#allocation15], 1 }
 0xa69   :  { %11336 = vsyncpa [#allocation4], 1 }
 0xa6a   :  { %11338 = vsyncpa [#allocation4 + $0x1], 1 }

</bundles_post_ra>
